<compile_context>
chip_gen: v7x
topology: tpu7x:2x2x1
jax: 0.10.0
libtpu: 0.0.40
codegen_flags: <defaults>
</compile_context>

<pallas_src>
import math

import numpy as np
import jax
import jax.numpy as jnp
from jax.experimental import pallas as pl
from jax.experimental.pallas import tpu as pltpu

COLORS = 1
LEAKY_RELU_SLOPE = 0.2

# (cin, cout, leaky_after, upsample_after) — mirrors the PyTorch Decoder.
_LAYER_CHANNELS = (
    (2, 4, True, False),
    (4, 4, True, True),
    (4, 8, True, False),
    (8, 8, True, True),
    (8, 16, True, False),
    (16, 16, True, True),
    (16, 16, True, False),
    (16, COLORS, False, False),
)


def _layer_plan(h0, w0):
    """Static per-layer metadata: (cin, cout, h, w, leaky, upsample_after)."""
    plan = []
    h, w = h0, w0
    for cin, cout, leaky, ups in _LAYER_CHANNELS:
        assert w & (w - 1) == 0 and h & (h - 1) == 0, "spatial dims must be pow2"
        plan.append((cin, cout, h, w, leaky, ups))
        if ups:
            h, w = 2 * h, 2 * w
    return tuple(plan)


def _upsample_matrix(h, w):
    """(h*w, 4*h*w) 0/1 matrix: flat nearest-neighbor 2x upsample as a matmul."""
    oh, ow = 2 * h, 2 * w
    q_out = np.arange(oh * ow)
    y_out, x_out = q_out // ow, q_out % ow
    src = (y_out // 2) * w + (x_out // 2)
    u = np.zeros((h * w, oh * ow), np.float32)
    u[src, q_out] = 1.0
    return jnp.asarray(u)


def _make_decoder_kernel(plan):
    nl = len(plan)
    n_up = sum(1 for p in plan if p[5])

    def kernel(*args):
        x_ref = args[0]
        wb_refs = args[1:1 + 2 * nl]                       # w0,b0, ..., w7,b7
        up_refs = args[1 + 2 * nl:1 + 2 * nl + n_up]       # 3 upsample matrices
        o_ref = args[1 + 2 * nl + n_up]
        pad_ref = args[1 + 2 * nl + n_up + 1]              # (Cmax, Lmax) VMEM
        patch_ref = args[1 + 2 * nl + n_up + 2]            # (9*Cmax, HWmax) VMEM

        act = x_ref[0]                                     # (C0, H0*W0) lane-dense
        up_i = 0
        for li, (cin, cout, h, w, leaky, ups) in enumerate(plan):
            hw = h * w
            padl = w + 1                     # zero pad on each side of flat row
            ltot = hw + 2 * padl
            w_ref = wb_refs[2 * li]          # (cout, 9*cin)
            b_ref = wb_refs[2 * li + 1]      # (cout, 1)

            # ---- zero padding, entirely in VMEM --------------------------
            pad_ref[:cin, :ltot] = jnp.zeros((cin, ltot), jnp.float32)
            pad_ref[:cin, padl:padl + hw] = act

            # column-validity masks for horizontal tap offsets (x wrap-around)
            col = jax.lax.broadcasted_iota(jnp.int32, (cin, hw), 1) & (w - 1)
            left_ok = col >= 1               # tap offset ox == -1
            right_ok = col <= w - 2          # tap offset ox == +1

            # ---- im2col: 9 shifted slices -> (9*cin, hw) patch matrix ----
            t = 0
            for oy in (-1, 0, 1):
                for ox in (-1, 0, 1):
                    d = oy * w + ox
                    tap = pad_ref[:cin, padl + d:padl + d + hw]
                    if ox == -1:
                        tap = jnp.where(left_ok, tap, 0.0)
                    elif ox == 1:
                        tap = jnp.where(right_ok, tap, 0.0)
                    patch_ref[t * cin:(t + 1) * cin, :hw] = tap
                    t += 1
            patches = patch_ref[:9 * cin, :hw]              # (9*cin, hw)

            # ---- one MXU matmul per conv + bias + LeakyReLU --------------
            y = jnp.dot(w_ref[...], patches,
                        preferred_element_type=jnp.float32)  # (cout, hw)
            y = y + b_ref[...]
            if leaky:
                y = jnp.where(y >= 0, y, LEAKY_RELU_SLOPE * y)

            # ---- fused nearest-neighbor 2x upsample (0/1 matmul) ---------
            if ups:
                y = jnp.dot(y, up_refs[up_i][...],
                            preferred_element_type=jnp.float32)  # (cout, 4*hw)
                up_i += 1
            act = y

        o_ref[0] = act                       # (COLORS, Hout*Wout), lane-dense

    return kernel


@jax.jit
def decoder_forward(x_nchw, params_flat):
    """x_nchw: (B, 2, H, W) f32 -> (B, COLORS, 8H, 8W) f32 (PyTorch NCHW)."""
    B, c0, h0, w0 = x_nchw.shape
    plan = _layer_plan(h0, w0)
    assert c0 == plan[0][0]

    ws = params_flat[0::2]                   # each (3, 3, cin, cout)
    bs = params_flat[1::2]                   # each (cout,)

    # Kernel-side layouts: weight -> (cout, 9*cin), bias -> (cout, 1).
    w_mats, b_cols = [], []
    for wk, bk, (cin, cout, _h, _w, _lk, _up) in zip(ws, bs, plan):
        w_mats.append(jnp.transpose(wk, (3, 0, 1, 2)).reshape(cout, 9 * cin))
        b_cols.append(bk.reshape(cout, 1))

    # Constant nearest-neighbor 2x upsample matrices (baked at trace time).
    u_mats = [_upsample_matrix(h, w) for (_c, _o, h, w, _lk, ups) in plan if ups]

    h_out, w_out = plan[-1][2], plan[-1][3]
    hw_out = h_out * w_out
    x_flat = x_nchw.reshape(B, c0, h0 * w0)

    max_cin = max(p[0] for p in plan)
    max_hw = max(p[2] * p[3] for p in plan)
    max_ltot = max(p[2] * p[3] + 2 * (p[3] + 1) for p in plan)

    in_specs = [pl.BlockSpec((1, c0, h0 * w0), lambda i: (i, 0, 0))]
    operands = [x_flat]
    for wm, bc in zip(w_mats, b_cols):
        in_specs.append(pl.BlockSpec(wm.shape, lambda i: (0, 0)))
        operands.append(wm)
        in_specs.append(pl.BlockSpec(bc.shape, lambda i: (0, 0)))
        operands.append(bc)
    for um in u_mats:
        in_specs.append(pl.BlockSpec(um.shape, lambda i: (0, 0)))
        operands.append(um)

    out = pl.pallas_call(
        _make_decoder_kernel(plan),
        out_shape=jax.ShapeDtypeStruct((B, COLORS, hw_out), jnp.float32),
        grid_spec=pltpu.PrefetchScalarGridSpec(
            num_scalar_prefetch=0,
            grid=(B,),
            in_specs=in_specs,
            out_specs=pl.BlockSpec((1, COLORS, hw_out), lambda i: (i, 0, 0)),
            scratch_shapes=[
                pltpu.VMEM((max_cin, max_ltot), jnp.float32),      # padded rows
                pltpu.VMEM((9 * max_cin, max_hw), jnp.float32),    # im2col patches
            ],
        ),
        compiler_params=pltpu.CompilerParams(
            dimension_semantics=("parallel",)),
    )(*operands)

    return out.reshape(B, COLORS, h_out, w_out)


def init_decoder_params(key):
    """Deterministic init (PyTorch-like uniform); weights in (3,3,cin,cout)."""
    keys = jax.random.split(key, len(_LAYER_CHANNELS))
    flat = []
    for k, (cin, cout, _leaky, _ups) in zip(keys, _LAYER_CHANNELS):
        kw, kb = jax.random.split(k)
        bound = 1.0 / math.sqrt(cin * 9)
        w = jax.random.uniform(kw, (3, 3, cin, cout), jnp.float32, -bound, bound)
        b = jax.random.uniform(kb, (cout,), jnp.float32, -bound, bound)
        flat.extend([w, b])
    return tuple(flat)


@jax.jit
def reference_forward(x_nchw, params_flat):
    """Pure-JAX (XLA) reference matching the PyTorch Decoder forward."""
    plan = _layer_plan(x_nchw.shape[2], x_nchw.shape[3])
    ws = params_flat[0::2]
    bs = params_flat[1::2]
    x = x_nchw
    for wk, bk, (_cin, cout, _h, _w, leaky, ups) in zip(ws, bs, plan):
        w_oihw = jnp.transpose(wk, (3, 2, 0, 1))
        x = jax.lax.conv_general_dilated(
            x, w_oihw, window_strides=(1, 1), padding=((1, 1), (1, 1)),
            dimension_numbers=("NCHW", "OIHW", "NCHW"),
            precision=jax.lax.Precision.HIGHEST)
        x = x + bk.reshape(1, cout, 1, 1)
        if leaky:
            x = jnp.where(x >= 0, x, LEAKY_RELU_SLOPE * x)
        if ups:
            x = jnp.repeat(jnp.repeat(x, 2, axis=2), 2, axis=3)
    return x


if __name__ == "__main__":
    key = jax.random.PRNGKey(0)
    k_params, k_x = jax.random.split(key)

    params_flat = init_decoder_params(k_params)

    # small latent consistent with the Decoder's first conv (2 input channels)
    B, Cin, H, W = 2, 2, 4, 4
    x = jax.random.normal(k_x, (B, Cin, H, W), jnp.float32)

    out = decoder_forward(x, params_flat)
    out = jax.block_until_ready(out)

    expected_shape = (B, COLORS, H * 8, W * 8)
    assert out.shape == expected_shape, (out.shape, expected_shape)
    assert out.dtype == jnp.float32

    ref = jax.block_until_ready(reference_forward(x, params_flat))
    max_err = float(np.max(np.abs(np.asarray(out) - np.asarray(ref))))
    assert np.allclose(np.asarray(out), np.asarray(ref), atol=2e-3, rtol=2e-3), max_err

    print("KERNEL_OK")
</pallas_src>

<mosaic_0001>
module attributes {stable_mosaic.version = 11 : i64} {
  func.func @kernel(%arg0: i32, %arg1: memref<1x2x16xf32, #tpu.memory_space<vmem>>, %arg2: memref<4x18xf32, #tpu.memory_space<vmem>>, %arg3: memref<4x1xf32, #tpu.memory_space<vmem>>, %arg4: memref<4x36xf32, #tpu.memory_space<vmem>>, %arg5: memref<4x1xf32, #tpu.memory_space<vmem>>, %arg6: memref<8x36xf32, #tpu.memory_space<vmem>>, %arg7: memref<8x1xf32, #tpu.memory_space<vmem>>, %arg8: memref<8x72xf32, #tpu.memory_space<vmem>>, %arg9: memref<8x1xf32, #tpu.memory_space<vmem>>, %arg10: memref<16x72xf32, #tpu.memory_space<vmem>>, %arg11: memref<16x1xf32, #tpu.memory_space<vmem>>, %arg12: memref<16x144xf32, #tpu.memory_space<vmem>>, %arg13: memref<16x1xf32, #tpu.memory_space<vmem>>, %arg14: memref<16x144xf32, #tpu.memory_space<vmem>>, %arg15: memref<16x1xf32, #tpu.memory_space<vmem>>, %arg16: memref<1x144xf32, #tpu.memory_space<vmem>>, %arg17: memref<1x1xf32, #tpu.memory_space<vmem>>, %arg18: memref<16x64xf32, #tpu.memory_space<vmem>>, %arg19: memref<64x256xf32, #tpu.memory_space<vmem>>, %arg20: memref<256x1024xf32, #tpu.memory_space<vmem>>, %arg21: memref<1x1x1024xf32, #tpu.memory_space<vmem>>, %arg22: memref<16x1090xf32, #tpu.memory_space<vmem>>, %arg23: memref<144x1024xf32, #tpu.memory_space<vmem>>) attributes {dimension_semantics = [#tpu.dimension_semantics<parallel>], iteration_bounds = array<i64: 2>, scalar_prefetch = 0 : i64, scratch_operands = 2 : i64, tpu.core_type = #tpu.core_type<tc>, window_params = [{transform_indices = @transform_0, window_bounds = array<i64: 1, 2, 16>}, {pipeline_mode = #tpu.pipeline_mode<synchronous>, transform_indices = @transform_1, window_bounds = array<i64: 4, 18>}, {pipeline_mode = #tpu.pipeline_mode<synchronous>, transform_indices = @transform_2, window_bounds = array<i64: 4, 1>}, {pipeline_mode = #tpu.pipeline_mode<synchronous>, transform_indices = @transform_3, window_bounds = array<i64: 4, 36>}, {pipeline_mode = #tpu.pipeline_mode<synchronous>, transform_indices = @transform_4, window_bounds = array<i64: 4, 1>}, {pipeline_mode = #tpu.pipeline_mode<synchronous>, transform_indices = @transform_5, window_bounds = array<i64: 8, 36>}, {pipeline_mode = #tpu.pipeline_mode<synchronous>, transform_indices = @transform_6, window_bounds = array<i64: 8, 1>}, {pipeline_mode = #tpu.pipeline_mode<synchronous>, transform_indices = @transform_7, window_bounds = array<i64: 8, 72>}, {pipeline_mode = #tpu.pipeline_mode<synchronous>, transform_indices = @transform_8, window_bounds = array<i64: 8, 1>}, {pipeline_mode = #tpu.pipeline_mode<synchronous>, transform_indices = @transform_9, window_bounds = array<i64: 16, 72>}, {pipeline_mode = #tpu.pipeline_mode<synchronous>, transform_indices = @transform_10, window_bounds = array<i64: 16, 1>}, {pipeline_mode = #tpu.pipeline_mode<synchronous>, transform_indices = @transform_11, window_bounds = array<i64: 16, 144>}, {pipeline_mode = #tpu.pipeline_mode<synchronous>, transform_indices = @transform_12, window_bounds = array<i64: 16, 1>}, {pipeline_mode = #tpu.pipeline_mode<synchronous>, transform_indices = @transform_13, window_bounds = array<i64: 16, 144>}, {pipeline_mode = #tpu.pipeline_mode<synchronous>, transform_indices = @transform_14, window_bounds = array<i64: 16, 1>}, {pipeline_mode = #tpu.pipeline_mode<synchronous>, transform_indices = @transform_15, window_bounds = array<i64: 1, 144>}, {pipeline_mode = #tpu.pipeline_mode<synchronous>, transform_indices = @transform_16, window_bounds = array<i64: 1, 1>}, {pipeline_mode = #tpu.pipeline_mode<synchronous>, transform_indices = @transform_17, window_bounds = array<i64: 16, 64>}, {pipeline_mode = #tpu.pipeline_mode<synchronous>, transform_indices = @transform_18, window_bounds = array<i64: 64, 256>}, {pipeline_mode = #tpu.pipeline_mode<synchronous>, transform_indices = @transform_19, window_bounds = array<i64: 256, 1024>}, {transform_indices = @transform_20, window_bounds = array<i64: 1, 1, 1024>}]} {
    %c0 = arith.constant 0 : index
    %c0_0 = arith.constant 0 : index
    %c0_1 = arith.constant 0 : index
    %0 = vector.load %arg1[%c0, %c0_0, %c0_1] : memref<1x2x16xf32, #tpu.memory_space<vmem>>, vector<1x2x16xf32>
    %1 = vector.shape_cast %0 : vector<1x2x16xf32> to vector<2x16xf32>
    %cst = arith.constant 0.000000e+00 : f32
    %2 = vector.broadcast %cst : f32 to vector<2x26xf32>
    %c0_2 = arith.constant 0 : index
    %c0_3 = arith.constant 0 : index
    %3 = vector.load %arg22[%c0_2, %c0_3] : memref<16x1090xf32, #tpu.memory_space<vmem>>, vector<2x26xf32>
    tpu.vector_store %arg22[%c0_2, %c0_3], %2 {strides = array<i32>} : memref<16x1090xf32, #tpu.memory_space<vmem>>, vector<2x26xf32>,
    %c0_4 = arith.constant 0 : index
    %c5 = arith.constant 5 : index
    %4 = vector.load %arg22[%c0_4, %c5] : memref<16x1090xf32, #tpu.memory_space<vmem>>, vector<2x16xf32>
    tpu.vector_store %arg22[%c0_4, %c5], %1 {strides = array<i32>} : memref<16x1090xf32, #tpu.memory_space<vmem>>, vector<2x16xf32>,
    %5 = tpu.iota {dimensions = array<i32: 1>} : vector<2x16xi32>
    %c3_i32 = arith.constant 3 : i32
    %6 = vector.broadcast %c3_i32 : i32 to vector<2x16xi32>
    %7 = arith.andi %5, %6 : vector<2x16xi32>
    %c1_i32 = arith.constant 1 : i32
    %8 = vector.broadcast %c1_i32 : i32 to vector<2x16xi32>
    %9 = arith.cmpi sge, %7, %8 : vector<2x16xi32>
    %c2_i32 = arith.constant 2 : i32
    %10 = vector.broadcast %c2_i32 : i32 to vector<2x16xi32>
    %11 = arith.cmpi sle, %7, %10 : vector<2x16xi32>
    %c0_5 = arith.constant 0 : index
    %c0_6 = arith.constant 0 : index
    %12 = vector.load %arg22[%c0_5, %c0_6] : memref<16x1090xf32, #tpu.memory_space<vmem>>, vector<2x16xf32>
    %cst_7 = arith.constant 0.000000e+00 : f32
    %13 = vector.broadcast %cst_7 : f32 to vector<2x16xf32>
    %14 = arith.select %9, %12, %13 : vector<2x16xi1>, vector<2x16xf32>
    %c0_8 = arith.constant 0 : index
    %c0_9 = arith.constant 0 : index
    %15 = vector.load %arg23[%c0_8, %c0_9] : memref<144x1024xf32, #tpu.memory_space<vmem>>, vector<2x16xf32>
    tpu.vector_store %arg23[%c0_8, %c0_9], %14 {strides = array<i32>} : memref<144x1024xf32, #tpu.memory_space<vmem>>, vector<2x16xf32>,
    %c0_10 = arith.constant 0 : index
    %c1 = arith.constant 1 : index
    %16 = vector.load %arg22[%c0_10, %c1] : memref<16x1090xf32, #tpu.memory_space<vmem>>, vector<2x16xf32>
    %c2 = arith.constant 2 : index
    %c0_11 = arith.constant 0 : index
    %17 = vector.load %arg23[%c2, %c0_11] : memref<144x1024xf32, #tpu.memory_space<vmem>>, vector<2x16xf32>
    tpu.vector_store %arg23[%c2, %c0_11], %16 {strides = array<i32>} : memref<144x1024xf32, #tpu.memory_space<vmem>>, vector<2x16xf32>,
    %c0_12 = arith.constant 0 : index
    %c2_13 = arith.constant 2 : index
    %18 = vector.load %arg22[%c0_12, %c2_13] : memref<16x1090xf32, #tpu.memory_space<vmem>>, vector<2x16xf32>
    %cst_14 = arith.constant 0.000000e+00 : f32
    %19 = vector.broadcast %cst_14 : f32 to vector<2x16xf32>
    %20 = arith.select %11, %18, %19 : vector<2x16xi1>, vector<2x16xf32>
    %c4 = arith.constant 4 : index
    %c0_15 = arith.constant 0 : index
    %21 = vector.load %arg23[%c4, %c0_15] : memref<144x1024xf32, #tpu.memory_space<vmem>>, vector<2x16xf32>
    tpu.vector_store %arg23[%c4, %c0_15], %20 {strides = array<i32>} : memref<144x1024xf32, #tpu.memory_space<vmem>>, vector<2x16xf32>,
    %c0_16 = arith.constant 0 : index
    %c4_17 = arith.constant 4 : index
    %22 = vector.load %arg22[%c0_16, %c4_17] : memref<16x1090xf32, #tpu.memory_space<vmem>>, vector<2x16xf32>
    %cst_18 = arith.constant 0.000000e+00 : f32
    %23 = vector.broadcast %cst_18 : f32 to vector<2x16xf32>
    %24 = arith.select %9, %22, %23 : vector<2x16xi1>, vector<2x16xf32>
    %c6 = arith.constant 6 : index
    %c0_19 = arith.constant 0 : index
    %25 = vector.load %arg23[%c6, %c0_19] : memref<144x1024xf32, #tpu.memory_space<vmem>>, vector<2x16xf32>
    tpu.vector_store %arg23[%c6, %c0_19], %24 {strides = array<i32>} : memref<144x1024xf32, #tpu.memory_space<vmem>>, vector<2x16xf32>,
    %c0_20 = arith.constant 0 : index
    %c5_21 = arith.constant 5 : index
    %26 = vector.load %arg22[%c0_20, %c5_21] : memref<16x1090xf32, #tpu.memory_space<vmem>>, vector<2x16xf32>
    %c8 = arith.constant 8 : index
    %c0_22 = arith.constant 0 : index
    %27 = vector.load %arg23[%c8, %c0_22] : memref<144x1024xf32, #tpu.memory_space<vmem>>, vector<2x16xf32>
    tpu.vector_store %arg23[%c8, %c0_22], %26 {strides = array<i32>} : memref<144x1024xf32, #tpu.memory_space<vmem>>, vector<2x16xf32>,
    %c0_23 = arith.constant 0 : index
    %c6_24 = arith.constant 6 : index
    %28 = vector.load %arg22[%c0_23, %c6_24] : memref<16x1090xf32, #tpu.memory_space<vmem>>, vector<2x16xf32>
    %cst_25 = arith.constant 0.000000e+00 : f32
    %29 = vector.broadcast %cst_25 : f32 to vector<2x16xf32>
    %30 = arith.select %11, %28, %29 : vector<2x16xi1>, vector<2x16xf32>
    %c10 = arith.constant 10 : index
    %c0_26 = arith.constant 0 : index
    %31 = vector.load %arg23[%c10, %c0_26] : memref<144x1024xf32, #tpu.memory_space<vmem>>, vector<2x16xf32>
    tpu.vector_store %arg23[%c10, %c0_26], %30 {strides = array<i32>} : memref<144x1024xf32, #tpu.memory_space<vmem>>, vector<2x16xf32>,
    %c0_27 = arith.constant 0 : index
    %c8_28 = arith.constant 8 : index
    %32 = vector.load %arg22[%c0_27, %c8_28] : memref<16x1090xf32, #tpu.memory_space<vmem>>, vector<2x16xf32>
    %cst_29 = arith.constant 0.000000e+00 : f32
    %33 = vector.broadcast %cst_29 : f32 to vector<2x16xf32>
    %34 = arith.select %9, %32, %33 : vector<2x16xi1>, vector<2x16xf32>
    %c12 = arith.constant 12 : index
    %c0_30 = arith.constant 0 : index
    %35 = vector.load %arg23[%c12, %c0_30] : memref<144x1024xf32, #tpu.memory_space<vmem>>, vector<2x16xf32>
    tpu.vector_store %arg23[%c12, %c0_30], %34 {strides = array<i32>} : memref<144x1024xf32, #tpu.memory_space<vmem>>, vector<2x16xf32>,
    %c0_31 = arith.constant 0 : index
    %c9 = arith.constant 9 : index
    %36 = vector.load %arg22[%c0_31, %c9] : memref<16x1090xf32, #tpu.memory_space<vmem>>, vector<2x16xf32>
    %c14 = arith.constant 14 : index
    %c0_32 = arith.constant 0 : index
    %37 = vector.load %arg23[%c14, %c0_32] : memref<144x1024xf32, #tpu.memory_space<vmem>>, vector<2x16xf32>
    tpu.vector_store %arg23[%c14, %c0_32], %36 {strides = array<i32>} : memref<144x1024xf32, #tpu.memory_space<vmem>>, vector<2x16xf32>,
    %c0_33 = arith.constant 0 : index
    %c10_34 = arith.constant 10 : index
    %38 = vector.load %arg22[%c0_33, %c10_34] : memref<16x1090xf32, #tpu.memory_space<vmem>>, vector<2x16xf32>
    %cst_35 = arith.constant 0.000000e+00 : f32
    %39 = vector.broadcast %cst_35 : f32 to vector<2x16xf32>
    %40 = arith.select %11, %38, %39 : vector<2x16xi1>, vector<2x16xf32>
    %c16 = arith.constant 16 : index
    %c0_36 = arith.constant 0 : index
    %41 = vector.load %arg23[%c16, %c0_36] : memref<144x1024xf32, #tpu.memory_space<vmem>>, vector<2x16xf32>
    tpu.vector_store %arg23[%c16, %c0_36], %40 {strides = array<i32>} : memref<144x1024xf32, #tpu.memory_space<vmem>>, vector<2x16xf32>,
    %c0_37 = arith.constant 0 : index
    %c0_38 = arith.constant 0 : index
    %42 = vector.load %arg23[%c0_37, %c0_38] : memref<144x1024xf32, #tpu.memory_space<vmem>>, vector<18x16xf32>
    %c0_39 = arith.constant 0 : index
    %c0_40 = arith.constant 0 : index
    %43 = vector.load %arg2[%c0_39, %c0_40] : memref<4x18xf32, #tpu.memory_space<vmem>>, vector<4x18xf32>
    %cst_41 = arith.constant dense<0.000000e+00> : vector<4x16xf32>
    %44 = tpu.matmul %43, %42, %cst_41 {dimension_numbers = #tpu.dot_dimension_numbers<[1], [0], [0], [1], [0, 0, 1, 1], [], []>} : vector<4x18xf32>, vector<18x16xf32>, vector<4x16xf32> -> vector<4x16xf32>
    %c0_42 = arith.constant 0 : index
    %c0_43 = arith.constant 0 : index
    %45 = vector.load %arg3[%c0_42, %c0_43] : memref<4x1xf32, #tpu.memory_space<vmem>>, vector<4x1xf32>
    %46 = vector.broadcast %45 : vector<4x1xf32> to vector<4x16xf32>
    %47 = arith.addf %44, %46 : vector<4x16xf32>
    %cst_44 = arith.constant 0.000000e+00 : f32
    %48 = vector.broadcast %cst_44 : f32 to vector<4x16xf32>
    %49 = arith.cmpf oge, %47, %48 : vector<4x16xf32>
    %cst_45 = arith.constant 2.000000e-01 : f32
    %50 = vector.broadcast %cst_45 : f32 to vector<4x16xf32>
    %51 = arith.mulf %50, %47 : vector<4x16xf32>
    %52 = arith.select %49, %47, %51 : vector<4x16xi1>, vector<4x16xf32>
    %cst_46 = arith.constant 0.000000e+00 : f32
    %53 = vector.broadcast %cst_46 : f32 to vector<4x26xf32>
    %c0_47 = arith.constant 0 : index
    %c0_48 = arith.constant 0 : index
    %54 = vector.load %arg22[%c0_47, %c0_48] : memref<16x1090xf32, #tpu.memory_space<vmem>>, vector<4x26xf32>
    tpu.vector_store %arg22[%c0_47, %c0_48], %53 {strides = array<i32>} : memref<16x1090xf32, #tpu.memory_space<vmem>>, vector<4x26xf32>,
    %c0_49 = arith.constant 0 : index
    %c5_50 = arith.constant 5 : index
    %55 = vector.load %arg22[%c0_49, %c5_50] : memref<16x1090xf32, #tpu.memory_space<vmem>>, vector<4x16xf32>
    tpu.vector_store %arg22[%c0_49, %c5_50], %52 {strides = array<i32>} : memref<16x1090xf32, #tpu.memory_space<vmem>>, vector<4x16xf32>,
    %56 = tpu.iota {dimensions = array<i32: 1>} : vector<4x16xi32>
    %c3_i32_51 = arith.constant 3 : i32
    %57 = vector.broadcast %c3_i32_51 : i32 to vector<4x16xi32>
    %58 = arith.andi %56, %57 : vector<4x16xi32>
    %c1_i32_52 = arith.constant 1 : i32
    %59 = vector.broadcast %c1_i32_52 : i32 to vector<4x16xi32>
    %60 = arith.cmpi sge, %58, %59 : vector<4x16xi32>
    %c2_i32_53 = arith.constant 2 : i32
    %61 = vector.broadcast %c2_i32_53 : i32 to vector<4x16xi32>
    %62 = arith.cmpi sle, %58, %61 : vector<4x16xi32>
    %c0_54 = arith.constant 0 : index
    %c0_55 = arith.constant 0 : index
    %63 = vector.load %arg22[%c0_54, %c0_55] : memref<16x1090xf32, #tpu.memory_space<vmem>>, vector<4x16xf32>
    %cst_56 = arith.constant 0.000000e+00 : f32
    %64 = vector.broadcast %cst_56 : f32 to vector<4x16xf32>
    %65 = arith.select %60, %63, %64 : vector<4x16xi1>, vector<4x16xf32>
    %c0_57 = arith.constant 0 : index
    %c0_58 = arith.constant 0 : index
    %66 = vector.load %arg23[%c0_57, %c0_58] : memref<144x1024xf32, #tpu.memory_space<vmem>>, vector<4x16xf32>
    tpu.vector_store %arg23[%c0_57, %c0_58], %65 {strides = array<i32>} : memref<144x1024xf32, #tpu.memory_space<vmem>>, vector<4x16xf32>,
    %c0_59 = arith.constant 0 : index
    %c1_60 = arith.constant 1 : index
    %67 = vector.load %arg22[%c0_59, %c1_60] : memref<16x1090xf32, #tpu.memory_space<vmem>>, vector<4x16xf32>
    %c4_61 = arith.constant 4 : index
    %c0_62 = arith.constant 0 : index
    %68 = vector.load %arg23[%c4_61, %c0_62] : memref<144x1024xf32, #tpu.memory_space<vmem>>, vector<4x16xf32>
    tpu.vector_store %arg23[%c4_61, %c0_62], %67 {strides = array<i32>} : memref<144x1024xf32, #tpu.memory_space<vmem>>, vector<4x16xf32>,
    %c0_63 = arith.constant 0 : index
    %c2_64 = arith.constant 2 : index
    %69 = vector.load %arg22[%c0_63, %c2_64] : memref<16x1090xf32, #tpu.memory_space<vmem>>, vector<4x16xf32>
    %cst_65 = arith.constant 0.000000e+00 : f32
    %70 = vector.broadcast %cst_65 : f32 to vector<4x16xf32>
    %71 = arith.select %62, %69, %70 : vector<4x16xi1>, vector<4x16xf32>
    %c8_66 = arith.constant 8 : index
    %c0_67 = arith.constant 0 : index
    %72 = vector.load %arg23[%c8_66, %c0_67] : memref<144x1024xf32, #tpu.memory_space<vmem>>, vector<4x16xf32>
    tpu.vector_store %arg23[%c8_66, %c0_67], %71 {strides = array<i32>} : memref<144x1024xf32, #tpu.memory_space<vmem>>, vector<4x16xf32>,
    %c0_68 = arith.constant 0 : index
    %c4_69 = arith.constant 4 : index
    %73 = vector.load %arg22[%c0_68, %c4_69] : memref<16x1090xf32, #tpu.memory_space<vmem>>, vector<4x16xf32>
    %cst_70 = arith.constant 0.000000e+00 : f32
    %74 = vector.broadcast %cst_70 : f32 to vector<4x16xf32>
    %75 = arith.select %60, %73, %74 : vector<4x16xi1>, vector<4x16xf32>
    %c12_71 = arith.constant 12 : index
    %c0_72 = arith.constant 0 : index
    %76 = vector.load %arg23[%c12_71, %c0_72] : memref<144x1024xf32, #tpu.memory_space<vmem>>, vector<4x16xf32>
    tpu.vector_store %arg23[%c12_71, %c0_72], %75 {strides = array<i32>} : memref<144x1024xf32, #tpu.memory_space<vmem>>, vector<4x16xf32>,
    %c0_73 = arith.constant 0 : index
    %c5_74 = arith.constant 5 : index
    %77 = vector.load %arg22[%c0_73, %c5_74] : memref<16x1090xf32, #tpu.memory_space<vmem>>, vector<4x16xf32>
    %c16_75 = arith.constant 16 : index
    %c0_76 = arith.constant 0 : index
    %78 = vector.load %arg23[%c16_75, %c0_76] : memref<144x1024xf32, #tpu.memory_space<vmem>>, vector<4x16xf32>
    tpu.vector_store %arg23[%c16_75, %c0_76], %77 {strides = array<i32>} : memref<144x1024xf32, #tpu.memory_space<vmem>>, vector<4x16xf32>,
    %c0_77 = arith.constant 0 : index
    %c6_78 = arith.constant 6 : index
    %79 = vector.load %arg22[%c0_77, %c6_78] : memref<16x1090xf32, #tpu.memory_space<vmem>>, vector<4x16xf32>
    %cst_79 = arith.constant 0.000000e+00 : f32
    %80 = vector.broadcast %cst_79 : f32 to vector<4x16xf32>
    %81 = arith.select %62, %79, %80 : vector<4x16xi1>, vector<4x16xf32>
    %c20 = arith.constant 20 : index
    %c0_80 = arith.constant 0 : index
    %82 = vector.load %arg23[%c20, %c0_80] : memref<144x1024xf32, #tpu.memory_space<vmem>>, vector<4x16xf32>
    tpu.vector_store %arg23[%c20, %c0_80], %81 {strides = array<i32>} : memref<144x1024xf32, #tpu.memory_space<vmem>>, vector<4x16xf32>,
    %c0_81 = arith.constant 0 : index
    %c8_82 = arith.constant 8 : index
    %83 = vector.load %arg22[%c0_81, %c8_82] : memref<16x1090xf32, #tpu.memory_space<vmem>>, vector<4x16xf32>
    %cst_83 = arith.constant 0.000000e+00 : f32
    %84 = vector.broadcast %cst_83 : f32 to vector<4x16xf32>
    %85 = arith.select %60, %83, %84 : vector<4x16xi1>, vector<4x16xf32>
    %c24 = arith.constant 24 : index
    %c0_84 = arith.constant 0 : index
    %86 = vector.load %arg23[%c24, %c0_84] : memref<144x1024xf32, #tpu.memory_space<vmem>>, vector<4x16xf32>
    tpu.vector_store %arg23[%c24, %c0_84], %85 {strides = array<i32>} : memref<144x1024xf32, #tpu.memory_space<vmem>>, vector<4x16xf32>,
    %c0_85 = arith.constant 0 : index
    %c9_86 = arith.constant 9 : index
    %87 = vector.load %arg22[%c0_85, %c9_86] : memref<16x1090xf32, #tpu.memory_space<vmem>>, vector<4x16xf32>
    %c28 = arith.constant 28 : index
    %c0_87 = arith.constant 0 : index
    %88 = vector.load %arg23[%c28, %c0_87] : memref<144x1024xf32, #tpu.memory_space<vmem>>, vector<4x16xf32>
    tpu.vector_store %arg23[%c28, %c0_87], %87 {strides = array<i32>} : memref<144x1024xf32, #tpu.memory_space<vmem>>, vector<4x16xf32>,
    %c0_88 = arith.constant 0 : index
    %c10_89 = arith.constant 10 : index
    %89 = vector.load %arg22[%c0_88, %c10_89] : memref<16x1090xf32, #tpu.memory_space<vmem>>, vector<4x16xf32>
    %cst_90 = arith.constant 0.000000e+00 : f32
    %90 = vector.broadcast %cst_90 : f32 to vector<4x16xf32>
    %91 = arith.select %62, %89, %90 : vector<4x16xi1>, vector<4x16xf32>
    %c32 = arith.constant 32 : index
    %c0_91 = arith.constant 0 : index
    %92 = vector.load %arg23[%c32, %c0_91] : memref<144x1024xf32, #tpu.memory_space<vmem>>, vector<4x16xf32>
    tpu.vector_store %arg23[%c32, %c0_91], %91 {strides = array<i32>} : memref<144x1024xf32, #tpu.memory_space<vmem>>, vector<4x16xf32>,
    %c0_92 = arith.constant 0 : index
    %c0_93 = arith.constant 0 : index
    %93 = vector.load %arg23[%c0_92, %c0_93] : memref<144x1024xf32, #tpu.memory_space<vmem>>, vector<36x16xf32>
    %c0_94 = arith.constant 0 : index
    %c0_95 = arith.constant 0 : index
    %94 = vector.load %arg4[%c0_94, %c0_95] : memref<4x36xf32, #tpu.memory_space<vmem>>, vector<4x36xf32>
    %cst_96 = arith.constant dense<0.000000e+00> : vector<4x16xf32>
    %95 = tpu.matmul %94, %93, %cst_96 {dimension_numbers = #tpu.dot_dimension_numbers<[1], [0], [0], [1], [0, 0, 1, 1], [], []>} : vector<4x36xf32>, vector<36x16xf32>, vector<4x16xf32> -> vector<4x16xf32>
    %c0_97 = arith.constant 0 : index
    %c0_98 = arith.constant 0 : index
    %96 = vector.load %arg5[%c0_97, %c0_98] : memref<4x1xf32, #tpu.memory_space<vmem>>, vector<4x1xf32>
    %97 = vector.broadcast %96 : vector<4x1xf32> to vector<4x16xf32>
    %98 = arith.addf %95, %97 : vector<4x16xf32>
    %cst_99 = arith.constant 0.000000e+00 : f32
    %99 = vector.broadcast %cst_99 : f32 to vector<4x16xf32>
    %100 = arith.cmpf oge, %98, %99 : vector<4x16xf32>
    %cst_100 = arith.constant 2.000000e-01 : f32
    %101 = vector.broadcast %cst_100 : f32 to vector<4x16xf32>
    %102 = arith.mulf %101, %98 : vector<4x16xf32>
    %103 = arith.select %100, %98, %102 : vector<4x16xi1>, vector<4x16xf32>
    %c0_101 = arith.constant 0 : index
    %c0_102 = arith.constant 0 : index
    %104 = vector.load %arg18[%c0_101, %c0_102] : memref<16x64xf32, #tpu.memory_space<vmem>>, vector<16x64xf32>
    %cst_103 = arith.constant dense<0.000000e+00> : vector<4x64xf32>
    %105 = tpu.matmul %103, %104, %cst_103 {dimension_numbers = #tpu.dot_dimension_numbers<[1], [0], [0], [1], [0, 0, 1, 1], [], []>} : vector<4x16xf32>, vector<16x64xf32>, vector<4x64xf32> -> vector<4x64xf32>
    %cst_104 = arith.constant 0.000000e+00 : f32
    %106 = vector.broadcast %cst_104 : f32 to vector<4x82xf32>
    %c0_105 = arith.constant 0 : index
    %c0_106 = arith.constant 0 : index
    %107 = vector.load %arg22[%c0_105, %c0_106] : memref<16x1090xf32, #tpu.memory_space<vmem>>, vector<4x82xf32>
    tpu.vector_store %arg22[%c0_105, %c0_106], %106 {strides = array<i32>} : memref<16x1090xf32, #tpu.memory_space<vmem>>, vector<4x82xf32>,
    %c0_107 = arith.constant 0 : index
    %c9_108 = arith.constant 9 : index
    %108 = vector.load %arg22[%c0_107, %c9_108] : memref<16x1090xf32, #tpu.memory_space<vmem>>, vector<4x64xf32>
    tpu.vector_store %arg22[%c0_107, %c9_108], %105 {strides = array<i32>} : memref<16x1090xf32, #tpu.memory_space<vmem>>, vector<4x64xf32>,
    %109 = tpu.iota {dimensions = array<i32: 1>} : vector<4x64xi32>
    %c7_i32 = arith.constant 7 : i32
    %110 = vector.broadcast %c7_i32 : i32 to vector<4x64xi32>
    %111 = arith.andi %109, %110 : vector<4x64xi32>
    %c1_i32_109 = arith.constant 1 : i32
    %112 = vector.broadcast %c1_i32_109 : i32 to vector<4x64xi32>
    %113 = arith.cmpi sge, %111, %112 : vector<4x64xi32>
    %c6_i32 = arith.constant 6 : i32
    %114 = vector.broadcast %c6_i32 : i32 to vector<4x64xi32>
    %115 = arith.cmpi sle, %111, %114 : vector<4x64xi32>
    %c0_110 = arith.constant 0 : index
    %c0_111 = arith.constant 0 : index
    %116 = vector.load %arg22[%c0_110, %c0_111] : memref<16x1090xf32, #tpu.memory_space<vmem>>, vector<4x64xf32>
    %cst_112 = arith.constant 0.000000e+00 : f32
    %117 = vector.broadcast %cst_112 : f32 to vector<4x64xf32>
    %118 = arith.select %113, %116, %117 : vector<4x64xi1>, vector<4x64xf32>
    %c0_113 = arith.constant 0 : index
    %c0_114 = arith.constant 0 : index
    %119 = vector.load %arg23[%c0_113, %c0_114] : memref<144x1024xf32, #tpu.memory_space<vmem>>, vector<4x64xf32>
    tpu.vector_store %arg23[%c0_113, %c0_114], %118 {strides = array<i32>} : memref<144x1024xf32, #tpu.memory_space<vmem>>, vector<4x64xf32>,
    %c0_115 = arith.constant 0 : index
    %c1_116 = arith.constant 1 : index
    %120 = vector.load %arg22[%c0_115, %c1_116] : memref<16x1090xf32, #tpu.memory_space<vmem>>, vector<4x64xf32>
    %c4_117 = arith.constant 4 : index
    %c0_118 = arith.constant 0 : index
    %121 = vector.load %arg23[%c4_117, %c0_118] : memref<144x1024xf32, #tpu.memory_space<vmem>>, vector<4x64xf32>
    tpu.vector_store %arg23[%c4_117, %c0_118], %120 {strides = array<i32>} : memref<144x1024xf32, #tpu.memory_space<vmem>>, vector<4x64xf32>,
    %c0_119 = arith.constant 0 : index
    %c2_120 = arith.constant 2 : index
    %122 = vector.load %arg22[%c0_119, %c2_120] : memref<16x1090xf32, #tpu.memory_space<vmem>>, vector<4x64xf32>
    %cst_121 = arith.constant 0.000000e+00 : f32
    %123 = vector.broadcast %cst_121 : f32 to vector<4x64xf32>
    %124 = arith.select %115, %122, %123 : vector<4x64xi1>, vector<4x64xf32>
    %c8_122 = arith.constant 8 : index
    %c0_123 = arith.constant 0 : index
    %125 = vector.load %arg23[%c8_122, %c0_123] : memref<144x1024xf32, #tpu.memory_space<vmem>>, vector<4x64xf32>
    tpu.vector_store %arg23[%c8_122, %c0_123], %124 {strides = array<i32>} : memref<144x1024xf32, #tpu.memory_space<vmem>>, vector<4x64xf32>,
    %c0_124 = arith.constant 0 : index
    %c8_125 = arith.constant 8 : index
    %126 = vector.load %arg22[%c0_124, %c8_125] : memref<16x1090xf32, #tpu.memory_space<vmem>>, vector<4x64xf32>
    %cst_126 = arith.constant 0.000000e+00 : f32
    %127 = vector.broadcast %cst_126 : f32 to vector<4x64xf32>
    %128 = arith.select %113, %126, %127 : vector<4x64xi1>, vector<4x64xf32>
    %c12_127 = arith.constant 12 : index
    %c0_128 = arith.constant 0 : index
    %129 = vector.load %arg23[%c12_127, %c0_128] : memref<144x1024xf32, #tpu.memory_space<vmem>>, vector<4x64xf32>
    tpu.vector_store %arg23[%c12_127, %c0_128], %128 {strides = array<i32>} : memref<144x1024xf32, #tpu.memory_space<vmem>>, vector<4x64xf32>,
    %c0_129 = arith.constant 0 : index
    %c9_130 = arith.constant 9 : index
    %130 = vector.load %arg22[%c0_129, %c9_130] : memref<16x1090xf32, #tpu.memory_space<vmem>>, vector<4x64xf32>
    %c16_131 = arith.constant 16 : index
    %c0_132 = arith.constant 0 : index
    %131 = vector.load %arg23[%c16_131, %c0_132] : memref<144x1024xf32, #tpu.memory_space<vmem>>, vector<4x64xf32>
    tpu.vector_store %arg23[%c16_131, %c0_132], %130 {strides = array<i32>} : memref<144x1024xf32, #tpu.memory_space<vmem>>, vector<4x64xf32>,
    %c0_133 = arith.constant 0 : index
    %c10_134 = arith.constant 10 : index
    %132 = vector.load %arg22[%c0_133, %c10_134] : memref<16x1090xf32, #tpu.memory_space<vmem>>, vector<4x64xf32>
    %cst_135 = arith.constant 0.000000e+00 : f32
    %133 = vector.broadcast %cst_135 : f32 to vector<4x64xf32>
    %134 = arith.select %115, %132, %133 : vector<4x64xi1>, vector<4x64xf32>
    %c20_136 = arith.constant 20 : index
    %c0_137 = arith.constant 0 : index
    %135 = vector.load %arg23[%c20_136, %c0_137] : memref<144x1024xf32, #tpu.memory_space<vmem>>, vector<4x64xf32>
    tpu.vector_store %arg23[%c20_136, %c0_137], %134 {strides = array<i32>} : memref<144x1024xf32, #tpu.memory_space<vmem>>, vector<4x64xf32>,
    %c0_138 = arith.constant 0 : index
    %c16_139 = arith.constant 16 : index
    %136 = vector.load %arg22[%c0_138, %c16_139] : memref<16x1090xf32, #tpu.memory_space<vmem>>, vector<4x64xf32>
    %cst_140 = arith.constant 0.000000e+00 : f32
    %137 = vector.broadcast %cst_140 : f32 to vector<4x64xf32>
    %138 = arith.select %113, %136, %137 : vector<4x64xi1>, vector<4x64xf32>
    %c24_141 = arith.constant 24 : index
    %c0_142 = arith.constant 0 : index
    %139 = vector.load %arg23[%c24_141, %c0_142] : memref<144x1024xf32, #tpu.memory_space<vmem>>, vector<4x64xf32>
    tpu.vector_store %arg23[%c24_141, %c0_142], %138 {strides = array<i32>} : memref<144x1024xf32, #tpu.memory_space<vmem>>, vector<4x64xf32>,
    %c0_143 = arith.constant 0 : index
    %c17 = arith.constant 17 : index
    %140 = vector.load %arg22[%c0_143, %c17] : memref<16x1090xf32, #tpu.memory_space<vmem>>, vector<4x64xf32>
    %c28_144 = arith.constant 28 : index
    %c0_145 = arith.constant 0 : index
    %141 = vector.load %arg23[%c28_144, %c0_145] : memref<144x1024xf32, #tpu.memory_space<vmem>>, vector<4x64xf32>
    tpu.vector_store %arg23[%c28_144, %c0_145], %140 {strides = array<i32>} : memref<144x1024xf32, #tpu.memory_space<vmem>>, vector<4x64xf32>,
    %c0_146 = arith.constant 0 : index
    %c18 = arith.constant 18 : index
    %142 = vector.load %arg22[%c0_146, %c18] : memref<16x1090xf32, #tpu.memory_space<vmem>>, vector<4x64xf32>
    %cst_147 = arith.constant 0.000000e+00 : f32
    %143 = vector.broadcast %cst_147 : f32 to vector<4x64xf32>
    %144 = arith.select %115, %142, %143 : vector<4x64xi1>, vector<4x64xf32>
    %c32_148 = arith.constant 32 : index
    %c0_149 = arith.constant 0 : index
    %145 = vector.load %arg23[%c32_148, %c0_149] : memref<144x1024xf32, #tpu.memory_space<vmem>>, vector<4x64xf32>
    tpu.vector_store %arg23[%c32_148, %c0_149], %144 {strides = array<i32>} : memref<144x1024xf32, #tpu.memory_space<vmem>>, vector<4x64xf32>,
    %c0_150 = arith.constant 0 : index
    %c0_151 = arith.constant 0 : index
    %146 = vector.load %arg23[%c0_150, %c0_151] : memref<144x1024xf32, #tpu.memory_space<vmem>>, vector<36x64xf32>
    %c0_152 = arith.constant 0 : index
    %c0_153 = arith.constant 0 : index
    %147 = vector.load %arg6[%c0_152, %c0_153] : memref<8x36xf32, #tpu.memory_space<vmem>>, vector<8x36xf32>
    %cst_154 = arith.constant dense<0.000000e+00> : vector<8x64xf32>
    %148 = tpu.matmul %147, %146, %cst_154 {dimension_numbers = #tpu.dot_dimension_numbers<[1], [0], [0], [1], [0, 0, 1, 1], [], []>} : vector<8x36xf32>, vector<36x64xf32>, vector<8x64xf32> -> vector<8x64xf32>
    %c0_155 = arith.constant 0 : index
    %c0_156 = arith.constant 0 : index
    %149 = vector.load %arg7[%c0_155, %c0_156] : memref<8x1xf32, #tpu.memory_space<vmem>>, vector<8x1xf32>
    %150 = vector.broadcast %149 : vector<8x1xf32> to vector<8x64xf32>
    %151 = arith.addf %148, %150 : vector<8x64xf32>
    %cst_157 = arith.constant 0.000000e+00 : f32
    %152 = vector.broadcast %cst_157 : f32 to vector<8x64xf32>
    %153 = arith.cmpf oge, %151, %152 : vector<8x64xf32>
    %cst_158 = arith.constant 2.000000e-01 : f32
    %154 = vector.broadcast %cst_158 : f32 to vector<8x64xf32>
    %155 = arith.mulf %154, %151 : vector<8x64xf32>
    %156 = arith.select %153, %151, %155 : vector<8x64xi1>, vector<8x64xf32>
    %cst_159 = arith.constant 0.000000e+00 : f32
    %157 = vector.broadcast %cst_159 : f32 to vector<8x82xf32>
    %c0_160 = arith.constant 0 : index
    %c0_161 = arith.constant 0 : index
    %158 = vector.load %arg22[%c0_160, %c0_161] : memref<16x1090xf32, #tpu.memory_space<vmem>>, vector<8x82xf32>
    tpu.vector_store %arg22[%c0_160, %c0_161], %157 {strides = array<i32>} : memref<16x1090xf32, #tpu.memory_space<vmem>>, vector<8x82xf32>,
    %c0_162 = arith.constant 0 : index
    %c9_163 = arith.constant 9 : index
    %159 = vector.load %arg22[%c0_162, %c9_163] : memref<16x1090xf32, #tpu.memory_space<vmem>>, vector<8x64xf32>
    tpu.vector_store %arg22[%c0_162, %c9_163], %156 {strides = array<i32>} : memref<16x1090xf32, #tpu.memory_space<vmem>>, vector<8x64xf32>,
    %160 = tpu.iota {dimensions = array<i32: 1>} : vector<8x64xi32>
    %c7_i32_164 = arith.constant 7 : i32
    %161 = vector.broadcast %c7_i32_164 : i32 to vector<8x64xi32>
    %162 = arith.andi %160, %161 : vector<8x64xi32>
    %c1_i32_165 = arith.constant 1 : i32
    %163 = vector.broadcast %c1_i32_165 : i32 to vector<8x64xi32>
    %164 = arith.cmpi sge, %162, %163 : vector<8x64xi32>
    %c6_i32_166 = arith.constant 6 : i32
    %165 = vector.broadcast %c6_i32_166 : i32 to vector<8x64xi32>
    %166 = arith.cmpi sle, %162, %165 : vector<8x64xi32>
    %c0_167 = arith.constant 0 : index
    %c0_168 = arith.constant 0 : index
    %167 = vector.load %arg22[%c0_167, %c0_168] : memref<16x1090xf32, #tpu.memory_space<vmem>>, vector<8x64xf32>
    %cst_169 = arith.constant 0.000000e+00 : f32
    %168 = vector.broadcast %cst_169 : f32 to vector<8x64xf32>
    %169 = arith.select %164, %167, %168 : vector<8x64xi1>, vector<8x64xf32>
    %c0_170 = arith.constant 0 : index
    %c0_171 = arith.constant 0 : index
    %170 = vector.load %arg23[%c0_170, %c0_171] : memref<144x1024xf32, #tpu.memory_space<vmem>>, vector<8x64xf32>
    tpu.vector_store %arg23[%c0_170, %c0_171], %169 {strides = array<i32>} : memref<144x1024xf32, #tpu.memory_space<vmem>>, vector<8x64xf32>,
    %c0_172 = arith.constant 0 : index
    %c1_173 = arith.constant 1 : index
    %171 = vector.load %arg22[%c0_172, %c1_173] : memref<16x1090xf32, #tpu.memory_space<vmem>>, vector<8x64xf32>
    %c8_174 = arith.constant 8 : index
    %c0_175 = arith.constant 0 : index
    %172 = vector.load %arg23[%c8_174, %c0_175] : memref<144x1024xf32, #tpu.memory_space<vmem>>, vector<8x64xf32>
    tpu.vector_store %arg23[%c8_174, %c0_175], %171 {strides = array<i32>} : memref<144x1024xf32, #tpu.memory_space<vmem>>, vector<8x64xf32>,
    %c0_176 = arith.constant 0 : index
    %c2_177 = arith.constant 2 : index
    %173 = vector.load %arg22[%c0_176, %c2_177] : memref<16x1090xf32, #tpu.memory_space<vmem>>, vector<8x64xf32>
    %cst_178 = arith.constant 0.000000e+00 : f32
    %174 = vector.broadcast %cst_178 : f32 to vector<8x64xf32>
    %175 = arith.select %166, %173, %174 : vector<8x64xi1>, vector<8x64xf32>
    %c16_179 = arith.constant 16 : index
    %c0_180 = arith.constant 0 : index
    %176 = vector.load %arg23[%c16_179, %c0_180] : memref<144x1024xf32, #tpu.memory_space<vmem>>, vector<8x64xf32>
    tpu.vector_store %arg23[%c16_179, %c0_180], %175 {strides = array<i32>} : memref<144x1024xf32, #tpu.memory_space<vmem>>, vector<8x64xf32>,
    %c0_181 = arith.constant 0 : index
    %c8_182 = arith.constant 8 : index
    %177 = vector.load %arg22[%c0_181, %c8_182] : memref<16x1090xf32, #tpu.memory_space<vmem>>, vector<8x64xf32>
    %cst_183 = arith.constant 0.000000e+00 : f32
    %178 = vector.broadcast %cst_183 : f32 to vector<8x64xf32>
    %179 = arith.select %164, %177, %178 : vector<8x64xi1>, vector<8x64xf32>
    %c24_184 = arith.constant 24 : index
    %c0_185 = arith.constant 0 : index
    %180 = vector.load %arg23[%c24_184, %c0_185] : memref<144x1024xf32, #tpu.memory_space<vmem>>, vector<8x64xf32>
    tpu.vector_store %arg23[%c24_184, %c0_185], %179 {strides = array<i32>} : memref<144x1024xf32, #tpu.memory_space<vmem>>, vector<8x64xf32>,
    %c0_186 = arith.constant 0 : index
    %c9_187 = arith.constant 9 : index
    %181 = vector.load %arg22[%c0_186, %c9_187] : memref<16x1090xf32, #tpu.memory_space<vmem>>, vector<8x64xf32>
    %c32_188 = arith.constant 32 : index
    %c0_189 = arith.constant 0 : index
    %182 = vector.load %arg23[%c32_188, %c0_189] : memref<144x1024xf32, #tpu.memory_space<vmem>>, vector<8x64xf32>
    tpu.vector_store %arg23[%c32_188, %c0_189], %181 {strides = array<i32>} : memref<144x1024xf32, #tpu.memory_space<vmem>>, vector<8x64xf32>,
    %c0_190 = arith.constant 0 : index
    %c10_191 = arith.constant 10 : index
    %183 = vector.load %arg22[%c0_190, %c10_191] : memref<16x1090xf32, #tpu.memory_space<vmem>>, vector<8x64xf32>
    %cst_192 = arith.constant 0.000000e+00 : f32
    %184 = vector.broadcast %cst_192 : f32 to vector<8x64xf32>
    %185 = arith.select %166, %183, %184 : vector<8x64xi1>, vector<8x64xf32>
    %c40 = arith.constant 40 : index
    %c0_193 = arith.constant 0 : index
    %186 = vector.load %arg23[%c40, %c0_193] : memref<144x1024xf32, #tpu.memory_space<vmem>>, vector<8x64xf32>
    tpu.vector_store %arg23[%c40, %c0_193], %185 {strides = array<i32>} : memref<144x1024xf32, #tpu.memory_space<vmem>>, vector<8x64xf32>,
    %c0_194 = arith.constant 0 : index
    %c16_195 = arith.constant 16 : index
    %187 = vector.load %arg22[%c0_194, %c16_195] : memref<16x1090xf32, #tpu.memory_space<vmem>>, vector<8x64xf32>
    %cst_196 = arith.constant 0.000000e+00 : f32
    %188 = vector.broadcast %cst_196 : f32 to vector<8x64xf32>
    %189 = arith.select %164, %187, %188 : vector<8x64xi1>, vector<8x64xf32>
    %c48 = arith.constant 48 : index
    %c0_197 = arith.constant 0 : index
    %190 = vector.load %arg23[%c48, %c0_197] : memref<144x1024xf32, #tpu.memory_space<vmem>>, vector<8x64xf32>
    tpu.vector_store %arg23[%c48, %c0_197], %189 {strides = array<i32>} : memref<144x1024xf32, #tpu.memory_space<vmem>>, vector<8x64xf32>,
    %c0_198 = arith.constant 0 : index
    %c17_199 = arith.constant 17 : index
    %191 = vector.load %arg22[%c0_198, %c17_199] : memref<16x1090xf32, #tpu.memory_space<vmem>>, vector<8x64xf32>
    %c56 = arith.constant 56 : index
    %c0_200 = arith.constant 0 : index
    %192 = vector.load %arg23[%c56, %c0_200] : memref<144x1024xf32, #tpu.memory_space<vmem>>, vector<8x64xf32>
    tpu.vector_store %arg23[%c56, %c0_200], %191 {strides = array<i32>} : memref<144x1024xf32, #tpu.memory_space<vmem>>, vector<8x64xf32>,
    %c0_201 = arith.constant 0 : index
    %c18_202 = arith.constant 18 : index
    %193 = vector.load %arg22[%c0_201, %c18_202] : memref<16x1090xf32, #tpu.memory_space<vmem>>, vector<8x64xf32>
    %cst_203 = arith.constant 0.000000e+00 : f32
    %194 = vector.broadcast %cst_203 : f32 to vector<8x64xf32>
    %195 = arith.select %166, %193, %194 : vector<8x64xi1>, vector<8x64xf32>
    %c64 = arith.constant 64 : index
    %c0_204 = arith.constant 0 : index
    %196 = vector.load %arg23[%c64, %c0_204] : memref<144x1024xf32, #tpu.memory_space<vmem>>, vector<8x64xf32>
    tpu.vector_store %arg23[%c64, %c0_204], %195 {strides = array<i32>} : memref<144x1024xf32, #tpu.memory_space<vmem>>, vector<8x64xf32>,
    %c0_205 = arith.constant 0 : index
    %c0_206 = arith.constant 0 : index
    %197 = vector.load %arg23[%c0_205, %c0_206] : memref<144x1024xf32, #tpu.memory_space<vmem>>, vector<72x64xf32>
    %c0_207 = arith.constant 0 : index
    %c0_208 = arith.constant 0 : index
    %198 = vector.load %arg8[%c0_207, %c0_208] : memref<8x72xf32, #tpu.memory_space<vmem>>, vector<8x72xf32>
    %cst_209 = arith.constant dense<0.000000e+00> : vector<8x64xf32>
    %199 = tpu.matmul %198, %197, %cst_209 {dimension_numbers = #tpu.dot_dimension_numbers<[1], [0], [0], [1], [0, 0, 1, 1], [], []>} : vector<8x72xf32>, vector<72x64xf32>, vector<8x64xf32> -> vector<8x64xf32>
    %c0_210 = arith.constant 0 : index
    %c0_211 = arith.constant 0 : index
    %200 = vector.load %arg9[%c0_210, %c0_211] : memref<8x1xf32, #tpu.memory_space<vmem>>, vector<8x1xf32>
    %201 = vector.broadcast %200 : vector<8x1xf32> to vector<8x64xf32>
    %202 = arith.addf %199, %201 : vector<8x64xf32>
    %cst_212 = arith.constant 0.000000e+00 : f32
    %203 = vector.broadcast %cst_212 : f32 to vector<8x64xf32>
    %204 = arith.cmpf oge, %202, %203 : vector<8x64xf32>
    %cst_213 = arith.constant 2.000000e-01 : f32
    %205 = vector.broadcast %cst_213 : f32 to vector<8x64xf32>
    %206 = arith.mulf %205, %202 : vector<8x64xf32>
    %207 = arith.select %204, %202, %206 : vector<8x64xi1>, vector<8x64xf32>
    %c0_214 = arith.constant 0 : index
    %c0_215 = arith.constant 0 : index
    %208 = vector.load %arg19[%c0_214, %c0_215] : memref<64x256xf32, #tpu.memory_space<vmem>>, vector<64x256xf32>
    %cst_216 = arith.constant dense<0.000000e+00> : vector<8x256xf32>
    %209 = tpu.matmul %207, %208, %cst_216 {dimension_numbers = #tpu.dot_dimension_numbers<[1], [0], [0], [1], [0, 0, 1, 1], [], []>} : vector<8x64xf32>, vector<64x256xf32>, vector<8x256xf32> -> vector<8x256xf32>
    %cst_217 = arith.constant 0.000000e+00 : f32
    %210 = vector.broadcast %cst_217 : f32 to vector<8x290xf32>
    %c0_218 = arith.constant 0 : index
    %c0_219 = arith.constant 0 : index
    %211 = vector.load %arg22[%c0_218, %c0_219] : memref<16x1090xf32, #tpu.memory_space<vmem>>, vector<8x290xf32>
    tpu.vector_store %arg22[%c0_218, %c0_219], %210 {strides = array<i32>} : memref<16x1090xf32, #tpu.memory_space<vmem>>, vector<8x290xf32>,
    %c0_220 = arith.constant 0 : index
    %c17_221 = arith.constant 17 : index
    %212 = vector.load %arg22[%c0_220, %c17_221] : memref<16x1090xf32, #tpu.memory_space<vmem>>, vector<8x256xf32>
    tpu.vector_store %arg22[%c0_220, %c17_221], %209 {strides = array<i32>} : memref<16x1090xf32, #tpu.memory_space<vmem>>, vector<8x256xf32>,
    %213 = tpu.iota {dimensions = array<i32: 1>} : vector<8x256xi32>
    %c15_i32 = arith.constant 15 : i32
    %214 = vector.broadcast %c15_i32 : i32 to vector<8x256xi32>
    %215 = arith.andi %213, %214 : vector<8x256xi32>
    %c1_i32_222 = arith.constant 1 : i32
    %216 = vector.broadcast %c1_i32_222 : i32 to vector<8x256xi32>
    %217 = arith.cmpi sge, %215, %216 : vector<8x256xi32>
    %c14_i32 = arith.constant 14 : i32
    %218 = vector.broadcast %c14_i32 : i32 to vector<8x256xi32>
    %219 = arith.cmpi sle, %215, %218 : vector<8x256xi32>
    %c0_223 = arith.constant 0 : index
    %c0_224 = arith.constant 0 : index
    %220 = vector.load %arg22[%c0_223, %c0_224] : memref<16x1090xf32, #tpu.memory_space<vmem>>, vector<8x256xf32>
    %cst_225 = arith.constant 0.000000e+00 : f32
    %221 = vector.broadcast %cst_225 : f32 to vector<8x256xf32>
    %222 = arith.select %217, %220, %221 : vector<8x256xi1>, vector<8x256xf32>
    %c0_226 = arith.constant 0 : index
    %c0_227 = arith.constant 0 : index
    %223 = vector.load %arg23[%c0_226, %c0_227] : memref<144x1024xf32, #tpu.memory_space<vmem>>, vector<8x256xf32>
    tpu.vector_store %arg23[%c0_226, %c0_227], %222 {strides = array<i32>} : memref<144x1024xf32, #tpu.memory_space<vmem>>, vector<8x256xf32>,
    %c0_228 = arith.constant 0 : index
    %c1_229 = arith.constant 1 : index
    %224 = vector.load %arg22[%c0_228, %c1_229] : memref<16x1090xf32, #tpu.memory_space<vmem>>, vector<8x256xf32>
    %c8_230 = arith.constant 8 : index
    %c0_231 = arith.constant 0 : index
    %225 = vector.load %arg23[%c8_230, %c0_231] : memref<144x1024xf32, #tpu.memory_space<vmem>>, vector<8x256xf32>
    tpu.vector_store %arg23[%c8_230, %c0_231], %224 {strides = array<i32>} : memref<144x1024xf32, #tpu.memory_space<vmem>>, vector<8x256xf32>,
    %c0_232 = arith.constant 0 : index
    %c2_233 = arith.constant 2 : index
    %226 = vector.load %arg22[%c0_232, %c2_233] : memref<16x1090xf32, #tpu.memory_space<vmem>>, vector<8x256xf32>
    %cst_234 = arith.constant 0.000000e+00 : f32
    %227 = vector.broadcast %cst_234 : f32 to vector<8x256xf32>
    %228 = arith.select %219, %226, %227 : vector<8x256xi1>, vector<8x256xf32>
    %c16_235 = arith.constant 16 : index
    %c0_236 = arith.constant 0 : index
    %229 = vector.load %arg23[%c16_235, %c0_236] : memref<144x1024xf32, #tpu.memory_space<vmem>>, vector<8x256xf32>
    tpu.vector_store %arg23[%c16_235, %c0_236], %228 {strides = array<i32>} : memref<144x1024xf32, #tpu.memory_space<vmem>>, vector<8x256xf32>,
    %c0_237 = arith.constant 0 : index
    %c16_238 = arith.constant 16 : index
    %230 = vector.load %arg22[%c0_237, %c16_238] : memref<16x1090xf32, #tpu.memory_space<vmem>>, vector<8x256xf32>
    %cst_239 = arith.constant 0.000000e+00 : f32
    %231 = vector.broadcast %cst_239 : f32 to vector<8x256xf32>
    %232 = arith.select %217, %230, %231 : vector<8x256xi1>, vector<8x256xf32>
    %c24_240 = arith.constant 24 : index
    %c0_241 = arith.constant 0 : index
    %233 = vector.load %arg23[%c24_240, %c0_241] : memref<144x1024xf32, #tpu.memory_space<vmem>>, vector<8x256xf32>
    tpu.vector_store %arg23[%c24_240, %c0_241], %232 {strides = array<i32>} : memref<144x1024xf32, #tpu.memory_space<vmem>>, vector<8x256xf32>,
    %c0_242 = arith.constant 0 : index
    %c17_243 = arith.constant 17 : index
    %234 = vector.load %arg22[%c0_242, %c17_243] : memref<16x1090xf32, #tpu.memory_space<vmem>>, vector<8x256xf32>
    %c32_244 = arith.constant 32 : index
    %c0_245 = arith.constant 0 : index
    %235 = vector.load %arg23[%c32_244, %c0_245] : memref<144x1024xf32, #tpu.memory_space<vmem>>, vector<8x256xf32>
    tpu.vector_store %arg23[%c32_244, %c0_245], %234 {strides = array<i32>} : memref<144x1024xf32, #tpu.memory_space<vmem>>, vector<8x256xf32>,
    %c0_246 = arith.constant 0 : index
    %c18_247 = arith.constant 18 : index
    %236 = vector.load %arg22[%c0_246, %c18_247] : memref<16x1090xf32, #tpu.memory_space<vmem>>, vector<8x256xf32>
    %cst_248 = arith.constant 0.000000e+00 : f32
    %237 = vector.broadcast %cst_248 : f32 to vector<8x256xf32>
    %238 = arith.select %219, %236, %237 : vector<8x256xi1>, vector<8x256xf32>
    %c40_249 = arith.constant 40 : index
    %c0_250 = arith.constant 0 : index
    %239 = vector.load %arg23[%c40_249, %c0_250] : memref<144x1024xf32, #tpu.memory_space<vmem>>, vector<8x256xf32>
    tpu.vector_store %arg23[%c40_249, %c0_250], %238 {strides = array<i32>} : memref<144x1024xf32, #tpu.memory_space<vmem>>, vector<8x256xf32>,
    %c0_251 = arith.constant 0 : index
    %c32_252 = arith.constant 32 : index
    %240 = vector.load %arg22[%c0_251, %c32_252] : memref<16x1090xf32, #tpu.memory_space<vmem>>, vector<8x256xf32>
    %cst_253 = arith.constant 0.000000e+00 : f32
    %241 = vector.broadcast %cst_253 : f32 to vector<8x256xf32>
    %242 = arith.select %217, %240, %241 : vector<8x256xi1>, vector<8x256xf32>
    %c48_254 = arith.constant 48 : index
    %c0_255 = arith.constant 0 : index
    %243 = vector.load %arg23[%c48_254, %c0_255] : memref<144x1024xf32, #tpu.memory_space<vmem>>, vector<8x256xf32>
    tpu.vector_store %arg23[%c48_254, %c0_255], %242 {strides = array<i32>} : memref<144x1024xf32, #tpu.memory_space<vmem>>, vector<8x256xf32>,
    %c0_256 = arith.constant 0 : index
    %c33 = arith.constant 33 : index
    %244 = vector.load %arg22[%c0_256, %c33] : memref<16x1090xf32, #tpu.memory_space<vmem>>, vector<8x256xf32>
    %c56_257 = arith.constant 56 : index
    %c0_258 = arith.constant 0 : index
    %245 = vector.load %arg23[%c56_257, %c0_258] : memref<144x1024xf32, #tpu.memory_space<vmem>>, vector<8x256xf32>
    tpu.vector_store %arg23[%c56_257, %c0_258], %244 {strides = array<i32>} : memref<144x1024xf32, #tpu.memory_space<vmem>>, vector<8x256xf32>,
    %c0_259 = arith.constant 0 : index
    %c34 = arith.constant 34 : index
    %246 = vector.load %arg22[%c0_259, %c34] : memref<16x1090xf32, #tpu.memory_space<vmem>>, vector<8x256xf32>
    %cst_260 = arith.constant 0.000000e+00 : f32
    %247 = vector.broadcast %cst_260 : f32 to vector<8x256xf32>
    %248 = arith.select %219, %246, %247 : vector<8x256xi1>, vector<8x256xf32>
    %c64_261 = arith.constant 64 : index
    %c0_262 = arith.constant 0 : index
    %249 = vector.load %arg23[%c64_261, %c0_262] : memref<144x1024xf32, #tpu.memory_space<vmem>>, vector<8x256xf32>
    tpu.vector_store %arg23[%c64_261, %c0_262], %248 {strides = array<i32>} : memref<144x1024xf32, #tpu.memory_space<vmem>>, vector<8x256xf32>,
    %c0_263 = arith.constant 0 : index
    %c0_264 = arith.constant 0 : index
    %250 = vector.load %arg23[%c0_263, %c0_264] : memref<144x1024xf32, #tpu.memory_space<vmem>>, vector<72x256xf32>
    %c0_265 = arith.constant 0 : index
    %c0_266 = arith.constant 0 : index
    %251 = vector.load %arg10[%c0_265, %c0_266] : memref<16x72xf32, #tpu.memory_space<vmem>>, vector<16x72xf32>
    %cst_267 = arith.constant dense<0.000000e+00> : vector<16x256xf32>
    %252 = tpu.matmul %251, %250, %cst_267 {dimension_numbers = #tpu.dot_dimension_numbers<[1], [0], [0], [1], [0, 0, 1, 1], [], []>} : vector<16x72xf32>, vector<72x256xf32>, vector<16x256xf32> -> vector<16x256xf32>
    %c0_268 = arith.constant 0 : index
    %c0_269 = arith.constant 0 : index
    %253 = vector.load %arg11[%c0_268, %c0_269] : memref<16x1xf32, #tpu.memory_space<vmem>>, vector<16x1xf32>
    %254 = vector.broadcast %253 : vector<16x1xf32> to vector<16x256xf32>
    %255 = arith.addf %252, %254 : vector<16x256xf32>
    %cst_270 = arith.constant 0.000000e+00 : f32
    %256 = vector.broadcast %cst_270 : f32 to vector<16x256xf32>
    %257 = arith.cmpf oge, %255, %256 : vector<16x256xf32>
    %cst_271 = arith.constant 2.000000e-01 : f32
    %258 = vector.broadcast %cst_271 : f32 to vector<16x256xf32>
    %259 = arith.mulf %258, %255 : vector<16x256xf32>
    %260 = arith.select %257, %255, %259 : vector<16x256xi1>, vector<16x256xf32>
    %cst_272 = arith.constant 0.000000e+00 : f32
    %261 = vector.broadcast %cst_272 : f32 to vector<16x290xf32>
    %c0_273 = arith.constant 0 : index
    %c0_274 = arith.constant 0 : index
    %262 = vector.load %arg22[%c0_273, %c0_274] : memref<16x1090xf32, #tpu.memory_space<vmem>>, vector<16x290xf32>
    tpu.vector_store %arg22[%c0_273, %c0_274], %261 {strides = array<i32>} : memref<16x1090xf32, #tpu.memory_space<vmem>>, vector<16x290xf32>,
    %c0_275 = arith.constant 0 : index
    %c17_276 = arith.constant 17 : index
    %263 = vector.load %arg22[%c0_275, %c17_276] : memref<16x1090xf32, #tpu.memory_space<vmem>>, vector<16x256xf32>
    tpu.vector_store %arg22[%c0_275, %c17_276], %260 {strides = array<i32>} : memref<16x1090xf32, #tpu.memory_space<vmem>>, vector<16x256xf32>,
    %264 = tpu.iota {dimensions = array<i32: 1>} : vector<16x256xi32>
    %c15_i32_277 = arith.constant 15 : i32
    %265 = vector.broadcast %c15_i32_277 : i32 to vector<16x256xi32>
    %266 = arith.andi %264, %265 : vector<16x256xi32>
    %c1_i32_278 = arith.constant 1 : i32
    %267 = vector.broadcast %c1_i32_278 : i32 to vector<16x256xi32>
    %268 = arith.cmpi sge, %266, %267 : vector<16x256xi32>
    %c14_i32_279 = arith.constant 14 : i32
    %269 = vector.broadcast %c14_i32_279 : i32 to vector<16x256xi32>
    %270 = arith.cmpi sle, %266, %269 : vector<16x256xi32>
    %c0_280 = arith.constant 0 : index
    %c0_281 = arith.constant 0 : index
    %271 = vector.load %arg22[%c0_280, %c0_281] : memref<16x1090xf32, #tpu.memory_space<vmem>>, vector<16x256xf32>
    %cst_282 = arith.constant 0.000000e+00 : f32
    %272 = vector.broadcast %cst_282 : f32 to vector<16x256xf32>
    %273 = arith.select %268, %271, %272 : vector<16x256xi1>, vector<16x256xf32>
    %c0_283 = arith.constant 0 : index
    %c0_284 = arith.constant 0 : index
    %274 = vector.load %arg23[%c0_283, %c0_284] : memref<144x1024xf32, #tpu.memory_space<vmem>>, vector<16x256xf32>
    tpu.vector_store %arg23[%c0_283, %c0_284], %273 {strides = array<i32>} : memref<144x1024xf32, #tpu.memory_space<vmem>>, vector<16x256xf32>,
    %c0_285 = arith.constant 0 : index
    %c1_286 = arith.constant 1 : index
    %275 = vector.load %arg22[%c0_285, %c1_286] : memref<16x1090xf32, #tpu.memory_space<vmem>>, vector<16x256xf32>
    %c16_287 = arith.constant 16 : index
    %c0_288 = arith.constant 0 : index
    %276 = vector.load %arg23[%c16_287, %c0_288] : memref<144x1024xf32, #tpu.memory_space<vmem>>, vector<16x256xf32>
    tpu.vector_store %arg23[%c16_287, %c0_288], %275 {strides = array<i32>} : memref<144x1024xf32, #tpu.memory_space<vmem>>, vector<16x256xf32>,
    %c0_289 = arith.constant 0 : index
    %c2_290 = arith.constant 2 : index
    %277 = vector.load %arg22[%c0_289, %c2_290] : memref<16x1090xf32, #tpu.memory_space<vmem>>, vector<16x256xf32>
    %cst_291 = arith.constant 0.000000e+00 : f32
    %278 = vector.broadcast %cst_291 : f32 to vector<16x256xf32>
    %279 = arith.select %270, %277, %278 : vector<16x256xi1>, vector<16x256xf32>
    %c32_292 = arith.constant 32 : index
    %c0_293 = arith.constant 0 : index
    %280 = vector.load %arg23[%c32_292, %c0_293] : memref<144x1024xf32, #tpu.memory_space<vmem>>, vector<16x256xf32>
    tpu.vector_store %arg23[%c32_292, %c0_293], %279 {strides = array<i32>} : memref<144x1024xf32, #tpu.memory_space<vmem>>, vector<16x256xf32>,
    %c0_294 = arith.constant 0 : index
    %c16_295 = arith.constant 16 : index
    %281 = vector.load %arg22[%c0_294, %c16_295] : memref<16x1090xf32, #tpu.memory_space<vmem>>, vector<16x256xf32>
    %cst_296 = arith.constant 0.000000e+00 : f32
    %282 = vector.broadcast %cst_296 : f32 to vector<16x256xf32>
    %283 = arith.select %268, %281, %282 : vector<16x256xi1>, vector<16x256xf32>
    %c48_297 = arith.constant 48 : index
    %c0_298 = arith.constant 0 : index
    %284 = vector.load %arg23[%c48_297, %c0_298] : memref<144x1024xf32, #tpu.memory_space<vmem>>, vector<16x256xf32>
    tpu.vector_store %arg23[%c48_297, %c0_298], %283 {strides = array<i32>} : memref<144x1024xf32, #tpu.memory_space<vmem>>, vector<16x256xf32>,
    %c0_299 = arith.constant 0 : index
    %c17_300 = arith.constant 17 : index
    %285 = vector.load %arg22[%c0_299, %c17_300] : memref<16x1090xf32, #tpu.memory_space<vmem>>, vector<16x256xf32>
    %c64_301 = arith.constant 64 : index
    %c0_302 = arith.constant 0 : index
    %286 = vector.load %arg23[%c64_301, %c0_302] : memref<144x1024xf32, #tpu.memory_space<vmem>>, vector<16x256xf32>
    tpu.vector_store %arg23[%c64_301, %c0_302], %285 {strides = array<i32>} : memref<144x1024xf32, #tpu.memory_space<vmem>>, vector<16x256xf32>,
    %c0_303 = arith.constant 0 : index
    %c18_304 = arith.constant 18 : index
    %287 = vector.load %arg22[%c0_303, %c18_304] : memref<16x1090xf32, #tpu.memory_space<vmem>>, vector<16x256xf32>
    %cst_305 = arith.constant 0.000000e+00 : f32
    %288 = vector.broadcast %cst_305 : f32 to vector<16x256xf32>
    %289 = arith.select %270, %287, %288 : vector<16x256xi1>, vector<16x256xf32>
    %c80 = arith.constant 80 : index
    %c0_306 = arith.constant 0 : index
    %290 = vector.load %arg23[%c80, %c0_306] : memref<144x1024xf32, #tpu.memory_space<vmem>>, vector<16x256xf32>
    tpu.vector_store %arg23[%c80, %c0_306], %289 {strides = array<i32>} : memref<144x1024xf32, #tpu.memory_space<vmem>>, vector<16x256xf32>,
    %c0_307 = arith.constant 0 : index
    %c32_308 = arith.constant 32 : index
    %291 = vector.load %arg22[%c0_307, %c32_308] : memref<16x1090xf32, #tpu.memory_space<vmem>>, vector<16x256xf32>
    %cst_309 = arith.constant 0.000000e+00 : f32
    %292 = vector.broadcast %cst_309 : f32 to vector<16x256xf32>
    %293 = arith.select %268, %291, %292 : vector<16x256xi1>, vector<16x256xf32>
    %c96 = arith.constant 96 : index
    %c0_310 = arith.constant 0 : index
    %294 = vector.load %arg23[%c96, %c0_310] : memref<144x1024xf32, #tpu.memory_space<vmem>>, vector<16x256xf32>
    tpu.vector_store %arg23[%c96, %c0_310], %293 {strides = array<i32>} : memref<144x1024xf32, #tpu.memory_space<vmem>>, vector<16x256xf32>,
    %c0_311 = arith.constant 0 : index
    %c33_312 = arith.constant 33 : index
    %295 = vector.load %arg22[%c0_311, %c33_312] : memref<16x1090xf32, #tpu.memory_space<vmem>>, vector<16x256xf32>
    %c112 = arith.constant 112 : index
    %c0_313 = arith.constant 0 : index
    %296 = vector.load %arg23[%c112, %c0_313] : memref<144x1024xf32, #tpu.memory_space<vmem>>, vector<16x256xf32>
    tpu.vector_store %arg23[%c112, %c0_313], %295 {strides = array<i32>} : memref<144x1024xf32, #tpu.memory_space<vmem>>, vector<16x256xf32>,
    %c0_314 = arith.constant 0 : index
    %c34_315 = arith.constant 34 : index
    %297 = vector.load %arg22[%c0_314, %c34_315] : memref<16x1090xf32, #tpu.memory_space<vmem>>, vector<16x256xf32>
    %cst_316 = arith.constant 0.000000e+00 : f32
    %298 = vector.broadcast %cst_316 : f32 to vector<16x256xf32>
    %299 = arith.select %270, %297, %298 : vector<16x256xi1>, vector<16x256xf32>
    %c128 = arith.constant 128 : index
    %c0_317 = arith.constant 0 : index
    %300 = vector.load %arg23[%c128, %c0_317] : memref<144x1024xf32, #tpu.memory_space<vmem>>, vector<16x256xf32>
    tpu.vector_store %arg23[%c128, %c0_317], %299 {strides = array<i32>} : memref<144x1024xf32, #tpu.memory_space<vmem>>, vector<16x256xf32>,
    %c0_318 = arith.constant 0 : index
    %c0_319 = arith.constant 0 : index
    %301 = vector.load %arg23[%c0_318, %c0_319] : memref<144x1024xf32, #tpu.memory_space<vmem>>, vector<144x256xf32>
    %c0_320 = arith.constant 0 : index
    %c0_321 = arith.constant 0 : index
    %302 = vector.load %arg12[%c0_320, %c0_321] : memref<16x144xf32, #tpu.memory_space<vmem>>, vector<16x144xf32>
    %cst_322 = arith.constant dense<0.000000e+00> : vector<16x256xf32>
    %303 = tpu.matmul %302, %301, %cst_322 {dimension_numbers = #tpu.dot_dimension_numbers<[1], [0], [0], [1], [0, 0, 1, 1], [], []>} : vector<16x144xf32>, vector<144x256xf32>, vector<16x256xf32> -> vector<16x256xf32>
    %c0_323 = arith.constant 0 : index
    %c0_324 = arith.constant 0 : index
    %304 = vector.load %arg13[%c0_323, %c0_324] : memref<16x1xf32, #tpu.memory_space<vmem>>, vector<16x1xf32>
    %305 = vector.broadcast %304 : vector<16x1xf32> to vector<16x256xf32>
    %306 = arith.addf %303, %305 : vector<16x256xf32>
    %cst_325 = arith.constant 0.000000e+00 : f32
    %307 = vector.broadcast %cst_325 : f32 to vector<16x256xf32>
    %308 = arith.cmpf oge, %306, %307 : vector<16x256xf32>
    %cst_326 = arith.constant 2.000000e-01 : f32
    %309 = vector.broadcast %cst_326 : f32 to vector<16x256xf32>
    %310 = arith.mulf %309, %306 : vector<16x256xf32>
    %311 = arith.select %308, %306, %310 : vector<16x256xi1>, vector<16x256xf32>
    %c0_327 = arith.constant 0 : index
    %c0_328 = arith.constant 0 : index
    %312 = vector.load %arg20[%c0_327, %c0_328] : memref<256x1024xf32, #tpu.memory_space<vmem>>, vector<256x1024xf32>
    %cst_329 = arith.constant dense<0.000000e+00> : vector<16x1024xf32>
    %313 = tpu.matmul %311, %312, %cst_329 {dimension_numbers = #tpu.dot_dimension_numbers<[1], [0], [0], [1], [0, 0, 1, 1], [], []>} : vector<16x256xf32>, vector<256x1024xf32>, vector<16x1024xf32> -> vector<16x1024xf32>
    %cst_330 = arith.constant 0.000000e+00 : f32
    %314 = vector.broadcast %cst_330 : f32 to vector<16x1090xf32>
    %c0_331 = arith.constant 0 : index
    %c0_332 = arith.constant 0 : index
    %315 = vector.load %arg22[%c0_331, %c0_332] : memref<16x1090xf32, #tpu.memory_space<vmem>>, vector<16x1090xf32>
    tpu.vector_store %arg22[%c0_331, %c0_332], %314 {strides = array<i32>} : memref<16x1090xf32, #tpu.memory_space<vmem>>, vector<16x1090xf32>,
    %c0_333 = arith.constant 0 : index
    %c33_334 = arith.constant 33 : index
    %316 = vector.load %arg22[%c0_333, %c33_334] : memref<16x1090xf32, #tpu.memory_space<vmem>>, vector<16x1024xf32>
    tpu.vector_store %arg22[%c0_333, %c33_334], %313 {strides = array<i32>} : memref<16x1090xf32, #tpu.memory_space<vmem>>, vector<16x1024xf32>,
    %317 = tpu.iota {dimensions = array<i32: 1>} : vector<16x1024xi32>
    %c31_i32 = arith.constant 31 : i32
    %318 = vector.broadcast %c31_i32 : i32 to vector<16x1024xi32>
    %319 = arith.andi %317, %318 : vector<16x1024xi32>
    %c1_i32_335 = arith.constant 1 : i32
    %320 = vector.broadcast %c1_i32_335 : i32 to vector<16x1024xi32>
    %321 = arith.cmpi sge, %319, %320 : vector<16x1024xi32>
    %c30_i32 = arith.constant 30 : i32
    %322 = vector.broadcast %c30_i32 : i32 to vector<16x1024xi32>
    %323 = arith.cmpi sle, %319, %322 : vector<16x1024xi32>
    %c0_336 = arith.constant 0 : index
    %c0_337 = arith.constant 0 : index
    %324 = vector.load %arg22[%c0_336, %c0_337] : memref<16x1090xf32, #tpu.memory_space<vmem>>, vector<16x1024xf32>
    %cst_338 = arith.constant 0.000000e+00 : f32
    %325 = vector.broadcast %cst_338 : f32 to vector<16x1024xf32>
    %326 = arith.select %321, %324, %325 : vector<16x1024xi1>, vector<16x1024xf32>
    %c0_339 = arith.constant 0 : index
    %c0_340 = arith.constant 0 : index
    %327 = vector.load %arg23[%c0_339, %c0_340] : memref<144x1024xf32, #tpu.memory_space<vmem>>, vector<16x1024xf32>
    tpu.vector_store %arg23[%c0_339, %c0_340], %326 {strides = array<i32>} : memref<144x1024xf32, #tpu.memory_space<vmem>>, vector<16x1024xf32>,
    %c0_341 = arith.constant 0 : index
    %c1_342 = arith.constant 1 : index
    %328 = vector.load %arg22[%c0_341, %c1_342] : memref<16x1090xf32, #tpu.memory_space<vmem>>, vector<16x1024xf32>
    %c16_343 = arith.constant 16 : index
    %c0_344 = arith.constant 0 : index
    %329 = vector.load %arg23[%c16_343, %c0_344] : memref<144x1024xf32, #tpu.memory_space<vmem>>, vector<16x1024xf32>
    tpu.vector_store %arg23[%c16_343, %c0_344], %328 {strides = array<i32>} : memref<144x1024xf32, #tpu.memory_space<vmem>>, vector<16x1024xf32>,
    %c0_345 = arith.constant 0 : index
    %c2_346 = arith.constant 2 : index
    %330 = vector.load %arg22[%c0_345, %c2_346] : memref<16x1090xf32, #tpu.memory_space<vmem>>, vector<16x1024xf32>
    %cst_347 = arith.constant 0.000000e+00 : f32
    %331 = vector.broadcast %cst_347 : f32 to vector<16x1024xf32>
    %332 = arith.select %323, %330, %331 : vector<16x1024xi1>, vector<16x1024xf32>
    %c32_348 = arith.constant 32 : index
    %c0_349 = arith.constant 0 : index
    %333 = vector.load %arg23[%c32_348, %c0_349] : memref<144x1024xf32, #tpu.memory_space<vmem>>, vector<16x1024xf32>
    tpu.vector_store %arg23[%c32_348, %c0_349], %332 {strides = array<i32>} : memref<144x1024xf32, #tpu.memory_space<vmem>>, vector<16x1024xf32>,
    %c0_350 = arith.constant 0 : index
    %c32_351 = arith.constant 32 : index
    %334 = vector.load %arg22[%c0_350, %c32_351] : memref<16x1090xf32, #tpu.memory_space<vmem>>, vector<16x1024xf32>
    %cst_352 = arith.constant 0.000000e+00 : f32
    %335 = vector.broadcast %cst_352 : f32 to vector<16x1024xf32>
    %336 = arith.select %321, %334, %335 : vector<16x1024xi1>, vector<16x1024xf32>
    %c48_353 = arith.constant 48 : index
    %c0_354 = arith.constant 0 : index
    %337 = vector.load %arg23[%c48_353, %c0_354] : memref<144x1024xf32, #tpu.memory_space<vmem>>, vector<16x1024xf32>
    tpu.vector_store %arg23[%c48_353, %c0_354], %336 {strides = array<i32>} : memref<144x1024xf32, #tpu.memory_space<vmem>>, vector<16x1024xf32>,
    %c0_355 = arith.constant 0 : index
    %c33_356 = arith.constant 33 : index
    %338 = vector.load %arg22[%c0_355, %c33_356] : memref<16x1090xf32, #tpu.memory_space<vmem>>, vector<16x1024xf32>
    %c64_357 = arith.constant 64 : index
    %c0_358 = arith.constant 0 : index
    %339 = vector.load %arg23[%c64_357, %c0_358] : memref<144x1024xf32, #tpu.memory_space<vmem>>, vector<16x1024xf32>
    tpu.vector_store %arg23[%c64_357, %c0_358], %338 {strides = array<i32>} : memref<144x1024xf32, #tpu.memory_space<vmem>>, vector<16x1024xf32>,
    %c0_359 = arith.constant 0 : index
    %c34_360 = arith.constant 34 : index
    %340 = vector.load %arg22[%c0_359, %c34_360] : memref<16x1090xf32, #tpu.memory_space<vmem>>, vector<16x1024xf32>
    %cst_361 = arith.constant 0.000000e+00 : f32
    %341 = vector.broadcast %cst_361 : f32 to vector<16x1024xf32>
    %342 = arith.select %323, %340, %341 : vector<16x1024xi1>, vector<16x1024xf32>
    %c80_362 = arith.constant 80 : index
    %c0_363 = arith.constant 0 : index
    %343 = vector.load %arg23[%c80_362, %c0_363] : memref<144x1024xf32, #tpu.memory_space<vmem>>, vector<16x1024xf32>
    tpu.vector_store %arg23[%c80_362, %c0_363], %342 {strides = array<i32>} : memref<144x1024xf32, #tpu.memory_space<vmem>>, vector<16x1024xf32>,
    %c0_364 = arith.constant 0 : index
    %c64_365 = arith.constant 64 : index
    %344 = vector.load %arg22[%c0_364, %c64_365] : memref<16x1090xf32, #tpu.memory_space<vmem>>, vector<16x1024xf32>
    %cst_366 = arith.constant 0.000000e+00 : f32
    %345 = vector.broadcast %cst_366 : f32 to vector<16x1024xf32>
    %346 = arith.select %321, %344, %345 : vector<16x1024xi1>, vector<16x1024xf32>
    %c96_367 = arith.constant 96 : index
    %c0_368 = arith.constant 0 : index
    %347 = vector.load %arg23[%c96_367, %c0_368] : memref<144x1024xf32, #tpu.memory_space<vmem>>, vector<16x1024xf32>
    tpu.vector_store %arg23[%c96_367, %c0_368], %346 {strides = array<i32>} : memref<144x1024xf32, #tpu.memory_space<vmem>>, vector<16x1024xf32>,
    %c0_369 = arith.constant 0 : index
    %c65 = arith.constant 65 : index
    %348 = vector.load %arg22[%c0_369, %c65] : memref<16x1090xf32, #tpu.memory_space<vmem>>, vector<16x1024xf32>
    %c112_370 = arith.constant 112 : index
    %c0_371 = arith.constant 0 : index
    %349 = vector.load %arg23[%c112_370, %c0_371] : memref<144x1024xf32, #tpu.memory_space<vmem>>, vector<16x1024xf32>
    tpu.vector_store %arg23[%c112_370, %c0_371], %348 {strides = array<i32>} : memref<144x1024xf32, #tpu.memory_space<vmem>>, vector<16x1024xf32>,
    %c0_372 = arith.constant 0 : index
    %c66 = arith.constant 66 : index
    %350 = vector.load %arg22[%c0_372, %c66] : memref<16x1090xf32, #tpu.memory_space<vmem>>, vector<16x1024xf32>
    %cst_373 = arith.constant 0.000000e+00 : f32
    %351 = vector.broadcast %cst_373 : f32 to vector<16x1024xf32>
    %352 = arith.select %323, %350, %351 : vector<16x1024xi1>, vector<16x1024xf32>
    %c128_374 = arith.constant 128 : index
    %c0_375 = arith.constant 0 : index
    %353 = vector.load %arg23[%c128_374, %c0_375] : memref<144x1024xf32, #tpu.memory_space<vmem>>, vector<16x1024xf32>
    tpu.vector_store %arg23[%c128_374, %c0_375], %352 {strides = array<i32>} : memref<144x1024xf32, #tpu.memory_space<vmem>>, vector<16x1024xf32>,
    %c0_376 = arith.constant 0 : index
    %c0_377 = arith.constant 0 : index
    %354 = vector.load %arg23[%c0_376, %c0_377] : memref<144x1024xf32, #tpu.memory_space<vmem>>, vector<144x1024xf32>
    %c0_378 = arith.constant 0 : index
    %c0_379 = arith.constant 0 : index
    %355 = vector.load %arg14[%c0_378, %c0_379] : memref<16x144xf32, #tpu.memory_space<vmem>>, vector<16x144xf32>
    %cst_380 = arith.constant dense<0.000000e+00> : vector<16x1024xf32>
    %356 = tpu.matmul %355, %354, %cst_380 {dimension_numbers = #tpu.dot_dimension_numbers<[1], [0], [0], [1], [0, 0, 1, 1], [], []>} : vector<16x144xf32>, vector<144x1024xf32>, vector<16x1024xf32> -> vector<16x1024xf32>
    %c0_381 = arith.constant 0 : index
    %c0_382 = arith.constant 0 : index
    %357 = vector.load %arg15[%c0_381, %c0_382] : memref<16x1xf32, #tpu.memory_space<vmem>>, vector<16x1xf32>
    %358 = vector.broadcast %357 : vector<16x1xf32> to vector<16x1024xf32>
    %359 = arith.addf %356, %358 : vector<16x1024xf32>
    %cst_383 = arith.constant 0.000000e+00 : f32
    %360 = vector.broadcast %cst_383 : f32 to vector<16x1024xf32>
    %361 = arith.cmpf oge, %359, %360 : vector<16x1024xf32>
    %cst_384 = arith.constant 2.000000e-01 : f32
    %362 = vector.broadcast %cst_384 : f32 to vector<16x1024xf32>
    %363 = arith.mulf %362, %359 : vector<16x1024xf32>
    %364 = arith.select %361, %359, %363 : vector<16x1024xi1>, vector<16x1024xf32>
    %cst_385 = arith.constant 0.000000e+00 : f32
    %365 = vector.broadcast %cst_385 : f32 to vector<16x1090xf32>
    %c0_386 = arith.constant 0 : index
    %c0_387 = arith.constant 0 : index
    %366 = vector.load %arg22[%c0_386, %c0_387] : memref<16x1090xf32, #tpu.memory_space<vmem>>, vector<16x1090xf32>
    tpu.vector_store %arg22[%c0_386, %c0_387], %365 {strides = array<i32>} : memref<16x1090xf32, #tpu.memory_space<vmem>>, vector<16x1090xf32>,
    %c0_388 = arith.constant 0 : index
    %c33_389 = arith.constant 33 : index
    %367 = vector.load %arg22[%c0_388, %c33_389] : memref<16x1090xf32, #tpu.memory_space<vmem>>, vector<16x1024xf32>
    tpu.vector_store %arg22[%c0_388, %c33_389], %364 {strides = array<i32>} : memref<16x1090xf32, #tpu.memory_space<vmem>>, vector<16x1024xf32>,
    %368 = tpu.iota {dimensions = array<i32: 1>} : vector<16x1024xi32>
    %c31_i32_390 = arith.constant 31 : i32
    %369 = vector.broadcast %c31_i32_390 : i32 to vector<16x1024xi32>
    %370 = arith.andi %368, %369 : vector<16x1024xi32>
    %c1_i32_391 = arith.constant 1 : i32
    %371 = vector.broadcast %c1_i32_391 : i32 to vector<16x1024xi32>
    %372 = arith.cmpi sge, %370, %371 : vector<16x1024xi32>
    %c30_i32_392 = arith.constant 30 : i32
    %373 = vector.broadcast %c30_i32_392 : i32 to vector<16x1024xi32>
    %374 = arith.cmpi sle, %370, %373 : vector<16x1024xi32>
    %c0_393 = arith.constant 0 : index
    %c0_394 = arith.constant 0 : index
    %375 = vector.load %arg22[%c0_393, %c0_394] : memref<16x1090xf32, #tpu.memory_space<vmem>>, vector<16x1024xf32>
    %cst_395 = arith.constant 0.000000e+00 : f32
    %376 = vector.broadcast %cst_395 : f32 to vector<16x1024xf32>
    %377 = arith.select %372, %375, %376 : vector<16x1024xi1>, vector<16x1024xf32>
    %c0_396 = arith.constant 0 : index
    %c0_397 = arith.constant 0 : index
    %378 = vector.load %arg23[%c0_396, %c0_397] : memref<144x1024xf32, #tpu.memory_space<vmem>>, vector<16x1024xf32>
    tpu.vector_store %arg23[%c0_396, %c0_397], %377 {strides = array<i32>} : memref<144x1024xf32, #tpu.memory_space<vmem>>, vector<16x1024xf32>,
    %c0_398 = arith.constant 0 : index
    %c1_399 = arith.constant 1 : index
    %379 = vector.load %arg22[%c0_398, %c1_399] : memref<16x1090xf32, #tpu.memory_space<vmem>>, vector<16x1024xf32>
    %c16_400 = arith.constant 16 : index
    %c0_401 = arith.constant 0 : index
    %380 = vector.load %arg23[%c16_400, %c0_401] : memref<144x1024xf32, #tpu.memory_space<vmem>>, vector<16x1024xf32>
    tpu.vector_store %arg23[%c16_400, %c0_401], %379 {strides = array<i32>} : memref<144x1024xf32, #tpu.memory_space<vmem>>, vector<16x1024xf32>,
    %c0_402 = arith.constant 0 : index
    %c2_403 = arith.constant 2 : index
    %381 = vector.load %arg22[%c0_402, %c2_403] : memref<16x1090xf32, #tpu.memory_space<vmem>>, vector<16x1024xf32>
    %cst_404 = arith.constant 0.000000e+00 : f32
    %382 = vector.broadcast %cst_404 : f32 to vector<16x1024xf32>
    %383 = arith.select %374, %381, %382 : vector<16x1024xi1>, vector<16x1024xf32>
    %c32_405 = arith.constant 32 : index
    %c0_406 = arith.constant 0 : index
    %384 = vector.load %arg23[%c32_405, %c0_406] : memref<144x1024xf32, #tpu.memory_space<vmem>>, vector<16x1024xf32>
    tpu.vector_store %arg23[%c32_405, %c0_406], %383 {strides = array<i32>} : memref<144x1024xf32, #tpu.memory_space<vmem>>, vector<16x1024xf32>,
    %c0_407 = arith.constant 0 : index
    %c32_408 = arith.constant 32 : index
    %385 = vector.load %arg22[%c0_407, %c32_408] : memref<16x1090xf32, #tpu.memory_space<vmem>>, vector<16x1024xf32>
    %cst_409 = arith.constant 0.000000e+00 : f32
    %386 = vector.broadcast %cst_409 : f32 to vector<16x1024xf32>
    %387 = arith.select %372, %385, %386 : vector<16x1024xi1>, vector<16x1024xf32>
    %c48_410 = arith.constant 48 : index
    %c0_411 = arith.constant 0 : index
    %388 = vector.load %arg23[%c48_410, %c0_411] : memref<144x1024xf32, #tpu.memory_space<vmem>>, vector<16x1024xf32>
    tpu.vector_store %arg23[%c48_410, %c0_411], %387 {strides = array<i32>} : memref<144x1024xf32, #tpu.memory_space<vmem>>, vector<16x1024xf32>,
    %c0_412 = arith.constant 0 : index
    %c33_413 = arith.constant 33 : index
    %389 = vector.load %arg22[%c0_412, %c33_413] : memref<16x1090xf32, #tpu.memory_space<vmem>>, vector<16x1024xf32>
    %c64_414 = arith.constant 64 : index
    %c0_415 = arith.constant 0 : index
    %390 = vector.load %arg23[%c64_414, %c0_415] : memref<144x1024xf32, #tpu.memory_space<vmem>>, vector<16x1024xf32>
    tpu.vector_store %arg23[%c64_414, %c0_415], %389 {strides = array<i32>} : memref<144x1024xf32, #tpu.memory_space<vmem>>, vector<16x1024xf32>,
    %c0_416 = arith.constant 0 : index
    %c34_417 = arith.constant 34 : index
    %391 = vector.load %arg22[%c0_416, %c34_417] : memref<16x1090xf32, #tpu.memory_space<vmem>>, vector<16x1024xf32>
    %cst_418 = arith.constant 0.000000e+00 : f32
    %392 = vector.broadcast %cst_418 : f32 to vector<16x1024xf32>
    %393 = arith.select %374, %391, %392 : vector<16x1024xi1>, vector<16x1024xf32>
    %c80_419 = arith.constant 80 : index
    %c0_420 = arith.constant 0 : index
    %394 = vector.load %arg23[%c80_419, %c0_420] : memref<144x1024xf32, #tpu.memory_space<vmem>>, vector<16x1024xf32>
    tpu.vector_store %arg23[%c80_419, %c0_420], %393 {strides = array<i32>} : memref<144x1024xf32, #tpu.memory_space<vmem>>, vector<16x1024xf32>,
    %c0_421 = arith.constant 0 : index
    %c64_422 = arith.constant 64 : index
    %395 = vector.load %arg22[%c0_421, %c64_422] : memref<16x1090xf32, #tpu.memory_space<vmem>>, vector<16x1024xf32>
    %cst_423 = arith.constant 0.000000e+00 : f32
    %396 = vector.broadcast %cst_423 : f32 to vector<16x1024xf32>
    %397 = arith.select %372, %395, %396 : vector<16x1024xi1>, vector<16x1024xf32>
    %c96_424 = arith.constant 96 : index
    %c0_425 = arith.constant 0 : index
    %398 = vector.load %arg23[%c96_424, %c0_425] : memref<144x1024xf32, #tpu.memory_space<vmem>>, vector<16x1024xf32>
    tpu.vector_store %arg23[%c96_424, %c0_425], %397 {strides = array<i32>} : memref<144x1024xf32, #tpu.memory_space<vmem>>, vector<16x1024xf32>,
    %c0_426 = arith.constant 0 : index
    %c65_427 = arith.constant 65 : index
    %399 = vector.load %arg22[%c0_426, %c65_427] : memref<16x1090xf32, #tpu.memory_space<vmem>>, vector<16x1024xf32>
    %c112_428 = arith.constant 112 : index
    %c0_429 = arith.constant 0 : index
    %400 = vector.load %arg23[%c112_428, %c0_429] : memref<144x1024xf32, #tpu.memory_space<vmem>>, vector<16x1024xf32>
    tpu.vector_store %arg23[%c112_428, %c0_429], %399 {strides = array<i32>} : memref<144x1024xf32, #tpu.memory_space<vmem>>, vector<16x1024xf32>,
    %c0_430 = arith.constant 0 : index
    %c66_431 = arith.constant 66 : index
    %401 = vector.load %arg22[%c0_430, %c66_431] : memref<16x1090xf32, #tpu.memory_space<vmem>>, vector<16x1024xf32>
    %cst_432 = arith.constant 0.000000e+00 : f32
    %402 = vector.broadcast %cst_432 : f32 to vector<16x1024xf32>
    %403 = arith.select %374, %401, %402 : vector<16x1024xi1>, vector<16x1024xf32>
    %c128_433 = arith.constant 128 : index
    %c0_434 = arith.constant 0 : index
    %404 = vector.load %arg23[%c128_433, %c0_434] : memref<144x1024xf32, #tpu.memory_space<vmem>>, vector<16x1024xf32>
    tpu.vector_store %arg23[%c128_433, %c0_434], %403 {strides = array<i32>} : memref<144x1024xf32, #tpu.memory_space<vmem>>, vector<16x1024xf32>,
    %c0_435 = arith.constant 0 : index
    %c0_436 = arith.constant 0 : index
    %405 = vector.load %arg23[%c0_435, %c0_436] : memref<144x1024xf32, #tpu.memory_space<vmem>>, vector<144x1024xf32>
    %c0_437 = arith.constant 0 : index
    %c0_438 = arith.constant 0 : index
    %406 = vector.load %arg16[%c0_437, %c0_438] : memref<1x144xf32, #tpu.memory_space<vmem>>, vector<1x144xf32>
    %cst_439 = arith.constant dense<0.000000e+00> : vector<1x1024xf32>
    %407 = tpu.matmul %406, %405, %cst_439 {dimension_numbers = #tpu.dot_dimension_numbers<[1], [0], [0], [1], [0, 0, 1, 1], [], []>} : vector<1x144xf32>, vector<144x1024xf32>, vector<1x1024xf32> -> vector<1x1024xf32>
    %c0_440 = arith.constant 0 : index
    %c0_441 = arith.constant 0 : index
    %408 = vector.load %arg17[%c0_440, %c0_441] : memref<1x1xf32, #tpu.memory_space<vmem>>, vector<1x1xf32>
    %409 = vector.broadcast %408 : vector<1x1xf32> to vector<1x1024xf32>
    %410 = arith.addf %407, %409 : vector<1x1024xf32>
    %c0_442 = arith.constant 0 : index
    %c0_443 = arith.constant 0 : index
    %c0_444 = arith.constant 0 : index
    %411 = vector.load %arg21[%c0_442, %c0_443, %c0_444] : memref<1x1x1024xf32, #tpu.memory_space<vmem>>, vector<1x1x1024xf32>
    %412 = vector.shape_cast %411 : vector<1x1x1024xf32> to vector<1x1024xf32>
    %413 = vector.shape_cast %410 : vector<1x1024xf32> to vector<1x1x1024xf32>
    tpu.vector_store %arg21[%c0_442, %c0_443, %c0_444], %413 {strides = array<i32>} : memref<1x1x1024xf32, #tpu.memory_space<vmem>>, vector<1x1x1024xf32>,
    return
  }
  func.func @transform_0(%arg0: i32) -> (i32, i32, i32) {
    %c0_i32 = arith.constant 0 : i32
    %c0_i32_0 = arith.constant 0 : i32
    %c0_i32_1 = arith.constant 0 : i32
    return %arg0, %c0_i32, %c0_i32_0 : i32, i32, i32
  }
  func.func @transform_1(%arg0: i32) -> (i32, i32) {
    %c0_i32 = arith.constant 0 : i32
    %c0_i32_0 = arith.constant 0 : i32
    %c0_i32_1 = arith.constant 0 : i32
    return %c0_i32, %c0_i32_0 : i32, i32
  }
  func.func @transform_2(%arg0: i32) -> (i32, i32) {
    %c0_i32 = arith.constant 0 : i32
    %c0_i32_0 = arith.constant 0 : i32
    %c0_i32_1 = arith.constant 0 : i32
    return %c0_i32, %c0_i32_0 : i32, i32
  }
  func.func @transform_3(%arg0: i32) -> (i32, i32) {
    %c0_i32 = arith.constant 0 : i32
    %c0_i32_0 = arith.constant 0 : i32
    %c0_i32_1 = arith.constant 0 : i32
    return %c0_i32, %c0_i32_0 : i32, i32
  }
  func.func @transform_4(%arg0: i32) -> (i32, i32) {
    %c0_i32 = arith.constant 0 : i32
    %c0_i32_0 = arith.constant 0 : i32
    %c0_i32_1 = arith.constant 0 : i32
    return %c0_i32, %c0_i32_0 : i32, i32
  }
  func.func @transform_5(%arg0: i32) -> (i32, i32) {
    %c0_i32 = arith.constant 0 : i32
    %c0_i32_0 = arith.constant 0 : i32
    %c0_i32_1 = arith.constant 0 : i32
    return %c0_i32, %c0_i32_0 : i32, i32
  }
  func.func @transform_6(%arg0: i32) -> (i32, i32) {
    %c0_i32 = arith.constant 0 : i32
    %c0_i32_0 = arith.constant 0 : i32
    %c0_i32_1 = arith.constant 0 : i32
    return %c0_i32, %c0_i32_0 : i32, i32
  }
  func.func @transform_7(%arg0: i32) -> (i32, i32) {
    %c0_i32 = arith.constant 0 : i32
    %c0_i32_0 = arith.constant 0 : i32
    %c0_i32_1 = arith.constant 0 : i32
    return %c0_i32, %c0_i32_0 : i32, i32
  }
  func.func @transform_8(%arg0: i32) -> (i32, i32) {
    %c0_i32 = arith.constant 0 : i32
    %c0_i32_0 = arith.constant 0 : i32
    %c0_i32_1 = arith.constant 0 : i32
    return %c0_i32, %c0_i32_0 : i32, i32
  }
  func.func @transform_9(%arg0: i32) -> (i32, i32) {
    %c0_i32 = arith.constant 0 : i32
    %c0_i32_0 = arith.constant 0 : i32
    %c0_i32_1 = arith.constant 0 : i32
    return %c0_i32, %c0_i32_0 : i32, i32
  }
  func.func @transform_10(%arg0: i32) -> (i32, i32) {
    %c0_i32 = arith.constant 0 : i32
    %c0_i32_0 = arith.constant 0 : i32
    %c0_i32_1 = arith.constant 0 : i32
    return %c0_i32, %c0_i32_0 : i32, i32
  }
  func.func @transform_11(%arg0: i32) -> (i32, i32) {
    %c0_i32 = arith.constant 0 : i32
    %c0_i32_0 = arith.constant 0 : i32
    %c0_i32_1 = arith.constant 0 : i32
    return %c0_i32, %c0_i32_0 : i32, i32
  }
  func.func @transform_12(%arg0: i32) -> (i32, i32) {
    %c0_i32 = arith.constant 0 : i32
    %c0_i32_0 = arith.constant 0 : i32
    %c0_i32_1 = arith.constant 0 : i32
    return %c0_i32, %c0_i32_0 : i32, i32
  }
  func.func @transform_13(%arg0: i32) -> (i32, i32) {
    %c0_i32 = arith.constant 0 : i32
    %c0_i32_0 = arith.constant 0 : i32
    %c0_i32_1 = arith.constant 0 : i32
    return %c0_i32, %c0_i32_0 : i32, i32
  }
  func.func @transform_14(%arg0: i32) -> (i32, i32) {
    %c0_i32 = arith.constant 0 : i32
    %c0_i32_0 = arith.constant 0 : i32
    %c0_i32_1 = arith.constant 0 : i32
    return %c0_i32, %c0_i32_0 : i32, i32
  }
  func.func @transform_15(%arg0: i32) -> (i32, i32) {
    %c0_i32 = arith.constant 0 : i32
    %c0_i32_0 = arith.constant 0 : i32
    %c0_i32_1 = arith.constant 0 : i32
    return %c0_i32, %c0_i32_0 : i32, i32
  }
  func.func @transform_16(%arg0: i32) -> (i32, i32) {
    %c0_i32 = arith.constant 0 : i32
    %c0_i32_0 = arith.constant 0 : i32
    %c0_i32_1 = arith.constant 0 : i32
    return %c0_i32, %c0_i32_0 : i32, i32
  }
  func.func @transform_17(%arg0: i32) -> (i32, i32) {
    %c0_i32 = arith.constant 0 : i32
    %c0_i32_0 = arith.constant 0 : i32
    %c0_i32_1 = arith.constant 0 : i32
    return %c0_i32, %c0_i32_0 : i32, i32
  }
  func.func @transform_18(%arg0: i32) -> (i32, i32) {
    %c0_i32 = arith.constant 0 : i32
    %c0_i32_0 = arith.constant 0 : i32
    %c0_i32_1 = arith.constant 0 : i32
    return %c0_i32, %c0_i32_0 : i32, i32
  }
  func.func @transform_19(%arg0: i32) -> (i32, i32) {
    %c0_i32 = arith.constant 0 : i32
    %c0_i32_0 = arith.constant 0 : i32
    %c0_i32_1 = arith.constant 0 : i32
    return %c0_i32, %c0_i32_0 : i32, i32
  }
  func.func @transform_20(%arg0: i32) -> (i32, i32, i32) {
    %c0_i32 = arith.constant 0 : i32
    %c0_i32_0 = arith.constant 0 : i32
    %c0_i32_1 = arith.constant 0 : i32
    return %arg0, %c0_i32, %c0_i32_0 : i32, i32, i32
  }
}

</mosaic_0001>

<bundles_post_ra>
// kernel: decoder_forward.1
= control target key start
LH: loop header
LB: loop body
LE: loop exit
PB: predicated region body
PF: predicated region fallthrough
CT: control target
= control target key end

     0   :  { %s10842_s0 = inlined_call_operand.vmem [shape: f32[2,2,16], index: 0, kind: input, shape index: {}]   ;;  %s10843_s1 = inlined_call_operand.vmem [shape: f32[4,18], index: 1, kind: input, shape index: {}]   ;;  %s10844_s2 = inlined_call_operand.vmem [shape: f32[4,1], index: 2, kind: input, shape index: {}]   ;;  %s10845_s3 = inlined_call_operand.vmem [shape: f32[4,36], index: 3, kind: input, shape index: {}]   ;;  %s10846_s4 = inlined_call_operand.vmem [shape: f32[4,1], index: 4, kind: input, shape index: {}]   ;;  %s10847_s5 = inlined_call_operand.vmem [shape: f32[8,36], index: 5, kind: input, shape index: {}]   ;;  %s10848_s6 = inlined_call_operand.vmem [shape: f32[8,1], index: 6, kind: input, shape index: {}]   ;;  %s10849_s7 = inlined_call_operand.vmem [shape: f32[8,72], index: 7, kind: input, shape index: {}]   ;;  %s10850_s8 = inlined_call_operand.vmem [shape: f32[8,1], index: 8, kind: input, shape index: {}]   ;;  %s10851_s9 = inlined_call_operand.vmem [shape: f32[16,72], index: 9, kind: input, shape index: {}]   ;;  %s10852_s10 = inlined_call_operand.vmem [shape: f32[16,1], index: 10, kind: input, shape index: {}]   ;;  %s10853_s11 = inlined_call_operand.vmem [shape: f32[16,144], index: 11, kind: input, shape index: {}]   ;;  %s10854_s12 = inlined_call_operand.vmem [shape: f32[16,1], index: 12, kind: input, shape index: {}]   ;;  %s10855_s13 = inlined_call_operand.vmem [shape: f32[16,144], index: 13, kind: input, shape index: {}]   ;;  %s10856_s14 = inlined_call_operand.vmem [shape: f32[16,1], index: 14, kind: input, shape index: {}]   ;;  %s10857_s15 = inlined_call_operand.vmem [shape: f32[1,144], index: 15, kind: input, shape index: {}]   ;;  %s10858_s16 = inlined_call_operand.<no memory space> [shape: f32[1,1], index: 16, kind: input, shape index: {}]   ;;  %s10859_s17 = inlined_call_operand.vmem [shape: f32[16,64], index: 17, kind: input, shape index: {}]   ;;  %s10860_s18 = inlined_call_operand.vmem [shape: f32[64,256], index: 18, kind: input, shape index: {}]   ;;  %s10861_s19 = inlined_call_operand.hbm [shape: f32[256,1024], index: 19, kind: input, shape index: {}]   ;;  %s10862_s20 = inlined_call_operand.vmem [shape: f32[2,1,1024], index: 20, kind: output, shape index: {}]  }
   0x1   :  { %10975 = sst [smem:[#allocation37_spill]] %s10842_s0  ;;  %v25_v0 = vstv %s10858_s16 }
   0x2   :  { %10976 = sst [smem:[#allocation38_spill]] %s10843_s1  ;;  %26 = vst [vmem:[#allocation4] sm:$0x1] %v25_v0 }
   0x3   :  { %10977 = sst [smem:[#allocation39_spill]] %s10844_s2 }
   0x4   :  { %10978 = sst [smem:[#allocation40_spill]] %s10845_s3 }
   0x5   :  { %10979 = sst [smem:[#allocation41_spill]] %s10846_s4 }
   0x6   :  { %27 = vsyncpa [#allocation6], 0  ;;  %s7735_s23 = smov 0  }
   0x7 LB: > { %s7741_s24 = sadd.s32 4294967295, %s7595_s23   ;;  %p6406_p0 = scmp.ge.s32.totalorder %s7595_s23, 1  ;;  %s7595_s23 = sphi %s7735_s23, %s33_s23  }
   0x8   : > { %p489_p1 = scmp.lt.s32.totalorder %s7595_s23, 3  ;;  %s7597_s2 = smov [#allocation5]  }
   0x9   : > { %s555_s16 = sshll.u32 %s7597_s2, 4  ;;  %p10863_p3 = scmp.eq.s32.totalorder %s7741_s24, 0  ;;  %s556_s16 = int_to_ptr.vmem [resolvable:$true] %s555_s16 }
   0xa   : > { %p7745_p2 = pnand %p6406_p0, %p489_p1  ;;  %s7557_s28 = scalar_lea.hbm %s10861_s19, 32768 }
   0xb   : > { %p7558_p6 = scmp.ne.s32.totalorder %s10861_s19, %s7557_s28  ;;  %p7564_p10 = scmp.lt.u32.totalorder %s7557_s28, %s10861_s19 }
   0xc   : > { %s10980_s25 = scalar_select %p7745_p2, 1, 0 }
   0xd   : > { %p7178_p4 = pneg %p7745_p2 }
   0xf   : > { %p7754_p5 = pnand %p10863_p3, %p7178_p4 }
  0x11   : > { %p7559_p7 = pneg %p7754_p5 }
  0x13   : > { %p7560_p8 = pnand %p7559_p7, %p7558_p6 }
  0x15   : > { %p7561_p9 = pneg %p7560_p8 }
  0x17   : > { %p7566_p11 = pnand %p7564_p10, %p7561_p9 }
  0x19   : > { %7569 = shalt.err (!%p7566_p11)
}
  0x1a   : > { %s7570_s21 = scalar_lea.vmem %s556_s16, 32768  ;;  %p7578_p1 = scmp.lt.s32.totalorder %s556_s16, %s556_s16 }
  0x1b   : > { %p7571_p12 = scmp.ne.s32.totalorder %s556_s16, %s7570_s21  ;;  %p7579_p4 = scmp.lt.s32.totalorder %s7570_s21, %s7570_s21 }
  0x1d   : > { %p7573_p13 = pnand %p7571_p12, %p7559_p7  ;;  %p7580_p3 = por %p7579_p4, %p7578_p1 }
  0x1f   : > { %p7574_p0 = pneg %p7573_p13 }
  0x21   : > { %p7581_p2 = pnand %p7580_p3, %p7574_p0 }
  0x23   : > { %7584 = shalt.err (!%p7581_p2)
}
  0x24   : > { %s7598_s1 = smov 1024   ;;  %s7599_s22 = smov 64  }
  0x25   : > { %7181 = dma.hbm_to_vmem [thread:$0]  (!%p7754_p5), %s10861_s19, 32768, %s556_s16, [#allocation6], %s7598_s1, %s7598_s1, %s7599_s22  }
  0x26   : > { %p10982_p6 = scmp.ne.s32.totalorder %s10980_s25, 0 }
  0x28   : > { %578 = sbr.rel (%p10982_p6) target bundleno = 5073 (0x13d1), region = 100 }
  0x2f   : > { %p10983_p8 = scmp.eq.s32.totalorder %s7741_s24, 0 }
  0x31   : > { %7590 = dma.done.wait (%p10983_p8), [#allocation6], 32768   ;;  %p10984_p7 = pmov %p10983_p8 }
  0x32   : > { %p634_p2 = scmp.lt.s32.totalorder %s7741_s24, 1  ;;  %vm643_vm0 = vcmask 205824   ;;  %v7600_v1 = vmov 0.0   ;;  %s10985_s27 = sld [smem:[#allocation37_spill]]  ;;  %v10875_v3 = vlaneseq  ;;  %vm649_vm1 = vcmask 164904  }
  0x33   : > { %7592 = vsyncadd (%p10984_p7), [#allocation6], 4294934528  ;;  %644 = vst.msk [vmem:[#allocation2] sm:$0x3] %vm643_vm0, %v7600_v1  ;;  %s7601_s4 = smov 5   ;;  %vm658_vm2 = vcmask 123904  }
  0x34   : > { %1804 = vst [vmem:[#allocation2 + $0x48] sm:$0xff] %v7600_v1  ;;  %s11460_s24 = smov (!%p634_p2, %s7741_s24), 1  ;;  %v7792_v5 = vand.u32 127, %v10875_v3  ;;  %s7602_s29 = smov 124   ;;  %vm821_vm4 = vcmask 207872   ;;  %v7604_v17 = vmov 0.0|0.0  }
  0x35   : > { %s6411_s16 = sshll.u32 %s11460_s24, 1  ;;  %s7603_s30 = smov 126   ;;  %6532 = vmatprep.subr.bf16.mxu0 %v7604_v17  ;;  %6535 = vmatprep.subr.bf16.mxu1 %v7604_v17  ;;  %vm7611_vm5 = vmmov 0   ;;  %v7612_v22 = vmov 0   ;;  %vm677_vm7 = vcmask 128004   ;;  %vm688_vm8 = vcmask 130054  }
  0x36   : > { %v653_v6 = vand.u32 3, %v7792_v5  ;;  %s7605_s0 = smov 122   ;;  %s7606_s21 = smov 120   ;;  %6475 = vmatprep.mubr.msk.f32.mxu0 %vm7611_vm5, %v7600_v1  ;;  %6488 = vmatprep.mubr.msk.f32.mxu1 %vm7611_vm5, %v7600_v1  ;;  %vm666_vm9 = vcmask 125954   ;;  %vm744_vm10 = vcmask 1041408   ;;  %vm740_vm11 = vcmask 146432  }
  0x37   : > { %s7607_s1 = smov 123   ;;  %s7608_s22 = smov 127   ;;  %7221 = vset.pattern.permute.xlu1 %v7612_v22  ;;  %7222 = vset.pattern.permute.xlu0 %v7612_v22  ;;  %vm827_vm13 = vcmask 166952   ;;  %vm831_vm14 = vcmask 125952   ;;  %vm1064_vm15 = vcmask 666624   ;;  %vm839_vm0 = vcmask 130052  }
  0x38   : > { %s637_s28 = scalar_lea.vmem %s10985_s27, %s6411_s16  ;;  %vm7797_vm3 = vcmp.ge.s32.totalorder %v653_v6, 1  ;;  %s7609_s2 = smov 118   ;;  %vm7820_vm6 = vcmp.le.s32.totalorder %v653_v6, 2 }
  0x39   : > { %v642_v2 = vld [vmem:[%s637_s28] sm:$0x3]  ;;  %s7610_s26 = smov 119   ;;  %s10988_s3 = sld [smem:[#allocation39_spill]] }
  0x3a   : > { %646 = vrot.lane.b32.xlu0 %v642_v2, %s7601_s4  ;;  %s10991_s16 = sld [smem:[#allocation38_spill]]  ;;  %s10992_s25 = sld [smem:[#allocation41_spill]] }
  0x3b   : > { %s7617_s27 = smov 17   ;;  %s10998_s28 = smov 110  }
  0x3f   : > { %v734_v21 = vld [vmem:[%s10988_s3] sm:$0xf]  ;;  %s10993_s3 = sld [smem:[#allocation40_spill]] }
  0x40   : > { %v733_v44 = vld [vmem:[%s10991_s16] sm:$0xf]  ;;  %s7625_s16 = smov 62  }
  0x41   : > { %v901_v2 = vld [vmem:[%s10992_s25] sm:$0xf]  ;;  %s7614_s25 = smov 112  }
  0x45   : > { %v900_v23 = vld [vmem:[%s10993_s3] sm:$0xf] }
  0xac   : > { %v647_v4 = vpop.permute.xlu0 %646 }
  0xad   : > { %650 = vst.msk [vmem:[#allocation2] sm:$0x3] %vm649_vm1, %v647_v4  ;;  %vm911_vm1 = vcmask 1043456  }
  0xb4   : > { %v679_v7 = vld [vmem:[#allocation2] sm:$0x3] }
  0xb5   : > { %v668_v8 = vld [vmem:[#allocation2] sm:$0x3]  ;;  %681 = vrot.lane.b32.xlu1 %v679_v7, %s7602_s29 }
  0xb6   : > { %670 = vrot.lane.b32.xlu0 %v668_v8, %s7603_s30  ;;  %v696_v9 = vld [vmem:[#allocation2] sm:$0x3] }
  0xb7   : > { %v706_v10 = vld [vmem:[#allocation2] sm:$0x3] }
  0xb8   : > { %v690_v12 = vld [vmem:[#allocation2] sm:$0x3] }
  0xb9   : > { %v660_v13 = vld [vmem:[#allocation2] sm:$0x3]  ;;  %698 = vrot.lane.b32.xlu1 %v696_v9, %s7605_s0 }
  0xba   : > { %v723_v14 = vld [vmem:[#allocation2] sm:$0x3]  ;;  %708 = vrot.lane.b32.xlu0 %v706_v10, %s7606_s21  ;;  %v662_v19 = vrot.slane %v660_v13, 6 }
  0xbb   : > { %v716_v15 = vld [vmem:[#allocation2] sm:$0x3] }
  0xbc   : > { %v656_v16 = vld [vmem:[#allocation2] sm:$0x3]  ;;  %v718_v20 = vrot.slane %v716_v15, 2 }
  0xbd   : > { %v657_v18 = vsel %vm7797_vm3, %v656_v16, 0.0  ;;  %822 = vst.msk [vmem:[#allocation2] sm:$0xf] %vm821_vm4, %v7600_v1  ;;  %663 = vrot.lane.b32.xlu1 %v662_v19, %s7608_s22  ;;  %vm10904_vm4 = vcmask 130048  }
  0xbe   : > { %659 = vst.msk [vmem:[#allocation3] sm:$0x3] %vm658_vm2, %v657_v18  ;;  %692 = vrot.lane.b32.xlu0 %v690_v12, %s7607_s1 }
  0xc1   : > { %719 = vrot.lane.b32.xlu1 %v718_v20, %s7610_s26 }
  0xc2   : > { %725 = vrot.lane.b32.xlu0 %v723_v14, %s7609_s2 }
  0xc5   : > { %737 = vperm.xlu1 %7221, %v734_v21  }
 0x127   : > { %v682_v24 = vpop.permute.xlu1 %681 }
 0x128   : > { %v671_v25 = vpop.permute.xlu0 %670  ;;  %v684_v26 = vsel %vm7797_vm3, %v682_v24, 0.0 }
 0x129   : > { %v673_v27 = vsel %vm7820_vm6, %v671_v25, 0.0  ;;  %v686_v28 = vrot.slane %v684_v26, 2 }
 0x12a   : > { %v675_v29 = vrot.slane %v673_v27, 4 }
 0x12b   : > { %v699_v30 = vpop.permute.xlu1 %698  ;;  %689 = vst.msk [vmem:[#allocation3] sm:$0xc0] %vm688_vm8, %v686_v28 }
 0x12c   : > { %678 = vst.msk [vmem:[#allocation3] sm:$0x30] %vm677_vm7, %v675_v29  ;;  %v709_v31 = vpop.permute.xlu0 %708  ;;  %v701_v32 = vsel %vm7820_vm6, %v699_v30, 0.0  ;;  %v988_v29 = vld [vmem:[%s10859_s17] sm:$0xff]  ;;  %v989_v30 = vld [vmem:[%s10859_s17 + $0x8] sm:$0xff] }
 0x12d   : > { %v711_v33 = vsel %vm7797_vm3, %v709_v31, 0.0  ;;  %v703_v34 = vrot.slane %v701_v32, 6  ;;  %v6542_v31 = vpack.c.bf16 %v989_v30, %v988_v29  ;;  %v1307_v29 = vld [vmem:[%s10850_s8] sm:$0xff]  ;;  %v1391_v30 = vld [vmem:[%s10860_s18 + $0x8] sm:$0xff] }
 0x12e   : > { %v713_v35 = vrot.slane %v711_v33, 4 }
 0x12f   : > { %705 = vst.msk [vmem:[#allocation3 + $0x40] sm:$0xc] %vm666_vm9, %v703_v34  ;;  %v664_v37 = vpop.permute.xlu1 %663 }
 0x130   : > { %715 = vst.msk [vmem:[#allocation3 + $0x40] sm:$0x30] %vm677_vm7, %v713_v35  ;;  %v693_v36 = vpop.permute.xlu0 %692 }
 0x131   : > { %695 = vst.msk [vmem:[#allocation3 + $0x40] sm:$0x3] %vm658_vm2, %v693_v36 }
 0x132   : > { %667 = vst.msk [vmem:[#allocation3] sm:$0xc] %vm666_vm9, %v664_v37 }
 0x133   : > { %v720_v39 = vpop.permute.xlu1 %719 }
 0x134   : > { %v726_v38 = vpop.permute.xlu0 %725  ;;  %722 = vst.msk [vmem:[#allocation3 + $0x40] sm:$0xc0] %vm688_vm8, %v720_v39  ;;  %vm1077_vm8 = vcmask 519168  }
 0x135   : > { %v728_v40 = vsel %vm7820_vm6, %v726_v38, 0.0 }
 0x136   : > { %729 = vst.msk [vmem:[#allocation3 + $0x80] sm:$0x3] %vm658_vm2, %v728_v40  ;;  %vm907_vm2 = vcmask 293888  }
 0x139   : > { %v730_v41 = vld [vmem:[#allocation3] sm:$0xff] }
 0x13b   : > { %v731_v42 = vld [vmem:[#allocation3 + $0x40] sm:$0xff] }
 0x13c   : > { %v6533_v43 = vpack.c.bf16 %v731_v42, %v730_v41  ;;  %v1072_v41 = vand.u32 7, %v7792_v5 }
 0x13d   : > { %v732_v45 = vld [vmem:[#allocation3 + $0x80] sm:$0x3] }
 0x13e   : > { %6534 = vmatpush3.bf16.msra.mxu0 %v6533_v43  ;;  %vm7901_vm7 = vcmp.ge.s32.totalorder %v1072_v41, 1  ;;  %vm7917_vm9 = vcmp.le.s32.totalorder %v1072_v41, 6  ;;  %v1399_v41 = vld [vmem:[%s10860_s18 + $0x48] sm:$0xff] }
 0x13f   : > { %6473 = vmatprep.subr.mxu0 %v7600_v1 }
 0x142   : > { %6474 = vmatpush3.msk.msra.mxu0 %vm744_vm10, %v732_v45  ;;  %vm1085_vm10 = vcmask 523268  }
 0x143   : > { %6476 = vmatmul.mubr.msk.f32.vlgmr.msra.gmra.mrb[0].mxu0 %vm740_vm11, %v733_v44  ;;  %vm1232_vm11 = vcmask 670720  }
 0x144   : > { %1473 = vmatprep.mubr.f32.mxu0 %v7600_v1  ;;  %v738_v46 = vpop.permute.xlu1 %737 }
 0x216   : > { %v814_v47 = vpop.f32.mrb[0].mxu0 }
 0x217   : > { %v815_v48 = vadd.f32 %v814_v47, %v738_v46  ;;  %v6477_v49 = vpop.f32.mrb[1].mxu0 }
 0x219   : > { %v819_v50 = vmul.f32 0.2, %v815_v48  ;;  %vm818_vm12 = vcmp.ge.f32.partialorder %v815_v48, 0.0 }
 0x21b   : > { %v820_v51 = vsel %vm818_vm12, %v815_v48, %v819_v50 }
 0x21c   : > { %824 = vrot.lane.b32.xlu0 %v820_v51, %s7601_s4 }
 0x28e   : > { %v825_v52 = vpop.permute.xlu0 %824 }
 0x28f   : > { %828 = vst.msk [vmem:[#allocation2] sm:$0xf] %vm827_vm13, %v825_v52  ;;  %vm1238_vm13 = vcmask 597064  }
 0x296   : > { %v848_v53 = vld [vmem:[#allocation2] sm:$0xf] }
 0x297   : > { %v841_v54 = vld [vmem:[#allocation2] sm:$0xf]  ;;  %850 = vrot.lane.b32.xlu1 %v848_v53, %s7602_s29  ;;  %s7613_s29 = smov 9  }
 0x298   : > { %843 = vrot.lane.b32.xlu0 %v841_v54, %s7603_s30  ;;  %v874_v55 = vld [vmem:[#allocation2] sm:$0xf] }
 0x299   : > { %v864_v56 = vld [vmem:[#allocation2] sm:$0xf] }
 0x29a   : > { %v858_v57 = vld [vmem:[#allocation2] sm:$0xf] }
 0x29b   : > { %v833_v58 = vld [vmem:[#allocation2] sm:$0xf]  ;;  %876 = vrot.lane.b32.xlu1 %v874_v55, %s7606_s21 }
 0x29c   : > { %v888_v59 = vld [vmem:[#allocation2] sm:$0xf]  ;;  %866 = vrot.lane.b32.xlu0 %v864_v56, %s7605_s0  ;;  %v835_v63 = vrot.slane %v833_v58, 4  ;;  %s10867_s0 = smov 110  }
 0x29d   : > { %v881_v60 = vld [vmem:[#allocation2] sm:$0xf] }
 0x29e   : > { %v829_v61 = vld [vmem:[#allocation2] sm:$0xf]  ;;  %v883_v0 = vrot.slane %v881_v60, 4 }
 0x29f   : > { %v830_v62 = vsel %vm7797_vm3, %v829_v61, 0.0  ;;  %1065 = vst.msk [vmem:[#allocation2] sm:$0xf] %vm1064_vm15, %v7600_v1  ;;  %836 = vrot.lane.b32.xlu1 %v835_v63, %s7608_s22  ;;  %v1147_v55 = vld [vmem:[%s10848_s6] sm:$0xff] }
 0x2a0   : > { %832 = vst.msk [vmem:[#allocation3] sm:$0xf] %vm831_vm14, %v830_v62  ;;  %860 = vrot.lane.b32.xlu0 %v858_v57, %s7607_s1  ;;  %s10865_s1 = smov 111  }
 0x2a3   : > { %884 = vrot.lane.b32.xlu1 %v883_v0, %s7610_s26 }
 0x2a4   : > { %890 = vrot.lane.b32.xlu0 %v888_v59, %s7609_s2 }
 0x2a7   : > { %904 = vperm.xlu1 %7221, %v901_v2  }
 0x309   : > { %v851_v4 = vpop.permute.xlu1 %850 }
 0x30a   : > { %v844_v6 = vpop.permute.xlu0 %843  ;;  %v853_v7 = vsel %vm7797_vm3, %v851_v4, 0.0 }
 0x30b   : > { %v846_v8 = vsel %vm7820_vm6, %v844_v6, 0.0  ;;  %v855_v9 = vrot.slane %v853_v7, 4 }
 0x30c   : > { %847 = vst.msk [vmem:[#allocation3 + $0x40] sm:$0xf] %vm831_vm14, %v846_v8 }
 0x30d   : > { %v877_v10 = vpop.permute.xlu1 %876  ;;  %857 = vst.msk [vmem:[#allocation3 + $0x40] sm:$0xf0] %vm839_vm0, %v855_v9 }
 0x30e   : > { %v867_v12 = vpop.permute.xlu0 %866  ;;  %v879_v13 = vsel %vm7797_vm3, %v877_v10, 0.0 }
 0x30f   : > { %v869_v14 = vsel %vm7820_vm6, %v867_v12, 0.0  ;;  %880 = vst.msk [vmem:[#allocation3 + $0xc0] sm:$0xf] %vm831_vm14, %v879_v13 }
 0x310   : > { %v871_v15 = vrot.slane %v869_v14, 4 }
 0x311   : > { %v837_v18 = vpop.permute.xlu1 %836 }
 0x312   : > { %v861_v16 = vpop.permute.xlu0 %860  ;;  %873 = vst.msk [vmem:[#allocation3 + $0x80] sm:$0xf0] %vm839_vm0, %v871_v15  ;;  %840 = vst.msk [vmem:[#allocation3] sm:$0xf0] %vm839_vm0, %v837_v18 }
 0x313   : > { %863 = vst.msk [vmem:[#allocation3 + $0x80] sm:$0xf] %vm831_vm14, %v861_v16 }
 0x314   : > { %v896_v22 = vld [vmem:[#allocation3 + $0x40] sm:$0xff] }
 0x315   : > { %v885_v20 = vpop.permute.xlu1 %884 }
 0x316   : > { %v891_v19 = vpop.permute.xlu0 %890  ;;  %887 = vst.msk [vmem:[#allocation3 + $0xc0] sm:$0xf0] %vm839_vm0, %v885_v20  ;;  %vm1482_vm0 = vcmask 277504  }
 0x317   : > { %v893_v11 = vsel %vm7820_vm6, %v891_v19, 0.0  ;;  %vm1070_vm6 = vcmask 592968   ;;  %v1146_v19 = vld [vmem:[%s10847_s5] sm:$0xff]  ;;  %1483 = vst.msk [vmem:[#allocation2 + $0x10] sm:$0xff] %vm1482_vm0, %v7600_v1  ;;  %1806 = vst.msk [vmem:[#allocation2 + $0x58] sm:$0xff] %vm1482_vm0, %v7600_v1 }
 0x318   : > { %894 = vst.msk [vmem:[#allocation3 + $0x100] sm:$0xf] %vm831_vm14, %v893_v11  ;;  %vm10869_vm14 = vcmask 523264  }
 0x319   : > { %v895_v21 = vld [vmem:[#allocation3] sm:$0xff] }
 0x31a   : > { %v6536_v24 = vpack.c.bf16 %v896_v22, %v895_v21  ;;  %v897_v25 = vld [vmem:[#allocation3 + $0x80] sm:$0xff] }
 0x31c   : > { %6537 = vmatpush3.bf16.msra.mxu1 %v6536_v24 }
 0x31d   : > { %6538 = vmatprep.subr.bf16.mxu1 %v7604_v17  ;;  %v898_v26 = vld [vmem:[#allocation3 + $0xc0] sm:$0xff] }
 0x31e   : > { %v6539_v27 = vpack.c.bf16 %v898_v26, %v897_v25 }
 0x31f   : > { %v899_v28 = vld [vmem:[#allocation3 + $0x100] sm:$0xf] }
 0x320   : > { %6540 = vmatpush3.bf16.msra.mxu1 %v6539_v27 }
 0x321   : > { %6486 = vmatprep.subr.mxu1 %v7600_v1 }
 0x324   : > { %6487 = vmatpush3.msk.msra.mxu1 %vm911_vm1, %v899_v28 }
 0x325   : > { %6489 = vmatmul.mubr.msk.f32.vlgmr.msra.gmra.mrb[0].mxu1 %vm907_vm2, %v900_v23  ;;  %6541 = vmatprep.subr.bf16.mxu1 %v7604_v17 }
 0x326   : > { %6495 = vmatprep.mubr.msk.f32.mxu1 %vm7611_vm5, %v7600_v1  ;;  %6543 = vmatpush3.bf16.msra.mxu1 %v6542_v31  ;;  %v905_v32 = vpop.permute.xlu1 %904  ;;  %v1393_v31 = vld [vmem:[%s10860_s18 + $0x18] sm:$0xff] }
 0x327   : > { %6544 = vmatprep.subr.bf16.mxu1 %v7604_v17 }
 0x3f8   : > { %v981_v33 = vpop.f32.mrb[0].mxu1 }
 0x3f9   : > { %v982_v34 = vadd.f32 %v981_v33, %v905_v32  ;;  %v6490_v35 = vpop.f32.mrb[1].mxu1  ;;  %v6562_v32 = vpack.c.bf16 %v1393_v31, %v1391_v30  ;;  %v1390_v33 = vld [vmem:[%s10860_s18] sm:$0xff] }
 0x3fa   : > { %v1395_v35 = vld [vmem:[%s10860_s18 + $0x28] sm:$0xff] }
 0x3fb   : > { %vm985_vm3 = vcmp.ge.f32.partialorder %v982_v34, 0.0  ;;  %v986_v36 = vmul.f32 0.2, %v982_v34  ;;  %6563 = vmatprep.subr.bf16.mxu0 %v6562_v32  ;;  %v1695_v32 = vld [vmem:[%s10852_s10 + $0x8] sm:$0xff] }
 0x3fd   : > { %v987_v37 = vsel %vm985_vm3, %v982_v34, %v986_v36  ;;  %v1392_v34 = vld [vmem:[%s10860_s18 + $0x10] sm:$0xff]  ;;  %vm10871_vm3 = vcmask 1031168  }
 0x3fe   : > { %6496 = vmatmul.mubr.msk.f32.vlgmr.msra.gmra.mrb[2].mxu1 %vm10904_vm4, %v987_v37  ;;  %v6564_v36 = vpack.c.bf16 %v1392_v34, %v1390_v33  ;;  %v1397_v37 = vld [vmem:[%s10860_s18 + $0x38] sm:$0xff]  ;;  %v1694_v33 = vld [vmem:[%s10852_s10] sm:$0xff] }
 0x3ff   : > { %6508 = vmatprep.mubr.msk.f32.mxu1 %vm7611_vm5, %v7600_v1 }
 0x400   : > { %6565 = vmatpush1.bf16.msra.mxu0 %v6564_v36 }
 0x4d1   : > { %v1060_v38 = vpop.f32.mrb[2].mxu1 }
 0x4d2   : > { %1067 = vrot.lane.b32.xlu0 %v1060_v38, %s7613_s29  ;;  %v6497_v39 = vpop.f32.mrb[3].mxu1  ;;  %v1394_v38 = vld [vmem:[%s10860_s18 + $0x20] sm:$0xff] }
 0x4d3   : > { %v1396_v39 = vld [vmem:[%s10860_s18 + $0x30] sm:$0xff] }
 0x544   : > { %v1068_v40 = vpop.permute.xlu0 %1067 }
 0x545   : > { %1071 = vst.msk [vmem:[#allocation2] sm:$0xf] %vm1070_vm6, %v1068_v40  ;;  %v6566_v40 = vpack.c.bf16 %v1397_v37, %v1395_v35 }
 0x547   : > { %6567 = vmatprep.subr.bf16.mxu0 %v6566_v40 }
 0x54c   : > { %v1094_v42 = vld [vmem:[#allocation2] sm:$0xf] }
 0x54d   : > { %v1087_v43 = vld [vmem:[#allocation2] sm:$0xf]  ;;  %1096 = vrot.lane.b32.xlu1 %v1094_v42, %s7606_s21  ;;  %v1401_v42 = vld [vmem:[%s10860_s18 + $0x58] sm:$0xff] }
 0x54e   : > { %1089 = vrot.lane.b32.xlu0 %v1087_v43, %s7603_s30  ;;  %v1120_v45 = vld [vmem:[#allocation2] sm:$0xf]  ;;  %v6568_v43 = vpack.c.bf16 %v1396_v39, %v1394_v38 }
 0x54f   : > { %v1075_v46 = vld [vmem:[#allocation2] sm:$0xf] }
 0x550   : > { %v1110_v47 = vld [vmem:[#allocation2] sm:$0xf]  ;;  %v1076_v49 = vsel %vm7901_vm7, %v1075_v46, 0.0  ;;  %6569 = vmatpush1.bf16.msra.mxu0 %v6568_v43 }
 0x551   : > { %v1079_v48 = vld [vmem:[#allocation2] sm:$0xf]  ;;  %1122 = vrot.lane.b32.xlu1 %v1120_v45, %s7614_s25  ;;  %1078 = vst.msk [vmem:[#allocation3] sm:$0xf] %vm1077_vm8, %v1076_v49  ;;  %v6570_v45 = vpack.c.bf16 %v1401_v42, %v1399_v41  ;;  %v8095_v42 = vadd.s32 128, %v7792_v5 }
 0x552   : > { %1112 = vrot.lane.b32.xlu0 %v1110_v47, %s7609_s2  ;;  %v1081_v50 = vrot.slane %v1079_v48, 4  ;;  %v1104_v51 = vld [vmem:[#allocation2] sm:$0xf]  ;;  %v1400_v47 = vld [vmem:[%s10860_s18 + $0x50] sm:$0xff] }
 0x553   : > { %v1127_v52 = vld [vmem:[#allocation2] sm:$0xf]  ;;  %6571 = vmatprep.subr.bf16.mxu0 %v6570_v45 }
 0x554   : > { %v1129_v53 = vrot.slane %v1127_v52, 4  ;;  %v1134_v54 = vld [vmem:[#allocation2] sm:$0xf] }
 0x555   : > { %1082 = vrot.lane.b32.xlu1 %v1081_v50, %s7608_s22  ;;  %1233 = vst.msk [vmem:[#allocation2] sm:$0xff] %vm1232_vm11, %v7600_v1  ;;  %v1398_v46 = vld [vmem:[%s10860_s18 + $0x40] sm:$0xff] }
 0x556   : > { %1106 = vrot.lane.b32.xlu0 %v1104_v51, %s7610_s26  ;;  %v6572_v48 = vpack.c.bf16 %v1400_v47, %v1398_v46  ;;  %v1500_v46 = vand.u32 15, %v7792_v5  ;;  %v1501_v47 = vand.u32 15, %v8095_v42 }
 0x558   : > { %6573 = vmatpush1.bf16.msra.mxu0 %v6572_v48  ;;  %vm8099_vm6 = vcmp.ge.s32.totalorder %v1500_v46, 1  ;;  %vm8116_vm11 = vcmp.le.s32.totalorder %v1500_v46, 14 }
 0x559   : > { %1130 = vrot.lane.b32.xlu1 %v1129_v53, %s10865_s1 }
 0x55a   : > { %1136 = vrot.lane.b32.xlu0 %v1134_v54, %s10867_s0 }
 0x55d   : > { %1150 = vperm.xlu1 %7221, %v1147_v55  }
 0x5bf   : > { %v1097_v57 = vpop.permute.xlu1 %1096 }
 0x5c0   : > { %v1090_v58 = vpop.permute.xlu0 %1089  ;;  %v1099_v59 = vsel %vm7901_vm7, %v1097_v57, 0.0 }
 0x5c1   : > { %v1092_v60 = vsel %vm7917_vm9, %v1090_v58, 0.0  ;;  %v1101_v61 = vrot.slane %v1099_v59, 4 }
 0x5c2   : > { %1093 = vst.msk [vmem:[#allocation3 + $0x40] sm:$0xf] %vm1077_vm8, %v1092_v60 }
 0x5c3   : > { %v1123_v62 = vpop.permute.xlu1 %1122  ;;  %1103 = vst.msk [vmem:[#allocation3 + $0x40] sm:$0xf0] %vm1085_vm10, %v1101_v61 }
 0x5c4   : > { %v1113_v63 = vpop.permute.xlu0 %1112  ;;  %v1125_v0 = vsel %vm7901_vm7, %v1123_v62, 0.0 }
 0x5c5   : > { %v1115_v2 = vsel %vm7917_vm9, %v1113_v63, 0.0  ;;  %1126 = vst.msk [vmem:[#allocation3 + $0xc0] sm:$0xf] %vm1077_vm8, %v1125_v0 }
 0x5c6   : > { %v1117_v4 = vrot.slane %v1115_v2, 4 }
 0x5c7   : > { %v1083_v7 = vpop.permute.xlu1 %1082 }
 0x5c8   : > { %v1107_v6 = vpop.permute.xlu0 %1106  ;;  %1119 = vst.msk [vmem:[#allocation3 + $0x80] sm:$0xf0] %vm1085_vm10, %v1117_v4  ;;  %1086 = vst.msk [vmem:[#allocation3] sm:$0xf0] %vm1085_vm10, %v1083_v7 }
 0x5c9   : > { %1109 = vst.msk [vmem:[#allocation3 + $0x80] sm:$0xf] %vm1077_vm8, %v1107_v6 }
 0x5ca   : > { %v1142_v13 = vld [vmem:[#allocation3 + $0x40] sm:$0xff] }
 0x5cb   : > { %v1131_v9 = vpop.permute.xlu1 %1130 }
 0x5cc   : > { %v1137_v8 = vpop.permute.xlu0 %1136  ;;  %1133 = vst.msk [vmem:[#allocation3 + $0xc0] sm:$0xf0] %vm1085_vm10, %v1131_v9  ;;  %vm8107_vm10 = vcmp.le.s32.totalorder %v1501_v47, 14 }
 0x5cd   : > { %v1139_v10 = vsel %vm7917_vm9, %v1137_v8, 0.0 }
 0x5ce   : > { %1140 = vst.msk [vmem:[#allocation3 + $0x100] sm:$0xf] %vm1077_vm8, %v1139_v10  ;;  %vm10873_vm8 = vcmask 1039360  }
 0x5cf   : > { %v1141_v12 = vld [vmem:[#allocation3] sm:$0xff] }
 0x5d0   : > { %v6545_v14 = vpack.c.bf16 %v1142_v13, %v1141_v12  ;;  %v1143_v15 = vld [vmem:[#allocation3 + $0x80] sm:$0xff]  ;;  %v1306_v13 = vld [vmem:[%s10849_s7] sm:$0xff] }
 0x5d2   : > { %6546 = vmatpush3.bf16.msra.mxu1 %v6545_v14 }
 0x5d3   : > { %6547 = vmatprep.subr.bf16.mxu1 %v7604_v17  ;;  %v1144_v16 = vld [vmem:[#allocation3 + $0xc0] sm:$0xff] }
 0x5d4   : > { %v6548_v18 = vpack.c.bf16 %v1144_v16, %v1143_v15  ;;  %v1403_v15 = vld [vmem:[%s10860_s18 + $0x68] sm:$0xff] }
 0x5d5   : > { %v1145_v20 = vld [vmem:[#allocation3 + $0x100] sm:$0xf] }
 0x5d6   : > { %6549 = vmatpush3.bf16.msra.mxu1 %v6548_v18  ;;  %v1402_v18 = vld [vmem:[%s10860_s18 + $0x60] sm:$0xff] }
 0x5d7   : > { %6506 = vmatprep.subr.mxu1 %v7600_v1 }
 0x5da   : > { %6507 = vmatpush3.msk.msra.mxu1 %vm911_vm1, %v1145_v20  ;;  %vm1495_vm1 = vcmask 1047688  }
 0x5db   : > { %6509 = vmatmul.mubr.msk.f32.vlgmr.msra.gmra.mrb[4].mxu1 %vm907_vm2, %v1146_v19  ;;  %6550 = vmatprep.subr.bf16.mxu1 %v7604_v17  ;;  %v1404_v19 = vld [vmem:[%s10860_s18 + $0x70] sm:$0xff]  ;;  %vm1490_vm2 = vcmask 138240  }
 0x5dc   : > { %6529 = vmatprep.mubr.msk.f32.mxu1 %vm7611_vm5, %v7600_v1  ;;  %v1151_v11 = vpop.permute.xlu1 %1150  ;;  %vm1313_vm5 = vcmask 588800   ;;  %v6576_v20 = vpack.c.bf16 %v1404_v19, %v1402_v18 }
 0x6ae   : > { %v1225_v21 = vpop.f32.mrb[4].mxu1 }
 0x6af   : > { %v1226_v22 = vadd.f32 %v1225_v21, %v1151_v11  ;;  %v6510_v24 = vpop.f32.mrb[5].mxu1 }
 0x6b1   : > { %v1230_v25 = vmul.f32 0.2, %v1226_v22  ;;  %vm1229_vm12 = vcmp.ge.f32.partialorder %v1226_v22, 0.0 }
 0x6b3   : > { %v1231_v26 = vsel %vm1229_vm12, %v1226_v22, %v1230_v25  ;;  %vm10872_vm12 = vcmask 900096  }
 0x6b4   : > { %1235 = vrot.lane.b32.xlu0 %v1231_v26, %s7613_s29 }
 0x726   : > { %v1236_v27 = vpop.permute.xlu0 %1235 }
 0x727   : > { %1239 = vst.msk [vmem:[#allocation2] sm:$0xff] %vm1238_vm13, %v1236_v27  ;;  %vm7621_vm13 = vmmov 1  }
 0x72e   : > { %v1240_v23 = vld [vmem:[#allocation2] sm:$0xff] }
 0x72f   : > { %v1241_v28 = vsel %vm7901_vm7, %v1240_v23, 0.0  ;;  %1252 = vrot.lane.b32.xlu0 %v1240_v23, %s7603_s30  ;;  %1246 = vrot.lane.b32.xlu1 %v1240_v23, %s7608_s22  ;;  %1480 = vst [vmem:[#allocation2] sm:$0xff] %v7600_v1 }
 0x730   : > { %1243 = vst.msk [vmem:[#allocation3] sm:$0xff] %vm10869_vm14, %v1241_v28 }
 0x733   : > { %1272 = vrot.lane.b32.xlu0 %v1240_v23, %s7609_s2  ;;  %1259 = vrot.lane.b32.xlu1 %v1240_v23, %s7606_s21  ;;  %s7618_s2 = smov 96   ;;  %s7619_s21 = smov 95  }
 0x737   : > { %1279 = vrot.lane.b32.xlu0 %v1240_v23, %s7614_s25  ;;  %1266 = vrot.lane.b32.xlu1 %v1240_v23, %s7610_s26  ;;  %v1297_v59 = vld [vmem:[#allocation3] sm:$0xff]  ;;  %s7620_s26 = smov 94  }
 0x73b   : > { %1292 = vrot.lane.b32.xlu0 %v1240_v23, %s10867_s0  ;;  %1286 = vrot.lane.b32.xlu1 %v1240_v23, %s10865_s1  ;;  %s10999_s1 = smov 111   ;;  %s7624_s0 = smov 63  }
 0x73f   : > { %1310 = vperm.xlu1 %7221, %v1307_v29  }
 0x7a1   : > { %v1253_v49 = vpop.permute.xlu0 %1252  ;;  %v1247_v50 = vpop.permute.xlu1 %1246 }
 0x7a2   : > { %v1255_v51 = vsel %vm7917_vm9, %v1253_v49, 0.0  ;;  %1249 = vst.msk [vmem:[#allocation3 + $0x40] sm:$0xff] %vm10869_vm14, %v1247_v50 }
 0x7a3   : > { %1256 = vst.msk [vmem:[#allocation3 + $0x80] sm:$0xff] %vm10869_vm14, %v1255_v51  ;;  %v2311_v51 = vld [vmem:[#allocation5 + $0x58] sm:$0xff] }
 0x7a5   : > { %v1273_v52 = vpop.permute.xlu0 %1272  ;;  %v1260_v53 = vpop.permute.xlu1 %1259 }
 0x7a6   : > { %v1275_v54 = vsel %vm7917_vm9, %v1273_v52, 0.0  ;;  %v1262_v55 = vsel %vm7901_vm7, %v1260_v53, 0.0 }
 0x7a7   : > { %1276 = vst.msk [vmem:[#allocation3 + $0x140] sm:$0xff] %vm10869_vm14, %v1275_v54  ;;  %1263 = vst.msk [vmem:[#allocation3 + $0xc0] sm:$0xff] %vm10869_vm14, %v1262_v55 }
 0x7a9   : > { %v1280_v57 = vpop.permute.xlu0 %1279  ;;  %v1267_v58 = vpop.permute.xlu1 %1266  ;;  %v1298_v60 = vld [vmem:[#allocation3 + $0x40] sm:$0xff] }
 0x7aa   : > { %v1282_v61 = vsel %vm7901_vm7, %v1280_v57, 0.0  ;;  %1269 = vst.msk [vmem:[#allocation3 + $0x100] sm:$0xff] %vm10869_vm14, %v1267_v58  ;;  %v6551_v62 = vpack.c.bf16 %v1298_v60, %v1297_v59  ;;  %v1299_v4 = vld [vmem:[#allocation3 + $0x80] sm:$0xff]  ;;  %vm8103_vm7 = vcmp.ge.s32.totalorder %v1501_v47, 1 }
 0x7ab   : > { %1283 = vst.msk [vmem:[#allocation3 + $0x180] sm:$0xff] %vm10869_vm14, %v1282_v61 }
 0x7ac   : > { %6552 = vmatpush3.bf16.msra.mxu1 %v6551_v62 }
 0x7ad   : > { %v1293_v63 = vpop.permute.xlu0 %1292  ;;  %v1287_v0 = vpop.permute.xlu1 %1286  ;;  %6553 = vmatprep.subr.bf16.mxu1 %v7604_v17 }
 0x7ae   : > { %v1295_v2 = vsel %vm7917_vm9, %v1293_v63, 0.0  ;;  %1289 = vst.msk [vmem:[#allocation3 + $0x1c0] sm:$0xff] %vm10869_vm14, %v1287_v0  ;;  %v1300_v6 = vld [vmem:[#allocation3 + $0xc0] sm:$0xff]  ;;  %vm10870_vm9 = vcmask 916480  }
 0x7af   : > { %1296 = vst.msk [vmem:[#allocation3 + $0x200] sm:$0xff] %vm10869_vm14, %v1295_v2  ;;  %v6554_v44 = vpack.c.bf16 %v1300_v6, %v1299_v4  ;;  %v1302_v8 = vld [vmem:[#allocation3 + $0x140] sm:$0xff] }
 0x7b1   : > { %6555 = vmatpush3.bf16.msra.mxu1 %v6554_v44  ;;  %v1301_v7 = vld [vmem:[#allocation3 + $0x100] sm:$0xff] }
 0x7b2   : > { %6556 = vmatprep.subr.bf16.mxu1 %v7604_v17  ;;  %v6557_v9 = vpack.c.bf16 %v1302_v8, %v1301_v7  ;;  %v1303_v10 = vld [vmem:[#allocation3 + $0x180] sm:$0xff] }
 0x7b5   : > { %6558 = vmatpush3.bf16.msra.mxu1 %v6557_v9  ;;  %v1304_v12 = vld [vmem:[#allocation3 + $0x1c0] sm:$0xff] }
 0x7b6   : > { %6559 = vmatprep.subr.bf16.mxu1 %v7604_v17  ;;  %v6560_v56 = vpack.c.bf16 %v1304_v12, %v1303_v10  ;;  %v1305_v14 = vld [vmem:[#allocation3 + $0x200] sm:$0xff]  ;;  %v1405_v17 = vld [vmem:[%s10860_s18 + $0x78] sm:$0xff] }
 0x7b7   : > { %v6574_v16 = vpack.c.bf16 %v1405_v17, %v1403_v15 }
 0x7b9   : > { %6561 = vmatpush3.bf16.msra.mxu1 %v6560_v56  ;;  %6575 = vmatprep.subr.bf16.mxu0 %v6574_v16 }
 0x7ba   : > { %6527 = vmatprep.subr.mxu1 %v7600_v1  ;;  %6577 = vmatpush1.bf16.msra.mxu0 %v6576_v20 }
 0x7bd   : > { %6528 = vmatpush3.msra.mxu1 %v1305_v14 }
 0x7be   : > { %6530 = vmatmul.mubr.msk.f32.vlgmr.msra.gmra.mrb[6].mxu1 %vm1313_vm5, %v1306_v13  ;;  %v1311_v11 = vpop.permute.xlu1 %1310 }
 0x7bf   : > { %1776 = vmatprep.mubr.f32.mxu1 %v7600_v1 }
 0x891   : > { %v1383_v21 = vpop.f32.mrb[6].mxu1 }
 0x892   : > { %v1384_v22 = vadd.f32 %v1383_v21, %v1311_v11  ;;  %v6531_v24 = vpop.f32.mrb[7].mxu1 }
 0x894   : > { %vm1387_vm15 = vcmp.ge.f32.partialorder %v1384_v22, 0.0  ;;  %v1388_v25 = vmul.f32 0.2, %v1384_v22 }
 0x896   : > { %v1389_v26 = vsel %vm1387_vm15, %v1384_v22, %v1388_v25  ;;  %vm8124_vm15 = vmpackc.low %vm7621_vm13, %vm8103_vm7 }
 0x897   : > { %6421 = vmatmul.mubr.msk.f32.vlgmr.msra.gmra.mrb[2].mxu0 %vm10869_vm14, %v1389_v26  ;;  %vm10874_vm14 = vcmask 908288  }
 0x96a   : > { %v1475_v27 = vpop.f32.mrb[2].mxu0 }
 0x96b   : > { %1486 = vrot.lane.b32.xlu0 %v1475_v27, %s7617_s27  ;;  %v1477_v23 = vpop.f32.mrb[3].mxu0 }
 0x96c   : > { %1488 = vrot.lane.b32.xlu1 %v1477_v23, %s7617_s27 }
 0x9dd   : > { %v1487_v28 = vpop.permute.xlu0 %1486 }
 0x9de   : > { %1496 = vst.msk [vmem:[#allocation2] sm:$0xff] %vm1495_vm1, %v1487_v28  ;;  %v1489_v29 = vpop.permute.xlu1 %1488 }
 0x9df   : > { %1498 = vst.msk [vmem:[#allocation2 + $0x10] sm:$0xff] %vm1490_vm2, %v1489_v29 }
 0x9e5   : > { %v8050_v30 = vld [vmem:[#allocation2] sm:$0xff] }
 0x9e6   : > { %1518 = vrot.lane.b32.xlu0 %v8050_v30, %s7608_s22  ;;  %1537 = vrot.lane.b32.xlu1 %v8050_v30, %s7603_s30  ;;  %v1533_v31 = vld [vmem:[#allocation2 + $0x10] sm:$0xff]  ;;  %1801 = vst [vmem:[#allocation2] sm:$0xff] %v7600_v1 }
 0x9e7   : > { %1803 = vst.msk [vmem:[#allocation2 + $0x10] sm:$0xff] %vm1482_vm0, %v7600_v1  ;;  %v1491_v1 = vsel %vm1490_vm2, %v1487_v28, %v1489_v29  ;;  %vm8133_vm0 = vmpackc.low %vm7621_vm13, %vm8099_vm6 }
 0x9ea   : > { %1558 = vrot.lane.b32.xlu0 %v8050_v30, %s7614_s25  ;;  %1598 = vrot.lane.b32.xlu1 %v8050_v30, %s10998_s28 }
 0x9ee   : > { %1541 = vrot.lane.b32.xlu0 %v1533_v31, %s7603_s30  ;;  %1522 = vrot.lane.b32.xlu1 %v1533_v31, %s7608_s22 }
 0x9f2   : > { %1562 = vrot.lane.b32.xlu0 %v1533_v31, %s7614_s25  ;;  %1619 = vrot.lane.b32.xlu1 %v8050_v30, %s7618_s2 }
 0x9f6   : > { %1602 = vrot.lane.b32.xlu0 %v1533_v31, %s10998_s28  ;;  %1644 = vrot.lane.b32.xlu1 %v1533_v31, %s7619_s21 }
 0x9fa   : > { %1583 = vrot.lane.b32.xlu0 %v1533_v31, %s10999_s1  ;;  %1539 = vrot.lane.b32.xlu1 %v1491_v1, %s7603_s30 }
 0x9fe   : > { %1560 = vrot.lane.b32.xlu1 %v1491_v1, %s7614_s25  ;;  %1520 = vrot.lane.b32.xlu0 %v1491_v1, %s7608_s22 }
 0xa02   : > { %1600 = vrot.lane.b32.xlu1 %v1491_v1, %s10998_s28  ;;  %1579 = vrot.lane.b32.xlu0 %v8050_v30, %s10999_s1 }
 0xa06   : > { %1581 = vrot.lane.b32.xlu1 %v1491_v1, %s10999_s1  ;;  %1623 = vrot.lane.b32.xlu0 %v1533_v31, %s7618_s2 }
 0xa0a   : > { %1621 = vrot.lane.b32.xlu1 %v1491_v1, %s7618_s2  ;;  %1642 = vrot.lane.b32.xlu0 %v1491_v1, %s7619_s21 }
 0xa0e   : > { %1661 = vrot.lane.b32.xlu1 %v1491_v1, %s7620_s26  ;;  %1640 = vrot.lane.b32.xlu0 %v8050_v30, %s7619_s21 }
 0xa12   : > { %1659 = vrot.lane.b32.xlu1 %v8050_v30, %s7620_s26  ;;  %1663 = vrot.lane.b32.xlu0 %v1533_v31, %s7620_s26  ;;  %v8176_v31 = vld [vmem:[#allocation2 + $0x48] sm:$0xff] }
 0xa16   : > { %1703 = vperm.xlu1 %7221, %v1695_v32   ;;  %1698 = vperm.xlu0 %7222, %v1694_v33  }
 0xa58   : > { %v1519_v34 = vpop.permute.xlu0 %1518  ;;  %v1538_v35 = vpop.permute.xlu1 %1537 }
 0xa5c   : > { %v1559_v36 = vpop.permute.xlu0 %1558  ;;  %v1599_v37 = vpop.permute.xlu1 %1598 }
 0xa60   : > { %v1542_v38 = vpop.permute.xlu0 %1541  ;;  %v1523_v39 = vpop.permute.xlu1 %1522 }
 0xa64   : > { %v1563_v40 = vpop.permute.xlu0 %1562  ;;  %v1620_v41 = vpop.permute.xlu1 %1619 }
 0xa68   : > { %v1603_v43 = vpop.permute.xlu0 %1602  ;;  %v1645_v45 = vpop.permute.xlu1 %1644 }
 0xa6c   : > { %v1584_v48 = vpop.permute.xlu0 %1583  ;;  %v1540_v49 = vpop.permute.xlu1 %1539 }
 0xa6d   : > { %v1545_v53 = vsel %vm10871_vm3, %v1540_v49, %v1542_v38  ;;  %v1544_v62 = vsel %vm10871_vm3, %v1538_v35, %v1540_v49  ;;  %vm7234_vm3 = vmpackc.low %vm8099_vm6, %vm8116_vm11 }
 0xa70   : > { %v1521_v54 = vpop.permute.xlu0 %1520  ;;  %v1561_v55 = vpop.permute.xlu1 %1560 }
 0xa71   : > { %v1525_v57 = vsel %vm10873_vm8, %v1519_v34, %v1521_v54  ;;  %v1526_v58 = vsel %vm10873_vm8, %v1521_v54, %v1523_v39  ;;  %v1565_v59 = vsel %vm10870_vm9, %v1559_v36, %v1561_v55  ;;  %v1566_v60 = vsel %vm10870_vm9, %v1561_v55, %v1563_v40  ;;  %vm7231_vm9 = vmpackc.low %vm8103_vm7, %vm8107_vm10 }
 0xa72   : > { %v7226_v4 = vpack.c.bf16 %v1526_v58, %v1491_v1  ;;  %v7229_v44 = vpack.c.bf16 %v1525_v57, %v8050_v30  ;;  %v7232_v9 = vpack.c.bf16 %v1566_v60, %v1545_v53  ;;  %v7235_v14 = vpack.c.bf16 %v1565_v59, %v1544_v62  ;;  %v1692_v30 = vld [vmem:[%s10851_s9] sm:$0xff]  ;;  %v1693_v1 = vld [vmem:[%s10851_s9 + $0x8] sm:$0xff] }
 0xa73   : > { %vm10922_vm8 = vcmask 785408  }
 0xa74   : > { %v1580_v63 = vpop.permute.xlu0 %1579  ;;  %v1601_v0 = vpop.permute.xlu1 %1600  ;;  %7227 = vmatprep.subr.msk.bf16.mxu1 %vm8124_vm15, %v7226_v4 }
 0xa75   : > { %7230 = vmatpush1.bf16.msk.msra.mxu1 %vm8133_vm0, %v7229_v44  ;;  %v1605_v7 = vsel %vm10872_vm12, %v1599_v37, %v1601_v0  ;;  %v1606_v8 = vsel %vm10872_vm12, %v1601_v0, %v1603_v43  ;;  %vm10906_vm12 = vcmask 777216  }
 0xa76   : > { %7233 = vmatprep.subr.msk.bf16.mxu1 %vm7231_vm9, %v7232_v9  ;;  %vm7237_vm9 = vmpackc.low %vm8107_vm10, %vm7621_vm13  ;;  %v2194_v9 = vld [vmem:[%s10854_s12 + $0x8] sm:$0xff] }
 0xa78   : > { %v1624_v10 = vpop.permute.xlu0 %1623  ;;  %v1582_v12 = vpop.permute.xlu1 %1581 }
 0xa79   : > { %v1586_v56 = vsel %vm10874_vm14, %v1580_v63, %v1582_v12  ;;  %v1587_v13 = vsel %vm10874_vm14, %v1582_v12, %v1584_v48  ;;  %7236 = vmatpush1.bf16.msk.msra.mxu1 %vm7234_vm3, %v7235_v14  ;;  %vm7240_vm14 = vmpackc.low %vm8116_vm11, %vm7621_vm13  ;;  %vm10905_vm3 = vcmask 769024   ;;  %v2309_v12 = vld [vmem:[#allocation5 + $0x48] sm:$0xff]  ;;  %v2308_v14 = vld [vmem:[#allocation5 + $0x40] sm:$0xff] }
 0xa7a   : > { %v7238_v16 = vpack.c.bf16 %v1606_v8, %v1587_v13  ;;  %v7241_v20 = vpack.c.bf16 %v1605_v7, %v1586_v56  ;;  %v2190_v7 = vld [vmem:[%s10853_s11 + $0x8] sm:$0xff]  ;;  %v2193_v8 = vld [vmem:[%s10854_s12] sm:$0xff]  ;;  %v2300_v13 = vld [vmem:[#allocation5] sm:$0xff] }
 0xa7b   : > { %6424 = vmatprep.mubr.msk.f32.mxu0 %vm10904_vm4, %v2190_v7  ;;  %v2437_v7 = vld [vmem:[#allocation5 + $0x448] sm:$0xff] }
 0xa7c   : > { %v1643_v15 = vpop.permute.xlu0 %1642  ;;  %v1622_v17 = vpop.permute.xlu1 %1621  ;;  %7239 = vmatprep.subr.msk.bf16.mxu1 %vm7237_vm9, %v7238_v16  ;;  %v2325_v16 = vld [vmem:[#allocation5 + $0xc8] sm:$0xff] }
 0xa7d   : > { %v1648_v18 = vsel %vm10906_vm12, %v1643_v15, %v1645_v45  ;;  %v1627_v19 = vsel %vm10922_vm8, %v1622_v17, %v1624_v10  ;;  %7242 = vmatpush1.bf16.msk.msra.mxu1 %vm7240_vm14, %v7241_v20  ;;  %v1626_v11 = vsel %vm10922_vm8, %v1620_v41, %v1622_v17  ;;  %v2301_v10 = vld [vmem:[#allocation5 + $0x8] sm:$0xff]  ;;  %v2324_v20 = vld [vmem:[#allocation5 + $0xc0] sm:$0xff] }
 0xa7e   : > { %v7244_v25 = vpack.c.bf16 %v1648_v18, %v1627_v19  ;;  %v6630_v56 = vpack.c.bf16 %v2309_v12, %v2301_v10  ;;  %v2317_v17 = vld [vmem:[#allocation5 + $0x88] sm:$0xff]  ;;  %v2316_v19 = vld [vmem:[#allocation5 + $0x80] sm:$0xff] }
 0xa7f   : > { %v6634_v18 = vpack.c.bf16 %v2325_v16, %v2317_v17  ;;  %v2428_v12 = vld [vmem:[#allocation5 + $0x400] sm:$0xff] }
 0xa80   : > { %v1641_v21 = vpop.permute.xlu0 %1640  ;;  %v1662_v22 = vpop.permute.xlu1 %1661  ;;  %7245 = vmatprep.subr.msk.bf16.mxu1 %vm8124_vm15, %v7244_v25  ;;  %v2332_v25 = vld [vmem:[#allocation5 + $0x100] sm:$0xff] }
 0xa81   : > { %v1647_v24 = vsel %vm10906_vm12, %v1641_v21, %v1643_v15  ;;  %v6632_v15 = vpack.c.bf16 %v2308_v14, %v2300_v13  ;;  %v2333_v21 = vld [vmem:[#allocation5 + $0x108] sm:$0xff] }
 0xa82   : > { %v7247_v23 = vpack.c.bf16 %v1647_v24, %v1626_v11  ;;  %v6636_v11 = vpack.c.bf16 %v2324_v20, %v2316_v19  ;;  %v2445_v14 = vld [vmem:[#allocation5 + $0x488] sm:$0xff]  ;;  %v2444_v19 = vld [vmem:[#allocation5 + $0x480] sm:$0xff] }
 0xa83   : > { %v2452_v20 = vld [vmem:[#allocation5 + $0x4c0] sm:$0xff] }
 0xa84   : > { %v1664_v26 = vpop.permute.xlu0 %1663  ;;  %v1660_v27 = vpop.permute.xlu1 %1659  ;;  %7248 = vmatpush1.bf16.msk.msra.mxu1 %vm8133_vm0, %v7247_v23  ;;  %vm8199_vm0 = vmpackc.low %vm8103_vm7, %vm8103_vm7  ;;  %v2349_v23 = vld [vmem:[#allocation5 + $0x188] sm:$0xff] }
 0xa85   : > { %v1667_v28 = vsel %vm10905_vm3, %v1662_v22, %v1664_v26  ;;  %v1666_v29 = vsel %vm10905_vm3, %v1660_v27, %v1662_v22  ;;  %v2341_v22 = vld [vmem:[#allocation5 + $0x148] sm:$0xff]  ;;  %v2340_v26 = vld [vmem:[#allocation5 + $0x140] sm:$0xff] }
 0xa86   : > { %7249 = vmatprep.subr.msk.mxu1 %vm8107_vm10, %v1667_v28  ;;  %v6638_v24 = vpack.c.bf16 %v2341_v22, %v2333_v21  ;;  %v6640_v27 = vpack.c.bf16 %v2340_v26, %v2332_v25  ;;  %v2357_v28 = vld [vmem:[#allocation5 + $0x1c8] sm:$0xff]  ;;  %v6668_v25 = vpack.c.bf16 %v2452_v20, %v2444_v19 }
 0xa87   : > { %v2461_v21 = vld [vmem:[#allocation5 + $0x508] sm:$0xff] }
 0xa88   : > { %7250 = vmatpush1.msk.msra.mxu1 %vm8116_vm11, %v1666_v29  ;;  %v6642_v29 = vpack.c.bf16 %v2357_v28, %v2349_v23  ;;  %v2469_v22 = vld [vmem:[#allocation5 + $0x548] sm:$0xff]  ;;  %v2468_v23 = vld [vmem:[#allocation5 + $0x540] sm:$0xff] }
 0xa89   : > { %6422 = vmatmul.mubr.msk.f32.vlgmr.msra.gmra.mrb[8].mxu1 %vm1313_vm5, %v1692_v30  ;;  %6631 = vmatprep.subr.bf16.mxu1 %v6630_v56  ;;  %v2348_v30 = vld [vmem:[#allocation5 + $0x180] sm:$0xff]  ;;  %v6670_v26 = vpack.c.bf16 %v2469_v22, %v2461_v21 }
 0xa8a   : > { %1782 = vmatprep.mubr.f32.mxu1 %v8176_v31  ;;  %6633 = vmatpush1.bf16.msra.mxu1 %v6632_v15  ;;  %v2436_v56 = vld [vmem:[#allocation5 + $0x440] sm:$0xff]  ;;  %v2453_v15 = vld [vmem:[#allocation5 + $0x4c8] sm:$0xff] }
 0xa8b   : > { %6635 = vmatprep.subr.bf16.mxu1 %v6634_v18  ;;  %v6664_v16 = vpack.c.bf16 %v2436_v56, %v2428_v12  ;;  %v6666_v18 = vpack.c.bf16 %v2453_v15, %v2445_v14 }
 0xa8d   : > { %6423 = vmatmul.mubr.msk.f32.gmra.mrb[10].mxu1 %vm1313_vm5, %v1693_v1  ;;  %v2356_v1 = vld [vmem:[#allocation5 + $0x1c0] sm:$0xff] }
 0xa8e   : > { %6637 = vmatpush1.bf16.msra.mxu1 %v6636_v11 }
 0xa8f   : > { %6639 = vmatprep.subr.bf16.mxu1 %v6638_v24 }
 0xa92   : > { %6641 = vmatpush1.bf16.msra.mxu1 %v6640_v27  ;;  %v2460_v27 = vld [vmem:[#allocation5 + $0x500] sm:$0xff] }
 0xa93   : > { %6643 = vmatprep.subr.bf16.mxu1 %v6642_v29  ;;  %v2477_v29 = vld [vmem:[#allocation5 + $0x588] sm:$0xff] }
 0xa95   : > { %v1699_v32 = vpop.permute.xlu0 %1698  ;;  %v1704_v38 = vpop.permute.xlu1 %1703 }
 0xb5c   : > { %v1778_v33 = vpop.f32.mrb[8].mxu1 }
 0xb5d   : > { %v1779_v34 = vadd.f32 %v1778_v33, %v1699_v32  ;;  %v1780_v35 = vpop.f32.mrb[9].mxu1  ;;  %v2373_v33 = vld [vmem:[#allocation5 + $0x248] sm:$0xff] }
 0xb5e   : > { %v1781_v36 = vadd.f32 %v1780_v35, %v1699_v32  ;;  %v2365_v32 = vld [vmem:[#allocation5 + $0x208] sm:$0xff] }
 0xb5f   : > { %v1793_v37 = vmul.f32 0.2, %v1779_v34  ;;  %vm1789_vm14 = vcmp.ge.f32.partialorder %v1779_v34, 0.0  ;;  %v6646_v35 = vpack.c.bf16 %v2373_v33, %v2365_v32  ;;  %v6672_v32 = vpack.c.bf16 %v2468_v23, %v2460_v27 }
 0xb60   : > { %v1794_v39 = vmul.f32 0.2, %v1781_v36  ;;  %v1784_v40 = vpop.f32.mrb[10].mxu1  ;;  %vm1790_vm13 = vcmp.ge.f32.partialorder %v1781_v36, 0.0 }
 0xb61   : > { %v1785_v41 = vadd.f32 %v1784_v40, %v1704_v38  ;;  %v1786_v43 = vpop.f32.mrb[11].mxu1  ;;  %v1797_v45 = vsel %vm1789_vm14, %v1779_v34, %v1793_v37  ;;  %v6644_v34 = vpack.c.bf16 %v2356_v1, %v2348_v30  ;;  %v2372_v37 = vld [vmem:[#allocation5 + $0x240] sm:$0xff]  ;;  %v2485_v30 = vld [vmem:[#allocation5 + $0x5c8] sm:$0xff]  ;;  %vm11020_vm14 = vcmask 1031168  }
 0xb62   : > { %v1787_v46 = vadd.f32 %v1786_v43, %v1704_v38  ;;  %1811 = vrot.lane.b32.xlu1 %v1797_v45, %s7617_s27  ;;  %v1798_v47 = vsel %vm1790_vm13, %v1781_v36, %v1794_v39  ;;  %v2364_v36 = vld [vmem:[#allocation5 + $0x200] sm:$0xff]  ;;  %v2381_v38 = vld [vmem:[#allocation5 + $0x288] sm:$0xff]  ;;  %v6674_v33 = vpack.c.bf16 %v2485_v30, %v2477_v29  ;;  %vm11021_vm13 = vmmov %vm11020_vm14 }
 0xb63   : > { %v1795_v48 = vmul.f32 0.2, %v1785_v41  ;;  %1813 = vrot.lane.b32.xlu0 %v1798_v47, %s7617_s27  ;;  %vm1791_vm5 = vcmp.ge.f32.partialorder %v1785_v41, 0.0  ;;  %v2389_v39 = vld [vmem:[#allocation5 + $0x2c8] sm:$0xff]  ;;  %6645 = vmatpush1.bf16.msra.mxu1 %v6644_v34  ;;  %v6648_v40 = vpack.c.bf16 %v2372_v37, %v2364_v36  ;;  %v2380_v43 = vld [vmem:[#allocation5 + $0x280] sm:$0xff] }
 0xb64   : > { %v1796_v49 = vmul.f32 0.2, %v1787_v46  ;;  %vm1792_vm15 = vcmp.ge.f32.partialorder %v1787_v46, 0.0  ;;  %6647 = vmatprep.subr.bf16.mxu1 %v6646_v35  ;;  %v2388_v45 = vld [vmem:[#allocation5 + $0x2c0] sm:$0xff]  ;;  %v2397_v47 = vld [vmem:[#allocation5 + $0x308] sm:$0xff] }
 0xb65   : > { %v1799_v53 = vsel %vm1791_vm5, %v1785_v41, %v1795_v48  ;;  %v6650_v41 = vpack.c.bf16 %v2389_v39, %v2381_v38  ;;  %v2405_v48 = vld [vmem:[#allocation5 + $0x348] sm:$0xff]  ;;  %v2476_v34 = vld [vmem:[#allocation5 + $0x580] sm:$0xff]  ;;  %vm11022_vm5 = vmmov %vm11021_vm13 }
 0xb66   : > { %1815 = vrot.lane.b32.xlu1 %v1799_v53, %s7617_s27  ;;  %v1800_v54 = vsel %vm1792_vm15, %v1787_v46, %v1796_v49  ;;  %v6652_v53 = vpack.c.bf16 %v2388_v45, %v2380_v43  ;;  %v2484_v35 = vld [vmem:[#allocation5 + $0x5c0] sm:$0xff]  ;;  %v2493_v37 = vld [vmem:[#allocation5 + $0x608] sm:$0xff]  ;;  %vm11023_vm15 = vmmov %vm11022_vm5 }
 0xb67   : > { %1817 = vrot.lane.b32.xlu0 %v1800_v54, %s7617_s27  ;;  %6649 = vmatpush1.bf16.msra.mxu1 %v6648_v40  ;;  %v6654_v54 = vpack.c.bf16 %v2405_v48, %v2397_v47  ;;  %v2501_v38 = vld [vmem:[#allocation5 + $0x648] sm:$0xff]  ;;  %v6676_v40 = vpack.c.bf16 %v2484_v35, %v2476_v34  ;;  %v2492_v43 = vld [vmem:[#allocation5 + $0x600] sm:$0xff] }
 0xb68   : > { %6651 = vmatprep.subr.bf16.mxu1 %v6650_v41  ;;  %v6678_v41 = vpack.c.bf16 %v2501_v38, %v2493_v37  ;;  %v2500_v45 = vld [vmem:[#allocation5 + $0x640] sm:$0xff]  ;;  %v2509_v48 = vld [vmem:[#allocation5 + $0x688] sm:$0xff] }
 0xb6b   : > { %6653 = vmatpush1.bf16.msra.mxu1 %v6652_v53  ;;  %v2517_v53 = vld [vmem:[#allocation5 + $0x6c8] sm:$0xff] }
 0xb6c   : > { %6655 = vmatprep.subr.bf16.mxu1 %v6654_v54 }
 0xbd4   : > { %v1812_v55 = vpop.permute.xlu1 %1811 }
 0xbd5   : > { %1827 = vst.msk [vmem:[#allocation2] sm:$0xff] %vm1495_vm1, %v1812_v55  ;;  %v1814_v57 = vpop.permute.xlu0 %1813 }
 0xbd6   : > { %1829 = vst.msk [vmem:[#allocation2 + $0x10] sm:$0xff] %vm1490_vm2, %v1814_v57  ;;  %v1819_v58 = vsel %vm1490_vm2, %v1812_v55, %v1814_v57  ;;  %v2396_v55 = vld [vmem:[#allocation5 + $0x300] sm:$0xff] }
 0xbd7   : > { %v2404_v57 = vld [vmem:[#allocation5 + $0x340] sm:$0xff] }
 0xbd8   : > { %v1816_v59 = vpop.permute.xlu1 %1815 }
 0xbd9   : > { %1830 = vst.msk [vmem:[#allocation2 + $0x48] sm:$0xff] %vm1495_vm1, %v1816_v59  ;;  %v1818_v60 = vpop.permute.xlu0 %1817  ;;  %vm8211_vm1 = vmpackc.low %vm8099_vm6, %vm8099_vm6 }
 0xbda   : > { %v1820_v62 = vsel %vm1490_vm2, %v1816_v59, %v1818_v60  ;;  %1832 = vst.msk [vmem:[#allocation2 + $0x58] sm:$0xff] %vm1490_vm2, %v1818_v60  ;;  %v2413_v59 = vld [vmem:[#allocation5 + $0x388] sm:$0xff]  ;;  %vm11016_vm2 = vcmask 1039360  }
 0xbdb   : > { %v7252_v4 = vpack.c.bf16 %v1820_v62, %v1819_v58  ;;  %v2421_v60 = vld [vmem:[#allocation5 + $0x3c8] sm:$0xff]  ;;  %vm11017_vm6 = vmmov %vm11016_vm2 }
 0xbdc   : > { %v1833_v63 = vld [vmem:[#allocation2] sm:$0xff]  ;;  %vm11018_vm7 = vmmov %vm11016_vm2 }
 0xbdd   : > { %1857 = vrot.lane.b32.xlu1 %v1833_v63, %s7608_s22  ;;  %v1847_v0 = vld [vmem:[#allocation2 + $0x10] sm:$0xff]  ;;  %2864 = vst [vmem:[#allocation2] sm:$0xff] %v8176_v31  ;;  %7253 = vmatprep.subr.msk.bf16.mxu0 %vm8199_vm0, %v7252_v4  ;;  %vm11019_vm9 = vmmov %vm11016_vm2 }
 0xbde   : > { %1861 = vrot.lane.b32.xlu0 %v1847_v0, %s7608_s22  ;;  %v2412_v4 = vld [vmem:[#allocation5 + $0x380] sm:$0xff] }
 0xbe0   : > { %v1835_v6 = vld [vmem:[#allocation2 + $0x48] sm:$0xff] }
 0xbe1   : > { %1893 = vrot.lane.b32.xlu1 %v1833_v63, %s7603_s30  ;;  %2874 = vst [vmem:[#allocation2 + $0x48] sm:$0xff] %v8176_v31  ;;  %v7255_v44 = vpack.c.bf16 %v1835_v6, %v1833_v63  ;;  %v1850_v50 = vld [vmem:[#allocation2 + $0x58] sm:$0xff] }
 0xbe2   : > { %1897 = vrot.lane.b32.xlu0 %v1847_v0, %s7603_s30 }
 0xbe3   : > { %7256 = vmatpush1.bf16.msk.msra.mxu0 %vm8211_vm1, %v7255_v44 }
 0xbe5   : > { %1933 = vrot.lane.b32.xlu1 %v1833_v63, %s7614_s25 }
 0xbe6   : > { %1937 = vrot.lane.b32.xlu0 %v1847_v0, %s7614_s25 }
 0xbe9   : > { %1973 = vrot.lane.b32.xlu1 %v1833_v63, %s10999_s1 }
 0xbea   : > { %1977 = vrot.lane.b32.xlu0 %v1847_v0, %s10999_s1 }
 0xbed   : > { %2009 = vrot.lane.b32.xlu1 %v1833_v63, %s10998_s28 }
 0xbee   : > { %2013 = vrot.lane.b32.xlu0 %v1847_v0, %s10998_s28 }
 0xbf1   : > { %2049 = vrot.lane.b32.xlu1 %v1833_v63, %s7618_s2 }
 0xbf2   : > { %2053 = vrot.lane.b32.xlu0 %v1847_v0, %s7618_s2 }
 0xbf5   : > { %2089 = vrot.lane.b32.xlu1 %v1833_v63, %s7619_s21 }
 0xbf6   : > { %2093 = vrot.lane.b32.xlu0 %v1847_v0, %s7619_s21 }
 0xbf9   : > { %1859 = vrot.lane.b32.xlu1 %v1819_v58, %s7608_s22 }
 0xbfa   : > { %2129 = vrot.lane.b32.xlu0 %v1847_v0, %s7620_s26  ;;  %v6658_v0 = vpack.c.bf16 %v2421_v60, %v2413_v59  ;;  %v2508_v59 = vld [vmem:[#allocation5 + $0x680] sm:$0xff] }
 0xbfb   : > { %v2516_v60 = vld [vmem:[#allocation5 + $0x6c0] sm:$0xff] }
 0xbfd   : > { %1895 = vrot.lane.b32.xlu1 %v1819_v58, %s7603_s30 }
 0xbfe   : > { %1863 = vrot.lane.b32.xlu0 %v1835_v6, %s7608_s22 }
 0xc01   : > { %1935 = vrot.lane.b32.xlu1 %v1819_v58, %s7614_s25 }
 0xc02   : > { %1899 = vrot.lane.b32.xlu0 %v1835_v6, %s7603_s30 }
 0xc05   : > { %1975 = vrot.lane.b32.xlu1 %v1819_v58, %s10999_s1 }
 0xc06   : > { %1939 = vrot.lane.b32.xlu0 %v1835_v6, %s7614_s25 }
 0xc09   : > { %2011 = vrot.lane.b32.xlu1 %v1819_v58, %s10998_s28 }
 0xc0a   : > { %1979 = vrot.lane.b32.xlu0 %v1835_v6, %s10999_s1 }
 0xc0d   : > { %2051 = vrot.lane.b32.xlu1 %v1819_v58, %s7618_s2 }
 0xc0e   : > { %2015 = vrot.lane.b32.xlu0 %v1835_v6, %s10998_s28 }
 0xc11   : > { %2091 = vrot.lane.b32.xlu1 %v1819_v58, %s7619_s21 }
 0xc12   : > { %2055 = vrot.lane.b32.xlu0 %v1835_v6, %s7618_s2 }
 0xc15   : > { %2127 = vrot.lane.b32.xlu1 %v1819_v58, %s7620_s26 }
 0xc16   : > { %2095 = vrot.lane.b32.xlu0 %v1835_v6, %s7619_s21 }
 0xc19   : > { %1865 = vrot.lane.b32.xlu1 %v1820_v62, %s7608_s22 }
 0xc1a   : > { %1867 = vrot.lane.b32.xlu0 %v1850_v50, %s7608_s22 }
 0xc1d   : > { %1901 = vrot.lane.b32.xlu1 %v1820_v62, %s7603_s30 }
 0xc1e   : > { %1903 = vrot.lane.b32.xlu0 %v1850_v50, %s7603_s30 }
 0xc21   : > { %1941 = vrot.lane.b32.xlu1 %v1820_v62, %s7614_s25 }
 0xc22   : > { %1943 = vrot.lane.b32.xlu0 %v1850_v50, %s7614_s25 }
 0xc25   : > { %1981 = vrot.lane.b32.xlu1 %v1820_v62, %s10999_s1 }
 0xc26   : > { %1983 = vrot.lane.b32.xlu0 %v1850_v50, %s10999_s1  ;;  %s7623_s1 = smov 64  }
 0xc29   : > { %2017 = vrot.lane.b32.xlu1 %v1820_v62, %s10998_s28 }
 0xc2a   : > { %2019 = vrot.lane.b32.xlu0 %v1850_v50, %s10998_s28  ;;  %s7622_s28 = smov 33  }
 0xc2d   : > { %2057 = vrot.lane.b32.xlu1 %v1820_v62, %s7618_s2 }
 0xc2e   : > { %2059 = vrot.lane.b32.xlu0 %v1850_v50, %s7618_s2 }
 0xc31   : > { %2097 = vrot.lane.b32.xlu1 %v1820_v62, %s7619_s21 }
 0xc32   : > { %2099 = vrot.lane.b32.xlu0 %v1850_v50, %s7619_s21 }
 0xc35   : > { %2133 = vrot.lane.b32.xlu1 %v1820_v62, %s7620_s26 }
 0xc36   : > { %2135 = vrot.lane.b32.xlu0 %v1850_v50, %s7620_s26  ;;  %v2429_v50 = vld [vmem:[#allocation5 + $0x408] sm:$0xff] }
 0xc37   : > { %v6662_v10 = vpack.c.bf16 %v2437_v7, %v2429_v50  ;;  %v6684_v50 = vpack.c.bf16 %v2516_v60, %v2508_v59 }
 0xc39   : > { %2125 = vrot.lane.b32.xlu1 %v1833_v63, %s7620_s26  ;;  %v6656_v63 = vpack.c.bf16 %v2404_v57, %v2396_v55  ;;  %v6680_v55 = vpack.c.bf16 %v2500_v45, %v2492_v43  ;;  %v6682_v57 = vpack.c.bf16 %v2517_v53, %v2509_v48 }
 0xc3a   : > { %2131 = vrot.lane.b32.xlu0 %v1835_v6, %s7620_s26  ;;  %v2420_v6 = vld [vmem:[#allocation5 + $0x3c0] sm:$0xff] }
 0xc3b   : > { %6657 = vmatpush1.bf16.msra.mxu1 %v6656_v63 }
 0xc3c   : > { %6659 = vmatprep.subr.bf16.mxu1 %v6658_v0  ;;  %v2525_v0 = vld [vmem:[#allocation5 + $0x708] sm:$0xff] }
 0xc3d   : > { %2197 = vperm.xlu1 %7221, %v2193_v8  }
 0xc3e   : > { %2202 = vperm.xlu0 %7222, %v2194_v9   ;;  %v6660_v9 = vpack.c.bf16 %v2420_v6, %v2412_v4  ;;  %v2533_v4 = vld [vmem:[#allocation5 + $0x748] sm:$0xff] }
 0xc3f   : > { %v6686_v7 = vpack.c.bf16 %v2533_v4, %v2525_v0 }
 0xc40   : > { %6661 = vmatpush1.bf16.msra.mxu1 %v6660_v9 }
 0xc41   : > { %6663 = vmatprep.subr.bf16.mxu1 %v6662_v10 }
 0xc44   : > { %6665 = vmatpush1.bf16.msra.mxu1 %v6664_v16 }
 0xc45   : > { %6667 = vmatprep.subr.bf16.mxu1 %v6666_v18 }
 0xc48   : > { %6669 = vmatpush1.bf16.msra.mxu1 %v6668_v25 }
 0xc49   : > { %6671 = vmatprep.subr.bf16.mxu1 %v6670_v26 }
 0xc4c   : > { %6673 = vmatpush1.bf16.msra.mxu1 %v6672_v32 }
 0xc4d   : > { %6675 = vmatprep.subr.bf16.mxu1 %v6674_v33 }
 0xc4f   : > { %v8271_v46 = vpop.permute.xlu1 %1857 }
 0xc50   : > { %v8273_v49 = vpop.permute.xlu0 %1861  ;;  %6677 = vmatpush1.bf16.msra.mxu1 %v6676_v40 }
 0xc51   : > { %6679 = vmatprep.subr.bf16.mxu1 %v6678_v41 }
 0xc53   : > { %v8275_v58 = vpop.permute.xlu1 %1893 }
 0xc54   : > { %v8277_v62 = vpop.permute.xlu0 %1897  ;;  %6681 = vmatpush1.bf16.msra.mxu1 %v6680_v55 }
 0xc55   : > { %6683 = vmatprep.subr.bf16.mxu1 %v6682_v57 }
 0xc57   : > { %v8279_v44 = vpop.permute.xlu1 %1933 }
 0xc58   : > { %v8281_v8 = vpop.permute.xlu0 %1937  ;;  %6685 = vmatpush1.bf16.msra.mxu1 %v6684_v50 }
 0xc59   : > { %6687 = vmatprep.subr.bf16.mxu1 %v6686_v7 }
 0xc5b   : > { %v8283_v13 = vpop.permute.xlu1 %1973 }
 0xc5c   : > { %v8285_v17 = vpop.permute.xlu0 %1977 }
 0xc5f   : > { %v8287_v11 = vpop.permute.xlu1 %2009 }
 0xc60   : > { %v8289_v24 = vpop.permute.xlu0 %2013 }
 0xc63   : > { %v8291_v28 = vpop.permute.xlu1 %2049 }
 0xc64   : > { %v8293_v1 = vpop.permute.xlu0 %2053 }
 0xc67   : > { %v8295_v36 = vpop.permute.xlu1 %2089 }
 0xc68   : > { %v8297_v39 = vpop.permute.xlu0 %2093 }
 0xc6b   : > { %v1860_v47 = vpop.permute.xlu1 %1859 }
 0xc6c   : > { %v8299_v54 = vpop.permute.xlu0 %2129  ;;  %v1870_v23 = vsel %vm11017_vm6, %v1860_v47, %v8273_v49  ;;  %v1869_v30 = vsel %vm11019_vm9, %v8271_v46, %v1860_v47 }
 0xc6f   : > { %v1896_v63 = vpop.permute.xlu1 %1895 }
 0xc70   : > { %v1864_v6 = vpop.permute.xlu0 %1863  ;;  %v1906_v33 = vsel %vm11020_vm14, %v1896_v63, %v8277_v62  ;;  %v1905_v37 = vsel %vm11021_vm13, %v8275_v58, %v1896_v63  ;;  %vm8328_vm14 = vmpackc.low %vm8107_vm10, %vm8107_vm10  ;;  %vm11032_vm10 = vcmask 908288   ;;  %v2326_v58 = vld [vmem:[#allocation5 + $0xd0] sm:$0xff] }
 0xc71   : > { %vm8337_vm13 = vmpackc.low %vm8116_vm11, %vm8116_vm11 }
 0xc73   : > { %v1936_v9 = vpop.permute.xlu1 %1935 }
 0xc74   : > { %v1900_v10 = vpop.permute.xlu0 %1899 }
 0xc77   : > { %v1976_v12 = vpop.permute.xlu1 %1975 }
 0xc78   : > { %v1940_v56 = vpop.permute.xlu0 %1939  ;;  %v1986_v55 = vsel %vm11032_vm10, %v1976_v12, %v8285_v17 }
 0xc7b   : > { %v2012_v14 = vpop.permute.xlu1 %2011 }
 0xc7c   : > { %v1980_v15 = vpop.permute.xlu0 %1979 }
 0xc7f   : > { %v2052_v16 = vpop.permute.xlu1 %2051 }
 0xc80   : > { %v2016_v18 = vpop.permute.xlu0 %2015 }
 0xc83   : > { %v8301_v19 = vpop.permute.xlu1 %2091 }
 0xc84   : > { %v2056_v20 = vpop.permute.xlu0 %2055 }
 0xc87   : > { %v8303_v21 = vpop.permute.xlu1 %2127 }
 0xc88   : > { %v8305_v22 = vpop.permute.xlu0 %2095 }
 0xc8b   : > { %v1866_v25 = vpop.permute.xlu1 %1865 }
 0xc8c   : > { %v1871_v26 = vsel %vm11016_vm2, %v1864_v6, %v1866_v25  ;;  %v1868_v27 = vpop.permute.xlu0 %1867  ;;  %vm11024_vm2 = vcmask 916480  }
 0xc8d   : > { %v1872_v29 = vsel %vm11018_vm7, %v1866_v25, %v1868_v27  ;;  %v6600_v35 = vpack.c.bf16 %v1871_v26, %v1869_v30  ;;  %v1946_v41 = vsel %vm11024_vm2, %v1936_v9, %v8281_v8  ;;  %vm11025_vm6 = vmmov %vm11024_vm2 }
 0xc8e   : > { %v6598_v32 = vpack.c.bf16 %v1872_v29, %v1870_v23  ;;  %v1945_v43 = vsel %vm11025_vm6, %v8279_v44, %v1936_v9  ;;  %vm11026_vm7 = vmmov %vm11024_vm2  ;;  %v2101_v29 = vsel %vm10906_vm12, %v8295_v36, %v8301_v19  ;;  %v2191_v44 = vld [vmem:[%s10853_s11 + $0x10] sm:$0xff] }
 0xc8f   : > { %v1902_v34 = vpop.permute.xlu1 %1901  ;;  %vm11027_vm9 = vmmov %vm11024_vm2  ;;  %vm11036_vm2 = vcmask 900096  }
 0xc90   : > { %v1907_v38 = vsel %vm11022_vm5, %v1900_v10, %v1902_v34  ;;  %v1904_v40 = vpop.permute.xlu0 %1903  ;;  %6599 = vmatprep.subr.bf16.mxu0 %v6598_v32  ;;  %vm11033_vm5 = vmmov %vm11032_vm10  ;;  %v2022_v4 = vsel %vm11036_vm2, %v2012_v14, %v8289_v24  ;;  %vm2872_vm10 = vcmask 539648  }
 0xc91   : > { %v1908_v49 = vsel %vm11023_vm15, %v1902_v34, %v1904_v40  ;;  %6601 = vmatpush1.bf16.msra.mxu0 %v6600_v35  ;;  %v7261_v8 = vpack.c.bf16 %v1907_v38, %v1905_v37  ;;  %vm11034_vm15 = vmmov %vm11033_vm5  ;;  %v2303_v34 = vld [vmem:[#allocation5 + $0x18] sm:$0xff]  ;;  %v2302_v38 = vld [vmem:[#allocation5 + $0x10] sm:$0xff]  ;;  %2873 = vst.msk [vmem:[#allocation2 + $0x40] sm:$0xff] %vm2872_vm10, %v8176_v31 }
 0xc92   : > { %v7258_v48 = vpack.c.bf16 %v1908_v49, %v1906_v33  ;;  %vm11035_vm11 = vmmov %vm11033_vm5  ;;  %v2310_v40 = vld [vmem:[#allocation5 + $0x50] sm:$0xff]  ;;  %v2319_v49 = vld [vmem:[#allocation5 + $0x98] sm:$0xff]  ;;  %2882 = vst.msk [vmem:[#allocation2 + $0x88] sm:$0xff] %vm2872_vm10, %v8176_v31 }
 0xc93   : > { %v1942_v46 = vpop.permute.xlu1 %1941  ;;  %v1985_v0 = vsel %vm11035_vm11, %v8283_v13, %v1976_v12  ;;  %vm11037_vm6 = vmmov %vm11036_vm2  ;;  %v2061_v13 = vsel %vm10922_vm8, %v8291_v28, %v2052_v16 }
 0xc94   : > { %v1947_v62 = vsel %vm11026_vm7, %v1940_v56, %v1942_v46  ;;  %v1944_v45 = vpop.permute.xlu0 %1943  ;;  %7259 = vmatprep.subr.msk.bf16.mxu0 %vm8328_vm14, %v7258_v48  ;;  %v2021_v6 = vsel %vm11037_vm6, %v8287_v11, %v2012_v14  ;;  %vm11038_vm7 = vmmov %vm11036_vm2  ;;  %v2062_v56 = vsel %vm10922_vm8, %v2052_v16, %v8293_v1  ;;  %v2102_v1 = vsel %vm10906_vm12, %v8301_v19, %v8297_v39  ;;  %v2335_v48 = vld [vmem:[#allocation5 + $0x118] sm:$0xff] }
 0xc95   : > { %v1948_v47 = vsel %vm11027_vm9, %v1942_v46, %v1944_v45  ;;  %7262 = vmatpush1.bf16.msk.msra.mxu0 %vm8337_vm13, %v7261_v8  ;;  %v7267_v61 = vpack.c.bf16 %v1947_v62, %v1945_v43  ;;  %vm11039_vm9 = vmmov %vm11036_vm2  ;;  %v2138_v39 = vsel %vm10905_vm3, %v8303_v21, %v8299_v54  ;;  %v6694_v54 = vpack.c.bf16 %v2311_v51, %v2303_v34  ;;  %v2192_v62 = vld [vmem:[%s10853_s11 + $0x18] sm:$0xff]  ;;  %v2343_v8 = vld [vmem:[#allocation5 + $0x158] sm:$0xff] }
 0xc96   : > { %v7264_v60 = vpack.c.bf16 %v1948_v47, %v1946_v41  ;;  %v2327_v41 = vld [vmem:[#allocation5 + $0xd8] sm:$0xff]  ;;  %v6696_v43 = vpack.c.bf16 %v2310_v40, %v2302_v38  ;;  %v2318_v47 = vld [vmem:[#allocation5 + $0x90] sm:$0xff] }
 0xc97   : > { %v1982_v52 = vpop.permute.xlu1 %1981  ;;  %v6698_v45 = vpack.c.bf16 %v2327_v41, %v2319_v49  ;;  %v2438_v34 = vld [vmem:[#allocation5 + $0x450] sm:$0xff]  ;;  %v2447_v51 = vld [vmem:[#allocation5 + $0x498] sm:$0xff] }
 0xc98   : > { %v1984_v53 = vpop.permute.xlu0 %1983  ;;  %v1987_v57 = vsel %vm11033_vm5, %v1980_v15, %v1982_v52  ;;  %7265 = vmatprep.subr.msk.bf16.mxu0 %vm8199_vm0, %v7264_v60  ;;  %v2359_v60 = vld [vmem:[#allocation5 + $0x1d8] sm:$0xff]  ;;  %vm10903_vm5 = vcmask 1047816  }
 0xc99   : > { %v1988_v59 = vsel %vm11034_vm15, %v1982_v52, %v1984_v53  ;;  %7268 = vmatpush1.bf16.msk.msra.mxu0 %vm8211_vm1, %v7267_v61  ;;  %v6612_v9 = vpack.c.bf16 %v1987_v57, %v1985_v0  ;;  %v6700_v52 = vpack.c.bf16 %v2326_v58, %v2318_v47  ;;  %v6702_v53 = vpack.c.bf16 %v2343_v8, %v2335_v48  ;;  %v2342_v57 = vld [vmem:[#allocation5 + $0x150] sm:$0xff]  ;;  %v2463_v38 = vld [vmem:[#allocation5 + $0x518] sm:$0xff] }
 0xc9a   : > { %v6610_v63 = vpack.c.bf16 %v1988_v59, %v1986_v55  ;;  %v2334_v55 = vld [vmem:[#allocation5 + $0x110] sm:$0xff]  ;;  %v2351_v59 = vld [vmem:[#allocation5 + $0x198] sm:$0xff]  ;;  %vm10898_vm15 = vcmask 269312  }
 0xc9b   : > { %v2018_v17 = vpop.permute.xlu1 %2017  ;;  %v6704_v61 = vpack.c.bf16 %v2342_v57, %v2334_v55  ;;  %v2350_v0 = vld [vmem:[#allocation5 + $0x190] sm:$0xff]  ;;  %v2471_v40 = vld [vmem:[#allocation5 + $0x558] sm:$0xff] }
 0xc9c   : > { %v2023_v50 = vsel %vm11038_vm7, %v2016_v18, %v2018_v17  ;;  %v2020_v7 = vpop.permute.xlu0 %2019  ;;  %6611 = vmatprep.subr.bf16.mxu0 %v6610_v63  ;;  %v6706_v63 = vpack.c.bf16 %v2359_v60, %v2351_v59  ;;  %v6734_v41 = vpack.c.bf16 %v2471_v40, %v2463_v38  ;;  %v2478_v58 = vld [vmem:[#allocation5 + $0x590] sm:$0xff]  ;;  %v2495_v8 = vld [vmem:[#allocation5 + $0x618] sm:$0xff]  ;;  %v2321_v40 = vld [vmem:[#allocation5 + $0xa8] sm:$0xff] }
 0xc9d   : > { %v2024_v10 = vsel %vm11039_vm9, %v2018_v17, %v2020_v7  ;;  %6613 = vmatpush1.bf16.msra.mxu0 %v6612_v9  ;;  %v7273_v18 = vpack.c.bf16 %v2023_v50, %v2021_v6  ;;  %v2367_v17 = vld [vmem:[#allocation5 + $0x218] sm:$0xff]  ;;  %v2366_v9 = vld [vmem:[#allocation5 + $0x210] sm:$0xff] }
 0xc9e   : > { %v7270_v14 = vpack.c.bf16 %v2024_v10, %v2022_v4  ;;  %v2358_v4 = vld [vmem:[#allocation5 + $0x1d0] sm:$0xff]  ;;  %v2375_v6 = vld [vmem:[#allocation5 + $0x258] sm:$0xff] }
 0xc9f   : > { %v2058_v15 = vpop.permute.xlu1 %2057  ;;  %v6708_v50 = vpack.c.bf16 %v2358_v4, %v2350_v0  ;;  %v6710_v7 = vpack.c.bf16 %v2375_v6, %v2367_v17  ;;  %v2374_v10 = vld [vmem:[#allocation5 + $0x250] sm:$0xff]  ;;  %v2511_v59 = vld [vmem:[#allocation5 + $0x698] sm:$0xff] }
 0xca0   : > { %v2063_v24 = vsel %vm10922_vm8, %v2056_v20, %v2058_v15  ;;  %v2060_v12 = vpop.permute.xlu0 %2059  ;;  %7271 = vmatprep.subr.msk.bf16.mxu0 %vm8328_vm14, %v7270_v14  ;;  %v2399_v14 = vld [vmem:[#allocation5 + $0x318] sm:$0xff]  ;;  %v2486_v48 = vld [vmem:[#allocation5 + $0x5d0] sm:$0xff] }
 0xca1   : > { %v2064_v11 = vsel %vm10922_vm8, %v2058_v15, %v2060_v12  ;;  %7274 = vmatpush1.bf16.msk.msra.mxu0 %vm8337_vm13, %v7273_v18  ;;  %v7279_v27 = vpack.c.bf16 %v2063_v24, %v2061_v13  ;;  %v2391_v15 = vld [vmem:[#allocation5 + $0x2d8] sm:$0xff]  ;;  %v6712_v13 = vpack.c.bf16 %v2374_v10, %v2366_v9  ;;  %v2382_v12 = vld [vmem:[#allocation5 + $0x290] sm:$0xff]  ;;  %v2524_v9 = vld [vmem:[#allocation5 + $0x700] sm:$0xff] }
 0xca2   : > { %v7276_v20 = vpack.c.bf16 %v2064_v11, %v2062_v56  ;;  %v2383_v56 = vld [vmem:[#allocation5 + $0x298] sm:$0xff]  ;;  %v2390_v11 = vld [vmem:[#allocation5 + $0x2d0] sm:$0xff]  ;;  %v2532_v10 = vld [vmem:[#allocation5 + $0x740] sm:$0xff] }
 0xca3   : > { %v2098_v25 = vpop.permute.xlu1 %2097  ;;  %v6714_v24 = vpack.c.bf16 %v2391_v15, %v2383_v56  ;;  %v2407_v18 = vld [vmem:[#allocation5 + $0x358] sm:$0xff]  ;;  %v2494_v55 = vld [vmem:[#allocation5 + $0x610] sm:$0xff]  ;;  %v6688_v15 = vpack.c.bf16 %v2532_v10, %v2524_v9 }
 0xca4   : > { %v2100_v26 = vpop.permute.xlu0 %2099  ;;  %v2103_v28 = vsel %vm10906_vm12, %v8305_v22, %v2098_v25  ;;  %7277 = vmatprep.subr.msk.bf16.mxu0 %vm8199_vm0, %v7276_v20  ;;  %v2423_v20 = vld [vmem:[#allocation5 + $0x3d8] sm:$0xff]  ;;  %v2502_v57 = vld [vmem:[#allocation5 + $0x650] sm:$0xff] }
 0xca5   : > { %v2104_v16 = vsel %vm10906_vm12, %v2098_v25, %v2100_v26  ;;  %7280 = vmatpush1.bf16.msk.msra.mxu0 %vm8211_vm1, %v7279_v27  ;;  %v6624_v32 = vpack.c.bf16 %v2103_v28, %v2101_v29  ;;  %v6716_v25 = vpack.c.bf16 %v2390_v11, %v2382_v12  ;;  %v6718_v26 = vpack.c.bf16 %v2407_v18, %v2399_v14  ;;  %v2406_v28 = vld [vmem:[#allocation5 + $0x350] sm:$0xff]  ;;  %v2519_v60 = vld [vmem:[#allocation5 + $0x6d8] sm:$0xff]  ;;  %v2541_v12 = vld [vmem:[#allocation5 + $0x788] sm:$0xff] }
 0xca6   : > { %v6622_v23 = vpack.c.bf16 %v2104_v16, %v2102_v1  ;;  %v2398_v1 = vld [vmem:[#allocation5 + $0x310] sm:$0xff]  ;;  %v2415_v16 = vld [vmem:[#allocation5 + $0x398] sm:$0xff]  ;;  %6689 = vmatpush1.bf16.msra.mxu1 %v6688_v15  ;;  %v2549_v11 = vld [vmem:[#allocation5 + $0x7c8] sm:$0xff] }
 0xca7   : > { %v2134_v22 = vpop.permute.xlu1 %2133  ;;  %v6720_v27 = vpack.c.bf16 %v2406_v28, %v2398_v1  ;;  %v2414_v29 = vld [vmem:[#allocation5 + $0x390] sm:$0xff]  ;;  %v2527_v17 = vld [vmem:[#allocation5 + $0x718] sm:$0xff]  ;;  %v6690_v18 = vpack.c.bf16 %v2549_v11, %v2541_v12  ;;  %v2548_v1 = vld [vmem:[#allocation5 + $0x7c0] sm:$0xff] }
 0xca8   : > { %v2136_v30 = vpop.permute.xlu0 %2135  ;;  %6623 = vmatprep.subr.bf16.mxu0 %v6622_v23  ;;  %v6722_v23 = vpack.c.bf16 %v2423_v20, %v2415_v16  ;;  %v2510_v0 = vld [vmem:[#allocation5 + $0x690] sm:$0xff]  ;;  %v2535_v6 = vld [vmem:[#allocation5 + $0x758] sm:$0xff]  ;;  %v2344_v15 = vld [vmem:[#allocation5 + $0x160] sm:$0xff] }
 0xca9   : > { %v2140_v2 = vsel %vm10905_vm3, %v2134_v22, %v2136_v30  ;;  %6625 = vmatpush1.bf16.msra.mxu0 %v6624_v32  ;;  %v2439_v30 = vld [vmem:[#allocation5 + $0x458] sm:$0xff]  ;;  %v2518_v4 = vld [vmem:[#allocation5 + $0x6d0] sm:$0xff]  ;;  %6691 = vmatprep.subr.bf16.mxu1 %v6690_v18  ;;  %v2353_v11 = vld [vmem:[#allocation5 + $0x1a8] sm:$0xff] }
 0xcaa   : > { %v7282_v19 = vpack.c.bf16 %v2140_v2, %v2138_v39  ;;  %v2422_v39 = vld [vmem:[#allocation5 + $0x3d0] sm:$0xff]  ;;  %v2543_v14 = vld [vmem:[#allocation5 + $0x798] sm:$0xff] }
 0xcab   : > { %v2126_v33 = vpop.permute.xlu1 %2125  ;;  %v6724_v32 = vpack.c.bf16 %v2422_v39, %v2414_v29  ;;  %v2526_v56 = vld [vmem:[#allocation5 + $0x710] sm:$0xff]  ;;  %v2305_v29 = vld [vmem:[#allocation5 + $0x28] sm:$0xff] }
 0xcac   : > { %v2137_v35 = vsel %vm10905_vm3, %v2126_v33, %v8303_v21  ;;  %v2132_v37 = vpop.permute.xlu0 %2131  ;;  %7283 = vmatprep.subr.msk.bf16.mxu0 %vm8328_vm14, %v7282_v19  ;;  %v2189_v21 = vld [vmem:[%s10853_s11] sm:$0xff] }
 0xcad   : > { %v2139_v36 = vsel %vm10905_vm3, %v2132_v37, %v2134_v22  ;;  %v2431_v22 = vld [vmem:[#allocation5 + $0x418] sm:$0xff]  ;;  %v2430_v33 = vld [vmem:[#allocation5 + $0x410] sm:$0xff]  ;;  %v2313_v39 = vld [vmem:[#allocation5 + $0x68] sm:$0xff] }
 0xcae   : > { %v7285_v46 = vpack.c.bf16 %v2139_v36, %v2137_v35  ;;  %v6726_v2 = vpack.c.bf16 %v2439_v30, %v2431_v22  ;;  %v2455_v35 = vld [vmem:[#allocation5 + $0x4d8] sm:$0xff]  ;;  %v6728_v37 = vpack.c.bf16 %v2438_v34, %v2430_v33  ;;  %v2446_v19 = vld [vmem:[#allocation5 + $0x490] sm:$0xff]  ;;  %v6758_v30 = vpack.c.bf16 %v2313_v39, %v2305_v29 }
 0xcaf   : > { %v6730_v36 = vpack.c.bf16 %v2455_v35, %v2447_v51  ;;  %v2542_v20 = vld [vmem:[#allocation5 + $0x790] sm:$0xff]  ;;  %v2307_v22 = vld [vmem:[#allocation5 + $0x38] sm:$0xff] }
 0xcb0   : > { %7286 = vmatpush1.bf16.msk.msra.mxu0 %vm8337_vm13, %v7285_v46  ;;  %v2462_v46 = vld [vmem:[#allocation5 + $0x510] sm:$0xff] }
 0xcb1   : > { %6695 = vmatprep.subr.bf16.mxu0 %v6694_v54  ;;  %v2454_v54 = vld [vmem:[#allocation5 + $0x4d0] sm:$0xff] }
 0xcb2   : > { %v6732_v49 = vpack.c.bf16 %v2454_v54, %v2446_v19  ;;  %v2306_v54 = vld [vmem:[#allocation5 + $0x30] sm:$0xff] }
 0xcb3   : > { %2276 = vmatmul.mubr.f32.vlgmr.msra.gmra.mrb[4].mxu0 %v2189_v21  ;;  %v2470_v21 = vld [vmem:[#allocation5 + $0x550] sm:$0xff] }
 0xcb4   : > { %6425 = vmatprep.mubr.msk.f32.mxu0 %vm10904_vm4, %v2192_v62  ;;  %6697 = vmatpush1.bf16.msra.mxu0 %v6696_v43  ;;  %v2479_v43 = vld [vmem:[#allocation5 + $0x598] sm:$0xff]  ;;  %v2314_v38 = vld [vmem:[#allocation5 + $0x70] sm:$0xff] }
 0xcb5   : > { %6699 = vmatprep.subr.bf16.mxu0 %v6698_v45  ;;  %v2487_v62 = vld [vmem:[#allocation5 + $0x5d8] sm:$0xff]  ;;  %v6736_v45 = vpack.c.bf16 %v2470_v21, %v2462_v46  ;;  %v2346_v12 = vld [vmem:[#allocation5 + $0x170] sm:$0xff] }
 0xcb6   : > { %v6738_v47 = vpack.c.bf16 %v2487_v62, %v2479_v43  ;;  %v2323_v46 = vld [vmem:[#allocation5 + $0xb8] sm:$0xff] }
 0xcb7   : > { %2282 = vmatmul.mubr.f32.gmra.mrb[6].mxu0 %v2191_v44  ;;  %v2503_v44 = vld [vmem:[#allocation5 + $0x658] sm:$0xff] }
 0xcb8   : > { %6701 = vmatpush1.bf16.msra.mxu0 %v6700_v52  ;;  %v6740_v52 = vpack.c.bf16 %v2486_v48, %v2478_v58  ;;  %v2331_v21 = vld [vmem:[#allocation5 + $0xf8] sm:$0xff] }
 0xcb9   : > { %6703 = vmatprep.subr.bf16.mxu0 %v6702_v53  ;;  %v6742_v53 = vpack.c.bf16 %v2503_v44, %v2495_v8  ;;  %v6824_v8 = vpack.c.bf16 %v2314_v38, %v2306_v54  ;;  %v2320_v44 = vld [vmem:[#allocation5 + $0xa0] sm:$0xff]  ;;  %v2370_v38 = vld [vmem:[#allocation5 + $0x230] sm:$0xff] }
 0xcbc   : > { %6705 = vmatpush1.bf16.msra.mxu0 %v6704_v61  ;;  %v6744_v61 = vpack.c.bf16 %v2502_v57, %v2494_v55  ;;  %v2198_v33 = vpop.permute.xlu1 %2197  ;;  %v6826_v57 = vpack.c.bf16 %v2331_v21, %v2323_v46  ;;  %v2387_v46 = vld [vmem:[#allocation5 + $0x2b8] sm:$0xff] }
 0xcbd   : > { %6707 = vmatprep.subr.bf16.mxu0 %v6706_v63  ;;  %v6746_v63 = vpack.c.bf16 %v2519_v60, %v2511_v59  ;;  %v2203_v43 = vpop.permute.xlu0 %2202  ;;  %v2328_v59 = vld [vmem:[#allocation5 + $0xe0] sm:$0xff]  ;;  %v2322_v60 = vld [vmem:[#allocation5 + $0xb0] sm:$0xff]  ;;  %v2395_v21 = vld [vmem:[#allocation5 + $0x2f8] sm:$0xff] }
 0xcbe   : > { %v6764_v9 = vpack.c.bf16 %v2328_v59, %v2320_v44  ;;  %v2394_v44 = vld [vmem:[#allocation5 + $0x2f0] sm:$0xff] }
 0xcc0   : > { %6709 = vmatpush1.bf16.msra.mxu0 %v6708_v50  ;;  %v6748_v50 = vpack.c.bf16 %v2518_v4, %v2510_v0  ;;  %v2337_v4 = vld [vmem:[#allocation5 + $0x128] sm:$0xff] }
 0xcc1   : > { %6711 = vmatprep.subr.bf16.mxu0 %v6710_v7  ;;  %v6750_v7 = vpack.c.bf16 %v2535_v6, %v2527_v17  ;;  %v2345_v17 = vld [vmem:[#allocation5 + $0x168] sm:$0xff] }
 0xcc2   : > { %v6766_v18 = vpack.c.bf16 %v2345_v17, %v2337_v4 }
 0xcc4   : > { %6713 = vmatpush1.bf16.msra.mxu0 %v6712_v13  ;;  %v2534_v13 = vld [vmem:[#allocation5 + $0x750] sm:$0xff] }
 0xcc5   : > { %6715 = vmatprep.subr.bf16.mxu0 %v6714_v24  ;;  %v6752_v24 = vpack.c.bf16 %v2534_v13, %v2526_v56  ;;  %v2336_v56 = vld [vmem:[#allocation5 + $0x120] sm:$0xff] }
 0xcc8   : > { %6717 = vmatpush1.bf16.msra.mxu0 %v6716_v25  ;;  %v2551_v25 = vld [vmem:[#allocation5 + $0x7d8] sm:$0xff] }
 0xcc9   : > { %6719 = vmatprep.subr.bf16.mxu0 %v6718_v26  ;;  %v2540_v26 = vld [vmem:[#allocation5 + $0x780] sm:$0xff]  ;;  %v6754_v28 = vpack.c.bf16 %v2551_v25, %v2543_v14 }
 0xcca   : > { %v6692_v16 = vpack.c.bf16 %v2548_v1, %v2540_v26  ;;  %v2361_v26 = vld [vmem:[#allocation5 + $0x1e8] sm:$0xff]  ;;  %v2355_v1 = vld [vmem:[#allocation5 + $0x1b8] sm:$0xff] }
 0xccb   : > { %v6770_v29 = vpack.c.bf16 %v2361_v26, %v2353_v11  ;;  %v2424_v11 = vld [vmem:[#allocation5 + $0x3e0] sm:$0xff]  ;;  %v2418_v26 = vld [vmem:[#allocation5 + $0x3b0] sm:$0xff] }
 0xccc   : > { %6721 = vmatpush1.bf16.msra.mxu0 %v6720_v27  ;;  %v2550_v27 = vld [vmem:[#allocation5 + $0x7d0] sm:$0xff]  ;;  %6693 = vmatpush1.bf16.msra.mxu1 %v6692_v16  ;;  %v6768_v16 = vpack.c.bf16 %v2344_v15, %v2336_v56  ;;  %v2427_v56 = vld [vmem:[#allocation5 + $0x3f8] sm:$0xff] }
 0xccd   : > { %6723 = vmatprep.subr.bf16.mxu0 %v6722_v23  ;;  %v6756_v23 = vpack.c.bf16 %v2550_v27, %v2542_v20  ;;  %6759 = vmatprep.subr.bf16.mxu1 %v6758_v30  ;;  %v2352_v27 = vld [vmem:[#allocation5 + $0x1a0] sm:$0xff]  ;;  %v2362_v30 = vld [vmem:[#allocation5 + $0x1f0] sm:$0xff] }
 0xcd0   : > { %6725 = vmatpush1.bf16.msra.mxu0 %v6724_v32  ;;  %v2315_v32 = vld [vmem:[#allocation5 + $0x78] sm:$0xff] }
 0xcd1   : > { %6727 = vmatprep.subr.bf16.mxu0 %v6726_v2  ;;  %v6822_v2 = vpack.c.bf16 %v2315_v32, %v2307_v22  ;;  %v2354_v22 = vld [vmem:[#allocation5 + $0x1b0] sm:$0xff]  ;;  %v2369_v32 = vld [vmem:[#allocation5 + $0x228] sm:$0xff] }
 0xcd4   : > { %6729 = vmatpush1.bf16.msra.mxu0 %v6728_v37  ;;  %v2304_v37 = vld [vmem:[#allocation5 + $0x20] sm:$0xff] }
 0xcd5   : > { %6731 = vmatprep.subr.bf16.mxu0 %v6730_v36  ;;  %v2312_v36 = vld [vmem:[#allocation5 + $0x60] sm:$0xff] }
 0xcd6   : > { %v6760_v48 = vpack.c.bf16 %v2312_v36, %v2304_v37  ;;  %v2368_v37 = vld [vmem:[#allocation5 + $0x220] sm:$0xff] }
 0xcd7   : > { %v2376_v36 = vld [vmem:[#allocation5 + $0x260] sm:$0xff] }
 0xcd8   : > { %6733 = vmatpush1.bf16.msra.mxu0 %v6732_v49 }
 0xcd9   : > { %6735 = vmatprep.subr.bf16.mxu0 %v6734_v41  ;;  %v2329_v41 = vld [vmem:[#allocation5 + $0xe8] sm:$0xff] }
 0xcda   : > { %v6762_v55 = vpack.c.bf16 %v2329_v41, %v2321_v40  ;;  %v2378_v40 = vld [vmem:[#allocation5 + $0x270] sm:$0xff]  ;;  %v2393_v41 = vld [vmem:[#allocation5 + $0x2e8] sm:$0xff] }
 0xcdc   : > { %6737 = vmatpush1.bf16.msra.mxu0 %v6736_v45 }
 0xcdd   : > { %6739 = vmatprep.subr.bf16.mxu0 %v6738_v47 }
 0xce0   : > { %6741 = vmatpush1.bf16.msra.mxu0 %v6740_v52 }
 0xce1   : > { %6743 = vmatprep.subr.bf16.mxu0 %v6742_v53 }
 0xce4   : > { %6745 = vmatpush1.bf16.msra.mxu0 %v6744_v61  ;;  %v2330_v61 = vld [vmem:[#allocation5 + $0xf0] sm:$0xff] }
 0xce5   : > { %6747 = vmatprep.subr.bf16.mxu0 %v6746_v63  ;;  %v6828_v10 = vpack.c.bf16 %v2330_v61, %v2322_v60  ;;  %v2400_v61 = vld [vmem:[#allocation5 + $0x320] sm:$0xff] }
 0xce8   : > { %6749 = vmatpush1.bf16.msra.mxu0 %v6748_v50  ;;  %v2339_v50 = vld [vmem:[#allocation5 + $0x138] sm:$0xff] }
 0xce9   : > { %6751 = vmatprep.subr.bf16.mxu0 %v6750_v7  ;;  %v2347_v7 = vld [vmem:[#allocation5 + $0x178] sm:$0xff] }
 0xcea   : > { %v6830_v25 = vpack.c.bf16 %v2347_v7, %v2339_v50  ;;  %v2410_v50 = vld [vmem:[#allocation5 + $0x370] sm:$0xff]  ;;  %v2417_v7 = vld [vmem:[#allocation5 + $0x3a8] sm:$0xff] }
 0xcec   : > { %6753 = vmatpush1.bf16.msra.mxu0 %v6752_v24  ;;  %v2338_v24 = vld [vmem:[#allocation5 + $0x130] sm:$0xff] }
 0xced   : > { %6755 = vmatprep.subr.bf16.mxu0 %v6754_v28  ;;  %v2363_v28 = vld [vmem:[#allocation5 + $0x1f8] sm:$0xff]  ;;  %v6832_v20 = vpack.c.bf16 %v2346_v12, %v2338_v24  ;;  %v2416_v12 = vld [vmem:[#allocation5 + $0x3a0] sm:$0xff] }
 0xcee   : > { %v6834_v39 = vpack.c.bf16 %v2363_v28, %v2355_v1  ;;  %v2426_v1 = vld [vmem:[#allocation5 + $0x3f0] sm:$0xff]  ;;  %v2433_v28 = vld [vmem:[#allocation5 + $0x428] sm:$0xff] }
 0xcf0   : > { %6757 = vmatpush1.bf16.msra.mxu0 %v6756_v23  ;;  %v2360_v23 = vld [vmem:[#allocation5 + $0x1e0] sm:$0xff] }
 0xcf1   : > { %6823 = vmatprep.subr.bf16.mxu0 %v6822_v2  ;;  %v2377_v2 = vld [vmem:[#allocation5 + $0x268] sm:$0xff] }
 0xd86   : > { %v2277_v34 = vpop.f32.mrb[4].mxu0 }
 0xd87   : > { %v2278_v51 = vadd.f32 %v2277_v34, %v2198_v33  ;;  %v2279_v35 = vpop.f32.mrb[5].mxu0  ;;  %v2379_v34 = vld [vmem:[#allocation5 + $0x278] sm:$0xff] }
 0xd88   : > { %v2280_v19 = vadd.f32 %v2279_v35, %v2198_v33  ;;  %v2371_v33 = vld [vmem:[#allocation5 + $0x238] sm:$0xff]  ;;  %v6836_v35 = vpack.c.bf16 %v2362_v30, %v2354_v22  ;;  %v2440_v22 = vld [vmem:[#allocation5 + $0x460] sm:$0xff] }
 0xd89   : > { %v2292_v49 = vmul.f32 0.2, %v2278_v51  ;;  %vm2288_vm0 = vcmp.ge.f32.partialorder %v2278_v51, 0.0  ;;  %v6838_v54 = vpack.c.bf16 %v2379_v34, %v2371_v33  ;;  %v2442_v33 = vld [vmem:[#allocation5 + $0x470] sm:$0xff]  ;;  %v2449_v34 = vld [vmem:[#allocation5 + $0x4a8] sm:$0xff] }
 0xd8a   : > { %vm2289_vm1 = vcmp.ge.f32.partialorder %v2280_v19, 0.0  ;;  %v2293_v62 = vmul.f32 0.2, %v2280_v19  ;;  %v2283_v45 = vpop.f32.mrb[6].mxu0 }
 0xd8b   : > { %v2284_v47 = vadd.f32 %v2283_v45, %v2203_v43  ;;  %v2285_v58 = vpop.f32.mrb[7].mxu0  ;;  %v8404_v63 = vsel %vm2288_vm0, %v2278_v51, %v2292_v49  ;;  %v6772_v51 = vpack.c.bf16 %v2360_v23, %v2352_v27  ;;  %v2385_v49 = vld [vmem:[#allocation5 + $0x2a8] sm:$0xff]  ;;  %v2384_v45 = vld [vmem:[#allocation5 + $0x2a0] sm:$0xff]  ;;  %v2443_v27 = vld [vmem:[#allocation5 + $0x478] sm:$0xff]  ;;  %v6788_v23 = vpack.c.bf16 %v2424_v11, %v2416_v12 }
 0xd8c   : > { %v2286_v52 = vadd.f32 %v2285_v58, %v2203_v43  ;;  %v2297_v53 = vsel %vm2289_vm1, %v2280_v19, %v2293_v62  ;;  %v6774_v19 = vpack.c.bf16 %v2377_v2, %v2369_v32  ;;  %v6776_v43 = vpack.c.bf16 %v2376_v36, %v2368_v37  ;;  %v2434_v2 = vld [vmem:[#allocation5 + $0x430] sm:$0xff]  ;;  %v2459_v37 = vld [vmem:[#allocation5 + $0x4f8] sm:$0xff] }
 0xd8d   : > { %v2294_v0 = vmul.f32 0.2, %v2284_v47  ;;  %2620 = vmatprep.mubr.f32.mxu1 %v2297_v53  ;;  %2697 = vmatprep.mubr.f32.mxu0 %v2297_v53  ;;  %vm2290_vm14 = vcmp.ge.f32.partialorder %v2284_v47, 0.0  ;;  %v6840_v62 = vpack.c.bf16 %v2378_v40, %v2370_v38  ;;  %v6778_v58 = vpack.c.bf16 %v2393_v41, %v2385_v49  ;;  %v2456_v38 = vld [vmem:[#allocation5 + $0x4e0] sm:$0xff]  ;;  %v2450_v41 = vld [vmem:[#allocation5 + $0x4b0] sm:$0xff]  ;;  %v2507_v12 = vld [vmem:[#allocation5 + $0x678] sm:$0xff] }
 0xd8e   : > { %vm2291_vm13 = vcmp.ge.f32.partialorder %v2286_v52, 0.0  ;;  %v2295_v6 = vmul.f32 0.2, %v2286_v52  ;;  %2621 = vmatmul.mubr.f32.vlgmr.msra.gmra.mrb[12].mxu1 %v8404_v63  ;;  %2698 = vmatmul.mubr.f32.vlgmr.msra.gmra.mrb[8].mxu0 %v8404_v63 }
 0xd8f   : > { %6761 = vmatpush1.bf16.msra.mxu1 %v6760_v48  ;;  %6825 = vmatpush1.bf16.msra.mxu0 %v6824_v8  ;;  %v8413_v14 = vsel %vm2290_vm14, %v2284_v47, %v2294_v0  ;;  %v2392_v47 = vld [vmem:[#allocation5 + $0x2e0] sm:$0xff]  ;;  %v6842_v48 = vpack.c.bf16 %v2395_v21, %v2387_v46  ;;  %v2386_v8 = vld [vmem:[#allocation5 + $0x2b0] sm:$0xff]  ;;  %v2465_v21 = vld [vmem:[#allocation5 + $0x528] sm:$0xff] }
 0xd90   : > { %v8408_v13 = vsel %vm2291_vm13, %v2286_v52, %v2295_v6  ;;  %6763 = vmatprep.subr.bf16.mxu1 %v6762_v55  ;;  %6827 = vmatprep.subr.bf16.mxu0 %v6826_v57  ;;  %v2401_v52 = vld [vmem:[#allocation5 + $0x328] sm:$0xff]  ;;  %v2403_v55 = vld [vmem:[#allocation5 + $0x338] sm:$0xff]  ;;  %v6780_v59 = vpack.c.bf16 %v2392_v47, %v2384_v45  ;;  %v6844_v60 = vpack.c.bf16 %v2394_v44, %v2386_v8  ;;  %v2408_v0 = vld [vmem:[#allocation5 + $0x360] sm:$0xff] }
 0xd91   : > { %2626 = vmatprep.mubr.f32.mxu1 %v8408_v13  ;;  %2703 = vmatprep.mubr.f32.mxu0 %v8408_v13  ;;  %v2411_v57 = vld [vmem:[#allocation5 + $0x378] sm:$0xff]  ;;  %v2402_v6 = vld [vmem:[#allocation5 + $0x330] sm:$0xff]  ;;  %v6784_v15 = vpack.c.bf16 %v2408_v0, %v2400_v61  ;;  %v2472_v8 = vld [vmem:[#allocation5 + $0x560] sm:$0xff] }
 0xd92   : > { %2627 = vmatmul.mubr.f32.gmra.mrb[14].mxu1 %v8413_v14  ;;  %2704 = vmatmul.mubr.f32.gmra.mrb[10].mxu0 %v8413_v14  ;;  %v6846_v17 = vpack.c.bf16 %v2411_v57, %v2403_v55  ;;  %v6848_v24 = vpack.c.bf16 %v2410_v50, %v2402_v6  ;;  %v2458_v46 = vld [vmem:[#allocation5 + $0x4f0] sm:$0xff]  ;;  %v2475_v45 = vld [vmem:[#allocation5 + $0x578] sm:$0xff]  ;;  %v2481_v57 = vld [vmem:[#allocation5 + $0x5a8] sm:$0xff] }
 0xd93   : > { %6765 = vmatpush1.bf16.msra.mxu1 %v6764_v9  ;;  %6829 = vmatpush1.bf16.msra.mxu0 %v6828_v10  ;;  %v2425_v9 = vld [vmem:[#allocation5 + $0x3e8] sm:$0xff]  ;;  %v2419_v10 = vld [vmem:[#allocation5 + $0x3b8] sm:$0xff]  ;;  %v2474_v55 = vld [vmem:[#allocation5 + $0x570] sm:$0xff] }
 0xd94   : > { %2774 = vmatprep.mubr.f32.mxu1 %v2297_v53  ;;  %2851 = vmatprep.mubr.f32.mxu0 %v2297_v53  ;;  %v2409_v53 = vld [vmem:[#allocation5 + $0x368] sm:$0xff]  ;;  %v2491_v61 = vld [vmem:[#allocation5 + $0x5f8] sm:$0xff]  ;;  %v2488_v6 = vld [vmem:[#allocation5 + $0x5e0] sm:$0xff] }
 0xd95   : > { %6767 = vmatprep.subr.bf16.mxu1 %v6766_v18  ;;  %6831 = vmatprep.subr.bf16.mxu0 %v6830_v25  ;;  %v6782_v4 = vpack.c.bf16 %v2409_v53, %v2401_v52  ;;  %v6786_v18 = vpack.c.bf16 %v2425_v9, %v2417_v7  ;;  %v6850_v25 = vpack.c.bf16 %v2427_v56, %v2419_v10  ;;  %v2466_v53 = vld [vmem:[#allocation5 + $0x530] sm:$0xff]  ;;  %v2497_v56 = vld [vmem:[#allocation5 + $0x628] sm:$0xff] }
 0xd96   : > { %v2482_v9 = vld [vmem:[#allocation5 + $0x5b0] sm:$0xff] }
 0xd97   : > { %6769 = vmatpush1.bf16.msra.mxu1 %v6768_v16  ;;  %6833 = vmatpush1.bf16.msra.mxu0 %v6832_v20  ;;  %v2441_v16 = vld [vmem:[#allocation5 + $0x468] sm:$0xff]  ;;  %v2435_v20 = vld [vmem:[#allocation5 + $0x438] sm:$0xff]  ;;  %v2490_v10 = vld [vmem:[#allocation5 + $0x5f0] sm:$0xff] }
 0xd98   : > { %6771 = vmatprep.subr.bf16.mxu1 %v6770_v29  ;;  %6835 = vmatprep.subr.bf16.mxu0 %v6834_v39  ;;  %v6852_v29 = vpack.c.bf16 %v2426_v1, %v2418_v26  ;;  %v2432_v39 = vld [vmem:[#allocation5 + $0x420] sm:$0xff]  ;;  %v6790_v30 = vpack.c.bf16 %v2441_v16, %v2433_v28  ;;  %v6854_v32 = vpack.c.bf16 %v2443_v27, %v2435_v20  ;;  %v2498_v16 = vld [vmem:[#allocation5 + $0x630] sm:$0xff]  ;;  %v2513_v27 = vld [vmem:[#allocation5 + $0x6a8] sm:$0xff] }
 0xd99   : > { %v6792_v36 = vpack.c.bf16 %v2440_v22, %v2432_v39  ;;  %v2504_v26 = vld [vmem:[#allocation5 + $0x660] sm:$0xff]  ;;  %v2506_v20 = vld [vmem:[#allocation5 + $0x670] sm:$0xff]  ;;  %v2523_v39 = vld [vmem:[#allocation5 + $0x6f8] sm:$0xff] }
 0xd9b   : > { %6773 = vmatpush1.bf16.msra.mxu1 %v6772_v51  ;;  %6837 = vmatpush1.bf16.msra.mxu0 %v6836_v35  ;;  %v2457_v51 = vld [vmem:[#allocation5 + $0x4e8] sm:$0xff]  ;;  %v2451_v35 = vld [vmem:[#allocation5 + $0x4b8] sm:$0xff] }
 0xd9c   : > { %6775 = vmatprep.subr.bf16.mxu1 %v6774_v19  ;;  %6839 = vmatprep.subr.bf16.mxu0 %v6838_v54  ;;  %v6856_v19 = vpack.c.bf16 %v2442_v33, %v2434_v2  ;;  %v2448_v54 = vld [vmem:[#allocation5 + $0x4a0] sm:$0xff]  ;;  %v6794_v40 = vpack.c.bf16 %v2457_v51, %v2449_v34  ;;  %v6858_v49 = vpack.c.bf16 %v2459_v37, %v2451_v35  ;;  %v2514_v51 = vld [vmem:[#allocation5 + $0x6b0] sm:$0xff]  ;;  %v2529_v37 = vld [vmem:[#allocation5 + $0x728] sm:$0xff] }
 0xd9d   : > { %v6796_v47 = vpack.c.bf16 %v2456_v38, %v2448_v54  ;;  %v2520_v2 = vld [vmem:[#allocation5 + $0x6e0] sm:$0xff]  ;;  %v2522_v35 = vld [vmem:[#allocation5 + $0x6f0] sm:$0xff]  ;;  %v2539_v54 = vld [vmem:[#allocation5 + $0x778] sm:$0xff] }
 0xd9f   : > { %6777 = vmatpush1.bf16.msra.mxu1 %v6776_v43  ;;  %6841 = vmatpush1.bf16.msra.mxu0 %v6840_v62  ;;  %v2473_v43 = vld [vmem:[#allocation5 + $0x568] sm:$0xff]  ;;  %v2467_v62 = vld [vmem:[#allocation5 + $0x538] sm:$0xff] }
 0xda0   : > { %6779 = vmatprep.subr.bf16.mxu1 %v6778_v58  ;;  %6843 = vmatprep.subr.bf16.mxu0 %v6842_v48  ;;  %v6860_v58 = vpack.c.bf16 %v2458_v46, %v2450_v41  ;;  %v2464_v48 = vld [vmem:[#allocation5 + $0x520] sm:$0xff]  ;;  %v6798_v44 = vpack.c.bf16 %v2473_v43, %v2465_v21  ;;  %v6862_v52 = vpack.c.bf16 %v2475_v45, %v2467_v62  ;;  %v2530_v43 = vld [vmem:[#allocation5 + $0x730] sm:$0xff]  ;;  %v2545_v45 = vld [vmem:[#allocation5 + $0x7a8] sm:$0xff] }
 0xda1   : > { %v6800_v0 = vpack.c.bf16 %v2472_v8, %v2464_v48  ;;  %v2536_v41 = vld [vmem:[#allocation5 + $0x760] sm:$0xff]  ;;  %v2538_v62 = vld [vmem:[#allocation5 + $0x770] sm:$0xff]  ;;  %v2555_v48 = vld [vmem:[#allocation5 + $0x7f8] sm:$0xff] }
 0xda3   : > { %6781 = vmatpush1.bf16.msra.mxu1 %v6780_v59  ;;  %6845 = vmatpush1.bf16.msra.mxu0 %v6844_v60  ;;  %v2489_v59 = vld [vmem:[#allocation5 + $0x5e8] sm:$0xff]  ;;  %v2483_v60 = vld [vmem:[#allocation5 + $0x5b8] sm:$0xff] }
 0xda4   : > { %6783 = vmatprep.subr.bf16.mxu1 %v6782_v4  ;;  %6847 = vmatprep.subr.bf16.mxu0 %v6846_v17  ;;  %v6864_v4 = vpack.c.bf16 %v2474_v55, %v2466_v53  ;;  %v2480_v17 = vld [vmem:[#allocation5 + $0x5a0] sm:$0xff]  ;;  %v6802_v50 = vpack.c.bf16 %v2489_v59, %v2481_v57  ;;  %v6866_v7 = vpack.c.bf16 %v2491_v61, %v2483_v60  ;;  %v2546_v59 = vld [vmem:[#allocation5 + $0x7b0] sm:$0xff] }
 0xda5   : > { %v6804_v11 = vpack.c.bf16 %v2488_v6, %v2480_v17  ;;  %v2552_v57 = vld [vmem:[#allocation5 + $0x7e0] sm:$0xff]  ;;  %v2554_v60 = vld [vmem:[#allocation5 + $0x7f0] sm:$0xff] }
 0xda7   : > { %6785 = vmatpush1.bf16.msra.mxu1 %v6784_v15  ;;  %6849 = vmatpush1.bf16.msra.mxu0 %v6848_v24  ;;  %v2505_v15 = vld [vmem:[#allocation5 + $0x668] sm:$0xff]  ;;  %v2499_v24 = vld [vmem:[#allocation5 + $0x638] sm:$0xff] }
 0xda8   : > { %6787 = vmatprep.subr.bf16.mxu1 %v6786_v18  ;;  %6851 = vmatprep.subr.bf16.mxu0 %v6850_v25  ;;  %v6868_v18 = vpack.c.bf16 %v2490_v10, %v2482_v9  ;;  %v2496_v25 = vld [vmem:[#allocation5 + $0x620] sm:$0xff]  ;;  %v6806_v1 = vpack.c.bf16 %v2505_v15, %v2497_v56  ;;  %v6870_v28 = vpack.c.bf16 %v2507_v12, %v2499_v24 }
 0xda9   : > { %v6808_v22 = vpack.c.bf16 %v2504_v26, %v2496_v25 }
 0xdab   : > { %6789 = vmatpush1.bf16.msra.mxu1 %v6788_v23  ;;  %6853 = vmatpush1.bf16.msra.mxu0 %v6852_v29  ;;  %v2521_v23 = vld [vmem:[#allocation5 + $0x6e8] sm:$0xff]  ;;  %v2515_v29 = vld [vmem:[#allocation5 + $0x6b8] sm:$0xff] }
 0xdac   : > { %6791 = vmatprep.subr.bf16.mxu1 %v6790_v30  ;;  %6855 = vmatprep.subr.bf16.mxu0 %v6854_v32  ;;  %v6872_v30 = vpack.c.bf16 %v2506_v20, %v2498_v16  ;;  %v2512_v32 = vld [vmem:[#allocation5 + $0x6a0] sm:$0xff]  ;;  %v6810_v33 = vpack.c.bf16 %v2521_v23, %v2513_v27  ;;  %v6874_v34 = vpack.c.bf16 %v2523_v39, %v2515_v29  ;;  %v10881_v20 = vand.u32 31, %v8095_v42 }
 0xdad   : > { %v6812_v38 = vpack.c.bf16 %v2520_v2, %v2512_v32  ;;  %v10880_v27 = vand.u32 31, %v7792_v5  ;;  %v8450_v23 = vadd.s32 384, %v7792_v5  ;;  %v8453_v39 = vadd.s32 256, %v7792_v5 }
 0xdae   : > { %vm8461_vm11 = vcmp.ge.s32.totalorder %v10881_v20, 1  ;;  %v11043_v2 = vmov 0 }
 0xdaf   : > { %6793 = vmatpush1.bf16.msra.mxu1 %v6792_v36  ;;  %6857 = vmatpush1.bf16.msra.mxu0 %v6856_v19  ;;  %v2537_v36 = vld [vmem:[#allocation5 + $0x768] sm:$0xff]  ;;  %v2531_v19 = vld [vmem:[#allocation5 + $0x738] sm:$0xff]  ;;  %11040 = vst [vmem:[#allocation8_spill] sm:$0xff] %v8453_v39  ;;  %vm8471_vm2 = vcmp.ge.s32.totalorder %v10880_v27, 1  ;;  %vm8508_vm9 = vmpackc.low %vm8461_vm11, %vm8461_vm11 }
 0xdb0   : > { %6795 = vmatprep.subr.bf16.mxu1 %v6794_v40  ;;  %6859 = vmatprep.subr.bf16.mxu0 %v6858_v49  ;;  %v6876_v40 = vpack.c.bf16 %v2522_v35, %v2514_v51  ;;  %v2528_v49 = vld [vmem:[#allocation5 + $0x720] sm:$0xff]  ;;  %v6814_v46 = vpack.c.bf16 %v2537_v36, %v2529_v37  ;;  %v6878_v21 = vpack.c.bf16 %v2539_v54, %v2531_v19  ;;  %v11044_v2 = vsel %vm8471_vm2, 4294967295, %v11043_v2  ;;  %vm8520_vm0 = vmpackc.low %vm8471_vm2, %vm8471_vm2 }
 0xdb1   : > { %v6816_v8 = vpack.c.bf16 %v2536_v41, %v2528_v49  ;;  %11045 = vst [vmem:[#allocation9_spill] sm:$0xff] %v11044_v2  ;;  %v11048_v41 = vmov 0 }
 0xdb2   : > { %v11049_v41 = vsel %vm8508_vm9, 4294967295, %v11048_v41 }
 0xdb3   : > { %6797 = vmatpush1.bf16.msra.mxu1 %v6796_v47  ;;  %6861 = vmatpush1.bf16.msra.mxu0 %v6860_v58  ;;  %v2553_v47 = vld [vmem:[#allocation5 + $0x7e8] sm:$0xff]  ;;  %v2547_v58 = vld [vmem:[#allocation5 + $0x7b8] sm:$0xff]  ;;  %11050 = vst [vmem:[#allocation10_spill] sm:$0xff] %v11049_v41 }
 0xdb4   : > { %6799 = vmatprep.subr.bf16.mxu1 %v6798_v44  ;;  %6863 = vmatprep.subr.bf16.mxu0 %v6862_v52  ;;  %v6880_v44 = vpack.c.bf16 %v2538_v62, %v2530_v43  ;;  %v2544_v52 = vld [vmem:[#allocation5 + $0x7a0] sm:$0xff]  ;;  %v6818_v53 = vpack.c.bf16 %v2553_v47, %v2545_v45  ;;  %v6882_v55 = vpack.c.bf16 %v2555_v48, %v2547_v58  ;;  %v11054_v62 = vmov 0 }
 0xdb5   : > { %v6820_v61 = vpack.c.bf16 %v2552_v57, %v2544_v52  ;;  %v11057_v47 = vmov 0  ;;  %v8567_v48 = vadd.s32 512, %v7792_v5  ;;  %v11062_v52 = vmov 0 }
 0xdb7   : > { %6801 = vmatpush1.bf16.msra.mxu1 %v6800_v0  ;;  %6865 = vmatpush1.bf16.msra.mxu0 %v6864_v4  ;;  %v6884_v0 = vpack.c.bf16 %v2554_v60, %v2546_v59  ;;  %11060 = vst [vmem:[#allocation14_spill] sm:$0xff] %v8567_v48 }
 0xdb8   : > { %6803 = vmatprep.subr.bf16.mxu1 %v6802_v50  ;;  %6867 = vmatprep.subr.bf16.mxu0 %v6866_v7 }
 0xdbb   : > { %6805 = vmatpush1.bf16.msra.mxu1 %v6804_v11  ;;  %6869 = vmatpush1.bf16.msra.mxu0 %v6868_v18 }
 0xdbc   : > { %6807 = vmatprep.subr.bf16.mxu1 %v6806_v1  ;;  %6871 = vmatprep.subr.bf16.mxu0 %v6870_v28 }
 0xdbf   : > { %6809 = vmatpush1.bf16.msra.mxu1 %v6808_v22  ;;  %6873 = vmatpush1.bf16.msra.mxu0 %v6872_v30 }
 0xdc0   : > { %6811 = vmatprep.subr.bf16.mxu1 %v6810_v33  ;;  %6875 = vmatprep.subr.bf16.mxu0 %v6874_v34  ;;  %v10879_v33 = vand.u32 31, %v8450_v23  ;;  %v10878_v34 = vand.u32 31, %v8453_v39 }
 0xdc2   : > { %vm3000_vm6 = vcmp.ge.s32.totalorder %v10879_v33, 1  ;;  %vm8494_vm7 = vcmp.ge.s32.totalorder %v10878_v34, 1 }
 0xdc3   : > { %6813 = vmatpush1.bf16.msra.mxu1 %v6812_v38  ;;  %6877 = vmatpush1.bf16.msra.mxu0 %v6876_v40  ;;  %vm8527_vm1 = vmpackc.low %vm3000_vm6, %vm3000_vm6 }
 0xdc4   : > { %6815 = vmatprep.subr.bf16.mxu1 %v6814_v46  ;;  %6879 = vmatprep.subr.bf16.mxu0 %v6878_v21  ;;  %v11051_v21 = vmov 0  ;;  %v11055_v62 = vsel %vm8527_vm1, 4294967295, %v11054_v62  ;;  %vm8539_vm14 = vmpackc.low %vm8494_vm7, %vm8494_vm7 }
 0xdc5   : > { %v11052_v21 = vsel %vm8520_vm0, 4294967295, %v11051_v21  ;;  %11056 = vst [vmem:[#allocation12_spill] sm:$0xff] %v11055_v62  ;;  %v11058_v47 = vsel %vm8539_vm14, 4294967295, %v11057_v47 }
 0xdc6   : > { %11053 = vst [vmem:[#allocation11_spill] sm:$0xff] %v11052_v21  ;;  %11059 = vst [vmem:[#allocation13_spill] sm:$0xff] %v11058_v47 }
 0xdc7   : > { %6817 = vmatpush1.bf16.msra.mxu1 %v6816_v8  ;;  %6881 = vmatpush1.bf16.msra.mxu0 %v6880_v44  ;;  %v10877_v8 = vand.u32 31, %v8567_v48  ;;  %v8574_v44 = vadd.s32 768, %v7792_v5 }
 0xdc8   : > { %6819 = vmatprep.subr.bf16.mxu1 %v6818_v53  ;;  %6883 = vmatprep.subr.bf16.mxu0 %v6882_v55 }
 0xdc9   : > { %11061 = vst [vmem:[#allocation15_spill] sm:$0xff] %v8574_v44  ;;  %vm8581_vm13 = vcmp.ge.s32.totalorder %v10877_v8, 1  ;;  %v10876_v53 = vand.u32 31, %v8574_v44 }
 0xdca   : > { %v11063_v52 = vsel %vm8581_vm13, 4294967295, %v11062_v52 }
 0xdcb   : > { %6821 = vmatpush1.bf16.msra.mxu1 %v6820_v61  ;;  %6885 = vmatpush1.bf16.msra.mxu0 %v6884_v0  ;;  %11064 = vst [vmem:[#allocation16_spill] sm:$0xff] %v11063_v52  ;;  %vm8603_vm11 = vcmp.ge.s32.totalorder %v10876_v53, 1  ;;  %v11065_v61 = vmov 0 }
 0xdcc   : > { %v11066_v61 = vsel %vm8603_vm11, 4294967295, %v11065_v61 }
 0xdcd   : > { %11067 = vst [vmem:[#allocation17_spill] sm:$0xff] %v11066_v61 }
 0xdce   : > { %2775 = vmatmul.mubr.f32.vlgmr.msra.gmra.mrb[16].mxu1 %v8404_v63  ;;  %2852 = vmatmul.mubr.f32.vlgmr.msra.gmra.mrb[12].mxu0 %v8404_v63 }
 0xdcf   : > { %2780 = vmatprep.mubr.f32.mxu1 %v8408_v13  ;;  %2857 = vmatprep.mubr.f32.mxu0 %v8408_v13 }
 0xdd2   : > { %2781 = vmatmul.mubr.f32.gmra.mrb[18].mxu1 %v8413_v14  ;;  %2858 = vmatmul.mubr.f32.gmra.mrb[14].mxu0 %v8413_v14 }
 0xe61   : > { %v2622_v4 = vpop.f32.mrb[12].mxu1  ;;  %v2699_v17 = vpop.f32.mrb[8].mxu0 }
 0xe62   : > { %v2701_v6 = vpop.f32.mrb[9].mxu0  ;;  %2899 = vrot.lane.b32.xlu1 %v2622_v4, %s7622_s28  ;;  %v2624_v50 = vpop.f32.mrb[13].mxu1 }
 0xe63   : > { %2901 = vrot.lane.b32.xlu0 %v2624_v50, %s7622_s28 }
 0xe65   : > { %v2628_v7 = vpop.f32.mrb[14].mxu1  ;;  %v2705_v9 = vpop.f32.mrb[10].mxu0 }
 0xe66   : > { %v2707_v63 = vpop.f32.mrb[11].mxu0  ;;  %2903 = vrot.lane.b32.xlu1 %v2699_v17, %s7622_s28  ;;  %v2630_v10 = vpop.f32.mrb[15].mxu1 }
 0xe67   : > { %2915 = vrot.lane.b32.xlu0 %v2628_v7, %s7622_s28 }
 0xe6a   : > { %2905 = vrot.lane.b32.xlu1 %v2701_v6, %s7622_s28 }
 0xe6b   : > { %2919 = vrot.lane.b32.xlu0 %v2705_v9, %s7622_s28 }
 0xe6e   : > { %2917 = vrot.lane.b32.xlu1 %v2630_v10, %s7622_s28 }
 0xe72   : > { %2921 = vrot.lane.b32.xlu1 %v2707_v63, %s7622_s28 }
 0xea1   : > { %v2776_v13 = vpop.f32.mrb[16].mxu1  ;;  %v2853_v14 = vpop.f32.mrb[12].mxu0 }
 0xea2   : > { %v2855_v56 = vpop.f32.mrb[13].mxu0  ;;  %2907 = vrot.lane.b32.xlu0 %v2776_v13, %s7622_s28  ;;  %v2778_v15 = vpop.f32.mrb[17].mxu1 }
 0xea3   : > { %2909 = vrot.lane.b32.xlu1 %v2778_v15, %s7622_s28 }
 0xea5   : > { %v2782_v24 = vpop.f32.mrb[18].mxu1  ;;  %v2859_v12 = vpop.f32.mrb[14].mxu0 }
 0xea6   : > { %v2861_v11 = vpop.f32.mrb[15].mxu0  ;;  %2911 = vrot.lane.b32.xlu0 %v2853_v14, %s7622_s28  ;;  %v2784_v18 = vpop.f32.mrb[19].mxu1 }
 0xea7   : > { %2913 = vrot.lane.b32.xlu1 %v2855_v56, %s7622_s28 }
 0xeaa   : > { %2923 = vrot.lane.b32.xlu0 %v2782_v24, %s7622_s28 }
 0xeab   : > { %2925 = vrot.lane.b32.xlu1 %v2784_v18, %s7622_s28 }
 0xeae   : > { %2927 = vrot.lane.b32.xlu0 %v2859_v12, %s7622_s28 }
 0xeb2   : > { %2929 = vrot.lane.b32.xlu0 %v2861_v11, %s7622_s28 }
 0xed4   : > { %v2900_v25 = vpop.permute.xlu1 %2899 }
 0xed5   : > { %2965 = vst.msk [vmem:[#allocation2] sm:$0xff] %vm10903_vm5, %v2900_v25  ;;  %v2902_v26 = vpop.permute.xlu0 %2901 }
 0xed6   : > { %v8466_v32 = vsel %vm10898_vm15, %v2900_v25, %v2902_v26 }
 0xed8   : > { %v2904_v1 = vpop.permute.xlu1 %2903 }
 0xed9   : > { %v2933_v28 = vsel %vm10898_vm15, %v2902_v26, %v2904_v1  ;;  %v2916_v16 = vpop.permute.xlu0 %2915 }
 0xeda   : > { %2974 = vst.msk [vmem:[#allocation2 + $0x48] sm:$0xff] %vm10903_vm5, %v2916_v16  ;;  %3101 = vrot.lane.b32.xlu0 %v2933_v28, %s7608_s22 }
 0xedc   : > { %v3013_v29 = vld [vmem:[#allocation2] sm:$0xff]  ;;  %v8455_v22 = vpop.permute.xlu1 %2905 }
 0xedd   : > { %3097 = vrot.lane.b32.xlu1 %v3013_v29, %s7608_s22  ;;  %4625 = vst [vmem:[#allocation2] sm:$0xff] %v8176_v31  ;;  %v2920_v37 = vpop.permute.xlu0 %2919  ;;  %v8488_v54 = vsel %vm10898_vm15, %v2904_v1, %v8455_v22  ;;  %v8728_v1 = vld [vmem:[%s10855_s13 + $0x8] sm:$0xff] }
 0xede   : > { %3221 = vrot.lane.b32.xlu0 %v2933_v28, %s7603_s30  ;;  %6426 = vmatprep.mubr.msk.f32.mxu1 %vm10904_vm4, %v8728_v1 }
 0xedf   : > { %6428 = vmatprep.mubr.msk.f32.mxu0 %vm10904_vm4, %v8728_v1 }
 0xee0   : > { %v2918_v51 = vpop.permute.xlu1 %2917 }
 0xee1   : > { %v3021_v35 = vld [vmem:[#allocation2 + $0x48] sm:$0xff]  ;;  %v8478_v36 = vsel %vm10898_vm15, %v2916_v16, %v2918_v51  ;;  %3217 = vrot.lane.b32.xlu1 %v3013_v29, %s7603_s30  ;;  %v8482_v19 = vsel %vm10898_vm15, %v2918_v51, %v2920_v37 }
 0xee2   : > { %3357 = vrot.lane.b32.xlu0 %v2933_v28, %s7618_s2  ;;  %4634 = vst [vmem:[#allocation2 + $0x48] sm:$0xff] %v8176_v31  ;;  %v7288_v46 = vpack.c.bf16 %v8478_v36, %v8466_v32  ;;  %v7291_v43 = vpack.c.bf16 %v3021_v35, %v3013_v29  ;;  %v7297_v58 = vpack.c.bf16 %v8482_v19, %v2933_v28 }
 0xee4   : > { %v8498_v40 = vpop.permute.xlu1 %2921  ;;  %7289 = vmatprep.subr.msk.bf16.mxu1 %vm8508_vm9, %v7288_v46 }
 0xee5   : > { %v8502_v49 = vsel %vm10898_vm15, %v2920_v37, %v8498_v40  ;;  %3353 = vrot.lane.b32.xlu1 %v3013_v29, %s7618_s2  ;;  %7292 = vmatpush1.bf16.msk.msra.mxu1 %vm8520_vm0, %v7291_v43 }
 0xee6   : > { %3493 = vrot.lane.b32.xlu0 %v2933_v28, %s7619_s21  ;;  %v7294_v45 = vpack.c.bf16 %v8502_v49, %v8488_v54 }
 0xee8   : > { %7295 = vmatprep.subr.msk.bf16.mxu0 %vm8527_vm1, %v7294_v45 }
 0xee9   : > { %3489 = vrot.lane.b32.xlu1 %v3013_v29, %s7619_s21  ;;  %7298 = vmatpush1.bf16.msk.msra.mxu0 %vm8539_vm14, %v7297_v58 }
 0xeea   : > { %3613 = vrot.lane.b32.xlu0 %v2933_v28, %s7620_s26 }
 0xeed   : > { %3609 = vrot.lane.b32.xlu1 %v3013_v29, %s7620_s26 }
 0xeee   : > { %3749 = vrot.lane.b32.xlu0 %v2933_v28, %s7623_s1 }
 0xef1   : > { %3745 = vrot.lane.b32.xlu1 %v3013_v29, %s7623_s1 }
 0xef2   : > { %3885 = vrot.lane.b32.xlu0 %v2933_v28, %s7624_s0 }
 0xef5   : > { %3881 = vrot.lane.b32.xlu1 %v3013_v29, %s7624_s0 }
 0xef6   : > { %4006 = vrot.lane.b32.xlu0 %v2933_v28, %s7625_s16 }
 0xef9   : > { %4002 = vrot.lane.b32.xlu1 %v3013_v29, %s7625_s16 }
 0xefa   : > { %3115 = vrot.lane.b32.xlu0 %v3021_v35, %s7608_s22 }
 0xefd   : > { %3099 = vrot.lane.b32.xlu1 %v8466_v32, %s7608_s22 }
 0xefe   : > { %3235 = vrot.lane.b32.xlu0 %v3021_v35, %s7603_s30 }
 0xf01   : > { %3219 = vrot.lane.b32.xlu1 %v8466_v32, %s7603_s30 }
 0xf02   : > { %3371 = vrot.lane.b32.xlu0 %v3021_v35, %s7618_s2 }
 0xf05   : > { %3355 = vrot.lane.b32.xlu1 %v8466_v32, %s7618_s2 }
 0xf06   : > { %3507 = vrot.lane.b32.xlu0 %v3021_v35, %s7619_s21 }
 0xf09   : > { %3491 = vrot.lane.b32.xlu1 %v8466_v32, %s7619_s21 }
 0xf0a   : > { %3627 = vrot.lane.b32.xlu0 %v3021_v35, %s7620_s26 }
 0xf0d   : > { %3611 = vrot.lane.b32.xlu1 %v8466_v32, %s7620_s26 }
 0xf0e   : > { %3763 = vrot.lane.b32.xlu0 %v3021_v35, %s7623_s1 }
 0xf11   : > { %3747 = vrot.lane.b32.xlu1 %v8466_v32, %s7623_s1 }
 0xf12   : > { %3899 = vrot.lane.b32.xlu0 %v3021_v35, %s7624_s0 }
 0xf14   : > { %v8586_v55 = vpop.permute.xlu0 %2907 }
 0xf15   : > { %v8591_v57 = vsel %vm10898_vm15, %v8455_v22, %v8586_v55  ;;  %v8593_v59 = vpop.permute.xlu1 %2909  ;;  %3883 = vrot.lane.b32.xlu1 %v8466_v32, %s7624_s0 }
 0xf16   : > { %v3033_v60 = vsel %vm8581_vm13, %v8591_v57, 0.0  ;;  %4020 = vrot.lane.b32.xlu0 %v3021_v35, %s7625_s16 }
 0xf17   : > { %3049 = vst [vmem:[#allocation3 + $0x20] sm:$0xff] %v3033_v60  ;;  %v8813_v60 = vsel %vm10898_vm15, %v8586_v55, %v8593_v59 }
 0xf18   : > { %v8607_v0 = vpop.permute.xlu0 %2911 }
 0xf19   : > { %v8612_v4 = vsel %vm10898_vm15, %v8593_v59, %v8607_v0  ;;  %v8614_v17 = vpop.permute.xlu1 %2913  ;;  %4004 = vrot.lane.b32.xlu1 %v8466_v32, %s7625_s16 }
 0xf1a   : > { %v3035_v6 = vsel %vm8603_vm11, %v8612_v4, 0.0  ;;  %2973 = vst.msk [vmem:[#allocation2 + $0x40] sm:$0xff] %vm10898_vm15, %v8614_v17  ;;  %3119 = vrot.lane.b32.xlu0 %v8482_v19, %s7608_s22  ;;  %v8882_v2 = vsel %vm10898_vm15, %v8607_v0, %v8614_v17 }
 0xf1b   : > { %3051 = vst [vmem:[#allocation3 + $0x30] sm:$0xff] %v3035_v6 }
 0xf1c   : > { %v8625_v50 = vpop.permute.xlu0 %2923 }
 0xf1d   : > { %v8630_v7 = vsel %vm10898_vm15, %v8498_v40, %v8625_v50  ;;  %3103 = vrot.lane.b32.xlu1 %v8488_v54, %s7608_s22  ;;  %v8639_v63 = vpop.permute.xlu1 %2925 }
 0xf1e   : > { %v3041_v9 = vsel %vm8581_vm13, %v8630_v7, 0.0  ;;  %3239 = vrot.lane.b32.xlu0 %v8482_v19, %s7603_s30 }
 0xf1f   : > { %3057 = vst [vmem:[#allocation3 + $0x60] sm:$0xff] %v3041_v9 }
 0xf20   : > { %v2928_v10 = vpop.permute.xlu0 %2927 }
 0xf21   : > { %v8643_v13 = vsel %vm10898_vm15, %v8639_v63, %v2928_v10  ;;  %3223 = vrot.lane.b32.xlu1 %v8488_v54, %s7603_s30  ;;  %v8647_v14 = vld [vmem:[#allocation2 + $0x40] sm:$0xff] }
 0xf22   : > { %v3043_v56 = vsel %vm8603_vm11, %v8643_v13, 0.0  ;;  %3375 = vrot.lane.b32.xlu0 %v8482_v19, %s7618_s2  ;;  %4633 = vst.msk [vmem:[#allocation2 + $0x40] sm:$0xff] %vm2872_vm10, %v8176_v31 }
 0xf23   : > { %3059 = vst [vmem:[#allocation3 + $0x70] sm:$0xff] %v3043_v56 }
 0xf24   : > { %v2930_v15 = vpop.permute.xlu0 %2929 }
 0xf25   : > { %v8657_v24 = vsel %vm10898_vm15, %v2928_v10, %v2930_v15  ;;  %2982 = vst.msk [vmem:[#allocation2 + $0x88] sm:$0xff] %vm10898_vm15, %v2930_v15  ;;  %3359 = vrot.lane.b32.xlu1 %v8488_v54, %s7618_s2 }
 0xf26   : > { %2981 = vst [vmem:[#allocation2 + $0x80] sm:$0xff] %v8657_v24  ;;  %3511 = vrot.lane.b32.xlu0 %v8482_v19, %s7619_s21 }
 0xf29   : > { %3495 = vrot.lane.b32.xlu1 %v8488_v54, %s7619_s21 }
 0xf2a   : > { %3631 = vrot.lane.b32.xlu0 %v8482_v19, %s7620_s26 }
 0xf2c   : > { %v8669_v12 = vld [vmem:[#allocation2 + $0x88] sm:$0xff] }
 0xf2d   : > { %3615 = vrot.lane.b32.xlu1 %v8488_v54, %s7620_s26  ;;  %4642 = vst.msk [vmem:[#allocation2 + $0x88] sm:$0xff] %vm2872_vm10, %v8176_v31  ;;  %vm11075_vm10 = vcmask 1039360  }
 0xf2e   : > { %3767 = vrot.lane.b32.xlu0 %v8482_v19, %s7623_s1  ;;  %vm11076_vm6 = vmmov %vm11075_vm10 }
 0xf2f   : > { %vm11077_vm7 = vmmov %vm11076_vm6 }
 0xf31   : > { %3751 = vrot.lane.b32.xlu1 %v8488_v54, %s7623_s1 }
 0xf32   : > { %3903 = vrot.lane.b32.xlu0 %v8482_v19, %s7624_s0 }
 0xf35   : > { %3887 = vrot.lane.b32.xlu1 %v8488_v54, %s7624_s0 }
 0xf36   : > { %4024 = vrot.lane.b32.xlu0 %v8482_v19, %s7625_s16 }
 0xf39   : > { %4008 = vrot.lane.b32.xlu1 %v8488_v54, %s7625_s16 }
 0xf3a   : > { %3105 = vrot.lane.b32.xlu0 %v8591_v57, %s7608_s22 }
 0xf3d   : > { %3117 = vrot.lane.b32.xlu1 %v8478_v36, %s7608_s22 }
 0xf3e   : > { %3225 = vrot.lane.b32.xlu0 %v8591_v57, %s7603_s30 }
 0xf41   : > { %3237 = vrot.lane.b32.xlu1 %v8478_v36, %s7603_s30 }
 0xf42   : > { %3361 = vrot.lane.b32.xlu0 %v8591_v57, %s7618_s2 }
 0xf45   : > { %3373 = vrot.lane.b32.xlu1 %v8478_v36, %s7618_s2 }
 0xf46   : > { %3497 = vrot.lane.b32.xlu0 %v8591_v57, %s7619_s21 }
 0xf49   : > { %3509 = vrot.lane.b32.xlu1 %v8478_v36, %s7619_s21 }
 0xf4a   : > { %3617 = vrot.lane.b32.xlu0 %v8591_v57, %s7620_s26 }
 0xf4c   : > { %v8705_v31 = vpop.permute.xlu0 %3101 }
 0xf4d   : > { %3629 = vrot.lane.b32.xlu1 %v8478_v36, %s7620_s26 }
 0xf4e   : > { %3753 = vrot.lane.b32.xlu0 %v8591_v57, %s7623_s1 }
 0xf4f   : > { %v8711_v11 = vpop.permute.xlu1 %3097 }
 0xf50   : > { %v8713_v18 = vpop.permute.xlu0 %3221 }
 0xf51   : > { %3765 = vrot.lane.b32.xlu1 %v8478_v36, %s7623_s1 }
 0xf52   : > { %3889 = vrot.lane.b32.xlu0 %v8591_v57, %s7624_s0 }
 0xf53   : > { %v8719_v25 = vpop.permute.xlu1 %3217 }
 0xf54   : > { %v8721_v26 = vpop.permute.xlu0 %3357 }
 0xf55   : > { %3901 = vrot.lane.b32.xlu1 %v8478_v36, %s7624_s0 }
 0xf56   : > { %4010 = vrot.lane.b32.xlu0 %v8591_v57, %s7625_s16 }
 0xf57   : > { %v8734_v28 = vpop.permute.xlu1 %3353 }
 0xf58   : > { %v8738_v16 = vpop.permute.xlu0 %3493 }
 0xf59   : > { %4022 = vrot.lane.b32.xlu1 %v8478_v36, %s7625_s16 }
 0xf5a   : > { %3113 = vrot.lane.b32.xlu0 %v8647_v14, %s7608_s22 }
 0xf5b   : > { %v8744_v29 = vpop.permute.xlu1 %3489 }
 0xf5c   : > { %v8746_v22 = vpop.permute.xlu0 %3613 }
 0xf5d   : > { %3121 = vrot.lane.b32.xlu1 %v8502_v49, %s7608_s22 }
 0xf5e   : > { %3233 = vrot.lane.b32.xlu0 %v8647_v14, %s7603_s30 }
 0xf5f   : > { %v8752_v30 = vpop.permute.xlu1 %3609 }
 0xf60   : > { %v8754_v32 = vpop.permute.xlu0 %3749 }
 0xf61   : > { %3241 = vrot.lane.b32.xlu1 %v8502_v49, %s7603_s30 }
 0xf62   : > { %3369 = vrot.lane.b32.xlu0 %v8647_v14, %s7618_s2 }
 0xf63   : > { %v8760_v51 = vpop.permute.xlu1 %3745 }
 0xf64   : > { %v8762_v35 = vpop.permute.xlu0 %3885 }
 0xf65   : > { %3377 = vrot.lane.b32.xlu1 %v8502_v49, %s7618_s2 }
 0xf66   : > { %3505 = vrot.lane.b32.xlu0 %v8647_v14, %s7619_s21 }
 0xf67   : > { %v8768_v37 = vpop.permute.xlu1 %3881 }
 0xf68   : > { %v8770_v36 = vpop.permute.xlu0 %4006 }
 0xf69   : > { %3513 = vrot.lane.b32.xlu1 %v8502_v49, %s7619_s21 }
 0xf6a   : > { %3109 = vrot.lane.b32.xlu0 %v8612_v4, %s7608_s22 }
 0xf6b   : > { %v8776_v19 = vpop.permute.xlu1 %4002 }
 0xf6c   : > { %v8778_v54 = vpop.permute.xlu0 %3115 }
 0xf6d   : > { %3633 = vrot.lane.b32.xlu1 %v8502_v49, %s7620_s26 }
 0xf6e   : > { %3229 = vrot.lane.b32.xlu0 %v8612_v4, %s7603_s30 }
 0xf6f   : > { %v8784_v38 = vpop.permute.xlu1 %3099 }
 0xf70   : > { %v8786_v40 = vpop.permute.xlu0 %3235 }
 0xf71   : > { %3769 = vrot.lane.b32.xlu1 %v8502_v49, %s7623_s1 }
 0xf72   : > { %3365 = vrot.lane.b32.xlu0 %v8612_v4, %s7618_s2 }
 0xf73   : > { %v8792_v46 = vpop.permute.xlu1 %3219 }
 0xf74   : > { %v8794_v43 = vpop.permute.xlu0 %3371 }
 0xf75   : > { %3905 = vrot.lane.b32.xlu1 %v8502_v49, %s7624_s0 }
 0xf76   : > { %3501 = vrot.lane.b32.xlu0 %v8612_v4, %s7619_s21 }
 0xf77   : > { %v8800_v45 = vpop.permute.xlu1 %3355 }
 0xf78   : > { %v8802_v58 = vpop.permute.xlu0 %3507 }
 0xf79   : > { %4026 = vrot.lane.b32.xlu1 %v8502_v49, %s7625_s16 }
 0xf7a   : > { %3621 = vrot.lane.b32.xlu0 %v8612_v4, %s7620_s26 }
 0xf7b   : > { %v8808_v57 = vpop.permute.xlu1 %3491 }
 0xf7c   : > { %v8815_v6 = vpop.permute.xlu0 %3627 }
 0xf7d   : > { %3107 = vrot.lane.b32.xlu1 %v8813_v60, %s7608_s22 }
 0xf7e   : > { %3757 = vrot.lane.b32.xlu0 %v8612_v4, %s7623_s1 }
 0xf7f   : > { %v8821_v9 = vpop.permute.xlu1 %3611 }
 0xf80   : > { %v8823_v49 = vpop.permute.xlu0 %3763 }
 0xf81   : > { %3227 = vrot.lane.b32.xlu1 %v8813_v60, %s7603_s30 }
 0xf82   : > { %3893 = vrot.lane.b32.xlu0 %v8612_v4, %s7624_s0 }
 0xf83   : > { %v8829_v55 = vpop.permute.xlu1 %3747 }
 0xf84   : > { %v8831_v59 = vpop.permute.xlu0 %3899 }
 0xf85   : > { %3363 = vrot.lane.b32.xlu1 %v8813_v60, %s7618_s2 }
 0xf86   : > { %4014 = vrot.lane.b32.xlu0 %v8612_v4, %s7625_s16 }
 0xf87   : > { %v8837_v10 = vpop.permute.xlu1 %3883 }
 0xf88   : > { %v8839_v56 = vpop.permute.xlu0 %4020 }
 0xf89   : > { %3499 = vrot.lane.b32.xlu1 %v8813_v60, %s7619_s21 }
 0xf8a   : > { %3123 = vrot.lane.b32.xlu0 %v8630_v7, %s7608_s22 }
 0xf8b   : > { %v8845_v15 = vpop.permute.xlu1 %4004 }
 0xf8c   : > { %v8847_v3 = vpop.permute.xlu0 %3119 }
 0xf8d   : > { %3619 = vrot.lane.b32.xlu1 %v8813_v60, %s7620_s26 }
 0xf8e   : > { %3243 = vrot.lane.b32.xlu0 %v8630_v7, %s7603_s30 }
 0xf8f   : > { %v8853_v4 = vpop.permute.xlu1 %3103 }
 0xf90   : > { %v8855_v53 = vpop.permute.xlu0 %3239 }
 0xf91   : > { %3755 = vrot.lane.b32.xlu1 %v8813_v60, %s7623_s1 }
 0xf92   : > { %3379 = vrot.lane.b32.xlu0 %v8630_v7, %s7618_s2 }
 0xf93   : > { %v8861_v8 = vpop.permute.xlu1 %3223 }
 0xf94   : > { %11068 = vst [vmem:[#allocation18_spill] sm:$0xff] %v8861_v8  ;;  %v8863_v34 = vpop.permute.xlu0 %3375  ;;  %v11079_v8 = vand.u32 31, %v8095_v42 }
 0xf95   : > { %3891 = vrot.lane.b32.xlu1 %v8813_v60, %s7624_s0 }
 0xf96   : > { %3515 = vrot.lane.b32.xlu0 %v8630_v7, %s7619_s21 }
 0xf97   : > { %v8869_v33 = vpop.permute.xlu1 %3359 }
 0xf98   : > { %11069 = vst [vmem:[#allocation19_spill] sm:$0xff] %v8869_v33  ;;  %v8871_v27 = vpop.permute.xlu0 %3511 }
 0xf99   : > { %4012 = vrot.lane.b32.xlu1 %v8813_v60, %s7625_s16 }
 0xf9a   : > { %3635 = vrot.lane.b32.xlu0 %v8630_v7, %s7620_s26 }
 0xf9b   : > { %v8877_v20 = vpop.permute.xlu1 %3495 }
 0xf9c   : > { %11070 = vst [vmem:[#allocation20_spill] sm:$0xff] %v8877_v20  ;;  %v8884_v61 = vpop.permute.xlu0 %3631 }
 0xf9d   : > { %3111 = vrot.lane.b32.xlu1 %v8882_v2, %s7608_s22 }
 0xf9e   : > { %3771 = vrot.lane.b32.xlu0 %v8630_v7, %s7623_s1 }
 0xf9f   : > { %v8890_v44 = vpop.permute.xlu1 %3615 }
 0xfa0   : > { %11071 = vst [vmem:[#allocation21_spill] sm:$0xff] %v8890_v44  ;;  %v8892_v52 = vpop.permute.xlu0 %3767 }
 0xfa1   : > { %3231 = vrot.lane.b32.xlu1 %v8882_v2, %s7603_s30 }
 0xfa2   : > { %3907 = vrot.lane.b32.xlu0 %v8630_v7, %s7624_s0 }
 0xfa3   : > { %v8898_v0 = vpop.permute.xlu1 %3751 }
 0xfa4   : > { %11072 = vst [vmem:[#allocation22_spill] sm:$0xff] %v8898_v0  ;;  %v8900_v17 = vpop.permute.xlu0 %3903  ;;  %v8919_v0 = vsel %vm10898_vm15, %v8625_v50, %v8639_v63  ;;  %vm11078_vm15 = vmmov %vm11076_vm6 }
 0xfa5   : > { %3367 = vrot.lane.b32.xlu1 %v8882_v2, %s7618_s2 }
 0xfa6   : > { %4028 = vrot.lane.b32.xlu0 %v8630_v7, %s7625_s16 }
 0xfa7   : > { %v8906_v48 = vpop.permute.xlu1 %3887 }
 0xfa8   : > { %11073 = vst [vmem:[#allocation23_spill] sm:$0xff] %v8906_v48  ;;  %v8908_v44 = vpop.permute.xlu0 %4024  ;;  %v3133_v48 = vsel %vm11075_vm10, %v8711_v11, %v8784_v38  ;;  %vm8943_vm10 = vcmp.le.s32.totalorder %v11079_v8, 30 }
 0xfa9   : > { %3503 = vrot.lane.b32.xlu1 %v8882_v2, %s7619_s21 }
 0xfaa   : > { %3131 = vrot.lane.b32.xlu0 %v8669_v12, %s7608_s22 }
 0xfab   : > { %v8914_v47 = vpop.permute.xlu1 %4008 }
 0xfac   : > { %11074 = vst [vmem:[#allocation24_spill] sm:$0xff] %v8914_v47  ;;  %v8921_v62 = vpop.permute.xlu0 %3105  ;;  %v3134_v47 = vsel %vm11076_vm6, %v8784_v38, %v8705_v31  ;;  %v11082_v38 = vand.u32 31, %v7792_v5 }
 0xfad   : > { %3125 = vrot.lane.b32.xlu1 %v8919_v0, %s7608_s22 }
 0xfae   : > { %3251 = vrot.lane.b32.xlu0 %v8669_v12, %s7603_s30  ;;  %vm8949_vm6 = vcmp.le.s32.totalorder %v11082_v38, 30 }
 0xfaf   : > { %v3118_v7 = vpop.permute.xlu1 %3117 }
 0xfb0   : > { %v3141_v50 = vsel %vm11077_vm7, %v8778_v54, %v3118_v7  ;;  %v3142_v63 = vsel %vm11078_vm15, %v3118_v7, %v8847_v3  ;;  %v8937_v20 = vpop.permute.xlu0 %3225  ;;  %v11083_v54 = vmov 0  ;;  %vm11086_vm15 = vcmask 1031168  }
 0xfb1   : > { %3245 = vrot.lane.b32.xlu1 %v8919_v0, %s7603_s30  ;;  %v6890_v33 = vpack.c.bf16 %v3142_v63, %v3134_v47  ;;  %v6892_v39 = vpack.c.bf16 %v3141_v50, %v3133_v48  ;;  %v11084_v54 = vsel %vm8949_vm6, 4294967295, %v11083_v54  ;;  %v3253_v7 = vsel %vm11086_vm15, %v8719_v25, %v8792_v46  ;;  %vm11087_vm7 = vmmov %vm11086_vm15 }
 0xfb2   : > { %11085 = vst [vmem:[#allocation25_spill] sm:$0xff] %v11084_v54  ;;  %v3254_v47 = vsel %vm11087_vm7, %v8792_v46, %v8713_v18  ;;  %3387 = vrot.lane.b32.xlu0 %v8669_v12, %s7618_s2  ;;  %vm11088_vm5 = vmmov %vm11087_vm7  ;;  %v3389_v25 = vsel %vm10922_vm8, %v8734_v28, %v8800_v45  ;;  %v11090_v28 = vmov 0  ;;  %vm10921_vm7 = vcmask 515072   ;;  %v4252_v54 = vld [vmem:[%s10856_s14 + $0x8] sm:$0xff] }
 0xfb3   : > { %v3238_v42 = vpop.permute.xlu1 %3237  ;;  %6891 = vmatprep.subr.bf16.mxu1 %v6890_v33  ;;  %vm11089_vm4 = vmmov %vm11088_vm5  ;;  %v3390_v33 = vsel %vm10922_vm8, %v8800_v45, %v8721_v26 }
 0xfb4   : > { %v3261_v48 = vsel %vm11088_vm5, %v8786_v40, %v3238_v42  ;;  %v3262_v8 = vsel %vm11089_vm4, %v3238_v42, %v8855_v53  ;;  %v8965_v50 = vpop.permute.xlu0 %3361  ;;  %6893 = vmatpush1.bf16.msra.mxu1 %v6892_v39  ;;  %vm8986_vm4 = vmpackc.low %vm8943_vm10, %vm8943_vm10  ;;  %vm11096_vm10 = vcmask 523264  }
 0xfb5   : > { %3381 = vrot.lane.b32.xlu1 %v8919_v0, %s7618_s2  ;;  %v11091_v28 = vsel %vm8986_vm4, 4294967295, %v11090_v28  ;;  %v7300_v45 = vpack.c.bf16 %v3262_v8, %v3254_v47  ;;  %vm8997_vm5 = vmpackc.low %vm8949_vm6, %vm8949_vm6  ;;  %v7303_v11 = vpack.c.bf16 %v3261_v48, %v3253_v7  ;;  %v3526_v47 = vsel %vm10906_vm12, %v8808_v57, %v8738_v16 }
 0xfb6   : > { %3127 = vrot.lane.b32.xlu0 %v8643_v13, %s7608_s22  ;;  %11092 = vst [vmem:[#allocation26_spill] sm:$0xff] %v11091_v28  ;;  %vm11097_vm15 = vmmov %vm11096_vm10 }
 0xfb7   : > { %v3374_v40 = vpop.permute.xlu1 %3373  ;;  %7301 = vmatprep.subr.msk.bf16.mxu1 %vm8986_vm4, %v7300_v45 }
 0xfb8   : > { %v3397_v46 = vsel %vm10922_vm8, %v8794_v43, %v3374_v40  ;;  %v3398_v39 = vsel %vm10922_vm8, %v3374_v40, %v8863_v34  ;;  %v8981_v63 = vpop.permute.xlu0 %3497  ;;  %v11093_v43 = vmov 0  ;;  %7304 = vmatpush1.bf16.msk.msra.mxu1 %vm8997_vm5, %v7303_v11  ;;  %v3645_v11 = vsel %vm10905_vm3, %v8752_v30, %v8821_v9 }
 0xfb9   : > { %3517 = vrot.lane.b32.xlu1 %v8919_v0, %s7619_s21  ;;  %v11094_v43 = vsel %vm8997_vm5, 4294967295, %v11093_v43  ;;  %v7306_v7 = vpack.c.bf16 %v3398_v39, %v3390_v33  ;;  %v7309_v48 = vpack.c.bf16 %v3397_v46, %v3389_v25  ;;  %v3646_v33 = vsel %vm10905_vm3, %v8821_v9, %v8746_v22 }
 0xfba   : > { %11095 = vst [vmem:[#allocation27_spill] sm:$0xff] %v11094_v43  ;;  %3247 = vrot.lane.b32.xlu0 %v8643_v13, %s7603_s30  ;;  %v3781_v30 = vsel %vm11096_vm10, %v8760_v51, %v8829_v55  ;;  %v3782_v9 = vsel %vm11097_vm15, %v8829_v55, %v8754_v32  ;;  %vm11109_vm15 = vcmask 130048  }
 0xfbb   : > { %v3510_v38 = vpop.permute.xlu1 %3509  ;;  %7307 = vmatprep.subr.msk.bf16.mxu1 %vm8508_vm9, %v7306_v7 }
 0xfbc   : > { %v3533_v42 = vsel %vm10906_vm12, %v8802_v58, %v3510_v38  ;;  %v3534_v8 = vsel %vm10906_vm12, %v3510_v38, %v8871_v27  ;;  %v9012_v40 = vpop.permute.xlu0 %3617  ;;  %7310 = vmatpush1.bf16.msk.msra.mxu1 %vm8520_vm0, %v7309_v48  ;;  %v3525_v58 = vsel %vm10906_vm12, %v8744_v29, %v8808_v57  ;;  %v9048_v38 = vadd.s32 640, %v7792_v5 }
 0xfbd   : > { %3637 = vrot.lane.b32.xlu1 %v8919_v0, %s7620_s26  ;;  %v6902_v45 = vpack.c.bf16 %v3534_v8, %v3526_v47  ;;  %v6904_v46 = vpack.c.bf16 %v3533_v42, %v3525_v58  ;;  %v3919_v48 = vsel %vm10921_vm7, %v8837_v10, %v8762_v35 }
 0xfbe   : > { %3383 = vrot.lane.b32.xlu0 %v8643_v13, %s7618_s2  ;;  %v10908_v7 = vand.u32 31, %v9048_v38 }
 0xfbf   : > { %v3630_v25 = vpop.permute.xlu1 %3629  ;;  %6903 = vmatprep.subr.bf16.mxu1 %v6902_v45 }
 0xfc0   : > { %v3653_v39 = vsel %vm10905_vm3, %v8815_v6, %v3630_v25  ;;  %v3654_v29 = vsel %vm10905_vm3, %v3630_v25, %v8884_v61  ;;  %v9035_v57 = vpop.permute.xlu0 %3753  ;;  %6905 = vmatpush1.bf16.msra.mxu1 %v6904_v46  ;;  %vm11098_vm3 = vmmov %vm11096_vm10 }
 0xfc1   : > { %3773 = vrot.lane.b32.xlu1 %v8919_v0, %s7623_s1  ;;  %vm11099_vm12 = vmmov %vm11098_vm3  ;;  %v7312_v51 = vpack.c.bf16 %v3654_v29, %v3646_v33  ;;  %v7315_v55 = vpack.c.bf16 %v3653_v39, %v3645_v11 }
 0xfc2   : > { %3519 = vrot.lane.b32.xlu0 %v8643_v13, %s7619_s21 }
 0xfc3   : > { %v3766_v6 = vpop.permute.xlu1 %3765  ;;  %7313 = vmatprep.subr.msk.bf16.mxu1 %vm8986_vm4, %v7312_v51 }
 0xfc4   : > { %v3789_v47 = vsel %vm11098_vm3, %v8823_v49, %v3766_v6  ;;  %v3790_v42 = vsel %vm11099_vm12, %v3766_v6, %v8892_v52  ;;  %v9054_v8 = vpop.permute.xlu0 %3889  ;;  %7316 = vmatpush1.bf16.msk.msra.mxu1 %vm8997_vm5, %v7315_v55  ;;  %vm10907_vm3 = vcmask 506880   ;;  %vm9093_vm12 = vcmp.ge.s32.totalorder %v10908_v7, 1  ;;  %v9120_v55 = vld [vmem:[%s10855_s13] sm:$0xff] }
 0xfc5   : > { %3909 = vrot.lane.b32.xlu1 %v8919_v0, %s7624_s0  ;;  %v7318_v33 = vpack.c.bf16 %v3790_v42, %v3782_v9  ;;  %v7321_v25 = vpack.c.bf16 %v3789_v47, %v3781_v30  ;;  %v4039_v39 = vsel %vm10907_vm3, %v8776_v19, %v8845_v15  ;;  %v4040_v29 = vsel %vm10907_vm3, %v8845_v15, %v8770_v36  ;;  %vm9127_vm10 = vmpackc.low %vm9093_vm12, %vm9093_vm12 }
 0xfc6   : > { %3639 = vrot.lane.b32.xlu0 %v8643_v13, %s7620_s26  ;;  %v11100_v6 = vmov 0 }
 0xfc7   : > { %v3902_v49 = vpop.permute.xlu1 %3901  ;;  %7319 = vmatprep.subr.msk.bf16.mxu1 %vm8508_vm9, %v7318_v33  ;;  %v11101_v6 = vsel %vm9093_vm12, 4294967295, %v11100_v6 }
 0xfc8   : > { %v3926_v45 = vsel %vm10921_vm7, %v8831_v59, %v3902_v49  ;;  %v3927_v58 = vsel %vm10921_vm7, %v3902_v49, %v8900_v17  ;;  %v9072_v11 = vpop.permute.xlu0 %4010  ;;  %7322 = vmatpush1.bf16.msk.msra.mxu1 %vm8520_vm0, %v7321_v25  ;;  %v3918_v59 = vsel %vm10921_vm7, %v8768_v37, %v8837_v10  ;;  %11102 = vst [vmem:[#allocation28_spill] sm:$0xff] %v11101_v6  ;;  %v11105_v49 = vmov 0 }
 0xfc9   : > { %4030 = vrot.lane.b32.xlu1 %v8919_v0, %s7625_s16  ;;  %v6914_v46 = vpack.c.bf16 %v3927_v58, %v3919_v48  ;;  %v6916_v9 = vpack.c.bf16 %v3926_v45, %v3918_v59  ;;  %v11106_v49 = vsel %vm9127_vm10, 4294967295, %v11105_v49  ;;  %v7330_v48 = vpack.c.bf16 %v8919_v0, %v8813_v60  ;;  %v4107_v45 = vld [vmem:[#allocation3 + $0x20] sm:$0xff] }
 0xfca   : > { %3775 = vrot.lane.b32.xlu0 %v8643_v13, %s7623_s1  ;;  %11107 = vst [vmem:[#allocation31_spill] sm:$0xff] %v11106_v49  ;;  %v9150_v60 = vld [vmem:[%s10855_s13 + $0x10] sm:$0xff] }
 0xfcb   : > { %v4023_v30 = vpop.permute.xlu1 %4022  ;;  %6915 = vmatprep.subr.bf16.mxu1 %v6914_v46 }
 0xfcc   : > { %v4047_v37 = vsel %vm10907_vm3, %v8839_v56, %v4023_v30  ;;  %v4048_v19 = vsel %vm10907_vm3, %v4023_v30, %v8908_v44  ;;  %v9101_v10 = vpop.permute.xlu0 %3113  ;;  %6917 = vmatpush1.bf16.msra.mxu1 %v6916_v9  ;;  %v4115_v56 = vld [vmem:[#allocation3 + $0x60] sm:$0xff]  ;;  %vm11111_vm3 = vmmov %vm11109_vm15 }
 0xfcd   : > { %11103 = vst [vmem:[#allocation29_spill] sm:$0xff] %v9101_v10  ;;  %3623 = vrot.lane.b32.xlu1 %v8882_v2, %s7620_s26  ;;  %v7324_v42 = vpack.c.bf16 %v4048_v19, %v4040_v29  ;;  %v7327_v51 = vpack.c.bf16 %v4047_v37, %v4039_v39  ;;  %v6960_v33 = vpack.c.bf16 %v4115_v56, %v4107_v45  ;;  %v3333_v37 = vld [vmem:[#allocation2 + $0x80] sm:$0xff] }
 0xfce   : > { %3911 = vrot.lane.b32.xlu0 %v8643_v13, %s7624_s0 }
 0xfcf   : > { %v9107_v15 = vpop.permute.xlu1 %3121  ;;  %7325 = vmatprep.subr.msk.bf16.mxu1 %vm8986_vm4, %v7324_v42 }
 0xfd0   : > { %v9109_v47 = vpop.permute.xlu0 %3233  ;;  %7328 = vmatpush1.bf16.msk.msra.mxu1 %vm8997_vm5, %v7327_v51  ;;  %vm11119_vm5 = vcmask 1031168  }
 0xfd1   : > { %11104 = vst [vmem:[#allocation30_spill] sm:$0xff] %v9109_v47  ;;  %3759 = vrot.lane.b32.xlu1 %v8882_v2, %s7623_s1  ;;  %7331 = vmatprep.subr.msk.bf16.mxu1 %vm9127_vm10, %v7330_v48  ;;  %v11120_v47 = vand.u32 31, %v8450_v23 }
 0xfd2   : > { %4032 = vrot.lane.b32.xlu0 %v8643_v13, %s7625_s16  ;;  %v9140_v13 = vld [vmem:[%s10855_s13 + $0x18] sm:$0xff] }
 0xfd3   : > { %v9135_v58 = vpop.permute.xlu1 %3241  ;;  %4334 = vmatmul.mubr.f32.vlgmr.msra.gmra.mrb[20].mxu1 %v9120_v55 }
 0xfd4   : > { %v9142_v25 = vpop.permute.xlu0 %3369  ;;  %6961 = vmatpush1.bf16.msra.mxu1 %v6960_v33  ;;  %6427 = vmatprep.mubr.msk.f32.mxu1 %vm11109_vm15, %v9140_v13 }
 0xfd5   : > { %11108 = vst [vmem:[#allocation32_spill] sm:$0xff] %v9142_v25  ;;  %3895 = vrot.lane.b32.xlu1 %v8882_v2, %s7624_s0  ;;  %v3263_v25 = vsel %vm11119_vm5, %v8855_v53, %v9135_v58 }
 0xfd6   : > { %3523 = vrot.lane.b32.xlu0 %v8669_v12, %s7619_s21 }
 0xfd7   : > { %v9156_v0 = vpop.permute.xlu1 %3377  ;;  %4340 = vmatmul.mubr.f32.gmra.mrb[22].mxu1 %v9150_v60 }
 0xfd8   : > { %v9158_v46 = vpop.permute.xlu0 %3505  ;;  %6430 = vmatprep.mubr.msk.f32.mxu1 %vm11111_vm3, %v8728_v1  ;;  %vm11115_vm3 = vcmask 1039360  }
 0xfd9   : > { %11110 = vst [vmem:[#allocation33_spill] sm:$0xff] %v9158_v46  ;;  %4016 = vrot.lane.b32.xlu1 %v8882_v2, %s7625_s16  ;;  %vm11116_vm15 = vmmov %vm11115_vm3 }
 0xfda   : > { %3625 = vrot.lane.b32.xlu0 %v8647_v14, %s7620_s26  ;;  %v3136_v46 = vsel %vm11116_vm15, %v8853_v4, %v8921_v62  ;;  %vm11117_vm7 = vmmov %vm11115_vm3 }
 0xfdb   : > { %v9167_v59 = vpop.permute.xlu1 %3513  ;;  %vm11118_vm8 = vmmov %vm11115_vm3 }
 0xfdc   : > { %v9169_v39 = vpop.permute.xlu0 %3109  ;;  %vm11124_vm15 = vmmov %vm11119_vm5 }
 0xfdd   : > { %3129 = vrot.lane.b32.xlu1 %v8657_v24, %s7608_s22 }
 0xfde   : > { %3643 = vrot.lane.b32.xlu0 %v8669_v12, %s7620_s26 }
 0xfdf   : > { %v9175_v29 = vpop.permute.xlu1 %3633 }
 0xfe0   : > { %v9177_v30 = vpop.permute.xlu0 %3229 }
 0xfe1   : > { %3249 = vrot.lane.b32.xlu1 %v8657_v24, %s7603_s30 }
 0xfe2   : > { %3761 = vrot.lane.b32.xlu0 %v8647_v14, %s7623_s1 }
 0xfe3   : > { %v9183_v9 = vpop.permute.xlu1 %3769 }
 0xfe4   : > { %v9185_v19 = vpop.permute.xlu0 %3365 }
 0xfe5   : > { %3385 = vrot.lane.b32.xlu1 %v3333_v37, %s7618_s2 }
 0xfe6   : > { %3779 = vrot.lane.b32.xlu0 %v8669_v12, %s7623_s1 }
 0xfe7   : > { %v9190_v42 = vpop.permute.xlu1 %3905 }
 0xfe8   : > { %v9192_v56 = vpop.permute.xlu0 %3501 }
 0xfe9   : > { %3521 = vrot.lane.b32.xlu1 %v3333_v37, %s7619_s21 }
 0xfea   : > { %3897 = vrot.lane.b32.xlu0 %v8647_v14, %s7624_s0 }
 0xfeb   : > { %v9197_v51 = vpop.permute.xlu1 %4026 }
 0xfec   : > { %v9199_v48 = vpop.permute.xlu0 %3621 }
 0xfed   : > { %3641 = vrot.lane.b32.xlu1 %v3333_v37, %s7620_s26 }
 0xfee   : > { %3915 = vrot.lane.b32.xlu0 %v8669_v12, %s7624_s0 }
 0xfef   : > { %v9204_v45 = vpop.permute.xlu1 %3107 }
 0xff0   : > { %v9206_v33 = vpop.permute.xlu0 %3757 }
 0xff1   : > { %11112 = vst [vmem:[#allocation34_spill] sm:$0xff] %v9206_v33  ;;  %3777 = vrot.lane.b32.xlu1 %v3333_v37, %s7623_s1  ;;  %v11125_v33 = vld [vmem:[#allocation8_spill] sm:$0xff] }
 0xff2   : > { %4018 = vrot.lane.b32.xlu0 %v8647_v14, %s7625_s16  ;;  %v4251_v14 = vld [vmem:[%s10856_s14] sm:$0xff] }
 0xff3   : > { %v9211_v7 = vpop.permute.xlu1 %3227 }
 0xff4   : > { %v9213_v43 = vpop.permute.xlu0 %3893 }
 0xff5   : > { %11113 = vst [vmem:[#allocation35_spill] sm:$0xff] %v9213_v43  ;;  %3913 = vrot.lane.b32.xlu1 %v3333_v37, %s7624_s0 }
 0xff6   : > { %4036 = vrot.lane.b32.xlu0 %v8669_v12, %s7625_s16  ;;  %v3143_v12 = vsel %vm11115_vm3, %v8847_v3, %v9107_v15  ;;  %vm9250_vm3 = vcmp.le.s32.totalorder %v11120_v47, 30 }
 0xff7   : > { %v9218_v28 = vpop.permute.xlu1 %3363 }
 0xff8   : > { %v9223_v6 = vpop.permute.xlu0 %4014 }
 0xff9   : > { %11114 = vst [vmem:[#allocation36_spill] sm:$0xff] %v9223_v6  ;;  %4034 = vrot.lane.b32.xlu1 %v3333_v37, %s7625_s16 }
 0xffa   : > { %4260 = vperm.xlu0 %7222, %v4252_v54   ;;  %v3135_v54 = vsel %vm11118_vm8, %v8705_v31, %v8853_v4  ;;  %v11126_v31 = vand.u32 31, %v11125_v33 }
 0xffb   : > { %v9229_v21 = vpop.permute.xlu1 %3499  ;;  %v6928_v43 = vpack.c.bf16 %v3143_v12, %v3135_v54  ;;  %v11136_v54 = vmov 0 }
 0xffc   : > { %v9234_v41 = vpop.permute.xlu0 %3123  ;;  %vm3007_vm8 = vcmp.le.s32.totalorder %v11126_v31, 30 }
 0xffd   : > { %4255 = vperm.xlu1 %7221, %v4251_v14   ;;  %v3144_v37 = vsel %vm11117_vm7, %v9107_v15, %v9234_v41  ;;  %v11123_v14 = vld [vmem:[#allocation18_spill] sm:$0xff]  ;;  %vm11127_vm7 = vmmov %vm11119_vm5 }
 0xffe   : > { %v6926_v3 = vpack.c.bf16 %v3144_v37, %v3136_v46  ;;  %v3256_v6 = vsel %vm11124_vm15, %v11123_v14, %v8937_v20  ;;  %v3255_v53 = vsel %vm11119_vm5, %v8713_v18, %v11123_v14  ;;  %vm11128_vm15 = vcmask 785408   ;;  %v11129_v46 = vld [vmem:[#allocation19_spill] sm:$0xff] }
 0xfff   : > { %v9257_v15 = vpop.permute.xlu1 %3619  ;;  %v3399_v47 = vsel %vm11128_vm15, %v8863_v34, %v9156_v0  ;;  %vm11130_vm4 = vmmov %vm11128_vm15  ;;  %v11133_v34 = vmov 0 }
0x1000   : > { %v9264_v4 = vpop.permute.xlu0 %3243  ;;  %6927 = vmatprep.subr.bf16.mxu0 %v6926_v3  ;;  %v3392_v33 = vsel %vm11130_vm4, %v11129_v46, %v8965_v50  ;;  %vm11131_vm5 = vmmov %vm11130_vm4  ;;  %v11140_v3 = vld [vmem:[#allocation20_spill] sm:$0xff] }
0x1001   : > { %v3264_v23 = vsel %vm11127_vm7, %v9135_v58, %v9264_v4  ;;  %6929 = vmatpush1.bf16.msra.mxu0 %v6928_v43  ;;  %v3391_v18 = vsel %vm11131_vm5, %v8721_v26, %v11129_v46  ;;  %vm11132_vm7 = vmmov %vm11130_vm4  ;;  %v7336_v26 = vpack.c.bf16 %v3263_v25, %v3255_v53  ;;  %v11144_v53 = vld [vmem:[#allocation12_spill] sm:$0xff] }
0x1002   : > { %vm9288_vm15 = vmpackc.low %vm9250_vm3, %vm9250_vm3  ;;  %v7333_v58 = vpack.c.bf16 %v3264_v23, %v3256_v6  ;;  %vm11141_vm3 = vcmask 777216   ;;  %v7342_v46 = vpack.c.bf16 %v3399_v47, %v3391_v18 }
0x1003   : > { %v9275_v12 = vpop.permute.xlu1 %3755  ;;  %v11134_v34 = vsel %vm9288_vm15, 4294967295, %v11133_v34  ;;  %vm9294_vm4 = vmpackc.low %vm3007_vm8, %vm3007_vm8  ;;  %v3528_v14 = vsel %vm11141_vm3, %v11140_v3, %v8981_v63 }
0x1004   : > { %v9280_v37 = vpop.permute.xlu0 %3379  ;;  %11135 = vst [vmem:[#allocation18_spill] sm:$0xff] %v11134_v34  ;;  %7334 = vmatprep.subr.msk.bf16.mxu0 %vm9288_vm15, %v7333_v58  ;;  %v11137_v54 = vsel %vm9294_vm4, 4294967295, %v11136_v54  ;;  %vm11142_vm5 = vmmov %vm11141_vm3  ;;  %v11146_v58 = vld [vmem:[#allocation13_spill] sm:$0xff] }
0x1005   : > { %v3400_v43 = vsel %vm11132_vm7, %v9156_v0, %v9280_v37  ;;  %11138 = vst [vmem:[#allocation8_spill] sm:$0xff] %v11137_v54  ;;  %7337 = vmatpush1.bf16.msk.msra.mxu0 %vm9294_vm4, %v7336_v26  ;;  %v3535_v6 = vsel %vm11142_vm5, %v8871_v27, %v9167_v59  ;;  %vm11143_vm8 = vmmov %vm11141_vm3  ;;  %vm11145_vm7 = vcmask 769024   ;;  %v3527_v27 = vsel %vm11141_vm3, %v8738_v16, %v11140_v3  ;;  %v11152_v3 = vld [vmem:[#allocation22_spill] sm:$0xff] }
0x1006   : > { %v7339_v25 = vpack.c.bf16 %v3400_v43, %v3392_v33  ;;  %v3655_v23 = vsel %vm11145_vm7, %v8884_v61, %v9175_v29  ;;  %vm11148_vm5 = vmmov %vm11145_vm7  ;;  %v6940_v47 = vpack.c.bf16 %v3535_v6, %v3527_v27  ;;  %vm11151_vm3 = vcmask 523264  }
0x1007   : > { %v9300_v0 = vpop.permute.xlu1 %3891  ;;  %vm11150_vm7 = vmmov %vm11148_vm5  ;;  %v3791_v16 = vsel %vm11151_vm3, %v8892_v52, %v9183_v9  ;;  %v9350_v6 = vadd.s32 896, %v7792_v5 }
0x1008   : > { %11139 = vst [vmem:[#allocation19_spill] sm:$0xff] %v9300_v0  ;;  %v9302_v10 = vpop.permute.xlu0 %3515  ;;  %7340 = vmatprep.subr.msk.bf16.mxu0 %vm8527_vm1, %v7339_v25  ;;  %v11147_v0 = vld [vmem:[#allocation21_spill] sm:$0xff] }
0x1009   : > { %v3536_v31 = vsel %vm11143_vm8, %v9167_v59, %v9302_v10  ;;  %7343 = vmatpush1.bf16.msk.msra.mxu0 %vm8539_vm14, %v7342_v46  ;;  %v3648_v59 = vsel %vm11148_vm5, %v11147_v0, %v9012_v40  ;;  %vm11149_vm8 = vmmov %vm11148_vm5  ;;  %v2996_v27 = vand.u32 31, %v9350_v6 }
0x100a   : > { %v6938_v26 = vpack.c.bf16 %v3536_v31, %v3528_v14  ;;  %v3647_v43 = vsel %vm11149_vm8, %v8746_v22, %v11147_v0  ;;  %vm11153_vm5 = vmmov %vm11151_vm3 }
0x100b   : > { %v9326_v33 = vpop.permute.xlu1 %4012  ;;  %v3784_v14 = vsel %vm11153_vm5, %v11152_v3, %v9035_v57  ;;  %vm11154_vm8 = vmmov %vm11151_vm3  ;;  %v7348_v25 = vpack.c.bf16 %v3655_v23, %v3647_v43 }
0x100c   : > { %v9331_v61 = vpop.permute.xlu0 %3635  ;;  %6939 = vmatprep.subr.bf16.mxu0 %v6938_v26  ;;  %v3783_v22 = vsel %vm11154_vm8, %v8754_v32, %v11152_v3  ;;  %v11156_v26 = vld [vmem:[#allocation23_spill] sm:$0xff]  ;;  %v11161_v3 = vld [vmem:[#allocation24_spill] sm:$0xff] }
0x100d   : > { %v3656_v18 = vsel %vm11150_vm7, %v9175_v29, %v9331_v61  ;;  %6941 = vmatpush1.bf16.msra.mxu0 %v6940_v47  ;;  %vm11155_vm7 = vmmov %vm11151_vm3  ;;  %vm11157_vm3 = vcmask 515072   ;;  %v7354_v47 = vpack.c.bf16 %v3791_v16, %v3783_v22  ;;  %v11164_v22 = vmov 0 }
0x100e   : > { %v7345_v29 = vpack.c.bf16 %v3656_v18, %v3648_v59  ;;  %v3921_v5 = vsel %vm11157_vm3, %v11156_v26, %v9054_v8  ;;  %vm11158_vm5 = vmmov %vm11157_vm3 }
0x100f   : > { %v9342_v31 = vpop.permute.xlu1 %3111  ;;  %vm11159_vm8 = vmmov %vm11157_vm3 }
0x1010   : > { %v9347_v0 = vpop.permute.xlu0 %3771  ;;  %7346 = vmatprep.subr.msk.bf16.mxu0 %vm9288_vm15, %v7345_v29 }
0x1011   : > { %v3792_v52 = vsel %vm11155_vm7, %v9183_v9, %v9347_v0  ;;  %7349 = vmatpush1.bf16.msk.msra.mxu0 %vm9294_vm4, %v7348_v25  ;;  %v3928_v9 = vsel %vm11158_vm5, %v8900_v17, %v9190_v42  ;;  %vm11160_vm7 = vcmask 506880   ;;  %v3920_v17 = vsel %vm11157_vm3, %v8762_v35, %v11156_v26  ;;  %v4117_v26 = vld [vmem:[#allocation3 + $0x70] sm:$0xff] }
0x1012   : > { %v7351_v59 = vpack.c.bf16 %v3792_v52, %v3784_v14  ;;  %v4049_v43 = vsel %vm11160_vm7, %v8908_v44, %v9197_v51  ;;  %vm11162_vm5 = vmmov %vm11160_vm7  ;;  %v6952_v16 = vpack.c.bf16 %v3928_v9, %v3920_v17  ;;  %vm9395_vm7 = vcmp.ge.s32.totalorder %v2996_v27, 1 }
0x1013   : > { %v9359_v46 = vpop.permute.xlu1 %3231  ;;  %v11165_v22 = vsel %vm9395_vm7, 4294967295, %v11164_v22  ;;  %vm11166_vm3 = vmmov %vm11162_vm5 }
0x1014   : > { %v9361_v32 = vpop.permute.xlu0 %3907  ;;  %7352 = vmatprep.subr.msk.bf16.mxu0 %vm8527_vm1, %v7351_v59  ;;  %v4109_v59 = vld [vmem:[#allocation3 + $0x30] sm:$0xff]  ;;  %vm11206_vm1 = vcmask 523264  }
0x1015   : > { %v3929_v23 = vsel %vm11159_vm8, %v9190_v42, %v9361_v32  ;;  %7355 = vmatpush1.bf16.msk.msra.mxu0 %vm8539_vm14, %v7354_v47  ;;  %v4042_v42 = vsel %vm11162_vm5, %v11161_v3, %v9072_v11  ;;  %vm11163_vm8 = vmmov %vm11162_vm5 }
0x1016   : > { %v6950_v18 = vpack.c.bf16 %v3929_v23, %v3921_v5  ;;  %v4041_v52 = vsel %vm11163_vm8, %v8770_v36, %v11161_v3  ;;  %vm9413_vm5 = vmpackc.low %vm9395_vm7, %vm9395_vm7  ;;  %v7363_v23 = vpack.c.bf16 %v8657_v24, %v8882_v2  ;;  %vm11170_vm8 = vcmask 130048  }
0x1017   : > { %v9386_v14 = vpop.permute.xlu1 %3367  ;;  %v7360_v5 = vpack.c.bf16 %v4049_v43, %v4041_v52  ;;  %v6996_v43 = vpack.c.bf16 %v4117_v26, %v4109_v59  ;;  %vm11176_vm7 = vcmask 1031168  }
0x1018   : > { %v9391_v44 = vpop.permute.xlu0 %4028  ;;  %6951 = vmatprep.subr.bf16.mxu0 %v6950_v18 }
0x1019   : > { %v4050_v35 = vsel %vm11166_vm3, %v9197_v51, %v9391_v44  ;;  %6953 = vmatpush1.bf16.msra.mxu0 %v6952_v16  ;;  %v11167_v51 = vmov 0  ;;  %vm11171_vm3 = vmmov %vm11170_vm8 }
0x101a   : > { %v7357_v36 = vpack.c.bf16 %v4050_v35, %v4042_v42  ;;  %v11168_v51 = vsel %vm9413_vm5, 4294967295, %v11167_v51 }
0x101b   : > { %v9402_v29 = vpop.permute.xlu1 %3503  ;;  %11169 = vst [vmem:[#allocation20_spill] sm:$0xff] %v11168_v51 }
0x101c   : > { %v9404_v25 = vpop.permute.xlu0 %3131  ;;  %7358 = vmatprep.subr.msk.bf16.mxu0 %vm9288_vm15, %v7357_v36  ;;  %v11177_v36 = vand.u32 31, %v9048_v38 }
0x101d   : > { %7361 = vmatpush1.bf16.msk.msra.mxu0 %vm9294_vm4, %v7360_v5  ;;  %vm11172_vm4 = vcmask 1039360  }
0x101e   : > { %7364 = vmatprep.subr.msk.bf16.mxu0 %vm9413_vm5, %v7363_v23  ;;  %vm11173_vm15 = vmmov %vm11172_vm4  ;;  %v11181_v23 = vld [vmem:[#allocation14_spill] sm:$0xff] }
0x101f   : > { %v3126_v9 = vpop.permute.xlu1 %3125  ;;  %v3138_v42 = vsel %vm11173_vm15, %v9204_v45, %v9169_v39  ;;  %vm11175_vm6 = vmmov %vm11172_vm4  ;;  %v11182_v59 = vand.u32 31, %v11181_v23 }
0x1020   : > { %v9421_v47 = vpop.permute.xlu0 %3251  ;;  %4411 = vmatmul.mubr.f32.vlgmr.msra.gmra.mrb[16].mxu0 %v9120_v55  ;;  %v3145_v24 = vsel %vm11172_vm4, %v9234_v41, %v3126_v9  ;;  %v3137_v16 = vsel %vm11175_vm6, %v8921_v62, %v9204_v45  ;;  %vm11180_vm15 = vmmov %vm11176_vm7 }
0x1021   : > { %6997 = vmatpush1.bf16.msra.mxu0 %v6996_v43  ;;  %6429 = vmatprep.mubr.msk.f32.mxu0 %vm11170_vm8, %v9140_v13  ;;  %vm11174_vm8 = vmmov %vm11172_vm4  ;;  %vm9447_vm4 = vcmp.le.s32.totalorder %v11177_v36, 30  ;;  %v3258_v26 = vsel %vm11180_vm15, %v9211_v7, %v9177_v30 }
0x1022   : > { %vm11183_vm6 = vmmov %vm11176_vm7 }
0x1023   : > { %v3246_v18 = vpop.permute.xlu1 %3245  ;;  %v3257_v62 = vsel %vm11183_vm6, %v8937_v20, %v9211_v7 }
0x1024   : > { %v9426_v17 = vpop.permute.xlu0 %3387  ;;  %4417 = vmatmul.mubr.f32.gmra.mrb[18].mxu0 %v9150_v60 }
0x1025   : > { %6432 = vmatprep.mubr.msk.f32.mxu0 %vm11171_vm3, %v8728_v1  ;;  %v3265_v1 = vsel %vm11176_vm7, %v9264_v4, %v3246_v18  ;;  %vm3009_vm3 = vcmp.le.s32.totalorder %v11182_v59, 30  ;;  %vm11184_vm7 = vmmov %vm11183_vm6 }
0x1027   : > { %v3382_v2 = vpop.permute.xlu1 %3381 }
0x1028   : > { %v9433_v3 = vpop.permute.xlu0 %3127 }
0x1029   : > { %v3146_v52 = vsel %vm11174_vm8, %v3126_v9, %v9433_v3  ;;  %v6964_v9 = vpack.c.bf16 %v3145_v24, %v3137_v16  ;;  %vm11185_vm8 = vcmask 785408  }
0x102a   : > { %v6962_v35 = vpack.c.bf16 %v3146_v52, %v3138_v42  ;;  %v3401_v4 = vsel %vm11185_vm8, %v9280_v37, %v3382_v2  ;;  %vm11186_vm15 = vmmov %vm11185_vm8  ;;  %v11192_v52 = vmov 0 }
0x102b   : > { %v3518_v5 = vpop.permute.xlu1 %3517  ;;  %v3394_v43 = vsel %vm11186_vm15, %v9218_v28, %v9185_v19  ;;  %vm11187_vm14 = vmmov %vm11185_vm8 }
0x102c   : > { %v9459_v45 = vpop.permute.xlu0 %3247  ;;  %6963 = vmatprep.subr.bf16.mxu1 %v6962_v35  ;;  %v3393_v42 = vsel %vm11187_vm14, %v8965_v50, %v9218_v28  ;;  %vm11188_vm6 = vmmov %vm11185_vm8  ;;  %v7369_v50 = vpack.c.bf16 %v3265_v1, %v3257_v62  ;;  %vm11195_vm14 = vcmask 777216  }
0x102d   : > { %v3266_v38 = vsel %vm11184_vm7, %v3246_v18, %v9459_v45  ;;  %6965 = vmatpush1.bf16.msra.mxu1 %v6964_v9  ;;  %vm9478_vm7 = vmpackc.low %vm9447_vm4, %vm9447_vm4  ;;  %v11189_v18 = vmov 0  ;;  %v3530_v16 = vsel %vm11195_vm14, %v9229_v21, %v9192_v56  ;;  %v11200_v9 = vmov 0 }
0x102e   : > { %v11190_v18 = vsel %vm9478_vm7, 4294967295, %v11189_v18  ;;  %v7366_v37 = vpack.c.bf16 %v3266_v38, %v3258_v26  ;;  %vm9484_vm8 = vmpackc.low %vm3009_vm3, %vm3009_vm3  ;;  %vm11198_vm3 = vcmask 769024   ;;  %v7375_v23 = vpack.c.bf16 %v3401_v4, %v3393_v42 }
0x102f   : > { %v3638_v24 = vpop.permute.xlu1 %3637  ;;  %11191 = vst [vmem:[#allocation21_spill] sm:$0xff] %v11190_v18  ;;  %v11193_v52 = vsel %vm9484_vm8, 4294967295, %v11192_v52  ;;  %vm11196_vm4 = vmmov %vm11195_vm14 }
0x1030   : > { %v9471_v20 = vpop.permute.xlu0 %3383  ;;  %7367 = vmatprep.subr.msk.bf16.mxu1 %vm9478_vm7, %v7366_v37  ;;  %11194 = vst [vmem:[#allocation22_spill] sm:$0xff] %v11193_v52  ;;  %v3537_v35 = vsel %vm11196_vm4, %v9302_v10, %v3518_v5  ;;  %vm11197_vm15 = vmmov %vm11196_vm4  ;;  %v3657_v1 = vsel %vm11198_vm3, %v9331_v61, %v3638_v24 }
0x1031   : > { %v3402_v7 = vsel %vm11188_vm6, %v3382_v2, %v9471_v20  ;;  %7370 = vmatpush1.bf16.msk.msra.mxu1 %vm9484_vm8, %v7369_v50  ;;  %vm9506_vm6 = vmpackc.low %vm8581_vm13, %vm8581_vm13 }
0x1032   : > { %v7372_v41 = vpack.c.bf16 %v3402_v7, %v3394_v43  ;;  %v11201_v9 = vsel %vm9506_vm6, 4294967295, %v11200_v9  ;;  %vm11203_vm14 = vmmov %vm11196_vm4 }
0x1033   : > { %v3774_v28 = vpop.permute.xlu1 %3773  ;;  %11202 = vst [vmem:[#allocation23_spill] sm:$0xff] %v11201_v9  ;;  %vm11204_vm4 = vmmov %vm11198_vm3 }
0x1034   : > { %v9490_v2 = vpop.permute.xlu0 %3519  ;;  %7373 = vmatprep.subr.msk.bf16.mxu1 %vm9127_vm10, %v7372_v41  ;;  %v3650_v61 = vsel %vm11204_vm4, %v9257_v15, %v9199_v48  ;;  %v3793_v42 = vsel %vm11206_vm1, %v9347_v0, %v3774_v28  ;;  %vm11209_vm4 = vmmov %vm11206_vm1 }
0x1035   : > { %v3538_v36 = vsel %vm11197_vm15, %v3518_v5, %v9490_v2  ;;  %7376 = vmatpush1.bf16.msk.msra.mxu1 %vm9506_vm6, %v7375_v23  ;;  %v3529_v5 = vsel %vm11203_vm14, %v8981_v63, %v9229_v21  ;;  %vm11205_vm15 = vmmov %vm11198_vm3  ;;  %v11207_v21 = vld [vmem:[#allocation34_spill] sm:$0xff] }
0x1036   : > { %v6974_v10 = vpack.c.bf16 %v3538_v36, %v3530_v16  ;;  %v3649_v62 = vsel %vm11205_vm15, %v9012_v40, %v9257_v15  ;;  %v6976_v4 = vpack.c.bf16 %v3537_v35, %v3529_v5  ;;  %vm11208_vm14 = vmmov %vm11206_vm1  ;;  %v3785_v40 = vsel %vm11209_vm4, %v9035_v57, %v9275_v12  ;;  %v11211_v35 = vld [vmem:[#allocation35_spill] sm:$0xff] }
0x1037   : > { %v3910_v59 = vpop.permute.xlu1 %3909  ;;  %v3786_v63 = vsel %vm11208_vm14, %v9275_v12, %v11207_v21  ;;  %vm11210_vm15 = vmmov %vm11206_vm1  ;;  %v7381_v0 = vpack.c.bf16 %v3657_v1, %v3649_v62  ;;  %v11212_v36 = vld [vmem:[#allocation19_spill] sm:$0xff]  ;;  %vm11213_vm1 = vcmask 515072   ;;  %vm11216_vm4 = vcmask 506880  }
0x1038   : > { %v9521_v38 = vpop.permute.xlu0 %3639  ;;  %6975 = vmatprep.subr.bf16.mxu1 %v6974_v10  ;;  %v3923_v57 = vsel %vm11213_vm1, %v11212_v36, %v11211_v35  ;;  %vm11215_vm14 = vmmov %vm11213_vm1  ;;  %v7387_v23 = vpack.c.bf16 %v3793_v42, %v3785_v40 }
0x1039   : > { %v3658_v43 = vsel %vm11198_vm3, %v3638_v24, %v9521_v38  ;;  %6977 = vmatpush1.bf16.msra.mxu1 %v6976_v4  ;;  %vm11214_vm3 = vmmov %vm11213_vm1 }
0x103a   : > { %v7378_v50 = vpack.c.bf16 %v3658_v43, %v3650_v61  ;;  %v3930_v12 = vsel %vm11214_vm3, %v9361_v32, %v3910_v59  ;;  %v11218_v32 = vld [vmem:[#allocation36_spill] sm:$0xff] }
0x103b   : > { %v4031_v7 = vpop.permute.xlu1 %4030 }
0x103c   : > { %v9533_v15 = vpop.permute.xlu0 %3775  ;;  %7379 = vmatprep.subr.msk.bf16.mxu1 %vm9478_vm7, %v7378_v50  ;;  %v4051_v1 = vsel %vm11216_vm4, %v9391_v44, %v4031_v7  ;;  %v11224_v50 = vld [vmem:[#allocation29_spill] sm:$0xff] }
0x103d   : > { %v3794_v37 = vsel %vm11210_vm15, %v3774_v28, %v9533_v15  ;;  %7382 = vmatpush1.bf16.msk.msra.mxu1 %vm9484_vm8, %v7381_v0  ;;  %vm11217_vm15 = vmmov %vm11213_vm1 }
0x103e   : > { %v7384_v41 = vpack.c.bf16 %v3794_v37, %v3786_v63  ;;  %v3922_v5 = vsel %vm11217_vm15, %v9054_v8, %v11212_v36  ;;  %vm11219_vm1 = vmmov %vm11216_vm4  ;;  %vm11222_vm4 = vcmask 130048   ;;  %vm11223_vm15 = vcmask 1039360  }
0x103f   : > { %v9541_v24 = vpop.permute.xlu1 %3623  ;;  %v4044_v61 = vsel %vm11219_vm1, %v9326_v33, %v11218_v32  ;;  %vm11220_vm3 = vmmov %vm11219_vm1  ;;  %v6988_v4 = vpack.c.bf16 %v3930_v12, %v3922_v5  ;;  %v3139_v37 = vsel %vm11223_vm15, %v9169_v39, %v9342_v31 }
0x1040   : > { %v9543_v16 = vpop.permute.xlu0 %3911  ;;  %7385 = vmatprep.subr.msk.bf16.mxu1 %vm9127_vm10, %v7384_v41  ;;  %v4043_v62 = vsel %vm11220_vm3, %v9072_v11, %v9326_v33  ;;  %vm11237_vm10 = vcmask 785408  }
0x1041   : > { %v3931_v28 = vsel %vm11215_vm14, %v3910_v59, %v9543_v16  ;;  %7388 = vmatpush1.bf16.msk.msra.mxu1 %vm9506_vm6, %v7387_v23  ;;  %vm11221_vm14 = vmmov %vm11219_vm1  ;;  %v7393_v40 = vpack.c.bf16 %v4051_v1, %v4043_v62  ;;  %v11228_v1 = vld [vmem:[#allocation15_spill] sm:$0xff]  ;;  %v3395_v6 = vsel %vm11237_vm10, %v9185_v19, %v9386_v14  ;;  %v11245_v19 = vmov 0 }
0x1042   : > { %v6986_v10 = vpack.c.bf16 %v3931_v28, %v3923_v57  ;;  %vm11225_vm1 = vmmov %vm11223_vm15  ;;  %v11229_v23 = vand.u32 31, %v11228_v1  ;;  %vm3012_vm15 = vcmp.le.s32.totalorder %v2996_v27, 30  ;;  %v11238_v27 = vld [vmem:[#allocation32_spill] sm:$0xff] }
0x1043   : > { %v9564_v59 = vpop.permute.xlu1 %3759  ;;  %v3140_v0 = vsel %vm11225_vm1, %v9342_v31, %v11224_v50  ;;  %vm11226_vm3 = vmmov %vm11225_vm1  ;;  %v11233_v31 = vld [vmem:[#allocation30_spill] sm:$0xff] }
0x1044   : > { %v9569_v44 = vpop.permute.xlu0 %4032  ;;  %6987 = vmatprep.subr.bf16.mxu1 %v6986_v10 }
0x1045   : > { %v4052_v43 = vsel %vm11221_vm14, %v4031_v7, %v9569_v44  ;;  %6989 = vmatpush1.bf16.msra.mxu1 %v6988_v4  ;;  %vm11227_vm14 = vmmov %vm11225_vm1  ;;  %vm11232_vm1 = vcmask 1031168  }
0x1046   : > { %v7390_v63 = vpack.c.bf16 %v4052_v43, %v4044_v61  ;;  %v3259_v39 = vsel %vm11232_vm1, %v9177_v30, %v9359_v46  ;;  %vm11236_vm6 = vmmov %vm11232_vm1 }
0x1047   : > { %v9573_v42 = vpop.permute.xlu1 %3895 }
0x1048   : > { %v3524_v8 = vpop.permute.xlu0 %3523  ;;  %7391 = vmatprep.subr.msk.bf16.mxu1 %vm9478_vm7, %v7390_v63 }
0x1049   : > { %7394 = vmatpush1.bf16.msk.msra.mxu1 %vm9484_vm8, %v7393_v40 }
0x104b   : > { %v9579_v11 = vpop.permute.xlu1 %4016 }
0x104c   : > { %v3626_v33 = vpop.permute.xlu0 %3625  ;;  %4488 = vmatmul.mubr.f32.vlgmr.msra.gmra.mrb[24].mxu1 %v9120_v55 }
0x104d   : > { %6431 = vmatprep.mubr.msk.f32.mxu1 %vm11222_vm4, %v9140_v13  ;;  %vm9597_vm4 = vcmp.le.s32.totalorder %v11229_v23, 30 }
0x104f   : > { %v3130_v7 = vpop.permute.xlu1 %3129 }
0x1050   : > { %v3147_v36 = vsel %vm11226_vm3, %v9433_v3, %v3130_v7  ;;  %v3148_v57 = vsel %vm11227_vm14, %v3130_v7, %v9404_v25  ;;  %v3644_v12 = vpop.permute.xlu0 %3643  ;;  %4494 = vmatmul.mubr.f32.gmra.mrb[26].mxu1 %v9150_v60  ;;  %vm11234_vm3 = vmmov %vm11232_vm1 }
0x1051   : > { %v6998_v28 = vpack.c.bf16 %v3148_v57, %v3140_v0  ;;  %v7000_v41 = vpack.c.bf16 %v3147_v36, %v3139_v37  ;;  %v3260_v25 = vsel %vm11234_vm3, %v9359_v46, %v11233_v31  ;;  %vm11235_vm14 = vmmov %vm11232_vm1  ;;  %v11253_v57 = vmov 0 }
0x1052   : > { %vm11239_vm1 = vmmov %vm11237_vm10 }
0x1053   : > { %v3250_v3 = vpop.permute.xlu1 %3249  ;;  %6999 = vmatprep.subr.bf16.mxu0 %v6998_v28  ;;  %v3396_v30 = vsel %vm11239_vm1, %v9386_v14, %v11238_v27  ;;  %vm11240_vm3 = vmmov %vm11239_vm1 }
0x1054   : > { %v3267_v5 = vsel %vm11235_vm14, %v9459_v45, %v3250_v3  ;;  %v3268_v61 = vsel %vm11236_vm6, %v3250_v3, %v9421_v47  ;;  %v3762_v62 = vpop.permute.xlu0 %3761  ;;  %7001 = vmatpush1.bf16.msra.mxu0 %v7000_v41  ;;  %vm11241_vm8 = vmmov %vm11239_vm1  ;;  %v11242_v47 = vmov 0 }
0x1055   : > { %vm9623_vm14 = vmpackc.low %vm3012_vm15, %vm3012_vm15  ;;  %v7396_v63 = vpack.c.bf16 %v3268_v61, %v3260_v25  ;;  %v7399_v14 = vpack.c.bf16 %v3267_v5, %v3259_v39 }
0x1056   : > { %v11243_v47 = vsel %vm9623_vm14, 4294967295, %v11242_v47  ;;  %vm9632_vm10 = vmpackc.low %vm9597_vm4, %vm9597_vm4 }
0x1057   : > { %v3386_v4 = vpop.permute.xlu1 %3385  ;;  %11244 = vst [vmem:[#allocation24_spill] sm:$0xff] %v11243_v47  ;;  %7397 = vmatprep.subr.msk.bf16.mxu0 %vm9623_vm14, %v7396_v63  ;;  %v11246_v19 = vsel %vm9632_vm10, 4294967295, %v11245_v19  ;;  %vm9649_vm4 = vmpackc.low %vm8603_vm11, %vm8603_vm11 }
0x1058   : > { %v3403_v46 = vsel %vm11240_vm3, %v9471_v20, %v3386_v4  ;;  %v3404_v45 = vsel %vm11241_vm8, %v3386_v4, %v9426_v17  ;;  %v3780_v43 = vpop.permute.xlu0 %3779  ;;  %11247 = vst [vmem:[#allocation14_spill] sm:$0xff] %v11246_v19  ;;  %7400 = vmatpush1.bf16.msk.msra.mxu0 %vm9632_vm10, %v7399_v14  ;;  %v11248_v20 = vld [vmem:[#allocation33_spill] sm:$0xff]  ;;  %vm11249_vm8 = vcmask 777216   ;;  %v11254_v57 = vsel %vm9649_vm4, 4294967295, %v11253_v57 }
0x1059   : > { %v3532_v40 = vsel %vm11249_vm8, %v9402_v29, %v11248_v20  ;;  %vm11250_vm6 = vmmov %vm11249_vm8  ;;  %v7402_v0 = vpack.c.bf16 %v3404_v45, %v3396_v30  ;;  %11255 = vst [vmem:[#allocation16_spill] sm:$0xff] %v11254_v57  ;;  %v7405_v28 = vpack.c.bf16 %v3403_v46, %v3395_v6  ;;  %vm11257_vm3 = vcmask 769024  }
0x105a   : > { %vm11251_vm15 = vmmov %vm11250_vm6 }
0x105b   : > { %v3522_v17 = vpop.permute.xlu1 %3521  ;;  %7403 = vmatprep.subr.msk.bf16.mxu0 %vm9413_vm5, %v7402_v0  ;;  %vm11256_vm1 = vmmov %vm11250_vm6 }
0x105c   : > { %v3539_v7 = vsel %vm11250_vm6, %v9490_v2, %v3522_v17  ;;  %v3540_v37 = vsel %vm11251_vm15, %v3522_v17, %v3524_v8  ;;  %v3898_v50 = vpop.permute.xlu0 %3897  ;;  %7406 = vmatpush1.bf16.msk.msra.mxu0 %vm9649_vm4, %v7405_v28  ;;  %v3531_v2 = vsel %vm11256_vm1, %v9192_v56, %v9402_v29  ;;  %v3651_v8 = vsel %vm11257_vm3, %v9199_v48, %v9541_v24  ;;  %vm11258_vm8 = vmmov %vm11257_vm3 }
0x105d   : > { %v7010_v41 = vpack.c.bf16 %v3540_v37, %v3532_v40  ;;  %v3652_v1 = vsel %vm11258_vm8, %v9541_v24, %v3626_v33  ;;  %v7012_v10 = vpack.c.bf16 %v3539_v7, %v3531_v2  ;;  %vm11259_vm6 = vmmov %vm11257_vm3  ;;  %vm11261_vm1 = vcmask 523264  }
0x105e   : > { %vm11260_vm15 = vmmov %vm11257_vm3  ;;  %v3787_v56 = vsel %vm11261_vm1, %v11207_v21, %v9564_v59 }
0x105f   : > { %v3642_v23 = vpop.permute.xlu1 %3641  ;;  %7011 = vmatprep.subr.bf16.mxu0 %v7010_v41  ;;  %vm11262_vm7 = vmmov %vm11261_vm1 }
0x1060   : > { %v3659_v39 = vsel %vm11259_vm6, %v9521_v38, %v3642_v23  ;;  %v3660_v31 = vsel %vm11260_vm15, %v3642_v23, %v3644_v12  ;;  %v3916_v25 = vpop.permute.xlu0 %3915  ;;  %7013 = vmatpush1.bf16.msra.mxu0 %v7012_v10  ;;  %v3788_v48 = vsel %vm11262_vm7, %v9564_v59, %v3762_v62  ;;  %vm11263_vm3 = vmmov %vm11261_vm1  ;;  %vm11265_vm6 = vcmask 515072  }
0x1061   : > { %vm11264_vm8 = vmmov %vm11261_vm1  ;;  %v7408_v3 = vpack.c.bf16 %v3660_v31, %v3652_v1  ;;  %v7411_v12 = vpack.c.bf16 %v3659_v39, %v3651_v8  ;;  %v3925_v21 = vsel %vm11265_vm6, %v9573_v42, %v3898_v50 }
0x1062   : > { %vm11266_vm7 = vmmov %vm11265_vm6 }
0x1063   : > { %v3778_v29 = vpop.permute.xlu1 %3777  ;;  %7409 = vmatprep.subr.msk.bf16.mxu0 %vm9623_vm14, %v7408_v3  ;;  %vm11267_vm15 = vmmov %vm11265_vm6 }
0x1064   : > { %v3795_v24 = vsel %vm11263_vm3, %v9533_v15, %v3778_v29  ;;  %v3796_v33 = vsel %vm11264_vm8, %v3778_v29, %v3780_v43  ;;  %v4019_v38 = vpop.permute.xlu0 %4018  ;;  %7412 = vmatpush1.bf16.msk.msra.mxu0 %vm9632_vm10, %v7411_v12  ;;  %vm11268_vm1 = vmmov %vm11265_vm6  ;;  %vm11269_vm3 = vcmask 506880  }
0x1065   : > { %v7414_v61 = vpack.c.bf16 %v3796_v33, %v3788_v48  ;;  %v7417_v62 = vpack.c.bf16 %v3795_v24, %v3787_v56  ;;  %v3924_v27 = vsel %vm11268_vm1, %v11211_v35, %v9573_v42  ;;  %v4045_v30 = vsel %vm11269_vm3, %v11218_v32, %v9579_v11  ;;  %vm11270_vm8 = vmmov %vm11269_vm3 }
0x1066   : > { %vm11271_vm6 = vmmov %vm11269_vm3 }
0x1067   : > { %v3914_v5 = vpop.permute.xlu1 %3913  ;;  %7415 = vmatprep.subr.msk.bf16.mxu0 %vm9413_vm5, %v7414_v61 }
0x1068   : > { %v3932_v59 = vsel %vm11266_vm7, %v9543_v16, %v3914_v5  ;;  %v3933_v15 = vsel %vm11267_vm15, %v3914_v5, %v3916_v25  ;;  %7418 = vmatpush1.bf16.msk.msra.mxu0 %vm9649_vm4, %v7417_v62  ;;  %v4046_v16 = vsel %vm11270_vm8, %v9579_v11, %v4019_v38  ;;  %v4037_v46 = vpop.permute.xlu0 %4036  ;;  %vm11272_vm7 = vmmov %vm11269_vm3  ;;  %vm11273_vm15 = vcmask 130048  }
0x1069   : > { %v7022_v6 = vpack.c.bf16 %v3933_v15, %v3925_v21  ;;  %v7024_v45 = vpack.c.bf16 %v3932_v59, %v3924_v27 }
0x106b   : > { %v4035_v4 = vpop.permute.xlu1 %4034  ;;  %7023 = vmatprep.subr.bf16.mxu0 %v7022_v6 }
0x106c   : > { %v4053_v43 = vsel %vm11271_vm6, %v9569_v44, %v4035_v4  ;;  %v4054_v63 = vsel %vm11272_vm7, %v4035_v4, %v4037_v46  ;;  %7025 = vmatpush1.bf16.msra.mxu0 %v7024_v45 }
0x106d   : > { %v7420_v14 = vpack.c.bf16 %v4054_v63, %v4046_v16  ;;  %v7423_v35 = vpack.c.bf16 %v4053_v43, %v4045_v30 }
0x106f   : > { %7421 = vmatprep.subr.msk.bf16.mxu0 %vm9623_vm14, %v7420_v14 }
0x1070   : > { %7424 = vmatpush1.bf16.msk.msra.mxu0 %vm9632_vm10, %v7423_v35 }
0x1073   : > { %4565 = vmatmul.mubr.f32.vlgmr.msra.gmra.mrb[20].mxu0 %v9120_v55 }
0x1074   : > { %6433 = vmatprep.mubr.msk.f32.mxu0 %vm11273_vm15, %v9140_v13 }
0x1077   : > { %4571 = vmatmul.mubr.f32.gmra.mrb[22].mxu0 %v9150_v60 }
0x1079   : > { %v9710_v40 = vpop.permute.xlu0 %4260 }
0x107c   : > { %v9706_v32 = vpop.permute.xlu1 %4255 }
0x10a6   : > { %v4335_v44 = vpop.f32.mrb[20].mxu1 }
0x10a7   : > { %v4336_v42 = vadd.f32 %v4335_v44, %v9706_v32  ;;  %v4337_v11 = vpop.f32.mrb[21].mxu1 }
0x10a8   : > { %v4338_v17 = vadd.f32 %v4337_v11, %v9706_v32 }
0x10a9   : > { %vm4577_vm1 = vcmp.ge.f32.partialorder %v4336_v42, 0.0  ;;  %v4593_v20 = vmul.f32 0.2, %v4336_v42 }
0x10aa   : > { %vm4578_vm3 = vcmp.ge.f32.partialorder %v4338_v17, 0.0  ;;  %v4594_v7 = vmul.f32 0.2, %v4338_v17  ;;  %v4341_v55 = vpop.f32.mrb[22].mxu1 }
0x10ab   : > { %v4342_v37 = vadd.f32 %v4341_v55, %v9710_v40  ;;  %v4343_v13 = vpop.f32.mrb[23].mxu1  ;;  %v4609_v50 = vsel %vm4577_vm1, %v4336_v42, %v4593_v20 }
0x10ac   : > { %v4344_v60 = vadd.f32 %v4343_v13, %v9710_v40  ;;  %4659 = vrot.lane.b32.xlu1 %v4609_v50, %s7622_s28  ;;  %v4610_v0 = vsel %vm4578_vm3, %v4338_v17, %v4594_v7  ;;  %vm11274_vm3 = vcmask 1047816  }
0x10ad   : > { %vm4585_vm8 = vcmp.ge.f32.partialorder %v4342_v37, 0.0  ;;  %v4601_v28 = vmul.f32 0.2, %v4342_v37  ;;  %4661 = vrot.lane.b32.xlu0 %v4610_v0, %s7622_s28 }
0x10ae   : > { %vm4586_vm6 = vcmp.ge.f32.partialorder %v4344_v60, 0.0  ;;  %v4602_v41 = vmul.f32 0.2, %v4344_v60 }
0x10af   : > { %v4617_v2 = vsel %vm4585_vm8, %v4342_v37, %v4601_v28  ;;  %vm11275_vm8 = vcmask 269312  }
0x10b0   : > { %v4618_v8 = vsel %vm4586_vm6, %v4344_v60, %v4602_v41 }
0x10b1   : > { %4675 = vrot.lane.b32.xlu0 %v4617_v2, %s7622_s28  ;;  %4677 = vrot.lane.b32.xlu1 %v4618_v8, %s7622_s28 }
0x10f3   : > { %v4412_v1 = vpop.f32.mrb[16].mxu0 }
0x10f4   : > { %v4413_v23 = vadd.f32 %v4412_v1, %v9706_v32  ;;  %v4414_v10 = vpop.f32.mrb[17].mxu0 }
0x10f5   : > { %v4415_v39 = vadd.f32 %v4414_v10, %v9706_v32 }
0x10f6   : > { %vm4579_vm7 = vcmp.ge.f32.partialorder %v4413_v23, 0.0  ;;  %v4595_v31 = vmul.f32 0.2, %v4413_v23 }
0x10f7   : > { %vm4580_vm15 = vcmp.ge.f32.partialorder %v4415_v39, 0.0  ;;  %v4596_v25 = vmul.f32 0.2, %v4415_v39  ;;  %v4418_v56 = vpop.f32.mrb[18].mxu0 }
0x10f8   : > { %v4419_v48 = vadd.f32 %v4418_v56, %v9710_v40  ;;  %v4420_v29 = vpop.f32.mrb[19].mxu0  ;;  %v4611_v24 = vsel %vm4579_vm7, %v4413_v23, %v4595_v31  ;;  %vm11276_vm7 = vmmov %vm11274_vm3 }
0x10f9   : > { %4663 = vrot.lane.b32.xlu1 %v4611_v24, %s7622_s28  ;;  %v4612_v33 = vsel %vm4580_vm15, %v4415_v39, %v4596_v25  ;;  %v4421_v16 = vadd.f32 %v4420_v29, %v9710_v40  ;;  %vm11277_vm15 = vmmov %vm11275_vm8 }
0x10fa   : > { %vm4587_vm1 = vcmp.ge.f32.partialorder %v4419_v48, 0.0  ;;  %v4603_v3 = vmul.f32 0.2, %v4419_v48  ;;  %4665 = vrot.lane.b32.xlu0 %v4612_v33, %s7622_s28 }
0x10fb   : > { %v4604_v20 = vmul.f32 0.2, %v4421_v16 }
0x10fc   : > { %v4619_v38 = vsel %vm4587_vm1, %v4419_v48, %v4603_v3 }
0x10fe   : > { %4679 = vrot.lane.b32.xlu0 %v4619_v38, %s7622_s28 }
0x111e   : > { %v4660_v12 = vpop.permute.xlu1 %4659 }
0x111f   : > { %4723 = vst.msk [vmem:[#allocation2] sm:$0xff] %vm11274_vm3, %v4660_v12  ;;  %v9725_v5 = vpop.permute.xlu0 %4661  ;;  %v4489_v21 = vpop.f32.mrb[24].mxu1 }
0x1120   : > { %v9729_v59 = vsel %vm11275_vm8, %v4660_v12, %v9725_v5  ;;  %v4490_v15 = vadd.f32 %v4489_v21, %v9706_v32  ;;  %v4491_v61 = vpop.f32.mrb[25].mxu1  ;;  %vm4588_vm8 = vcmp.ge.f32.partialorder %v4421_v16, 0.0 }
0x1121   : > { %v4492_v62 = vadd.f32 %v4491_v61, %v9706_v32  ;;  %v4620_v28 = vsel %vm4588_vm8, %v4421_v16, %v4604_v20  ;;  %vm11281_vm8 = vcmask 269312  }
0x1122   : > { %vm4581_vm6 = vcmp.ge.f32.partialorder %v4490_v15, 0.0  ;;  %v4597_v6 = vmul.f32 0.2, %v4490_v15 }
0x1123   : > { %v4676_v27 = vpop.permute.xlu0 %4675  ;;  %v9733_v30 = vpop.permute.xlu1 %4677  ;;  %v4598_v46 = vmul.f32 0.2, %v4492_v62  ;;  %vm4582_vm1 = vcmp.ge.f32.partialorder %v4492_v62, 0.0 }
0x1124   : > { %4732 = vst.msk [vmem:[#allocation2 + $0x48] sm:$0xff] %vm11276_vm7, %v4676_v27  ;;  %v9739_v4 = vsel %vm11277_vm15, %v4676_v27, %v9733_v30  ;;  %v4495_v45 = vpop.f32.mrb[26].mxu1  ;;  %v4613_v43 = vsel %vm4581_vm6, %v4490_v15, %v4597_v6 }
0x1125   : > { %v4496_v63 = vadd.f32 %v4495_v45, %v9710_v40  ;;  %v4497_v14 = vpop.f32.mrb[27].mxu1  ;;  %4667 = vrot.lane.b32.xlu1 %v4613_v43, %s7622_s28  ;;  %v4614_v7 = vsel %vm4582_vm1, %v4492_v62, %v4598_v46  ;;  %v7426_v55 = vpack.c.bf16 %v9739_v4, %v9729_v59 }
0x1126   : > { %v9743_v35 = vld [vmem:[#allocation2] sm:$0xff]  ;;  %v4498_v44 = vadd.f32 %v4497_v14, %v9710_v40 }
0x1127   : > { %v4757_v11 = vsel %vm8471_vm2, %v9743_v35, 0.0  ;;  %vm4589_vm3 = vcmp.ge.f32.partialorder %v4496_v63, 0.0  ;;  %v4605_v17 = vmul.f32 0.2, %v4496_v63  ;;  %7427 = vmatprep.subr.msk.bf16.mxu1 %vm8508_vm9, %v7426_v55 }
0x1128   : > { %4773 = vst [vmem:[#allocation3] sm:$0xff] %v4757_v11  ;;  %v4606_v13 = vmul.f32 0.2, %v4498_v44  ;;  %vm4590_vm6 = vcmp.ge.f32.partialorder %v4498_v44, 0.0 }
0x1129   : > { %v4621_v50 = vsel %vm4589_vm3, %v4496_v63, %v4605_v17  ;;  %4669 = vrot.lane.b32.xlu1 %v4614_v7, %s7622_s28 }
0x112a   : > { %4683 = vrot.lane.b32.xlu0 %v4621_v50, %s7622_s28  ;;  %v4622_v41 = vsel %vm4590_vm6, %v4498_v44, %v4606_v13  ;;  %vm11282_vm6 = vmmov %vm11281_vm8 }
0x112b   : > { %v4749_v60 = vld [vmem:[#allocation2 + $0x48] sm:$0xff] }
0x112c   : > { %v4765_v0 = vsel %vm8471_vm2, %v4749_v60, 0.0  ;;  %v7429_v2 = vpack.c.bf16 %v4749_v60, %v9743_v35 }
0x112d   : > { %4781 = vst [vmem:[#allocation3 + $0x40] sm:$0xff] %v4765_v0  ;;  %4681 = vrot.lane.b32.xlu1 %v4620_v28, %s7622_s28 }
0x112e   : > { %4685 = vrot.lane.b32.xlu0 %v4622_v41, %s7622_s28  ;;  %7430 = vmatpush1.bf16.msk.msra.mxu1 %vm8520_vm0, %v7429_v2 }
0x1146   : > { %v4566_v1 = vpop.f32.mrb[20].mxu0 }
0x1147   : > { %v4567_v23 = vadd.f32 %v4566_v1, %v9706_v32  ;;  %v4568_v10 = vpop.f32.mrb[21].mxu0 }
0x1148   : > { %v4569_v39 = vadd.f32 %v4568_v10, %v9706_v32 }
0x1149   : > { %vm4583_vm7 = vcmp.ge.f32.partialorder %v4567_v23, 0.0  ;;  %v4599_v31 = vmul.f32 0.2, %v4567_v23 }
0x114a   : > { %vm4584_vm15 = vcmp.ge.f32.partialorder %v4569_v39, 0.0  ;;  %v4600_v25 = vmul.f32 0.2, %v4569_v39  ;;  %v4572_v56 = vpop.f32.mrb[22].mxu0 }
0x114b   : > { %v4573_v48 = vadd.f32 %v4572_v56, %v9710_v40  ;;  %v4574_v29 = vpop.f32.mrb[23].mxu0  ;;  %v4615_v24 = vsel %vm4583_vm7, %v4567_v23, %v4599_v31  ;;  %vm11283_vm7 = vmmov %vm11282_vm6  ;;  %v11299_v56 = vlaneseq }
0x114c   : > { %v4575_v33 = vadd.f32 %v4574_v29, %v9710_v40  ;;  %4671 = vrot.lane.b32.xlu0 %v4615_v24, %s7622_s28  ;;  %v4616_v3 = vsel %vm4584_vm15, %v4569_v39, %v4600_v25  ;;  %vm11284_vm15 = vmmov %vm11282_vm6 }
0x114d   : > { %vm4591_vm1 = vcmp.ge.f32.partialorder %v4573_v48, 0.0  ;;  %v4607_v38 = vmul.f32 0.2, %v4573_v48  ;;  %4673 = vrot.lane.b32.xlu1 %v4616_v3, %s7622_s28  ;;  %v9950_v3 = vld [vmem:[%s10857_s15] sm:$0x3] }
0x114e   : > { %vm4592_vm3 = vcmp.ge.f32.partialorder %v4575_v33, 0.0  ;;  %v4608_v32 = vmul.f32 0.2, %v4575_v33 }
0x114f   : > { %v4623_v12 = vsel %vm4591_vm1, %v4573_v48, %v4607_v38  ;;  %vm11285_vm1 = vmmov %vm11282_vm6  ;;  %v9938_v48 = vshrl.u32 %v11299_v56, 7 }
0x1150   : > { %v4624_v21 = vsel %vm4592_vm3, %v4575_v33, %v4608_v32  ;;  %vm11287_vm3 = vmmov %vm11285_vm1 }
0x1151   : > { %4689 = vrot.lane.b32.xlu0 %v4624_v21, %s7622_s28  ;;  %4687 = vrot.lane.b32.xlu1 %v4623_v12, %s7622_s28  ;;  %v5991_v29 = vsub.s32 1, %v9938_v48 }
0x1153   : > { %v9953_v38 = vrot.slane %v9950_v3, %v5991_v29 }
0x1155   : > { %4843 = vrot.lane.b32.xlu0 %v4749_v60, %s7608_s22  ;;  %4825 = vrot.lane.b32.xlu1 %v9743_v35, %s7608_s22 }
0x1159   : > { %4963 = vrot.lane.b32.xlu0 %v4749_v60, %s7603_s30  ;;  %4945 = vrot.lane.b32.xlu1 %v9743_v35, %s7603_s30 }
0x115d   : > { %5099 = vrot.lane.b32.xlu0 %v4749_v60, %s7618_s2  ;;  %5081 = vrot.lane.b32.xlu1 %v9743_v35, %s7618_s2 }
0x1161   : > { %5235 = vrot.lane.b32.xlu0 %v4749_v60, %s7619_s21  ;;  %5217 = vrot.lane.b32.xlu1 %v9743_v35, %s7619_s21 }
0x1165   : > { %5355 = vrot.lane.b32.xlu0 %v4749_v60, %s7620_s26  ;;  %5337 = vrot.lane.b32.xlu1 %v9743_v35, %s7620_s26 }
0x1169   : > { %5491 = vrot.lane.b32.xlu0 %v4749_v60, %s7623_s1  ;;  %5473 = vrot.lane.b32.xlu1 %v9743_v35, %s7623_s1 }
0x116b   : > { %v4664_v40 = vpop.permute.xlu1 %4663 }
0x116c   : > { %v4692_v15 = vsel %vm11281_vm8, %v9725_v5, %v4664_v40  ;;  %v4666_v61 = vpop.permute.xlu0 %4665  ;;  %vm11288_vm8 = vmmov %vm11285_vm1 }
0x116d   : > { %5627 = vrot.lane.b32.xlu0 %v4749_v60, %s7624_s0  ;;  %5609 = vrot.lane.b32.xlu1 %v9743_v35, %s7624_s0  ;;  %4725 = vst [vmem:[#allocation2 + $0x10] sm:$0xff] %v4692_v15  ;;  %v9794_v62 = vsel %vm11282_vm6, %v4664_v40, %v4666_v61  ;;  %vm11289_vm6 = vmmov %vm11285_vm1 }
0x1170   : > { %v4680_v6 = vpop.permute.xlu0 %4679 }
0x1171   : > { %5747 = vrot.lane.b32.xlu0 %v4749_v60, %s7625_s16  ;;  %5729 = vrot.lane.b32.xlu1 %v9743_v35, %s7625_s16  ;;  %v9801_v27 = vsel %vm11283_vm7, %v9733_v30, %v4680_v6  ;;  %vm11290_vm7 = vnez %v11144_v53 }
0x1172   : > { %4734 = vst [vmem:[#allocation2 + $0x58] sm:$0xff] %v9801_v27  ;;  %v7435_v26 = vpack.c.bf16 %v9801_v27, %v4692_v15 }
0x1175   : > { %4827 = vrot.lane.b32.xlu1 %v9729_v59, %s7608_s22  ;;  %4829 = vrot.lane.b32.xlu0 %v4692_v15, %s7608_s22 }
0x1179   : > { %4947 = vrot.lane.b32.xlu1 %v9729_v59, %s7603_s30  ;;  %4949 = vrot.lane.b32.xlu0 %v4692_v15, %s7603_s30 }
0x117d   : > { %5083 = vrot.lane.b32.xlu1 %v9729_v59, %s7618_s2  ;;  %5085 = vrot.lane.b32.xlu0 %v4692_v15, %s7618_s2 }
0x1181   : > { %5219 = vrot.lane.b32.xlu1 %v9729_v59, %s7619_s21  ;;  %5221 = vrot.lane.b32.xlu0 %v4692_v15, %s7619_s21 }
0x1185   : > { %5339 = vrot.lane.b32.xlu1 %v9729_v59, %s7620_s26  ;;  %5341 = vrot.lane.b32.xlu0 %v4692_v15, %s7620_s26 }
0x1189   : > { %5475 = vrot.lane.b32.xlu1 %v9729_v59, %s7623_s1  ;;  %5477 = vrot.lane.b32.xlu0 %v4692_v15, %s7623_s1 }
0x118d   : > { %5611 = vrot.lane.b32.xlu1 %v9729_v59, %s7624_s0  ;;  %5613 = vrot.lane.b32.xlu0 %v4692_v15, %s7624_s0 }
0x1191   : > { %5731 = vrot.lane.b32.xlu1 %v9729_v59, %s7625_s16  ;;  %5733 = vrot.lane.b32.xlu0 %v4692_v15, %s7625_s16 }
0x1195   : > { %4845 = vrot.lane.b32.xlu1 %v9739_v4, %s7608_s22 }
0x1197   : > { %v4668_v5 = vpop.permute.xlu1 %4667 }
0x1198   : > { %v4694_v30 = vsel %vm11284_vm15, %v4666_v61, %v4668_v5  ;;  %vm11293_vm15 = vmmov %vm11285_vm1 }
0x1199   : > { %4965 = vrot.lane.b32.xlu1 %v9739_v4, %s7603_s30  ;;  %v4761_v16 = vsel %vm8581_vm13, %v4694_v30, 0.0  ;;  %4833 = vrot.lane.b32.xlu0 %v4694_v30, %s7608_s22 }
0x119a   : > { %4777 = vst [vmem:[#allocation3 + $0x20] sm:$0xff] %v4761_v16 }
0x119b   : > { %v4670_v46 = vpop.permute.xlu1 %4669 }
0x119c   : > { %v4684_v45 = vpop.permute.xlu0 %4683  ;;  %v9837_v59 = vsel %vm11285_vm1, %v4668_v5, %v4670_v46 }
0x119d   : > { %5101 = vrot.lane.b32.xlu1 %v9739_v4, %s7618_s2  ;;  %v4762_v63 = vsel %vm9093_vm12, %v9837_v59, 0.0  ;;  %4953 = vrot.lane.b32.xlu0 %v4694_v30, %s7603_s30 }
0x119e   : > { %4778 = vst [vmem:[#allocation3 + $0x28] sm:$0xff] %v4762_v63 }
0x119f   : > { %v4682_v14 = vpop.permute.xlu1 %4681 }
0x11a0   : > { %v4686_v35 = vpop.permute.xlu0 %4685  ;;  %v9846_v44 = vsel %vm11287_vm3, %v4680_v6, %v4682_v14  ;;  %v9849_v11 = vsel %vm11288_vm8, %v4682_v14, %v4684_v45  ;;  %vm11294_vm3 = vnez %v11165_v22  ;;  %vm11295_vm8 = vmmov %vm11285_vm1 }
0x11a1   : > { %5237 = vrot.lane.b32.xlu1 %v9739_v4, %s7619_s21  ;;  %v9854_v17 = vsel %vm11289_vm6, %v4684_v45, %v4686_v35  ;;  %v4769_v20 = vsel %vm8581_vm13, %v9849_v11, 0.0  ;;  %5089 = vrot.lane.b32.xlu0 %v4694_v30, %s7618_s2  ;;  %v7432_v55 = vpack.c.bf16 %v9846_v44, %v9794_v62  ;;  %vm11291_vm13 = vnez %v11146_v58  ;;  %vm11296_vm6 = vmmov %vm11285_vm1 }
0x11a2   : > { %v4770_v7 = vsel %vm9093_vm12, %v9854_v17, 0.0  ;;  %4785 = vst [vmem:[#allocation3 + $0x60] sm:$0xff] %v4769_v20  ;;  %vm11292_vm12 = vmmov %vm11285_vm1  ;;  %v11306_v20 = vld [vmem:[#allocation25_spill] sm:$0xff] }
0x11a3   : > { %4786 = vst [vmem:[#allocation3 + $0x68] sm:$0xff] %v4770_v7  ;;  %7433 = vmatprep.subr.msk.bf16.mxu0 %vm11290_vm7, %v7432_v55 }
0x11a4   : > { %7436 = vmatpush1.bf16.msk.msra.mxu0 %vm11291_vm13, %v7435_v26 }
0x11a5   : > { %5357 = vrot.lane.b32.xlu1 %v9739_v4, %s7620_s26  ;;  %5225 = vrot.lane.b32.xlu0 %v4694_v30, %s7619_s21 }
0x11a9   : > { %5493 = vrot.lane.b32.xlu1 %v9739_v4, %s7623_s1  ;;  %5345 = vrot.lane.b32.xlu0 %v4694_v30, %s7620_s26 }
0x11aa   : > { %v5842_v8 = vld [vmem:[#allocation3 + $0x68] sm:$0xff] }
0x11ad   : > { %5629 = vrot.lane.b32.xlu1 %v9739_v4, %s7624_s0  ;;  %5481 = vrot.lane.b32.xlu0 %v4694_v30, %s7623_s1 }
0x11b1   : > { %5749 = vrot.lane.b32.xlu1 %v9739_v4, %s7625_s16  ;;  %5617 = vrot.lane.b32.xlu0 %v4694_v30, %s7624_s0 }
0x11b5   : > { %4831 = vrot.lane.b32.xlu1 %v9794_v62, %s7608_s22  ;;  %5737 = vrot.lane.b32.xlu0 %v4694_v30, %s7625_s16 }
0x11b9   : > { %4951 = vrot.lane.b32.xlu1 %v9794_v62, %s7603_s30  ;;  %4847 = vrot.lane.b32.xlu0 %v9801_v27, %s7608_s22 }
0x11bd   : > { %5087 = vrot.lane.b32.xlu1 %v9794_v62, %s7618_s2  ;;  %4967 = vrot.lane.b32.xlu0 %v9801_v27, %s7603_s30 }
0x11be   : > { %v4672_v4 = vpop.permute.xlu0 %4671 }
0x11bf   : > { %v9894_v13 = vsel %vm11292_vm12, %v4670_v46, %v4672_v4  ;;  %v4674_v50 = vpop.permute.xlu1 %4673  ;;  %vm11297_vm12 = vmmov %vm11285_vm1 }
0x11c0   : > { %v4763_v60 = vsel %vm8603_vm11, %v9894_v13, 0.0  ;;  %v9900_v0 = vsel %vm11293_vm15, %v4672_v4, %v4674_v50  ;;  %4731 = vst.msk [vmem:[#allocation2 + $0x40] sm:$0xff] %vm11285_vm1, %v4674_v50  ;;  %vm11302_vm1 = vcmask 1039360  }
0x11c1   : > { %4779 = vst [vmem:[#allocation3 + $0x30] sm:$0xff] %v4763_v60  ;;  %v4764_v28 = vsel %vm11294_vm3, %v9900_v0, 0.0  ;;  %5223 = vrot.lane.b32.xlu1 %v9794_v62, %s7619_s21  ;;  %5103 = vrot.lane.b32.xlu0 %v9801_v27, %s7618_s2 }
0x11c2   : > { %4780 = vst [vmem:[#allocation3 + $0x38] sm:$0xff] %v4764_v28 }
0x11c3   : > { %v4690_v41 = vpop.permute.xlu0 %4689  ;;  %v4688_v2 = vpop.permute.xlu1 %4687 }
0x11c4   : > { %4740 = vst.msk [vmem:[#allocation2 + $0x88] sm:$0xff] %vm11295_vm8, %v4690_v41  ;;  %v9912_v1 = vsel %vm11296_vm6, %v4686_v35, %v4688_v2  ;;  %v9915_v23 = vsel %vm11297_vm12, %v4688_v2, %v4690_v41  ;;  %vm11304_vm8 = vcmask 1031168   ;;  %vm11307_vm12 = vnez %v11306_v20 }
0x11c5   : > { %11298 = vst [vmem:[#allocation34_spill] sm:$0xff] %v9915_v23  ;;  %4738 = vst [vmem:[#allocation2 + $0x78] sm:$0xff] %v9912_v1  ;;  %v4771_v10 = vsel %vm8603_vm11, %v9912_v1, 0.0  ;;  %v4772_v39 = vsel %vm11294_vm3, %v9915_v23, 0.0  ;;  %5343 = vrot.lane.b32.xlu1 %v9794_v62, %s7620_s26  ;;  %5239 = vrot.lane.b32.xlu0 %v9801_v27, %s7619_s21  ;;  %vm11300_vm11 = vcmask 130048  }
0x11c6   : > { %4739 = vst [vmem:[#allocation2 + $0x80] sm:$0xff] %v9915_v23  ;;  %4787 = vst [vmem:[#allocation3 + $0x70] sm:$0xff] %v4771_v10  ;;  %6434 = vmatprep.mubr.msk.f32.mxu1 %vm11300_vm11, %v9953_v38 }
0x11c7   : > { %4788 = vst [vmem:[#allocation3 + $0x78] sm:$0xff] %v4772_v39  ;;  %v9929_v31 = vpop.permute.xlu0 %4843  ;;  %v4826_v25 = vpop.permute.xlu1 %4825  ;;  %vm11301_vm15 = vmmov %vm11300_vm11  ;;  %vm11308_vm11 = vcmask 785408  }
0x11c8   : > { %6435 = vmatprep.mubr.msk.f32.mxu0 %vm11301_vm15, %v9953_v38  ;;  %vm11303_vm3 = vmmov %vm11302_vm1 }
0x11c9   : > { %5479 = vrot.lane.b32.xlu1 %v9794_v62, %s7623_s1  ;;  %5359 = vrot.lane.b32.xlu0 %v9801_v27, %s7620_s26  ;;  %vm11305_vm6 = vmmov %vm11304_vm8 }
0x11ca   : > { %vm11309_vm15 = vmmov %vm11308_vm11 }
0x11cb   : > { %v9935_v36 = vpop.permute.xlu0 %4963  ;;  %v4946_v22 = vpop.permute.xlu1 %4945 }
0x11cd   : > { %5615 = vrot.lane.b32.xlu1 %v9794_v62, %s7624_s0  ;;  %5495 = vrot.lane.b32.xlu0 %v9801_v27, %s7623_s1 }
0x11cf   : > { %v9945_v24 = vpop.permute.xlu0 %5099  ;;  %v5082_v33 = vpop.permute.xlu1 %5081 }
0x11d1   : > { %5735 = vrot.lane.b32.xlu1 %v9794_v62, %s7625_s16  ;;  %5631 = vrot.lane.b32.xlu0 %v9801_v27, %s7624_s0 }
0x11d3   : > { %v9963_v32 = vpop.permute.xlu0 %5235  ;;  %v5218_v12 = vpop.permute.xlu1 %5217 }
0x11d5   : > { %4835 = vrot.lane.b32.xlu1 %v9837_v59, %s7608_s22  ;;  %5751 = vrot.lane.b32.xlu0 %v9801_v27, %s7625_s16 }
0x11d7   : > { %v9969_v21 = vpop.permute.xlu0 %5355  ;;  %v5338_v40 = vpop.permute.xlu1 %5337 }
0x11d9   : > { %4955 = vrot.lane.b32.xlu1 %v9837_v59, %s7603_s30  ;;  %4851 = vrot.lane.b32.xlu0 %v9849_v11, %s7608_s22 }
0x11db   : > { %v9975_v15 = vpop.permute.xlu0 %5491  ;;  %v5474_v61 = vpop.permute.xlu1 %5473 }
0x11dd   : > { %5091 = vrot.lane.b32.xlu1 %v9837_v59, %s7618_s2  ;;  %4971 = vrot.lane.b32.xlu0 %v9849_v11, %s7603_s30 }
0x11df   : > { %v9981_v62 = vpop.permute.xlu0 %5627  ;;  %v5610_v6 = vpop.permute.xlu1 %5609 }
0x11e1   : > { %5227 = vrot.lane.b32.xlu1 %v9837_v59, %s7619_s21  ;;  %5107 = vrot.lane.b32.xlu0 %v9849_v11, %s7618_s2 }
0x11e3   : > { %v9987_v27 = vpop.permute.xlu0 %5747  ;;  %v5730_v5 = vpop.permute.xlu1 %5729 }
0x11e5   : > { %5347 = vrot.lane.b32.xlu1 %v9837_v59, %s7620_s26  ;;  %5243 = vrot.lane.b32.xlu0 %v9849_v11, %s7619_s21 }
0x11e7   : > { %v4828_v30 = vpop.permute.xlu1 %4827  ;;  %v9993_v16 = vpop.permute.xlu0 %4829 }
0x11e8   : > { %v9996_v46 = vsel %vm11302_vm1, %v4826_v25, %v4828_v30  ;;  %v10000_v45 = vsel %vm11303_vm3, %v4828_v30, %v9993_v16  ;;  %vm11310_vm1 = vcmask 777216  }
0x11e9   : > { %4893 = vst [vmem:[#allocation3 + $0x80] sm:$0xff] %v9996_v46  ;;  %5483 = vrot.lane.b32.xlu1 %v9837_v59, %s7623_s1  ;;  %5363 = vrot.lane.b32.xlu0 %v9849_v11, %s7620_s26  ;;  %vm11311_vm3 = vmmov %vm11310_vm1 }
0x11eb   : > { %v4948_v43 = vpop.permute.xlu1 %4947  ;;  %v10007_v63 = vpop.permute.xlu0 %4949 }
0x11ec   : > { %v10010_v14 = vsel %vm11304_vm8, %v4946_v22, %v4948_v43  ;;  %v10014_v35 = vsel %vm11305_vm6, %v4948_v43, %v10007_v63  ;;  %vm11312_vm8 = vcmask 769024  }
0x11ed   : > { %v5013_v7 = vsel %vm11307_vm12, %v10010_v14, 0.0  ;;  %5619 = vrot.lane.b32.xlu1 %v9837_v59, %s7624_s0  ;;  %5499 = vrot.lane.b32.xlu0 %v9849_v11, %s7623_s1  ;;  %vm11313_vm6 = vmmov %vm11312_vm8 }
0x11ee   : > { %5029 = vst [vmem:[#allocation3 + $0x100] sm:$0xff] %v5013_v7 }
0x11ef   : > { %v5084_v55 = vpop.permute.xlu1 %5083  ;;  %v10023_v26 = vpop.permute.xlu0 %5085 }
0x11f0   : > { %v10026_v4 = vsel %vm11308_vm11, %v5082_v33, %v5084_v55  ;;  %v10030_v50 = vsel %vm11309_vm15, %v5084_v55, %v10023_v26  ;;  %vm11314_vm11 = vcmask 523264  }
0x11f1   : > { %v5149_v60 = vsel %vm8471_vm2, %v10026_v4, 0.0  ;;  %5739 = vrot.lane.b32.xlu1 %v9837_v59, %s7625_s16  ;;  %5635 = vrot.lane.b32.xlu0 %v9849_v11, %s7624_s0  ;;  %vm11315_vm15 = vmmov %vm11314_vm11 }
0x11f2   : > { %5165 = vst [vmem:[#allocation3 + $0x180] sm:$0xff] %v5149_v60 }
0x11f3   : > { %v5220_v28 = vpop.permute.xlu1 %5219  ;;  %v10039_v41 = vpop.permute.xlu0 %5221 }
0x11f4   : > { %v10042_v2 = vsel %vm11310_vm1, %v5218_v12, %v5220_v28  ;;  %v10046_v10 = vsel %vm11311_vm3, %v5220_v28, %v10039_v41  ;;  %v10075_v12 = vld [vmem:[#allocation2 + $0x40] sm:$0xff]  ;;  %vm11316_vm1 = vcmask 515072  }
0x11f5   : > { %5285 = vst [vmem:[#allocation3 + $0x200] sm:$0xff] %v10042_v2  ;;  %4849 = vrot.lane.b32.xlu1 %v9846_v44, %s7608_s22  ;;  %5755 = vrot.lane.b32.xlu0 %v9849_v11, %s7625_s16  ;;  %vm11317_vm3 = vmmov %vm11316_vm1 }
0x11f7   : > { %v5340_v59 = vpop.permute.xlu1 %5339  ;;  %v10053_v39 = vpop.permute.xlu0 %5341 }
0x11f8   : > { %v10056_v25 = vsel %vm11312_vm8, %v5338_v40, %v5340_v59  ;;  %v10060_v22 = vsel %vm11313_vm6, %v5340_v59, %v10053_v39  ;;  %vm11318_vm8 = vcmask 506880  }
0x11f9   : > { %4969 = vrot.lane.b32.xlu1 %v9846_v44, %s7603_s30  ;;  %4837 = vrot.lane.b32.xlu0 %v9894_v13, %s7608_s22  ;;  %vm11319_vm6 = vmmov %vm11318_vm8 }
0x11fb   : > { %v5476_v56 = vpop.permute.xlu1 %5475  ;;  %v10066_v29 = vpop.permute.xlu0 %5477 }
0x11fc   : > { %v10069_v11 = vsel %vm11314_vm11, %v5474_v61, %v5476_v56  ;;  %v10073_v33 = vsel %vm11315_vm15, %v5476_v56, %v10066_v29  ;;  %vm11320_vm11 = vcmask 1039360   ;;  %vm11321_vm15 = vcmask 1031168  }
0x11fd   : > { %5105 = vrot.lane.b32.xlu1 %v9846_v44, %s7618_s2  ;;  %4841 = vrot.lane.b32.xlu0 %v10075_v12, %s7608_s22 }
0x11ff   : > { %v5612_v40 = vpop.permute.xlu1 %5611  ;;  %v10081_v30 = vpop.permute.xlu0 %5613 }
0x1200   : > { %v10084_v43 = vsel %vm11316_vm1, %v5610_v6, %v5612_v40  ;;  %v10088_v61 = vsel %vm11317_vm3, %v5612_v40, %v10081_v30  ;;  %vm11322_vm1 = vcmask 785408   ;;  %vm11325_vm3 = vcmask 523264  }
0x1201   : > { %5241 = vrot.lane.b32.xlu1 %v9846_v44, %s7619_s21  ;;  %4957 = vrot.lane.b32.xlu0 %v9894_v13, %s7603_s30 }
0x1203   : > { %v5732_v7 = vpop.permute.xlu1 %5731  ;;  %v10094_v55 = vpop.permute.xlu0 %5733 }
0x1204   : > { %v10097_v60 = vsel %vm11318_vm8, %v5730_v5, %v5732_v7  ;;  %v10101_v6 = vsel %vm11319_vm6, %v5732_v7, %v10094_v55  ;;  %vm11326_vm8 = vcmask 515072  }
0x1205   : > { %5361 = vrot.lane.b32.xlu1 %v9846_v44, %s7620_s26  ;;  %4961 = vrot.lane.b32.xlu0 %v10075_v12, %s7603_s30 }
0x1207   : > { %v4846_v28 = vpop.permute.xlu1 %4845 }
0x1208   : > { %v10109_v59 = vsel %vm11320_vm11, %v9929_v31, %v4846_v28 }
0x1209   : > { %4901 = vst [vmem:[#allocation3 + $0xc0] sm:$0xff] %v10109_v59  ;;  %5497 = vrot.lane.b32.xlu1 %v9846_v44, %s7623_s1  ;;  %5093 = vrot.lane.b32.xlu0 %v9894_v13, %s7618_s2 }
0x120b   : > { %v4966_v5 = vpop.permute.xlu1 %4965  ;;  %v10116_v56 = vpop.permute.xlu0 %4833 }
0x120c   : > { %v10120_v40 = vsel %vm11321_vm15, %v9935_v36, %v4966_v5  ;;  %vm11328_vm15 = vmmov %vm11320_vm11 }
0x120d   : > { %v5021_v31 = vsel %vm11307_vm12, %v10120_v40, 0.0  ;;  %5633 = vrot.lane.b32.xlu1 %v9846_v44, %s7624_s0  ;;  %5097 = vrot.lane.b32.xlu0 %v10075_v12, %s7618_s2  ;;  %vm11323_vm12 = vcmask 777216  }
0x120e   : > { %5037 = vst [vmem:[#allocation3 + $0x140] sm:$0xff] %v5021_v31 }
0x120f   : > { %v5102_v7 = vpop.permute.xlu1 %5101  ;;  %v10129_v57 = vpop.permute.xlu0 %4953 }
0x1210   : > { %v10133_v51 = vsel %vm11322_vm1, %v9945_v24, %v5102_v7  ;;  %vm11330_vm1 = vcmask 1031168  }
0x1211   : > { %v5157_v36 = vsel %vm8471_vm2, %v10133_v51, 0.0  ;;  %5753 = vrot.lane.b32.xlu1 %v9846_v44, %s7625_s16  ;;  %5229 = vrot.lane.b32.xlu0 %v9894_v13, %s7619_s21  ;;  %vm11324_vm2 = vcmask 769024  }
0x1212   : > { %5173 = vst [vmem:[#allocation3 + $0x1c0] sm:$0xff] %v5157_v36 }
0x1213   : > { %v10142_v20 = vpop.permute.xlu1 %5237  ;;  %v10144_v31 = vpop.permute.xlu0 %5089 }
0x1214   : > { %v10149_v24 = vsel %vm11323_vm12, %v9963_v32, %v10142_v20  ;;  %vm11332_vm12 = vmmov %vm11330_vm1 }
0x1215   : > { %4853 = vrot.lane.b32.xlu1 %v9854_v17, %s7608_s22  ;;  %5233 = vrot.lane.b32.xlu0 %v10075_v12, %s7619_s21 }
0x1217   : > { %v10155_v42 = vpop.permute.xlu1 %5357  ;;  %v10157_v44 = vpop.permute.xlu0 %5225 }
0x1218   : > { %v10162_v36 = vsel %vm11324_vm2, %v9969_v21, %v10155_v42  ;;  %vm11334_vm2 = vmmov %vm11320_vm11 }
0x1219   : > { %4973 = vrot.lane.b32.xlu1 %v9854_v17, %s7603_s30  ;;  %5349 = vrot.lane.b32.xlu0 %v9894_v13, %s7620_s26 }
0x121b   : > { %v10168_v32 = vpop.permute.xlu1 %5493  ;;  %v10170_v19 = vpop.permute.xlu0 %5345 }
0x121c   : > { %v10175_v47 = vsel %vm11325_vm3, %v9975_v15, %v10168_v32  ;;  %vm11335_vm3 = vcmask 785408  }
0x121d   : > { %5109 = vrot.lane.b32.xlu1 %v9854_v17, %s7618_s2  ;;  %5353 = vrot.lane.b32.xlu0 %v10075_v12, %s7620_s26 }
0x121f   : > { %v10181_v21 = vpop.permute.xlu1 %5629  ;;  %v10183_v9 = vpop.permute.xlu0 %5481 }
0x1220   : > { %v10188_v49 = vsel %vm11326_vm8, %v9981_v62, %v10181_v21  ;;  %vm11336_vm8 = vmmov %vm11335_vm3 }
0x1221   : > { %5245 = vrot.lane.b32.xlu1 %v9854_v17, %s7619_s21  ;;  %5485 = vrot.lane.b32.xlu0 %v9894_v13, %s7623_s1 }
0x1223   : > { %v10194_v15 = vpop.permute.xlu1 %5749  ;;  %v10196_v52 = vpop.permute.xlu0 %5617 }
0x1224   : > { %v10201_v18 = vsel %vm11319_vm6, %v9987_v27, %v10194_v15  ;;  %vm11337_vm6 = vmmov %vm11330_vm1 }
0x1225   : > { %5365 = vrot.lane.b32.xlu1 %v9854_v17, %s7620_s26  ;;  %5489 = vrot.lane.b32.xlu0 %v10075_v12, %s7623_s1 }
0x1227   : > { %v4832_v62 = vpop.permute.xlu1 %4831  ;;  %v10207_v58 = vpop.permute.xlu0 %5737 }
0x1228   : > { %v10211_v53 = vsel %vm11320_vm11, %v9993_v16, %v4832_v62  ;;  %v10215_v54 = vsel %vm11328_vm15, %v4832_v62, %v10116_v56  ;;  %vm11338_vm11 = vcmask 777216  }
0x1229   : > { %11327 = vst [vmem:[#allocation35_spill] sm:$0xff] %v10211_v53  ;;  %11329 = vst [vmem:[#allocation19_spill] sm:$0xff] %v10215_v54  ;;  %5501 = vrot.lane.b32.xlu1 %v9854_v17, %s7623_s1  ;;  %5621 = vrot.lane.b32.xlu0 %v9894_v13, %s7624_s0  ;;  %v7036_v54 = vpack.c.bf16 %v10109_v59, %v9996_v46 }
0x122a   : > { %vm11339_vm15 = vmmov %vm11338_vm11 }
0x122b   : > { %v4952_v27 = vpop.permute.xlu1 %4951  ;;  %v10221_v34 = vpop.permute.xlu0 %4847 }
0x122c   : > { %v10225_v23 = vsel %vm11330_vm1, %v10007_v63, %v4952_v27  ;;  %v10229_v16 = vsel %vm11332_vm12, %v4952_v27, %v10129_v57  ;;  %v4870_v62 = vsel %vm11334_vm2, %v4846_v28, %v10221_v34  ;;  %vm11340_vm1 = vmmov %vm11335_vm3 }
0x122d   : > { %11331 = vst [vmem:[#allocation36_spill] sm:$0xff] %v10225_v23  ;;  %11333 = vst [vmem:[#allocation29_spill] sm:$0xff] %v10229_v16  ;;  %5637 = vrot.lane.b32.xlu1 %v9854_v17, %s7624_s0  ;;  %5625 = vrot.lane.b32.xlu0 %v10075_v12, %s7624_s0  ;;  %v7034_v53 = vpack.c.bf16 %v4870_v62, %v10000_v45 }
0x122f   : > { %v5088_v63 = vpop.permute.xlu1 %5087  ;;  %v10240_v23 = vpop.permute.xlu0 %4967  ;;  %7035 = vmatprep.subr.bf16.mxu1 %v7034_v53 }
0x1230   : > { %v10244_v27 = vsel %vm11335_vm3, %v10023_v26, %v5088_v63  ;;  %v10248_v28 = vsel %vm11336_vm8, %v5088_v63, %v10144_v31  ;;  %v4990_v16 = vsel %vm11337_vm6, %v4966_v5, %v10240_v23  ;;  %7037 = vmatpush1.bf16.msra.mxu1 %v7036_v54  ;;  %vm11345_vm3 = vcmask 769024   ;;  %vm11347_vm6 = vmmov %vm11338_vm11 }
0x1231   : > { %5757 = vrot.lane.b32.xlu1 %v9854_v17, %s7625_s16  ;;  %5741 = vrot.lane.b32.xlu0 %v9894_v13, %s7625_s16  ;;  %v7438_v59 = vpack.c.bf16 %v4990_v16, %v10014_v35  ;;  %v11341_v17 = vld [vmem:[#allocation26_spill] sm:$0xff]  ;;  %v7441_v13 = vpack.c.bf16 %v10120_v40, %v10010_v14  ;;  %vm11346_vm8 = vmmov %vm11345_vm3  ;;  %v7447_v40 = vpack.c.bf16 %v10133_v51, %v10026_v4 }
0x1232   : > { %vm11342_vm12 = vnez %v11341_v17  ;;  %v10317_v51 = vld [vmem:[#allocation2 + $0x88] sm:$0xff]  ;;  %v7048_v4 = vpack.c.bf16 %v10149_v24, %v10042_v2 }
0x1233   : > { %v5224_v46 = vpop.permute.xlu1 %5223  ;;  %v10256_v53 = vpop.permute.xlu0 %5103  ;;  %7439 = vmatprep.subr.msk.bf16.mxu1 %vm11342_vm12, %v7438_v59 }
0x1234   : > { %v10260_v45 = vsel %vm11338_vm11, %v10039_v41, %v5224_v46  ;;  %v10264_v26 = vsel %vm11339_vm15, %v5224_v46, %v10157_v44  ;;  %v5126_v54 = vsel %vm11340_vm1, %v5102_v7, %v10256_v53  ;;  %v11343_v41 = vld [vmem:[#allocation27_spill] sm:$0xff]  ;;  %vm11348_vm11 = vcmask 523264   ;;  %vm11350_vm1 = vmmov %vm11345_vm3 }
0x1235   : > { %4839 = vrot.lane.b32.xlu1 %v9900_v0, %s7608_s22  ;;  %5745 = vrot.lane.b32.xlu0 %v10075_v12, %s7625_s16  ;;  %vm11344_vm2 = vnez %v11343_v41  ;;  %v7444_v14 = vpack.c.bf16 %v5126_v54, %v10030_v50  ;;  %vm11349_vm15 = vmmov %vm11348_vm11 }
0x1236   : > { %7442 = vmatpush1.bf16.msk.msra.mxu1 %vm11344_vm2, %v7441_v13 }
0x1237   : > { %v5344_v5 = vpop.permute.xlu1 %5343  ;;  %v10279_v62 = vpop.permute.xlu0 %5239  ;;  %7445 = vmatprep.subr.msk.bf16.mxu1 %vm8508_vm9, %v7444_v14 }
0x1238   : > { %v10283_v35 = vsel %vm11345_vm3, %v10053_v39, %v5344_v5  ;;  %v10287_v7 = vsel %vm11346_vm8, %v5344_v5, %v10170_v19  ;;  %v5262_v12 = vsel %vm11347_vm6, %v10142_v20, %v10279_v62  ;;  %vm11351_vm3 = vcmask 515072   ;;  %vm11353_vm6 = vmmov %vm11348_vm11 }
0x1239   : > { %4959 = vrot.lane.b32.xlu1 %v9900_v0, %s7603_s30  ;;  %4855 = vrot.lane.b32.xlu0 %v9912_v1, %s7608_s22  ;;  %v7046_v39 = vpack.c.bf16 %v5262_v12, %v10046_v10  ;;  %vm11352_vm8 = vmmov %vm11351_vm3 }
0x123a   : > { %7448 = vmatpush1.bf16.msk.msra.mxu1 %vm8520_vm0, %v7447_v40 }
0x123b   : > { %v5480_v20 = vpop.permute.xlu1 %5479  ;;  %v10304_v16 = vpop.permute.xlu0 %5359  ;;  %7047 = vmatprep.subr.bf16.mxu1 %v7046_v39  ;;  %v7465_v39 = vpack.c.bf16 %v10201_v18, %v10097_v60  ;;  %v5833_v18 = vld [vmem:[#allocation3 + $0x20] sm:$0xff] }
0x123c   : > { %v10308_v50 = vsel %vm11348_vm11, %v10066_v29, %v5480_v20  ;;  %v10312_v63 = vsel %vm11349_vm15, %v5480_v20, %v10183_v9  ;;  %v5382_v10 = vsel %vm11350_vm1, %v10155_v42, %v10304_v16  ;;  %vm11354_vm11 = vcmask 506880   ;;  %vm11356_vm1 = vmmov %vm11351_vm3 }
0x123d   : > { %5095 = vrot.lane.b32.xlu1 %v9900_v0, %s7618_s2  ;;  %4859 = vrot.lane.b32.xlu0 %v10317_v51, %s7608_s22  ;;  %v7450_v24 = vpack.c.bf16 %v5382_v10, %v10060_v22  ;;  %vm11355_vm15 = vmmov %vm11354_vm11 }
0x123e   : > { %7049 = vmatpush1.bf16.msra.mxu1 %v7048_v4 }
0x123f   : > { %v5616_v29 = vpop.permute.xlu1 %5615  ;;  %v10325_v46 = vpop.permute.xlu0 %5495  ;;  %7451 = vmatprep.subr.msk.bf16.mxu1 %vm11342_vm12, %v7450_v24 }
0x1240   : > { %v10329_v54 = vsel %vm11351_vm3, %v10081_v30, %v5616_v29  ;;  %v10333_v42 = vsel %vm11352_vm8, %v5616_v29, %v10196_v52  ;;  %v5518_v2 = vsel %vm11353_vm6, %v10168_v32, %v10325_v46  ;;  %v7453_v30 = vpack.c.bf16 %v10162_v36, %v10056_v25  ;;  %vm11358_vm3 = vmmov %vm11354_vm11 }
0x1241   : > { %5231 = vrot.lane.b32.xlu1 %v9900_v0, %s7619_s21  ;;  %4975 = vrot.lane.b32.xlu0 %v9912_v1, %s7603_s30  ;;  %v7456_v25 = vpack.c.bf16 %v5518_v2, %v10073_v33  ;;  %v7459_v36 = vpack.c.bf16 %v10175_v47, %v10069_v11  ;;  %v7060_v47 = vpack.c.bf16 %v10188_v49, %v10084_v43  ;;  %v5982_v11 = vsub.s32 0, %v9938_v48  ;;  %v5834_v43 = vld [vmem:[#allocation3 + $0x28] sm:$0xff] }
0x1242   : > { %7454 = vmatpush1.bf16.msk.msra.mxu1 %vm11344_vm2, %v7453_v30  ;;  %v7102_v14 = vpack.c.bf16 %v5842_v8, %v5834_v43  ;;  %vm11362_vm8 = vcmask 777216   ;;  %vm11364_vm6 = vcmask 769024   ;;  %v11370_v8 = vld [vmem:[#allocation35_spill] sm:$0xff] }
0x1243   : > { %v5736_v59 = vpop.permute.xlu1 %5735  ;;  %v10349_v13 = vpop.permute.xlu0 %5631  ;;  %7457 = vmatprep.subr.msk.bf16.mxu1 %vm8508_vm9, %v7456_v25  ;;  %vm11357_vm9 = vcmask 1039360  }
0x1244   : > { %v10353_v22 = vsel %vm11354_vm11, %v10094_v55, %v5736_v59  ;;  %v10357_v32 = vsel %vm11355_vm15, %v5736_v59, %v10207_v58  ;;  %v5654_v5 = vsel %vm11356_vm1, %v10181_v21, %v10349_v13  ;;  %vm11365_vm11 = vcmask 523264   ;;  %vm11366_vm15 = vmmov %vm11356_vm1 }
0x1245   : > { %5351 = vrot.lane.b32.xlu1 %v9900_v0, %s7620_s26  ;;  %4979 = vrot.lane.b32.xlu0 %v10317_v51, %s7603_s30  ;;  %v7058_v55 = vpack.c.bf16 %v5654_v5, %v10088_v61  ;;  %vm11367_vm1 = vmmov %vm11358_vm3 }
0x1246   : > { %7460 = vmatpush1.bf16.msk.msra.mxu1 %vm8520_vm0, %v7459_v36  ;;  %vm11359_vm0 = vcmask 1031168  }
0x1247   : > { %v10374_v21 = vpop.permute.xlu1 %4835  ;;  %v10376_v33 = vpop.permute.xlu0 %5751  ;;  %7059 = vmatprep.subr.bf16.mxu1 %v7058_v55 }
0x1248   : > { %v10381_v37 = vsel %vm11357_vm9, %v10116_v56, %v10374_v21  ;;  %v5774_v61 = vsel %vm11358_vm3, %v10194_v15, %v10376_v33  ;;  %vm11368_vm3 = vmmov %vm11357_vm9 }
0x1249   : > { %5487 = vrot.lane.b32.xlu1 %v9900_v0, %s7623_s1  ;;  %5111 = vrot.lane.b32.xlu0 %v9912_v1, %s7618_s2  ;;  %v7462_v49 = vpack.c.bf16 %v5774_v61, %v10101_v6  ;;  %v5841_v6 = vld [vmem:[#allocation3 + $0x60] sm:$0xff]  ;;  %v5588_v61 = vld [vmem:[#allocation2 + $0x78] sm:$0xff] }
0x124a   : > { %7061 = vmatpush1.bf16.msra.mxu1 %v7060_v47 }
0x124b   : > { %v10393_v12 = vpop.permute.xlu1 %4955  ;;  %v10395_v56 = vpop.permute.xlu0 %4851  ;;  %7463 = vmatprep.subr.msk.bf16.mxu1 %vm11342_vm12, %v7462_v49  ;;  %vm11360_vm12 = vcmask 785408  }
0x124c   : > { %v10400_v15 = vsel %vm11359_vm0, %v10129_v57, %v10393_v12  ;;  %v10416_v57 = vrot.slane %v9950_v3, %v5982_v11  ;;  %v7104_v3 = vpack.c.bf16 %v5841_v6, %v5833_v18 }
0x124d   : > { %5623 = vrot.lane.b32.xlu1 %v9900_v0, %s7624_s0  ;;  %5115 = vrot.lane.b32.xlu0 %v10317_v51, %s7618_s2 }
0x124e   : > { %7466 = vmatpush1.bf16.msk.msra.mxu1 %vm11344_vm2, %v7465_v39  ;;  %vm11361_vm2 = vcmask 130048  }
0x124f   : > { %v10418_v17 = vpop.permute.xlu1 %5091  ;;  %v10420_v40 = vpop.permute.xlu0 %4971  ;;  %7103 = vmatprep.subr.bf16.mxu1 %v7102_v14 }
0x1250   : > { %v10425_v20 = vsel %vm11360_vm12, %v10144_v31, %v10418_v17  ;;  %vm11371_vm12 = vmmov %vm11359_vm0 }
0x1251   : > { %5743 = vrot.lane.b32.xlu1 %v9900_v0, %s7625_s16  ;;  %5247 = vrot.lane.b32.xlu0 %v9912_v1, %s7619_s21  ;;  %v11363_v0 = vld [vmem:[#allocation34_spill] sm:$0xff] }
0x1252   : > { %6061 = vmatmul.mubr.f32.vlgmr.msra.gmra.mrb[28].mxu1 %v10416_v57 }
0x1253   : > { %v10432_v60 = vpop.permute.xlu1 %5227  ;;  %v10434_v41 = vpop.permute.xlu0 %5107  ;;  %7105 = vmatpush1.bf16.msra.mxu1 %v7104_v3  ;;  %6436 = vmatprep.mubr.msk.f32.mxu1 %vm11361_vm2, %v9953_v38  ;;  %vm11372_vm2 = vmmov %vm11368_vm3 }
0x1254   : > { %v10441_v31 = vsel %vm11362_vm8, %v10157_v44, %v10432_v60  ;;  %vm11373_vm8 = vcmask 785408  }
0x1255   : > { %4857 = vrot.lane.b32.xlu1 %v11363_v0, %s7608_s22  ;;  %5251 = vrot.lane.b32.xlu0 %v10317_v51, %s7619_s21 }
0x1257   : > { %v10447_v10 = vpop.permute.xlu1 %5347  ;;  %v10449_v4 = vpop.permute.xlu0 %5243 }
0x1258   : > { %v10454_v29 = vsel %vm11364_vm6, %v10170_v19, %v10447_v10  ;;  %vm11374_vm6 = vmmov %vm11373_vm8 }
0x1259   : > { %4977 = vrot.lane.b32.xlu1 %v11363_v0, %s7603_s30  ;;  %5367 = vrot.lane.b32.xlu0 %v9912_v1, %s7620_s26  ;;  %s6412_s30 = sshll.u32 %s11460_s24, 3 }
0x125b   : > { %v10460_v44 = vpop.permute.xlu1 %5483  ;;  %v10462_v2 = vpop.permute.xlu0 %5363 }
0x125c   : > { %v10467_v24 = vsel %vm11365_vm11, %v10183_v9, %v10460_v44 }
0x125d   : > { %5113 = vrot.lane.b32.xlu1 %v11363_v0, %s7618_s2  ;;  %5371 = vrot.lane.b32.xlu0 %v10317_v51, %s7620_s26 }
0x125f   : > { %v10473_v19 = vpop.permute.xlu1 %5619  ;;  %v10475_v30 = vpop.permute.xlu0 %5499 }
0x1260   : > { %v10480_v59 = vsel %vm11366_vm15, %v10196_v52, %v10473_v19 }
0x1261   : > { %5249 = vrot.lane.b32.xlu1 %v11363_v0, %s7619_s21  ;;  %5503 = vrot.lane.b32.xlu0 %v9912_v1, %s7623_s1  ;;  %s641_s21 = scalar_lea.vmem %s10862_s20, %s6412_s30 }
0x1263   : > { %v10486_v9 = vpop.permute.xlu1 %5739  ;;  %v10488_v5 = vpop.permute.xlu0 %5635 }
0x1264   : > { %v10493_v25 = vsel %vm11367_vm1, %v10207_v58, %v10486_v9  ;;  %v11369_v58 = vld [vmem:[#allocation19_spill] sm:$0xff]  ;;  %vm11381_vm1 = vcmask 777216  }
0x1265   : > { %5369 = vrot.lane.b32.xlu1 %v11363_v0, %s7620_s26  ;;  %5507 = vrot.lane.b32.xlu0 %v10317_v51, %s7623_s1 }
0x1267   : > { %v4850_v52 = vpop.permute.xlu1 %4849  ;;  %v10499_v55 = vpop.permute.xlu0 %5755 }
0x1268   : > { %v4871_v1 = vsel %vm11357_vm9, %v10221_v34, %v4850_v52  ;;  %v4872_v36 = vsel %vm11368_vm3, %v4850_v52, %v10395_v56  ;;  %vm11382_vm9 = vmmov %vm11381_vm1 }
0x1269   : > { %5505 = vrot.lane.b32.xlu1 %v11363_v0, %s7623_s1  ;;  %v7070_v47 = vpack.c.bf16 %v4872_v36, %v11369_v58  ;;  %5639 = vrot.lane.b32.xlu0 %v5588_v61, %s7624_s0  ;;  %v7072_v49 = vpack.c.bf16 %v4871_v1, %v11370_v8  ;;  %v11375_v1 = vld [vmem:[#allocation29_spill] sm:$0xff]  ;;  %v11376_v58 = vld [vmem:[#allocation18_spill] sm:$0xff]  ;;  %v11379_v8 = vld [vmem:[#allocation8_spill] sm:$0xff] }
0x126a   : > { %vm11377_vm11 = vnez %v11376_v58  ;;  %vm11380_vm15 = vnez %v11379_v8  ;;  %vm11384_vm3 = vmmov %vm11359_vm0 }
0x126b   : > { %v4970_v43 = vpop.permute.xlu1 %4969  ;;  %7071 = vmatprep.subr.bf16.mxu0 %v7070_v47  ;;  %v10510_v14 = vpop.permute.xlu0 %4837 }
0x126c   : > { %v4991_v34 = vsel %vm11359_vm0, %v10240_v23, %v4970_v43  ;;  %v4992_v39 = vsel %vm11371_vm12, %v4970_v43, %v10420_v40  ;;  %7073 = vmatpush1.bf16.msra.mxu0 %v7072_v49  ;;  %v10519_v6 = vsel %vm11372_vm2, %v10374_v21, %v10510_v14  ;;  %v11378_v21 = vld [vmem:[#allocation36_spill] sm:$0xff]  ;;  %v5974_v49 = vld [vmem:[#allocation4] sm:$0x1]  ;;  %vm11386_vm0 = vcmask 769024  }
0x126d   : > { %5641 = vrot.lane.b32.xlu1 %v11363_v0, %s7624_s0  ;;  %5643 = vrot.lane.b32.xlu0 %v10317_v51, %s7624_s0  ;;  %v7468_v36 = vpack.c.bf16 %v4992_v39, %v11375_v1  ;;  %v7471_v47 = vpack.c.bf16 %v4991_v34, %v11378_v21  ;;  %vm11387_vm12 = vmmov %vm11386_vm0  ;;  %vm11388_vm2 = vcmask 523264  }
0x126f   : > { %v5106_v18 = vpop.permute.xlu1 %5105  ;;  %v10525_v3 = vpop.permute.xlu0 %4841  ;;  %7469 = vmatprep.subr.msk.bf16.mxu0 %vm11377_vm11, %v7468_v36 }
0x1270   : > { %v5127_v23 = vsel %vm11373_vm8, %v10256_v53, %v5106_v18  ;;  %v5128_v52 = vsel %vm11374_vm6, %v5106_v18, %v10434_v41  ;;  %7472 = vmatpush1.bf16.msk.msra.mxu0 %vm11380_vm15, %v7471_v47  ;;  %vm11389_vm8 = vmmov %vm11388_vm2 }
0x1271   : > { %5761 = vrot.lane.b32.xlu1 %v11363_v0, %s7625_s16  ;;  %5759 = vrot.lane.b32.xlu0 %v5588_v61, %s7625_s16  ;;  %v7474_v1 = vpack.c.bf16 %v5128_v52, %v10248_v28  ;;  %v7477_v61 = vpack.c.bf16 %v5127_v23, %v10244_v27  ;;  %v5844_v0 = vld [vmem:[#allocation3 + $0x78] sm:$0xff] }
0x1273   : > { %v5242_v53 = vpop.permute.xlu1 %5241  ;;  %v10540_v43 = vpop.permute.xlu0 %4957  ;;  %7475 = vmatprep.subr.msk.bf16.mxu0 %vm11290_vm7, %v7474_v1 }
0x1274   : > { %v5263_v39 = vsel %vm11381_vm1, %v10279_v62, %v5242_v53  ;;  %v5264_v18 = vsel %vm11382_vm9, %v5242_v53, %v10449_v4  ;;  %v10552_v34 = vsel %vm11384_vm3, %v10393_v12, %v10540_v43  ;;  %7478 = vmatpush1.bf16.msk.msra.mxu0 %vm11291_vm13, %v7477_v61  ;;  %vm11390_vm1 = vcmask 515072  }
0x1275   : > { %5977 = vperm.xlu1 %7221, %v5974_v49   ;;  %v7082_v62 = vpack.c.bf16 %v5264_v18, %v10264_v26  ;;  %5763 = vrot.lane.b32.xlu0 %v10317_v51, %s7625_s16  ;;  %v7084_v52 = vpack.c.bf16 %v5263_v39, %v10260_v45  ;;  %vm11391_vm9 = vmmov %vm11390_vm1  ;;  %vm11392_vm3 = vcmask 506880  }
0x1277   : > { %v5362_v28 = vpop.permute.xlu1 %5361  ;;  %7083 = vmatprep.subr.bf16.mxu0 %v7082_v62  ;;  %v10561_v21 = vpop.permute.xlu0 %4961 }
0x1278   : > { %v5383_v12 = vsel %vm11386_vm0, %v10304_v16, %v5362_v28  ;;  %v5384_v27 = vsel %vm11387_vm12, %v5362_v28, %v10462_v2  ;;  %7085 = vmatpush1.bf16.msra.mxu0 %v7084_v52  ;;  %vm11393_vm0 = vmmov %vm11392_vm3  ;;  %v5836_v28 = vld [vmem:[#allocation3 + $0x38] sm:$0xff]  ;;  %vm11396_vm12 = vcmask 1031168  }
0x1279   : > { %v7480_v45 = vpack.c.bf16 %v5384_v27, %v10287_v7  ;;  %v7483_v49 = vpack.c.bf16 %v5383_v12, %v10283_v35  ;;  %v5843_v12 = vld [vmem:[#allocation3 + $0x70] sm:$0xff] }
0x127b   : > { %v5498_v23 = vpop.permute.xlu1 %5497  ;;  %v10567_v47 = vpop.permute.xlu0 %5093  ;;  %7481 = vmatprep.subr.msk.bf16.mxu0 %vm11377_vm11, %v7480_v45 }
0x127c   : > { %v5519_v26 = vsel %vm11388_vm2, %v10325_v46, %v5498_v23  ;;  %v5520_v51 = vsel %vm11389_vm8, %v5498_v23, %v10475_v30  ;;  %v10579_v16 = vsel %vm11374_vm6, %v10418_v17, %v10567_v47  ;;  %7484 = vmatpush1.bf16.msk.msra.mxu0 %vm11380_vm15, %v7483_v49  ;;  %vm11397_vm2 = vcmask 769024  }
0x127d   : > { %v7486_v18 = vpack.c.bf16 %v5520_v51, %v10312_v63  ;;  %v7489_v17 = vpack.c.bf16 %v5519_v26, %v10308_v50 }
0x127f   : > { %v5634_v53 = vpop.permute.xlu1 %5633  ;;  %v10584_v46 = vpop.permute.xlu0 %5097  ;;  %7487 = vmatprep.subr.msk.bf16.mxu0 %vm11290_vm7, %v7486_v18  ;;  %vm11394_vm7 = vcmask 777216  }
0x1280   : > { %v5655_v39 = vsel %vm11390_vm1, %v10349_v13, %v5634_v53  ;;  %v5656_v7 = vsel %vm11391_vm9, %v5634_v53, %v10488_v5  ;;  %7490 = vmatpush1.bf16.msk.msra.mxu0 %vm11291_vm13, %v7489_v17  ;;  %vm11395_vm13 = vcmask 1039360   ;;  %vm11400_vm8 = vmmov %vm11394_vm7 }
0x1281   : > { %v7094_v35 = vpack.c.bf16 %v5656_v7, %v10333_v42  ;;  %v7096_v61 = vpack.c.bf16 %v5655_v39, %v10329_v54  ;;  %vm11402_vm1 = vmmov %vm11397_vm2 }
0x1283   : > { %v5754_v1 = vpop.permute.xlu1 %5753  ;;  %7095 = vmatprep.subr.bf16.mxu0 %v7094_v35  ;;  %v10598_v13 = vpop.permute.xlu0 %5229 }
0x1284   : > { %v5775_v62 = vsel %vm11392_vm3, %v10376_v33, %v5754_v1  ;;  %v5776_v63 = vsel %vm11393_vm0, %v5754_v1, %v10499_v55  ;;  %v10607_v50 = vsel %vm11394_vm7, %v10432_v60, %v10598_v13  ;;  %7097 = vmatpush1.bf16.msra.mxu0 %v7096_v61  ;;  %v7138_v33 = vpack.c.bf16 %v5844_v0, %v5836_v28  ;;  %v5835_v60 = vld [vmem:[#allocation3 + $0x30] sm:$0xff] }
0x1285   : > { %v7492_v52 = vpack.c.bf16 %v5776_v63, %v10357_v32  ;;  %v7495_v27 = vpack.c.bf16 %v5775_v62, %v10353_v22  ;;  %v7140_v26 = vpack.c.bf16 %v5843_v12, %v5835_v60  ;;  %vm11404_vm3 = vcmask 515072  }
0x1286   : > { %vm11405_vm0 = vmmov %vm11404_vm3  ;;  %vm11406_vm7 = vcmask 506880  }
0x1287   : > { %v4854_v42 = vpop.permute.xlu1 %4853  ;;  %v5234_v36 = vpop.permute.xlu0 %5233  ;;  %7493 = vmatprep.subr.msk.bf16.mxu0 %vm11377_vm11, %v7492_v52  ;;  %vm11398_vm11 = vcmask 130048  }
0x1288   : > { %v4873_v54 = vsel %vm11395_vm13, %v10395_v56, %v4854_v42  ;;  %7496 = vmatpush1.bf16.msk.msra.mxu0 %vm11380_vm15, %v7495_v27  ;;  %vm11399_vm15 = vmmov %vm11374_vm6  ;;  %vm11401_vm6 = vcmask 523264  }
0x1289   : > { %7139 = vmatprep.subr.bf16.mxu0 %v7138_v33  ;;  %vm11403_vm9 = vmmov %vm11401_vm6  ;;  %v7108_v12 = vpack.c.bf16 %v4873_v54, %v10381_v37 }
0x128a   : > { %vm11407_vm13 = vmmov %vm11406_vm7 }
0x128b   : > { %v4974_v23 = vpop.permute.xlu1 %4973  ;;  %v5350_v51 = vpop.permute.xlu0 %5349  ;;  %6132 = vmatmul.mubr.f32.vlgmr.msra.gmra.mrb[24].mxu0 %v10416_v57 }
0x128c   : > { %v4993_v56 = vsel %vm11396_vm12, %v10420_v40, %v4974_v23  ;;  %v10622_v32 = vsel %vm11397_vm2, %v10447_v10, %v5350_v51  ;;  %7141 = vmatpush1.bf16.msra.mxu0 %v7140_v26  ;;  %6437 = vmatprep.mubr.msk.f32.mxu0 %vm11398_vm11, %v9953_v38  ;;  %vm11408_vm12 = vcmask 1039360   ;;  %vm11410_vm11 = vcmask 1031168  }
0x128d   : > { %vm11409_vm2 = vmmov %vm11408_vm12 }
0x128f   : > { %v5110_v22 = vpop.permute.xlu1 %5109  ;;  %v5354_v58 = vpop.permute.xlu0 %5353 }
0x1290   : > { %v5129_v8 = vsel %vm11399_vm15, %v10434_v41, %v5110_v22  ;;  %vm11411_vm15 = vmmov %vm11410_vm11 }
0x1293   : > { %v10628_v45 = vpop.permute.xlu1 %5245  ;;  %v5486_v49 = vpop.permute.xlu0 %5485 }
0x1294   : > { %v10633_v40 = vsel %vm11400_vm8, %v10449_v4, %v10628_v45  ;;  %v10637_v10 = vsel %vm11401_vm6, %v10460_v44, %v5486_v49  ;;  %vm11412_vm8 = vmmov %vm11409_vm2  ;;  %vm11413_vm6 = vcmask 785408  }
0x1297   : > { %v10639_v53 = vpop.permute.xlu1 %5365  ;;  %v5490_v38 = vpop.permute.xlu0 %5489 }
0x1298   : > { %v10644_v39 = vsel %vm11402_vm1, %v10462_v2, %v10639_v53  ;;  %vm11414_vm1 = vmmov %vm11413_vm6 }
0x129b   : > { %v10646_v41 = vpop.permute.xlu1 %5501  ;;  %v5622_v7 = vpop.permute.xlu0 %5621 }
0x129c   : > { %v10651_v4 = vsel %vm11403_vm9, %v10475_v30, %v10646_v41  ;;  %v10655_v44 = vsel %vm11404_vm3, %v10473_v19, %v5622_v7  ;;  %vm11415_vm9 = vcmask 777216  }
0x129d   : > { %vm11416_vm3 = vmmov %vm11415_vm9 }
0x129f   : > { %v10657_v18 = vpop.permute.xlu1 %5637  ;;  %v5626_v17 = vpop.permute.xlu0 %5625 }
0x12a0   : > { %v10662_v2 = vsel %vm11405_vm0, %v10488_v5, %v10657_v18  ;;  %vm11417_vm0 = vmmov %vm11410_vm11 }
0x12a3   : > { %v10664_v35 = vpop.permute.xlu1 %5757  ;;  %v5742_v1 = vpop.permute.xlu0 %5741 }
0x12a4   : > { %v10669_v30 = vsel %vm11406_vm7, %v10499_v55, %v10664_v35  ;;  %v10673_v19 = vsel %vm11407_vm13, %v10486_v9, %v5742_v1  ;;  %vm11418_vm7 = vcmask 769024  }
0x12a5   : > { %vm11419_vm13 = vmmov %vm11418_vm7 }
0x12a7   : > { %v4840_v61 = vpop.permute.xlu1 %4839  ;;  %v5746_v62 = vpop.permute.xlu0 %5745 }
0x12a8   : > { %v4867_v63 = vsel %vm11408_vm12, %v10510_v14, %v4840_v61  ;;  %v4868_v5 = vsel %vm11409_vm2, %v4840_v61, %v10525_v3 }
0x12ab   : > { %v4960_v0 = vpop.permute.xlu1 %4959  ;;  %v4856_v28 = vpop.permute.xlu0 %4855 }
0x12ac   : > { %v10681_v52 = vsel %vm11410_vm11, %v10540_v43, %v4960_v0  ;;  %v10685_v55 = vsel %vm11411_vm15, %v4960_v0, %v10561_v21  ;;  %v4874_v9 = vsel %vm11412_vm8, %v4854_v42, %v4856_v28  ;;  %v11420_v0 = vld [vmem:[#allocation21_spill] sm:$0xff]  ;;  %vm11424_vm11 = vcmask 523264   ;;  %vm11426_vm8 = vmmov %vm11414_vm1 }
0x12ad   : > { %v7106_v33 = vpack.c.bf16 %v4874_v9, %v10519_v6  ;;  %vm11421_vm12 = vnez %v11420_v0  ;;  %v11422_v9 = vld [vmem:[#allocation22_spill] sm:$0xff]  ;;  %vm11425_vm15 = vmmov %vm11424_vm11 }
0x12ae   : > { %vm11423_vm2 = vnez %v11422_v9 }
0x12af   : > { %v5096_v14 = vpop.permute.xlu1 %5095  ;;  %v4860_v27 = vpop.permute.xlu0 %4859  ;;  %7107 = vmatprep.subr.bf16.mxu1 %v7106_v33 }
0x12b0   : > { %v10692_v3 = vsel %vm11413_vm6, %v10567_v47, %v5096_v14  ;;  %v10696_v43 = vsel %vm11414_vm1, %v5096_v14, %v10584_v46  ;;  %7109 = vmatpush1.bf16.msra.mxu1 %v7108_v12  ;;  %vm11427_vm6 = vcmask 515072  }
0x12b1   : > { %vm11428_vm1 = vmmov %vm11427_vm6 }
0x12b3   : > { %v5232_v21 = vpop.permute.xlu1 %5231  ;;  %v4976_v60 = vpop.permute.xlu0 %4975 }
0x12b4   : > { %v10700_v42 = vsel %vm11415_vm9, %v10598_v13, %v5232_v21  ;;  %v10703_v37 = vsel %vm11416_vm3, %v5232_v21, %v5234_v36  ;;  %v4994_v6 = vsel %vm11417_vm0, %v4974_v23, %v4976_v60  ;;  %v7501_v13 = vpack.c.bf16 %v4993_v56, %v10400_v15  ;;  %v11429_v21 = vld [vmem:[#allocation31_spill] sm:$0xff] }
0x12b5   : > { %v7498_v61 = vpack.c.bf16 %v4994_v6, %v10552_v34  ;;  %vm11430_vm9 = vnez %v11429_v21  ;;  %v11431_v6 = vld [vmem:[#allocation23_spill] sm:$0xff]  ;;  %vm11433_vm0 = vcmask 506880  }
0x12b6   : > { %vm11432_vm3 = vnez %v11431_v6 }
0x12b7   : > { %v5352_v54 = vpop.permute.xlu1 %5351  ;;  %v4980_v26 = vpop.permute.xlu0 %4979  ;;  %7499 = vmatprep.subr.msk.bf16.mxu1 %vm11421_vm12, %v7498_v61  ;;  %v7120_v61 = vpack.c.bf16 %v10633_v40, %v10441_v31 }
0x12b8   : > { %v10707_v47 = vsel %vm11418_vm7, %v5350_v51, %v5352_v54  ;;  %v10710_v46 = vsel %vm11419_vm13, %v5352_v54, %v5354_v58  ;;  %7502 = vmatpush1.bf16.msk.msra.mxu1 %vm11423_vm2, %v7501_v13  ;;  %vm11434_vm7 = vmmov %vm11433_vm0  ;;  %vm11435_vm13 = vcmask 777216  }
0x12bb   : > { %v5488_v36 = vpop.permute.xlu1 %5487  ;;  %v5112_v23 = vpop.permute.xlu0 %5111 }
0x12bc   : > { %v10719_v33 = vsel %vm11424_vm11, %v5486_v49, %v5488_v36  ;;  %v10722_v51 = vsel %vm11425_vm15, %v5488_v36, %v5490_v38  ;;  %v5130_v58 = vsel %vm11426_vm8, %v5110_v22, %v5112_v23  ;;  %v7507_v49 = vpack.c.bf16 %v5129_v8, %v10425_v20 }
0x12bd   : > { %v7504_v56 = vpack.c.bf16 %v5130_v58, %v10579_v16  ;;  %vm11436_vm11 = vcmask 1039360   ;;  %vm11438_vm8 = vcmask 1031168  }
0x12be   : > { %vm11437_vm15 = vmmov %vm11436_vm11 }
0x12bf   : > { %v5624_v12 = vpop.permute.xlu1 %5623  ;;  %v5116_v34 = vpop.permute.xlu0 %5115  ;;  %7505 = vmatprep.subr.msk.bf16.mxu1 %vm11430_vm9, %v7504_v56 }
0x12c0   : > { %v10726_v14 = vsel %vm11427_vm6, %v5622_v7, %v5624_v12  ;;  %v10729_v15 = vsel %vm11428_vm1, %v5624_v12, %v5626_v17  ;;  %7508 = vmatpush1.bf16.msk.msra.mxu1 %vm11432_vm3, %v7507_v49  ;;  %vm11439_vm6 = vmmov %vm11438_vm8  ;;  %vm11440_vm1 = vcmask 769024  }
0x12c3   : > { %v5744_v38 = vpop.permute.xlu1 %5743  ;;  %v5248_v22 = vpop.permute.xlu0 %5247 }
0x12c4   : > { %v10738_v54 = vsel %vm11433_vm0, %v5742_v1, %v5744_v38  ;;  %v10741_v7 = vsel %vm11434_vm7, %v5744_v38, %v5746_v62  ;;  %v5266_v17 = vsel %vm11435_vm13, %v10628_v45, %v5248_v22  ;;  %vm11441_vm0 = vcmask 785408  }
0x12c5   : > { %v7118_v16 = vpack.c.bf16 %v5266_v17, %v10607_v50  ;;  %vm11442_vm7 = vmmov %vm11441_vm0 }
0x12c7   : > { %v4858_v20 = vpop.permute.xlu1 %4857  ;;  %v5252_v8 = vpop.permute.xlu0 %5251  ;;  %7119 = vmatprep.subr.bf16.mxu1 %v7118_v16 }
0x12c8   : > { %v4875_v13 = vsel %vm11436_vm11, %v4856_v28, %v4858_v20  ;;  %v4876_v36 = vsel %vm11437_vm15, %v4858_v20, %v4860_v27  ;;  %7121 = vmatpush1.bf16.msra.mxu1 %v7120_v61  ;;  %vm11445_vm11 = vmmov %vm11435_vm13  ;;  %vm11447_vm15 = vcmask 523264  }
0x12c9   : > { %v7142_v1 = vpack.c.bf16 %v4876_v36, %v4868_v5  ;;  %v7144_v58 = vpack.c.bf16 %v4875_v13, %v4867_v63 }
0x12cb   : > { %v4978_v62 = vpop.permute.xlu1 %4977  ;;  %7143 = vmatprep.subr.bf16.mxu0 %v7142_v1  ;;  %v5368_v12 = vpop.permute.xlu0 %5367 }
0x12cc   : > { %v4995_v45 = vsel %vm11438_vm8, %v4976_v60, %v4978_v62  ;;  %v4996_v50 = vsel %vm11439_vm6, %v4978_v62, %v4980_v26  ;;  %7145 = vmatpush1.bf16.msra.mxu0 %v7144_v58  ;;  %v5386_v31 = vsel %vm11440_vm1, %v10639_v53, %v5368_v12  ;;  %v7519_v53 = vpack.c.bf16 %v10644_v39, %v10454_v29  ;;  %vm11449_vm8 = vmmov %vm11440_vm1 }
0x12cd   : > { %v7510_v5 = vpack.c.bf16 %v4996_v50, %v10685_v55  ;;  %v7513_v49 = vpack.c.bf16 %v5386_v31, %v10622_v32  ;;  %v7516_v60 = vpack.c.bf16 %v4995_v45, %v10681_v52  ;;  %vm11450_vm6 = vmmov %vm11440_vm1 }
0x12ce   : > { %vm11451_vm1 = vmmov %vm11447_vm15 }
0x12cf   : > { %v5114_v40 = vpop.permute.xlu1 %5113  ;;  %v5372_v56 = vpop.permute.xlu0 %5371  ;;  %7511 = vmatprep.subr.msk.bf16.mxu0 %vm9623_vm14, %v7510_v5  ;;  %7514 = vmatprep.subr.msk.bf16.mxu1 %vm11421_vm12, %v7513_v49 }
0x12d0   : > { %v5131_v28 = vsel %vm11441_vm0, %v5112_v23, %v5114_v40  ;;  %v5132_v27 = vsel %vm11442_vm7, %v5114_v40, %v5116_v34  ;;  %7517 = vmatpush1.bf16.msk.msra.mxu0 %vm9632_vm10, %v7516_v60  ;;  %7520 = vmatpush1.bf16.msk.msra.mxu1 %vm11423_vm2, %v7519_v53  ;;  %vm11452_vm0 = vmmov %vm11451_vm1  ;;  %vm11453_vm7 = vcmask 515072  }
0x12d1   : > { %v7522_v38 = vpack.c.bf16 %v5132_v27, %v10696_v43  ;;  %v7525_v16 = vpack.c.bf16 %v5131_v28, %v10692_v3 }
0x12d3   : > { %v5250_v55 = vpop.permute.xlu1 %5249  ;;  %v5504_v23 = vpop.permute.xlu0 %5503  ;;  %7523 = vmatprep.subr.msk.bf16.mxu0 %vm9413_vm5, %v7522_v38 }
0x12d4   : > { %v5267_v34 = vsel %vm11435_vm13, %v5248_v22, %v5250_v55  ;;  %v5268_v32 = vsel %vm11445_vm11, %v5250_v55, %v5252_v8  ;;  %v5522_v52 = vsel %vm11447_vm15, %v10646_v41, %v5504_v23  ;;  %7526 = vmatpush1.bf16.msk.msra.mxu0 %vm9649_vm4, %v7525_v16  ;;  %v7531_v41 = vpack.c.bf16 %v10651_v4, %v10467_v24 }
0x12d5   : > { %v7154_v39 = vpack.c.bf16 %v5268_v32, %v10703_v37  ;;  %v7156_v22 = vpack.c.bf16 %v5267_v34, %v10700_v42  ;;  %v7528_v13 = vpack.c.bf16 %v5522_v52, %v10637_v10  ;;  %v7132_v4 = vpack.c.bf16 %v10662_v2, %v10480_v59 }
0x12d6   : > { %vm11456_vm13 = vcmask 506880  }
0x12d7   : > { %v5370_v61 = vpop.permute.xlu1 %5369  ;;  %7155 = vmatprep.subr.bf16.mxu0 %v7154_v39  ;;  %v5508_v20 = vpop.permute.xlu0 %5507  ;;  %7529 = vmatprep.subr.msk.bf16.mxu1 %vm11430_vm9, %v7528_v13  ;;  %vm11454_vm9 = vmmov %vm11453_vm7 }
0x12d8   : > { %v5387_v43 = vsel %vm11449_vm8, %v5368_v12, %v5370_v61  ;;  %v5388_v8 = vsel %vm11450_vm6, %v5370_v61, %v5372_v56  ;;  %7157 = vmatpush1.bf16.msra.mxu0 %v7156_v22  ;;  %7532 = vmatpush1.bf16.msk.msra.mxu1 %vm11432_vm3, %v7531_v41  ;;  %vm11455_vm3 = vmmov %vm11453_vm7 }
0x12d9   : > { %v7534_v10 = vpack.c.bf16 %v5388_v8, %v10710_v46  ;;  %v7537_v21 = vpack.c.bf16 %v5387_v43, %v10707_v47  ;;  %vm11457_vm11 = vmmov %vm11456_vm13 }
0x12db   : > { %v5506_v3 = vpop.permute.xlu1 %5505  ;;  %v5640_v37 = vpop.permute.xlu0 %5639  ;;  %7535 = vmatprep.subr.msk.bf16.mxu0 %vm9623_vm14, %v7534_v10 }
0x12dc   : > { %v5523_v42 = vsel %vm11451_vm1, %v5504_v23, %v5506_v3  ;;  %v5524_v36 = vsel %vm11452_vm0, %v5506_v3, %v5508_v20  ;;  %v5658_v1 = vsel %vm11453_vm7, %v10657_v18, %v5640_v37  ;;  %7538 = vmatpush1.bf16.msk.msra.mxu0 %vm9632_vm10, %v7537_v21 }
0x12dd   : > { %v7130_v24 = vpack.c.bf16 %v5658_v1, %v10655_v44  ;;  %v7540_v62 = vpack.c.bf16 %v5524_v36, %v10722_v51  ;;  %v7543_v47 = vpack.c.bf16 %v5523_v42, %v10719_v33 }
0x12df   : > { %v5642_v6 = vpop.permute.xlu1 %5641  ;;  %v5644_v58 = vpop.permute.xlu0 %5643  ;;  %7131 = vmatprep.subr.bf16.mxu1 %v7130_v24  ;;  %7541 = vmatprep.subr.msk.bf16.mxu0 %vm9413_vm5, %v7540_v62  ;;  %vm11458_vm5 = vmmov %vm11457_vm11 }
0x12e0   : > { %v5659_v18 = vsel %vm11454_vm9, %v5640_v37, %v5642_v6  ;;  %v5660_v46 = vsel %vm11455_vm3, %v5642_v6, %v5644_v58  ;;  %7133 = vmatpush1.bf16.msra.mxu1 %v7132_v4  ;;  %7544 = vmatpush1.bf16.msk.msra.mxu0 %vm9649_vm4, %v7543_v47 }
0x12e1   : > { %v7166_v59 = vpack.c.bf16 %v5660_v46, %v10729_v15  ;;  %v7168_v2 = vpack.c.bf16 %v5659_v18, %v10726_v14  ;;  %v7549_v15 = vpack.c.bf16 %v10669_v30, %v10493_v25 }
0x12e3   : > { %v5762_v44 = vpop.permute.xlu1 %5761  ;;  %7167 = vmatprep.subr.bf16.mxu0 %v7166_v59  ;;  %v5760_v12 = vpop.permute.xlu0 %5759 }
0x12e4   : > { %v5778_v45 = vsel %vm11456_vm13, %v10664_v35, %v5760_v12  ;;  %v5779_v51 = vsel %vm11457_vm11, %v5760_v12, %v5762_v44  ;;  %7169 = vmatpush1.bf16.msra.mxu0 %v7168_v2 }
0x12e5   : > { %v7546_v33 = vpack.c.bf16 %v5778_v45, %v10673_v19  ;;  %v7555_v14 = vpack.c.bf16 %v5779_v51, %v10738_v54  ;;  %v7626_v19 = vmov 1966171168  }
0x12e6   : > { %v6293_v0 = vunpack.c.l.s4 %v7626_v19 }
0x12e7   : > { %v5764_v50 = vpop.permute.xlu0 %5763  ;;  %7547 = vmatprep.subr.msk.bf16.mxu1 %vm11421_vm12, %v7546_v33 }
0x12e8   : > { %v5780_v31 = vsel %vm11458_vm5, %v5762_v44, %v5764_v50  ;;  %7550 = vmatpush1.bf16.msk.msra.mxu1 %vm11423_vm2, %v7549_v15  ;;  %v6294_v30 = vunpack.c.0.s8 %v6293_v0 }
0x12e9   : > { %v7552_v35 = vpack.c.bf16 %v5780_v31, %v10741_v7 }
0x12ea   : > { %v6297_v28 = vsub.s32 %v6294_v30, %v9938_v48 }
0x12eb   : > { %6203 = vmatmul.mubr.f32.vlgmr.msra.gmra.mrb[30].mxu1 %v10416_v57  ;;  %7553 = vmatprep.subr.msk.bf16.mxu0 %vm9623_vm14, %v7552_v35 }
0x12ec   : > { %7556 = vmatpush1.bf16.msk.msra.mxu0 %vm9632_vm10, %v7555_v14 }
0x12ef   : > { %6274 = vmatmul.mubr.f32.vlgmr.msra.gmra.mrb[26].mxu0 %v10416_v57 }
0x12f4   : > { %v5978_v25 = vpop.permute.xlu1 %5977 }
0x12f5   : > { %v5983_v9 = vrot.slane %v5978_v25, %v5982_v11 }
0x1325   : > { %v6062_v40 = vpop.f32.mrb[28].mxu1 }
0x1326   : > { %v6063_v56 = vadd.f32 %v6062_v40, %v5983_v9  ;;  %v6064_v7 = vpop.f32.mrb[29].mxu1 }
0x1327   : > { %v6065_v27 = vadd.f32 %v6064_v7, %v5983_v9 }
0x1329   : > { %v6288_v5 = vcombine.low %v6063_v56, %v6065_v27 }
0x132b   : > { %v6298_v54 = vrot.slane %v6288_v5, %v6297_v28 }
0x135e   : > { %v6133_v63 = vpop.f32.mrb[24].mxu0 }
0x135f   : > { %v6134_v49 = vadd.f32 %v6133_v63, %v5983_v9  ;;  %v6135_v60 = vpop.f32.mrb[25].mxu0 }
0x1360   : > { %v6136_v26 = vadd.f32 %v6135_v60, %v5983_v9 }
0x1362   : > { %v6289_v57 = vcombine.low %v6134_v49, %v6136_v26 }
0x1364   : > { %v6305_v53 = vrot.slane %v6289_v57, %v6297_v28 }
0x1366   : > { %v6320_v55 = vcombine.low %v6298_v54, %v6305_v53 }
0x1368   : > { %v6328_v23 = vrot.slane %v6320_v55, %v6297_v28 }
0x13be   : > { %v6204_v34 = vpop.f32.mrb[30].mxu1 }
0x13bf   : > { %v6205_v32 = vadd.f32 %v6204_v34, %v5983_v9  ;;  %v6206_v11 = vpop.f32.mrb[31].mxu1 }
0x13c0   : > { %v6207_v38 = vadd.f32 %v6206_v11, %v5983_v9 }
0x13c2   : > { %v6290_v17 = vcombine.low %v6205_v32, %v6207_v38  ;;  %v6275_v52 = vpop.f32.mrb[26].mxu0 }
0x13c3   : > { %v6276_v16 = vadd.f32 %v6275_v52, %v5983_v9  ;;  %v6277_v48 = vpop.f32.mrb[27].mxu0 }
0x13c4   : > { %v6312_v29 = vrot.slane %v6290_v17, %v6297_v28  ;;  %v6278_v39 = vadd.f32 %v6277_v48, %v5983_v9 }
0x13c6   : > { %v6291_v61 = vcombine.low %v6276_v16, %v6278_v39 }
0x13c8   : > { %v6319_v22 = vrot.slane %v6291_v61, %v6297_v28 }
0x13ca   : > { %v6321_v20 = vcombine.low %v6312_v29, %v6319_v22 }
0x13cc   : > { %v6335_v43 = vrot.slane %v6321_v20, %v6297_v28 }
0x13ce   : > { %v6336_v8 = vcombine.low %v6328_v23, %v6335_v43 }
0x13d0   : > { %6338 = vst [vmem:[%s641_s21] sm:$0xff] %v6336_v8 }
0x13d1 PF: > { %s33_s23 = sadd.s32 1, %s7595_s23  }
0x13d2   : > { %p30_p3 = scmp.ge.s32.totalorder %s33_s23, 4  }
0x13d4   :  { %32 = sbr.rel (!%p30_p3) target bundleno = 7 (0x7), region = 135 }
0x13db   :  { %6358 = vsyncpa [#allocation6], 1 }
0x13dc   :  { %6360 = vsyncpa [#allocation6 + $0x1], 1 }

</bundles_post_ra>
